<compile_context>
chip_gen: v7x
topology: tpu7x:2x2x1
jax: 0.10.0
libtpu: 0.0.40
codegen_flags: <defaults>
</compile_context>

<pallas_src>
import jax
import jax.numpy as jnp
from jax.experimental import pallas as pl
from jax.experimental.pallas import tpu as pltpu

IN_DIM = 224 * 224 * 3     # 150528
HID = 512
OUT = 128

TK = 21504                 # 150528 / 21504 = 7 K-tiles
DEQ_CHUNK = 5376           # 21504 / 5376 = 4 dequant sub-chunks (5376 = 42 * 128)
N_CHUNKS = TK // DEQ_CHUNK


def _default_n_split():
    """Split HID across the two TensorCores only on 2-core chips (v7x)."""
    try:
        kind = jax.devices()[0].device_kind.lower()
    except Exception:
        return 1
    # TODO(synk): verify on real v7x (xprof) that the leading "parallel" axis
    # truly shards across both TensorCores; if not, switch it to CORE_PARALLEL.
    return 2 if any(tag in kind for tag in ("v7", "tpu7", "tpu 7")) else 1


def encoder_kernel(x_ref, w1q_ref, scale_ref, b1_ref, w2_ref, y_ref, acc_ref):
    """Grid = (n, k): n tiles HID ("parallel"; one HID half per TensorCore on
    v7x), k tiles the 150528-long reduction ("arbitrary", innermost).

      x_ref:     (B_pad, TK)  f32   K-slab of the flattened images
      w1q_ref:   (TK, TN)     int8  contiguous K/N-slab of quantized W1
      scale_ref: (1, TN)      f32   per-output-channel dequant scale
      b1_ref:    (1, TN)      f32
      w2_ref:    (TN, OUT)    f32   N-slab of the second Linear (fused)
      y_ref:     (B_pad, OUT) f32   this n-block's layer-2 partial output
      acc_ref:   (B_pad, TN)  f32   running sum of x_bf16 @ W1_q for this n-block
    """
    k = pl.program_id(1)

    @pl.when(k == 0)
    def _():
        acc_ref[...] = jnp.zeros_like(acc_ref)

    # Dequantize W1 in sub-chunks so the bf16 temp stays a few MiB instead of
    # materializing the whole (TK, TN) tile.  The per-column scale commutes with
    # the K-reduction, so the hot loop is only int8->bf16 cast + MXU dot.
    @pl.loop(0, N_CHUNKS)
    def _(c):
        start = pl.multiple_of(c * DEQ_CHUNK, DEQ_CHUNK)
        xb = x_ref[:, pl.ds(start, DEQ_CHUNK)].astype(jnp.bfloat16)      # (B_pad, C)
        wb = w1q_ref[pl.ds(start, DEQ_CHUNK), :].astype(jnp.bfloat16)    # (C, TN)
        acc_ref[...] += jnp.dot(xb, wb, preferred_element_type=jnp.float32)

    @pl.when(k == pl.num_programs(1) - 1)
    def _():
        h = jnp.maximum(acc_ref[...] * scale_ref[...] + b1_ref[...], 0.0)
        # Fused second Linear: (B_pad, TN) @ (TN, OUT); partials summed in wrapper.
        y_ref[...] = jnp.dot(h.astype(jnp.bfloat16),
                             w2_ref[...].astype(jnp.bfloat16),
                             preferred_element_type=jnp.float32)


def encoder_forward(x, w1q, w1_scale, b1, w2, b2):
    """x: (B, IN_DIM) f32.
    w1q: (n_split, IN_DIM, HID//n_split) int8 (per-core-contiguous pre-split W1).
    w1_scale: (1, HID) f32; b1: (1, HID) f32; w2: (HID, OUT) f32; b2: (1, OUT) f32.
    Returns (B, OUT) f32 = Linear2(ReLU(Linear1(x)))."""
    B = x.shape[0]
    n_split = w1q.shape[0]
    TN = HID // n_split
    assert w1q.shape == (n_split, IN_DIM, TN)
    assert IN_DIM % TK == 0 and TK % DEQ_CHUNK == 0

    # Pad batch only to the sublane multiple (8); MXU utilization is irrelevant
    # for a weight-streaming-bound kernel.
    B_pad = max(8, ((B + 7) // 8) * 8)
    if B_pad != B:
        x = jnp.pad(x, ((0, B_pad - B), (0, 0)))

    k_tiles = IN_DIM // TK

    cost = pl.CostEstimate(
        flops=2 * B_pad * IN_DIM * HID + 2 * B_pad * HID * OUT,
        transcendentals=0,
        bytes_accessed=int(IN_DIM * HID * 1                  # W1 int8 stream
                           + n_split * B_pad * IN_DIM * 4    # x slabs (f32, per n)
                           + n_split * B_pad * OUT * 4       # partial outputs
                           + HID * (OUT + 3) * 4),           # w2, b1, scale
    )

    # int8 W1 double-buffer dominates VMEM: 2*TK*TN bytes = 22 MiB (n_split=1)
    # or 11 MiB (n_split=2), plus a ~5 MiB bf16 dequant chunk + x slabs.
    vmem_limit = (56 if n_split == 1 else 32) * 1024 * 1024

    y_parts = pl.pallas_call(
        encoder_kernel,
        out_shape=jax.ShapeDtypeStruct((n_split, B_pad, OUT), jnp.float32),
        grid_spec=pltpu.PrefetchScalarGridSpec(
            num_scalar_prefetch=0,
            grid=(n_split, k_tiles),
            in_specs=[
                pl.BlockSpec((B_pad, TK), lambda n, k: (0, k)),         # x (f32)
                pl.BlockSpec((None, TK, TN), lambda n, k: (n, k, 0)),   # W1 int8
                pl.BlockSpec((1, TN), lambda n, k: (0, n)),             # scale
                pl.BlockSpec((1, TN), lambda n, k: (0, n)),             # b1
                pl.BlockSpec((TN, OUT), lambda n, k: (n, 0)),           # w2 N-slab
            ],
            out_specs=pl.BlockSpec((None, B_pad, OUT), lambda n, k: (n, 0, 0)),
            scratch_shapes=[pltpu.VMEM((B_pad, TN), jnp.float32)],
        ),
        compiler_params=pltpu.CompilerParams(
            dimension_semantics=("parallel", "arbitrary"),
            vmem_limit_bytes=vmem_limit,
        ),
        cost_estimate=cost,
    )(x, w1q, w1_scale, b1, w2)

    # Sum the per-core layer-2 partials, add bias, drop padded batch rows.
    return y_parts.sum(axis=0)[:B] + b2


def init_params(key, n_split):
    """PyTorch-Linear-style init (U(-1/sqrt(fan_in), 1/sqrt(fan_in))).  W1 is
    stored as symmetric per-output-channel int8 + f32 scale, pre-split into the
    (n_split, IN_DIM, HID//n_split) per-TensorCore-contiguous layout."""
    k1, k2, k3, k4 = jax.random.split(key, 4)
    s1 = 1.0 / jnp.sqrt(IN_DIM)
    s2 = 1.0 / jnp.sqrt(HID)
    w1 = jax.random.uniform(k1, (IN_DIM, HID), jnp.float32, -s1, s1)
    b1 = jax.random.uniform(k2, (1, HID), jnp.float32, -s1, s1)
    w2 = jax.random.uniform(k3, (HID, OUT), jnp.float32, -s2, s2)
    b2 = jax.random.uniform(k4, (1, OUT), jnp.float32, -s2, s2)

    scale = (jnp.max(jnp.abs(w1), axis=0, keepdims=True) / 127.0).astype(jnp.float32)
    w1q = jnp.clip(jnp.round(w1 / scale), -127, 127).astype(jnp.int8)    # (IN, HID)
    TN = HID // n_split
    w1q_split = jnp.transpose(w1q.reshape(IN_DIM, n_split, TN), (1, 0, 2))
    return w1q_split, scale, b1, w2, b2


if __name__ == "__main__":
    n_split = _default_n_split()
    key = jax.random.PRNGKey(0)
    kp, kx = jax.random.split(key)
    w1q, w1_scale, b1, w2, b2 = init_params(kp, n_split)

    B = 2
    x = jax.random.uniform(kx, (B, IN_DIM), jnp.float32)  # flattened 224x224x3 images

    fwd = jax.jit(encoder_forward)
    y = jax.block_until_ready(fwd(x, w1q, w1_scale, b1, w2, b2))

    # Pure-JAX reference using the SAME dequantized int8 weights and bf16-rounded
    # x, so the kernel-vs-reference delta is only bf16 rounding / accumulation
    # order (NOT quantization error) — hence the loosened 2e-2 tolerance.
    TN = HID // n_split
    w1_deq = (jnp.transpose(w1q, (1, 0, 2)).reshape(IN_DIM, HID).astype(jnp.float32)
              * w1_scale)
    x_r = x.astype(jnp.bfloat16).astype(jnp.float32)
    h_ref = jnp.maximum(x_r @ w1_deq + b1, 0.0)
    y_ref = h_ref @ w2 + b2

    assert y.shape == (B, OUT)
    err = float(jnp.max(jnp.abs(y - y_ref)))
    assert jnp.allclose(y, y_ref, atol=2e-2, rtol=2e-2), f"mismatch vs reference: {err}"

    print("KERNEL_OK")
</pallas_src>

<mosaic_0001>
module attributes {stable_mosaic.version = 11 : i64} {
  func.func @encoder_kernel(%arg0: i32, %arg1: i32, %arg2: memref<8x21504xf32, #tpu.memory_space<vmem>>, %arg3: memref<1x21504x512xi8, #tpu.memory_space<vmem>>, %arg4: memref<1x512xf32, #tpu.memory_space<vmem>>, %arg5: memref<1x512xf32, #tpu.memory_space<vmem>>, %arg6: memref<512x128xf32, #tpu.memory_space<vmem>>, %arg7: memref<1x8x128xf32, #tpu.memory_space<vmem>>, %arg8: memref<8x512xf32, #tpu.memory_space<vmem>>) attributes {dimension_semantics = [#tpu.dimension_semantics<parallel>, #tpu.dimension_semantics<arbitrary>], iteration_bounds = array<i64: 1, 7>, scalar_prefetch = 0 : i64, scratch_operands = 1 : i64, tpu.core_type = #tpu.core_type<tc>, window_params = [{transform_indices = @transform_0, window_bounds = array<i64: 8, 21504>}, {transform_indices = @transform_1, window_bounds = array<i64: 1, 21504, 512>}, {transform_indices = @transform_2, window_bounds = array<i64: 1, 512>}, {transform_indices = @transform_3, window_bounds = array<i64: 1, 512>}, {transform_indices = @transform_4, window_bounds = array<i64: 512, 128>}, {transform_indices = @transform_5, window_bounds = array<i64: 1, 8, 128>}]} {
    %c0_i32 = arith.constant 0 : i32
    %0 = arith.cmpi eq, %arg1, %c0_i32 : i32
    %1 = arith.extui %0 : i1 to i32
    %c0_i32_0 = arith.constant 0 : i32
    %2 = arith.cmpi ne, %1, %c0_i32_0 : i32
    scf.if %2 {
      %cst = arith.constant 0.000000e+00 : f32
      %7 = vector.broadcast %cst : f32 to vector<8x512xf32>
      %c0 = arith.constant 0 : index
      %c0_4 = arith.constant 0 : index
      %8 = vector.load %arg8[%c0, %c0_4] : memref<8x512xf32, #tpu.memory_space<vmem>>, vector<8x512xf32>
      tpu.vector_store %arg8[%c0, %c0_4], %7 {strides = array<i32>} : memref<8x512xf32, #tpu.memory_space<vmem>>, vector<8x512xf32>,
    } else {
    }
    %c0_i32_1 = arith.constant 0 : i32
    %c4_i32 = arith.constant 4 : i32
    %3 = arith.addi %c0_i32_1, %c4_i32 : i32
    %c1_i32 = arith.constant 1 : i32
    scf.for %arg9 = %c0_i32_1 to %3 step %c1_i32  : i32 {
      %c1_i32_4 = arith.constant 1 : i32
      %7 = arith.muli %arg9, %c1_i32_4 : i32
      %c0_i32_5 = arith.constant 0 : i32
      %8 = arith.addi %c0_i32_5, %7 : i32
      %c5376_i32 = arith.constant 5376 : i32
      %9 = arith.muli %8, %c5376_i32 : i32
      %10 = tpu.assume_multiple %9, 5376 : i32
      %c0 = arith.constant 0 : index
      %11 = arith.index_cast %10 : i32 to index
      %12 = vector.load %arg2[%c0, %11] : memref<8x21504xf32, #tpu.memory_space<vmem>>, vector<8x5376xf32>
      %13 = arith.truncf %12 : vector<8x5376xf32> to vector<8x5376xbf16>
      %c0_6 = arith.constant 0 : index
      %14 = arith.index_cast %10 : i32 to index
      %c0_7 = arith.constant 0 : index
      %15 = vector.load %arg3[%c0_6, %14, %c0_7] : memref<1x21504x512xi8, #tpu.memory_space<vmem>>, vector<1x5376x512xi8>
      %16 = vector.shape_cast %15 : vector<1x5376x512xi8> to vector<5376x512xi8>
      %17 = arith.sitofp %16 : vector<5376x512xi8> to vector<5376x512xbf16>
      %c0_8 = arith.constant 0 : index
      %c0_9 = arith.constant 0 : index
      %18 = vector.load %arg8[%c0_8, %c0_9] : memref<8x512xf32, #tpu.memory_space<vmem>>, vector<8x512xf32>
      %cst = arith.constant dense<0.000000e+00> : vector<8x512xf32>
      %19 = tpu.matmul %13, %17, %cst {dimension_numbers = #tpu.dot_dimension_numbers<[1], [0], [0], [1], [0, 0, 1, 1], [], []>} : vector<8x5376xbf16>, vector<5376x512xbf16>, vector<8x512xf32> -> vector<8x512xf32>
      %20 = arith.addf %18, %19 : vector<8x512xf32>
      %c0_10 = arith.constant 0 : index
      %c0_11 = arith.constant 0 : index
      %21 = vector.load %arg8[%c0_10, %c0_11] : memref<8x512xf32, #tpu.memory_space<vmem>>, vector<8x512xf32>
      tpu.vector_store %arg8[%c0_10, %c0_11], %20 {strides = array<i32>} : memref<8x512xf32, #tpu.memory_space<vmem>>, vector<8x512xf32>,
    }
    %c4_i32_2 = arith.constant 4 : i32
    %c6_i32 = arith.constant 6 : i32
    %4 = arith.cmpi eq, %arg1, %c6_i32 : i32
    %5 = arith.extui %4 : i1 to i32
    %c0_i32_3 = arith.constant 0 : i32
    %6 = arith.cmpi ne, %5, %c0_i32_3 : i32
    scf.if %6 {
      %c0 = arith.constant 0 : index
      %c0_4 = arith.constant 0 : index
      %7 = vector.load %arg8[%c0, %c0_4] : memref<8x512xf32, #tpu.memory_space<vmem>>, vector<8x512xf32>
      %c0_5 = arith.constant 0 : index
      %c0_6 = arith.constant 0 : index
      %8 = vector.load %arg4[%c0_5, %c0_6] : memref<1x512xf32, #tpu.memory_space<vmem>>, vector<1x512xf32>
      %9 = vector.broadcast %8 : vector<1x512xf32> to vector<8x512xf32>
      %10 = arith.mulf %7, %9 : vector<8x512xf32>
      %c0_7 = arith.constant 0 : index
      %c0_8 = arith.constant 0 : index
      %11 = vector.load %arg5[%c0_7, %c0_8] : memref<1x512xf32, #tpu.memory_space<vmem>>, vector<1x512xf32>
      %12 = vector.broadcast %11 : vector<1x512xf32> to vector<8x512xf32>
      %13 = arith.addf %10, %12 : vector<8x512xf32>
      %cst = arith.constant 0.000000e+00 : f32
      %14 = vector.broadcast %cst : f32 to vector<8x512xf32>
      %15 = arith.maximumf %13, %14 : vector<8x512xf32>
      %16 = arith.truncf %15 : vector<8x512xf32> to vector<8x512xbf16>
      %c0_9 = arith.constant 0 : index
      %c0_10 = arith.constant 0 : index
      %17 = vector.load %arg6[%c0_9, %c0_10] : memref<512x128xf32, #tpu.memory_space<vmem>>, vector<512x128xf32>
      %18 = arith.truncf %17 : vector<512x128xf32> to vector<512x128xbf16>
      %cst_11 = arith.constant dense<0.000000e+00> : vector<8x128xf32>
      %19 = tpu.matmul %16, %18, %cst_11 {dimension_numbers = #tpu.dot_dimension_numbers<[1], [0], [0], [1], [0, 0, 1, 1], [], []>} : vector<8x512xbf16>, vector<512x128xbf16>, vector<8x128xf32> -> vector<8x128xf32>
      %c0_12 = arith.constant 0 : index
      %c0_13 = arith.constant 0 : index
      %c0_14 = arith.constant 0 : index
      %20 = vector.load %arg7[%c0_12, %c0_13, %c0_14] : memref<1x8x128xf32, #tpu.memory_space<vmem>>, vector<1x8x128xf32>
      %21 = vector.shape_cast %20 : vector<1x8x128xf32> to vector<8x128xf32>
      %22 = vector.shape_cast %19 : vector<8x128xf32> to vector<1x8x128xf32>
      tpu.vector_store %arg7[%c0_12, %c0_13, %c0_14], %22 {strides = array<i32>} : memref<1x8x128xf32, #tpu.memory_space<vmem>>, vector<1x8x128xf32>,
    } else {
    }
    return
  }
  func.func @transform_0(%arg0: i32, %arg1: i32) -> (i32, i32) {
    %c0_i32 = arith.constant 0 : i32
    %c0_i32_0 = arith.constant 0 : i32
    return %c0_i32, %arg1 : i32, i32
  }
  func.func @transform_1(%arg0: i32, %arg1: i32) -> (i32, i32, i32) {
    %c0_i32 = arith.constant 0 : i32
    %c0_i32_0 = arith.constant 0 : i32
    return %arg0, %arg1, %c0_i32 : i32, i32, i32
  }
  func.func @transform_2(%arg0: i32, %arg1: i32) -> (i32, i32) {
    %c0_i32 = arith.constant 0 : i32
    %c0_i32_0 = arith.constant 0 : i32
    return %c0_i32, %arg0 : i32, i32
  }
  func.func @transform_3(%arg0: i32, %arg1: i32) -> (i32, i32) {
    %c0_i32 = arith.constant 0 : i32
    %c0_i32_0 = arith.constant 0 : i32
    return %c0_i32, %arg0 : i32, i32
  }
  func.func @transform_4(%arg0: i32, %arg1: i32) -> (i32, i32) {
    %c0_i32 = arith.constant 0 : i32
    %c0_i32_0 = arith.constant 0 : i32
    return %arg0, %c0_i32 : i32, i32
  }
  func.func @transform_5(%arg0: i32, %arg1: i32) -> (i32, i32, i32) {
    %c0_i32 = arith.constant 0 : i32
    %c0_i32_0 = arith.constant 0 : i32
    %c0_i32_1 = arith.constant 0 : i32
    return %arg0, %c0_i32, %c0_i32_0 : i32, i32, i32
  }
}

</mosaic_0001>

<bundles_post_ra>
// kernel: encoder_forward.1
= control target key start
LH: loop header
LB: loop body
LE: loop exit
PB: predicated region body
PF: predicated region fallthrough
CT: control target
= control target key end

     0   :  { %10 = vsyncpa [#allocation4], 0  ;;  %s6163_s0 = inlined_call_operand.vmem [shape: f32[8,150528], index: 0, kind: input, shape index: {}]   ;;  %s6164_s1 = inlined_call_operand.hbm [shape: s8[1,150528,512], index: 1, kind: input, shape index: {}]   ;;  %s6165_s2 = inlined_call_operand.vmem [shape: f32[1,512], index: 2, kind: input, shape index: {}]   ;;  %s6166_s3 = inlined_call_operand.vmem [shape: f32[1,512], index: 3, kind: input, shape index: {}]   ;;  %s6167_s4 = inlined_call_operand.vmem [shape: f32[512,128], index: 4, kind: input, shape index: {}]   ;;  %s6168_s5 = inlined_call_operand.vmem [shape: f32[1,8,128], index: 5, kind: output, shape index: {}]  }
   0x1   :  { %12 = vsyncpa [#allocation4 + $0x1], 0  ;;  %s4838_s18 = smov 0   ;;  %s4840_s19 = smov 0  }
   0x2   :  { %s4842_s20 = smov 0   ;;  %s4844_s21 = smov 0  }
   0x3   :  { %s4846_s22 = smov 0   ;;  %s4848_s23 = smov 0  }
   0x4 LB: > { %s4580_s24 = sadd.s32 4294967295, %s4798_s23   ;;  %s27_s25 = sadd.s32 1, %s4794_s22  ;;  %s4798_s23 = sphi %s4848_s23, %s18_s23   ;;  %s4794_s22 = sphi %s4846_s22, %s6175_s22   ;;  %s4790_s21 = sphi %s4844_s21, %s6174_s21   ;;  %s4786_s20 = sphi %s4842_s20, %s6173_s20   ;;  %s4782_s19 = sphi %s4840_s19, %s6172_s19   ;;  %s4778_s18 = sphi %s4838_s18, %s6171_s18  }
   0x5   : > { %p28_p0 = scmp.ge.s32.totalorder %s27_s25, 7  ;;  %s65_s26 = sadd.s32 1, %s4786_s20 }
   0x6   : > { %p72_p1 = scmp.ne.s32.totalorder %s4786_s20, %s4782_s19  ;;  %p73_p2 = scmp.eq.s32.totalorder %s4798_s23, 0 }
   0x7   : > { %s6177_s25 = smov (%p28_p0, %s27_s25), 0  ;;  %p78_p4 = scmp.ne.s32.totalorder %s4782_s19, %s4778_s18 }
   0x8   : > { %p74_p3 = por %p73_p2, %p72_p1  ;;  %s61_s27 = ssub.s32 %s4794_s22, %s6177_s25 }
   0x9   : > { %p79_p5 = scmp.eq.s32.totalorder %s4580_s24, 0  ;;  %p63_p6 = scmp.eq.s32.totalorder %s61_s27, 0 }
   0xa   : > { %p4654_p8 = scmp.lt.s32.totalorder %s4798_s23, 7  ;;  %s240_s30 = sand.u32 1, %s4786_s20  }
   0xb   : > { %p4877_p7 = por %p79_p5, %p78_p4  ;;  %s4601_s6 = smul.u32 344064, %s4794_s22 }
   0xc   : > { %s4883_s29 = scalar_select %p63_p6, %s4786_s20, %s65_s26  }
   0xd   : > { %s4646_s7 = smul.u32 21504, %s240_s30  ;;  %s4890_s10 = scalar_lea.hbm %s6164_s1, %s4601_s6 }
   0xe   : > { %p4892_p9 = pnand %p4654_p8, %p74_p3  ;;  %s4898_s14 = scalar_lea.sflag [#allocation4], %s240_s30 }
   0xf   : > { %s244_s12 = scalar_lea.vmem [#allocation3], %s4646_s7  ;;  %s4714_s15 = scalar_lea.hbm %s4890_s10, 344064 }
  0x10   : > { %s254_s13 = sshll.u32 %s244_s12, 4  ;;  %p4715_p10 = scmp.ne.s32.totalorder %s4890_s10, %s4714_s15  ;;  %s4896_s13 = int_to_ptr.vmem [resolvable:$true] %s254_s13 }
  0x11   : > { %p4716_p11 = pneg %p4892_p9  ;;  %s4719_s18 = scalar_lea.hbm %s6164_s1, 2408448 }
  0x12   : > { %p4720_p0 = scmp.lt.u32.totalorder %s4890_s10, %s6164_s1  ;;  %p4721_p1 = scmp.lt.u32.totalorder %s4719_s18, %s4714_s15 }
  0x13   : > { %p4717_p12 = pnand %p4716_p11, %p4715_p10  ;;  %p4723_p3 = scmp.lt.u32.totalorder %s4714_s15, %s4890_s10 }
  0x14   : > { %p4722_p2 = por %p4721_p1, %p4720_p0 }
  0x15   : > { %p4718_p13 = pneg %p4717_p12 }
  0x16   : > { %p4724_p4 = por %p4723_p3, %p4722_p2 }
  0x18   : > { %p4725_p5 = pnand %p4724_p4, %p4718_p13 }
  0x1a   : > { %4728 = shalt.err (!%p4725_p5)
}
  0x1b   : > { %s4729_s27 = scalar_lea.vmem %s4896_s13, 344064  ;;  %s4804_s30 = smov [#allocation3]  }
  0x1c   : > { %p4730_p6 = scmp.ne.s32.totalorder %s4896_s13, %s4729_s27  ;;  %s4734_s6 = sshll.u32 %s4804_s30, 4  ;;  %s4735_s6 = int_to_ptr.vmem [resolvable:$false] %s4734_s6 }
  0x1d   : > { %s4736_s7 = scalar_lea.vmem %s4735_s6, 688128  ;;  %p4737_p12 = scmp.lt.s32.totalorder %s4896_s13, %s4735_s6 }
  0x1e   : > { %p4732_p8 = pnand %p4730_p6, %p4716_p11  ;;  %p4738_p0 = scmp.lt.s32.totalorder %s4736_s7, %s4729_s27 }
  0x20   : > { %p4733_p10 = pneg %p4732_p8  ;;  %p4739_p1 = por %p4738_p0, %p4737_p12 }
  0x22   : > { %p4740_p2 = pnand %p4739_p1, %p4733_p10 }
  0x24   : > { %4743 = shalt.err (!%p4740_p2)
}
  0x25   : > { %s4805_s8 = smov 512   ;;  %s4806_s9 = smov 32  }
  0x26   : > { %4653 = dma.hbm_to_vmem [thread:$0]  (!%p4892_p9), %s4890_s10, 344064, %s4896_s13, %s4898_s14, %s4805_s8, %s4805_s8, %s4806_s9  }
  0x27   : > { %p4588_p11 = scmp.ge.s32.totalorder %s4798_s23, 1  ;;  %p262_p13 = scmp.lt.s32.totalorder %s4798_s23, 8 }
  0x29   : > { %p263_p3 = pnand %p4588_p11, %p262_p13 }
  0x2a   : > { %s268_s12 = sand.u32 (!%p263_p3), 1, %s4782_s19  }
  0x2b   : > { %266 = sbr.rel (%p263_p3) target bundleno = 1888 (0x760), region = 40  ;;  %s269_s16 = scalar_lea.sflag (!%p263_p3), [#allocation4], %s268_s12 }
  0x2c   : > { %s4929_s15 = smul.u32 (!%p263_p3), 21504, %s268_s12 }
  0x2e   : > { %s272_s17 = scalar_lea.vmem (!%p263_p3), [#allocation3], %s4929_s15 }
  0x32   : > { %4773 = dma.done.wait (%p4877_p7), %s269_s16, 344064  }
  0x33   : > { %4775 = vsyncadd (%p4877_p7), %s269_s16, 4294623232  ;;  %s316_s11 = smul.u32 168, %s4790_s21  ;;  %p4590_p4 = scmp.ne.s32.totalorder %s4790_s21, 0 }
  0x34   : > { %v4807_v0 = vmov (!%p4590_p4), 0.0  }
  0x35   : > { %p317_p9 = scmp.lt.s32.totalorder %s316_s11, 1175  ;;  %347 = sbr.rel (%p4590_p4) target bundleno = 60 (0x3c), region = 48  ;;  %348 = vst [vmem:[#allocation2] sm:$0xff] (!%p4590_p4), %v4807_v0  ;;  %349 = vst [vmem:[#allocation2 + $0x8] sm:$0xff] (!%p4590_p4), %v4807_v0 }
  0x36   : > { %350 = vst [vmem:[#allocation2 + $0x10] sm:$0xff] (!%p4590_p4), %v4807_v0  ;;  %351 = vst [vmem:[#allocation2 + $0x18] sm:$0xff] (!%p4590_p4), %v4807_v0 }
  0x37   : > { %s6179_s11 = smov (!%p317_p9, %s316_s11), 1175 }
  0x38   : > { %s4589_s10 = sshll.u32 %s6179_s11, 3 }
  0x39   : > { %s4940_s18 = scalar_lea.vmem %s6163_s0, %s4589_s10 }
  0x3c PF: > { %s4943_s28 = smov 0  }
  0x3d LB: >> { %s358_s24 = smul.u32 5376, %s4802_s28  ;;  %s357_s28 = sadd.s32 1, %s4802_s28   ;;  %s4802_s28 = sphi %s4943_s28, %s357_s28  }
  0x3e   : >> { %p354_p7 = scmp.ge.s32.totalorder %s357_s28, 4  }
  0x3f   : >> { %s447_s26 = sshra.s32 %s358_s24, 5  ;;  %s359_s6 = sshra.s32 %s358_s24, 7 }
  0x40   : >> { %s4600_s27 = sshll.u32 %s447_s26, 5  ;;  %s4591_s7 = sshll.u32 %s359_s6, 3 }
  0x41   : >> { %s4951_s30 = scalar_lea.vmem %s272_s17, %s4600_s27 [#allocation3]  ;;  %s4964_s8 = scalar_lea.vmem %s4940_s18, %s4591_s7 }
  0x42   : >> { %v453_v1 = vld [vmem:[%s4951_s30 + $0x8] sm:$0xff]  ;;  %v452_v3 = vld [vmem:[%s4951_s30] sm:$0xff]  ;;  %v366_v32 = vld [vmem:[%s4964_s8 + $0x18] sm:$0xff]  ;;  %p4594_p5 = scmp.ne.s32.totalorder (%p354_p7), %s4790_s21, 6 }
  0x43   : >> { %v485_v2 = vld [vmem:[%s4951_s30 + $0x108] sm:$0xff]  ;;  %v1125_v4 = vunpack.c.l.s8.bf16 %v453_v1  ;;  %v1129_v5 = vunpack.c.h.s8.bf16 %v453_v1  ;;  %v484_v8 = vld [vmem:[%s4951_s30 + $0x100] sm:$0xff]  ;;  %v1124_v9 = vunpack.c.l.s8.bf16 %v452_v3  ;;  %v1128_v13 = vunpack.c.h.s8.bf16 %v452_v3 }
  0x44   : >> { %v1189_v6 = vunpack.c.l.s8.bf16 %v485_v2  ;;  %v1193_v7 = vunpack.c.h.s8.bf16 %v485_v2  ;;  %v1188_v10 = vunpack.c.l.s8.bf16 %v484_v8  ;;  %v457_v11 = vld [vmem:[%s4951_s30 + $0x28] sm:$0xff]  ;;  %v1192_v14 = vunpack.c.h.s8.bf16 %v484_v8  ;;  %v456_v17 = vld [vmem:[%s4951_s30 + $0x20] sm:$0xff] }
  0x45   : >> { %v489_v12 = vld [vmem:[%s4951_s30 + $0x128] sm:$0xff]  ;;  %2472 = vmatprep.subr.bf16.mxu0 %v1125_v4  ;;  %v1133_v15 = vunpack.c.l.s8.bf16 %v457_v11  ;;  %v488_v18 = vld [vmem:[%s4951_s30 + $0x120] sm:$0xff]  ;;  %v1132_v19 = vunpack.c.l.s8.bf16 %v456_v17  ;;  %v1137_v21 = vunpack.c.h.s8.bf16 %v457_v11  ;;  %v1136_v25 = vunpack.c.h.s8.bf16 %v456_v17 }
  0x46   : >> { %2513 = vmatprep.subr.bf16.mxu1 %v1189_v6  ;;  %2473 = vmatpush1.bf16.msra.mxu0 %v1124_v9  ;;  %v1197_v16 = vunpack.c.l.s8.bf16 %v489_v12  ;;  %v1196_v20 = vunpack.c.l.s8.bf16 %v488_v18  ;;  %v1201_v22 = vunpack.c.h.s8.bf16 %v489_v12  ;;  %v461_v23 = vld [vmem:[%s4951_s30 + $0x48] sm:$0xff]  ;;  %v1200_v26 = vunpack.c.h.s8.bf16 %v488_v18  ;;  %v460_v29 = vld [vmem:[%s4951_s30 + $0x40] sm:$0xff] }
  0x47   : >> { %2514 = vmatpush1.bf16.msra.mxu1 %v1188_v10  ;;  %2474 = vmatprep.subr.bf16.mxu0 %v1129_v5  ;;  %v493_v24 = vld [vmem:[%s4951_s30 + $0x148] sm:$0xff]  ;;  %v1141_v27 = vunpack.c.l.s8.bf16 %v461_v23  ;;  %v492_v30 = vld [vmem:[%s4951_s30 + $0x140] sm:$0xff]  ;;  %v1140_v33 = vunpack.c.l.s8.bf16 %v460_v29  ;;  %v1145_v35 = vunpack.c.h.s8.bf16 %v461_v23  ;;  %v4972_v38 = vpack.c.bf16 %v366_v32, %v366_v32 }
  0x48   : >> { %2515 = vmatprep.subr.bf16.mxu1 %v1193_v7  ;;  %v1205_v28 = vunpack.c.l.s8.bf16 %v493_v24  ;;  %v364_v31 = vld [vmem:[%s4964_s8 + $0x8] sm:$0xff]  ;;  %v1204_v34 = vunpack.c.l.s8.bf16 %v492_v30  ;;  %v1209_v36 = vunpack.c.h.s8.bf16 %v493_v24  ;;  %v1144_v41 = vunpack.c.h.s8.bf16 %v460_v29  ;;  %v464_v45 = vld [vmem:[%s4951_s30 + $0x60] sm:$0xff] }
  0x49   : >> { %v4970_v37 = vpack.c.bf16 %v364_v31, %v364_v31  ;;  %v465_v39 = vld [vmem:[%s4951_s30 + $0x68] sm:$0xff]  ;;  %2545 = vmatprep.mubr.bf16.mxu1 %v4972_v38  ;;  %v1208_v42 = vunpack.c.h.s8.bf16 %v492_v30  ;;  %v496_v46 = vld [vmem:[%s4951_s30 + $0x160] sm:$0xff]  ;;  %v1148_v47 = vunpack.c.l.s8.bf16 %v464_v45  ;;  %v1152_v53 = vunpack.c.h.s8.bf16 %v464_v45 }
  0x4a   : >> { %2475 = vmatpush1.bf16.msra.mxu0 %v1128_v13  ;;  %v497_v40 = vld [vmem:[%s4951_s30 + $0x168] sm:$0xff]  ;;  %v1149_v43 = vunpack.c.l.s8.bf16 %v465_v39  ;;  %v1212_v48 = vunpack.c.l.s8.bf16 %v496_v46  ;;  %v1153_v49 = vunpack.c.h.s8.bf16 %v465_v39  ;;  %v1216_v54 = vunpack.c.h.s8.bf16 %v496_v46  ;;  %v468_v57 = vld [vmem:[%s4951_s30 + $0x80] sm:$0xff] }
  0x4b   : >> { %2516 = vmatpush1.bf16.msra.mxu1 %v1192_v14  ;;  %2476 = vmatprep.subr.bf16.mxu0 %v1133_v15  ;;  %v1213_v44 = vunpack.c.l.s8.bf16 %v497_v40  ;;  %v1217_v50 = vunpack.c.h.s8.bf16 %v497_v40  ;;  %v469_v51 = vld [vmem:[%s4951_s30 + $0x88] sm:$0xff]  ;;  %v500_v58 = vld [vmem:[%s4951_s30 + $0x180] sm:$0xff]  ;;  %v1156_v59 = vunpack.c.l.s8.bf16 %v468_v57  ;;  %v1160_v1 = vunpack.c.h.s8.bf16 %v468_v57 }
  0x4c   : >> { %2517 = vmatprep.subr.bf16.mxu1 %v1197_v16  ;;  %2504 = vmatprep.mubr.bf16.mxu0 %v4970_v37  ;;  %v501_v52 = vld [vmem:[%s4951_s30 + $0x188] sm:$0xff]  ;;  %v1157_v55 = vunpack.c.l.s8.bf16 %v469_v51  ;;  %v1220_v60 = vunpack.c.l.s8.bf16 %v500_v58  ;;  %v1161_v61 = vunpack.c.h.s8.bf16 %v469_v51  ;;  %v1224_v2 = vunpack.c.h.s8.bf16 %v500_v58  ;;  %v472_v5 = vld [vmem:[%s4951_s30 + $0xa0] sm:$0xff] }
  0x4d   : >> { %v1221_v56 = vunpack.c.l.s8.bf16 %v501_v52  ;;  %v1225_v62 = vunpack.c.h.s8.bf16 %v501_v52  ;;  %v473_v63 = vld [vmem:[%s4951_s30 + $0xa8] sm:$0xff]  ;;  %v504_v6 = vld [vmem:[%s4951_s30 + $0x1a0] sm:$0xff]  ;;  %v1164_v7 = vunpack.c.l.s8.bf16 %v472_v5  ;;  %v1168_v13 = vunpack.c.h.s8.bf16 %v472_v5 }
  0x4e   : >> { %2477 = vmatpush1.bf16.msra.mxu0 %v1132_v19  ;;  %v505_v0 = vld [vmem:[%s4951_s30 + $0x1a8] sm:$0xff]  ;;  %v1165_v3 = vunpack.c.l.s8.bf16 %v473_v63  ;;  %v1228_v8 = vunpack.c.l.s8.bf16 %v504_v6  ;;  %v1169_v9 = vunpack.c.h.s8.bf16 %v473_v63  ;;  %v1232_v14 = vunpack.c.h.s8.bf16 %v504_v6  ;;  %v476_v17 = vld [vmem:[%s4951_s30 + $0xc0] sm:$0xff] }
  0x4f   : >> { %2518 = vmatpush1.bf16.msra.mxu1 %v1196_v20  ;;  %2478 = vmatprep.subr.bf16.mxu0 %v1137_v21  ;;  %v1229_v4 = vunpack.c.l.s8.bf16 %v505_v0  ;;  %v1233_v10 = vunpack.c.h.s8.bf16 %v505_v0  ;;  %v477_v11 = vld [vmem:[%s4951_s30 + $0xc8] sm:$0xff]  ;;  %v508_v18 = vld [vmem:[%s4951_s30 + $0x1c0] sm:$0xff]  ;;  %v1172_v19 = vunpack.c.l.s8.bf16 %v476_v17 }
  0x50   : >> { %2519 = vmatprep.subr.bf16.mxu1 %v1201_v22  ;;  %v509_v12 = vld [vmem:[%s4951_s30 + $0x1c8] sm:$0xff]  ;;  %v1173_v15 = vunpack.c.l.s8.bf16 %v477_v11  ;;  %v1236_v20 = vunpack.c.l.s8.bf16 %v508_v18  ;;  %v1177_v21 = vunpack.c.h.s8.bf16 %v477_v11  ;;  %v480_v29 = vld [vmem:[%s4951_s30 + $0xe0] sm:$0xff] }
  0x51   : >> { %v1237_v16 = vunpack.c.l.s8.bf16 %v509_v12  ;;  %v1241_v22 = vunpack.c.h.s8.bf16 %v509_v12  ;;  %v481_v23 = vld [vmem:[%s4951_s30 + $0xe8] sm:$0xff]  ;;  %v512_v30 = vld [vmem:[%s4951_s30 + $0x1e0] sm:$0xff]  ;;  %v1180_v31 = vunpack.c.l.s8.bf16 %v480_v29  ;;  %v1184_v39 = vunpack.c.h.s8.bf16 %v480_v29 }
  0x52   : >> { %2479 = vmatpush1.bf16.msra.mxu0 %v1136_v25  ;;  %v513_v24 = vld [vmem:[%s4951_s30 + $0x1e8] sm:$0xff]  ;;  %v1176_v25 = vunpack.c.h.s8.bf16 %v476_v17  ;;  %v1244_v32 = vunpack.c.l.s8.bf16 %v512_v30  ;;  %v1248_v40 = vunpack.c.h.s8.bf16 %v512_v30  ;;  %v516_v45 = vld [vmem:[%s4951_s30 + $0x200] sm:$0xff] }
  0x53   : >> { %2520 = vmatpush1.bf16.msra.mxu1 %v1200_v26  ;;  %2480 = vmatprep.subr.bf16.mxu0 %v1141_v27  ;;  %v1240_v26 = vunpack.c.h.s8.bf16 %v508_v18  ;;  %v1181_v27 = vunpack.c.l.s8.bf16 %v481_v23  ;;  %v548_v46 = vld [vmem:[%s4951_s30 + $0x300] sm:$0xff]  ;;  %v1252_v51 = vunpack.c.l.s8.bf16 %v516_v45  ;;  %v525_v5 = vld [vmem:[%s4951_s30 + $0x248] sm:$0xff] }
  0x54   : >> { %2521 = vmatprep.subr.bf16.mxu1 %v1205_v28  ;;  %v1245_v28 = vunpack.c.l.s8.bf16 %v513_v24  ;;  %v1316_v52 = vunpack.c.l.s8.bf16 %v548_v46  ;;  %v520_v63 = vld [vmem:[%s4951_s30 + $0x220] sm:$0xff]  ;;  %v557_v6 = vld [vmem:[%s4951_s30 + $0x348] sm:$0xff] }
  0x55   : >> { %v552_v0 = vld [vmem:[%s4951_s30 + $0x320] sm:$0xff]  ;;  %v529_v17 = vld [vmem:[%s4951_s30 + $0x268] sm:$0xff] }
  0x56   : >> { %2481 = vmatpush1.bf16.msra.mxu0 %v1140_v33  ;;  %v1185_v33 = vunpack.c.h.s8.bf16 %v481_v23  ;;  %v524_v11 = vld [vmem:[%s4951_s30 + $0x240] sm:$0xff]  ;;  %v561_v18 = vld [vmem:[%s4951_s30 + $0x368] sm:$0xff] }
  0x57   : >> { %2522 = vmatpush1.bf16.msra.mxu1 %v1204_v34  ;;  %2482 = vmatprep.subr.bf16.mxu0 %v1145_v35  ;;  %v1249_v34 = vunpack.c.h.s8.bf16 %v513_v24  ;;  %v517_v35 = vld [vmem:[%s4951_s30 + $0x208] sm:$0xff]  ;;  %v556_v12 = vld [vmem:[%s4951_s30 + $0x340] sm:$0xff] }
  0x58   : >> { %2523 = vmatprep.subr.bf16.mxu1 %v1209_v36  ;;  %v549_v36 = vld [vmem:[%s4951_s30 + $0x308] sm:$0xff]  ;;  %v528_v23 = vld [vmem:[%s4951_s30 + $0x260] sm:$0xff] }
  0x59   : >> { %v560_v24 = vld [vmem:[%s4951_s30 + $0x360] sm:$0xff]  ;;  %v533_v29 = vld [vmem:[%s4951_s30 + $0x288] sm:$0xff] }
  0x5a   : >> { %2483 = vmatpush1.bf16.msra.mxu0 %v1144_v41  ;;  %v363_v41 = vld [vmem:[%s4964_s8] sm:$0xff]  ;;  %v565_v30 = vld [vmem:[%s4951_s30 + $0x388] sm:$0xff] }
  0x5b   : >> { %2524 = vmatpush1.bf16.msra.mxu1 %v1208_v42  ;;  %2484 = vmatprep.subr.bf16.mxu0 %v1149_v43  ;;  %v365_v42 = vld [vmem:[%s4964_s8 + $0x10] sm:$0xff]  ;;  %v1253_v43 = vunpack.c.l.s8.bf16 %v517_v35 }
  0x5c   : >> { %2525 = vmatprep.subr.bf16.mxu1 %v1213_v44  ;;  %v1317_v44 = vunpack.c.l.s8.bf16 %v549_v36 }
  0x5e   : >> { %2485 = vmatpush1.bf16.msra.mxu0 %v1148_v47  ;;  %v5002_v47 = vpack.c.bf16 %v363_v41, %v363_v41  ;;  %v1289_v41 = vunpack.c.h.s8.bf16 %v533_v29 }
  0x5f   : >> { %2526 = vmatpush1.bf16.msra.mxu1 %v1212_v48  ;;  %2486 = vmatprep.subr.bf16.mxu0 %v1153_v49  ;;  %v5004_v48 = vpack.c.bf16 %v365_v42, %v365_v42  ;;  %v368_v49 = vld [vmem:[%s4964_s8 + $0x28] sm:$0xff]  ;;  %v1353_v42 = vunpack.c.h.s8.bf16 %v565_v30 }
  0x60   : >> { %2527 = vmatprep.subr.bf16.mxu1 %v1217_v50  ;;  %v370_v50 = vld [vmem:[%s4964_s8 + $0x38] sm:$0xff]  ;;  %v5010_v57 = vpack.c.bf16 %v368_v49, %v368_v49 }
  0x61   : >> { %v5012_v58 = vpack.c.bf16 %v370_v50, %v370_v50 }
  0x62   : >> { %2487 = vmatpush1.bf16.msra.mxu0 %v1152_v53  ;;  %v1257_v53 = vunpack.c.h.s8.bf16 %v517_v35  ;;  %v532_v35 = vld [vmem:[%s4951_s30 + $0x280] sm:$0xff] }
  0x63   : >> { %2528 = vmatpush1.bf16.msra.mxu1 %v1216_v54  ;;  %2488 = vmatprep.subr.bf16.mxu0 %v1157_v55  ;;  %v1321_v54 = vunpack.c.h.s8.bf16 %v549_v36  ;;  %v521_v55 = vld [vmem:[%s4951_s30 + $0x228] sm:$0xff]  ;;  %v564_v36 = vld [vmem:[%s4951_s30 + $0x380] sm:$0xff] }
  0x64   : >> { %2529 = vmatprep.subr.bf16.mxu1 %v1221_v56  ;;  %v553_v56 = vld [vmem:[%s4951_s30 + $0x328] sm:$0xff] }
  0x66   : >> { %2489 = vmatpush1.bf16.msra.mxu0 %v1156_v59  ;;  %v1256_v59 = vunpack.c.h.s8.bf16 %v516_v45  ;;  %v1288_v45 = vunpack.c.h.s8.bf16 %v532_v35 }
  0x67   : >> { %2530 = vmatpush1.bf16.msra.mxu1 %v1220_v60  ;;  %2490 = vmatprep.subr.bf16.mxu0 %v1161_v61  ;;  %v1320_v60 = vunpack.c.h.s8.bf16 %v548_v46  ;;  %v1261_v61 = vunpack.c.l.s8.bf16 %v521_v55  ;;  %v1352_v46 = vunpack.c.h.s8.bf16 %v564_v36 }
  0x68   : >> { %2531 = vmatprep.subr.bf16.mxu1 %v1225_v62  ;;  %v1325_v62 = vunpack.c.l.s8.bf16 %v553_v56 }
  0x6a   : >> { %2491 = vmatpush1.bf16.msra.mxu0 %v1160_v1  ;;  %v1260_v1 = vunpack.c.l.s8.bf16 %v520_v63 }
  0x6b   : >> { %2532 = vmatpush1.bf16.msra.mxu1 %v1224_v2  ;;  %2492 = vmatprep.subr.bf16.mxu0 %v1165_v3  ;;  %v1324_v2 = vunpack.c.l.s8.bf16 %v552_v0  ;;  %v1265_v3 = vunpack.c.h.s8.bf16 %v521_v55 }
  0x6c   : >> { %2533 = vmatprep.subr.bf16.mxu1 %v1229_v4  ;;  %v1329_v4 = vunpack.c.h.s8.bf16 %v553_v56 }
  0x6e   : >> { %2493 = vmatpush1.bf16.msra.mxu0 %v1164_v7  ;;  %v1264_v7 = vunpack.c.h.s8.bf16 %v520_v63 }
  0x6f   : >> { %2534 = vmatpush1.bf16.msra.mxu1 %v1228_v8  ;;  %2494 = vmatprep.subr.bf16.mxu0 %v1169_v9  ;;  %v1328_v8 = vunpack.c.h.s8.bf16 %v552_v0  ;;  %v1269_v9 = vunpack.c.l.s8.bf16 %v525_v5 }
  0x70   : >> { %2535 = vmatprep.subr.bf16.mxu1 %v1233_v10  ;;  %v1333_v10 = vunpack.c.l.s8.bf16 %v557_v6 }
  0x72   : >> { %2495 = vmatpush1.bf16.msra.mxu0 %v1168_v13  ;;  %v1268_v13 = vunpack.c.l.s8.bf16 %v524_v11 }
  0x73   : >> { %2536 = vmatpush1.bf16.msra.mxu1 %v1232_v14  ;;  %2496 = vmatprep.subr.bf16.mxu0 %v1173_v15  ;;  %v1332_v14 = vunpack.c.l.s8.bf16 %v556_v12  ;;  %v1273_v15 = vunpack.c.h.s8.bf16 %v525_v5 }
  0x74   : >> { %2537 = vmatprep.subr.bf16.mxu1 %v1237_v16  ;;  %v1337_v16 = vunpack.c.h.s8.bf16 %v557_v6 }
  0x76   : >> { %2497 = vmatpush1.bf16.msra.mxu0 %v1172_v19  ;;  %v1272_v19 = vunpack.c.h.s8.bf16 %v524_v11 }
  0x77   : >> { %2538 = vmatpush1.bf16.msra.mxu1 %v1236_v20  ;;  %2498 = vmatprep.subr.bf16.mxu0 %v1177_v21  ;;  %v1336_v20 = vunpack.c.h.s8.bf16 %v556_v12  ;;  %v1277_v21 = vunpack.c.l.s8.bf16 %v529_v17 }
  0x78   : >> { %2539 = vmatprep.subr.bf16.mxu1 %v1241_v22  ;;  %v1341_v22 = vunpack.c.l.s8.bf16 %v561_v18 }
  0x7a   : >> { %2499 = vmatpush1.bf16.msra.mxu0 %v1176_v25  ;;  %v1276_v25 = vunpack.c.l.s8.bf16 %v528_v23 }
  0x7b   : >> { %2540 = vmatpush1.bf16.msra.mxu1 %v1240_v26  ;;  %2500 = vmatprep.subr.bf16.mxu0 %v1181_v27  ;;  %v1340_v26 = vunpack.c.l.s8.bf16 %v560_v24  ;;  %v1281_v27 = vunpack.c.h.s8.bf16 %v529_v17 }
  0x7c   : >> { %2541 = vmatprep.subr.bf16.mxu1 %v1245_v28  ;;  %v1345_v28 = vunpack.c.h.s8.bf16 %v561_v18 }
  0x7e   : >> { %2501 = vmatpush1.bf16.msra.mxu0 %v1180_v31  ;;  %v1280_v31 = vunpack.c.h.s8.bf16 %v528_v23  ;;  %v367_v23 = vld [vmem:[%s4964_s8 + $0x20] sm:$0xff] }
  0x7f   : >> { %2542 = vmatpush1.bf16.msra.mxu1 %v1244_v32  ;;  %2502 = vmatprep.subr.bf16.mxu0 %v1185_v33  ;;  %v1344_v32 = vunpack.c.h.s8.bf16 %v560_v24  ;;  %v1285_v33 = vunpack.c.l.s8.bf16 %v533_v29  ;;  %v369_v24 = vld [vmem:[%s4964_s8 + $0x30] sm:$0xff]  ;;  %v5050_v29 = vpack.c.bf16 %v367_v23, %v367_v23  ;;  %v596_v23 = vld [vmem:[%s4951_s30 + $0x480] sm:$0xff] }
  0x80   : >> { %2543 = vmatprep.subr.bf16.mxu1 %v1249_v34  ;;  %v1349_v34 = vunpack.c.l.s8.bf16 %v565_v30  ;;  %v5052_v30 = vpack.c.bf16 %v369_v24, %v369_v24  ;;  %v628_v24 = vld [vmem:[%s4951_s30 + $0x580] sm:$0xff] }
  0x82   : >> { %2503 = vmatpush1.bf16.msra.mxu0 %v1184_v39  ;;  %v1284_v39 = vunpack.c.l.s8.bf16 %v532_v35 }
  0x83   : >> { %2544 = vmatpush1.bf16.msra.mxu1 %v1248_v40  ;;  %2554 = vmatprep.subr.bf16.mxu0 %v1253_v43  ;;  %v1348_v40 = vunpack.c.l.s8.bf16 %v564_v36  ;;  %v537_v43 = vld [vmem:[%s4951_s30 + $0x2a8] sm:$0xff] }
  0x84   : >> { %2595 = vmatprep.subr.bf16.mxu1 %v1317_v44  ;;  %v569_v44 = vld [vmem:[%s4951_s30 + $0x3a8] sm:$0xff]  ;;  %v1293_v49 = vunpack.c.l.s8.bf16 %v537_v43  ;;  %v1297_v55 = vunpack.c.h.s8.bf16 %v537_v43 }
  0x85   : >> { %2505 = vmatmul.mubr.bf16.vlgmr.msra.gmra.mrb[0].mxu0 %v5002_v47  ;;  %v1357_v50 = vunpack.c.l.s8.bf16 %v569_v44  ;;  %v1361_v56 = vunpack.c.h.s8.bf16 %v569_v44 }
  0x86   : >> { %2546 = vmatmul.mubr.bf16.vlgmr.msra.gmra.mrb[0].mxu1 %v5004_v48  ;;  %2555 = vmatpush1.bf16.msra.mxu0 %v1252_v51  ;;  %v536_v51 = vld [vmem:[%s4951_s30 + $0x2a0] sm:$0xff] }
  0x87   : >> { %2596 = vmatpush1.bf16.msra.mxu1 %v1316_v52  ;;  %2556 = vmatprep.subr.bf16.mxu0 %v1257_v53  ;;  %v568_v52 = vld [vmem:[%s4951_s30 + $0x3a0] sm:$0xff]  ;;  %v1292_v53 = vunpack.c.l.s8.bf16 %v536_v51 }
  0x88   : >> { %2597 = vmatprep.subr.bf16.mxu1 %v1321_v54  ;;  %2586 = vmatprep.mubr.bf16.mxu0 %v5010_v57  ;;  %v1356_v54 = vunpack.c.l.s8.bf16 %v568_v52 }
  0x89   : >> { %2627 = vmatprep.mubr.bf16.mxu1 %v5012_v58 }
  0x8a   : >> { %2557 = vmatpush1.bf16.msra.mxu0 %v1256_v59  ;;  %v541_v59 = vld [vmem:[%s4951_s30 + $0x2c8] sm:$0xff] }
  0x8b   : >> { %2598 = vmatpush1.bf16.msra.mxu1 %v1320_v60  ;;  %2558 = vmatprep.subr.bf16.mxu0 %v1261_v61  ;;  %v573_v60 = vld [vmem:[%s4951_s30 + $0x3c8] sm:$0xff]  ;;  %v1296_v61 = vunpack.c.h.s8.bf16 %v536_v51  ;;  %v1301_v63 = vunpack.c.l.s8.bf16 %v541_v59  ;;  %v1305_v5 = vunpack.c.h.s8.bf16 %v541_v59 }
  0x8c   : >> { %2599 = vmatprep.subr.bf16.mxu1 %v1325_v62  ;;  %v1360_v62 = vunpack.c.h.s8.bf16 %v568_v52  ;;  %v1365_v0 = vunpack.c.l.s8.bf16 %v573_v60  ;;  %v1369_v6 = vunpack.c.h.s8.bf16 %v573_v60 }
  0x8e   : >> { %2559 = vmatpush1.bf16.msra.mxu0 %v1260_v1  ;;  %v540_v1 = vld [vmem:[%s4951_s30 + $0x2c0] sm:$0xff] }
  0x8f   : >> { %2600 = vmatpush1.bf16.msra.mxu1 %v1324_v2  ;;  %2560 = vmatprep.subr.bf16.mxu0 %v1265_v3  ;;  %v572_v2 = vld [vmem:[%s4951_s30 + $0x3c0] sm:$0xff]  ;;  %v1300_v3 = vunpack.c.l.s8.bf16 %v540_v1 }
  0x90   : >> { %2601 = vmatprep.subr.bf16.mxu1 %v1329_v4  ;;  %v1364_v4 = vunpack.c.l.s8.bf16 %v572_v2 }
  0x92   : >> { %2561 = vmatpush1.bf16.msra.mxu0 %v1264_v7  ;;  %v545_v7 = vld [vmem:[%s4951_s30 + $0x2e8] sm:$0xff] }
  0x93   : >> { %2602 = vmatpush1.bf16.msra.mxu1 %v1328_v8  ;;  %2562 = vmatprep.subr.bf16.mxu0 %v1269_v9  ;;  %v577_v8 = vld [vmem:[%s4951_s30 + $0x3e8] sm:$0xff]  ;;  %v1304_v9 = vunpack.c.h.s8.bf16 %v540_v1  ;;  %v1309_v11 = vunpack.c.l.s8.bf16 %v545_v7  ;;  %v1313_v17 = vunpack.c.h.s8.bf16 %v545_v7 }
  0x94   : >> { %2603 = vmatprep.subr.bf16.mxu1 %v1333_v10  ;;  %v1368_v10 = vunpack.c.h.s8.bf16 %v572_v2  ;;  %v1373_v12 = vunpack.c.l.s8.bf16 %v577_v8  ;;  %v1377_v18 = vunpack.c.h.s8.bf16 %v577_v8 }
  0x96   : >> { %2563 = vmatpush1.bf16.msra.mxu0 %v1268_v13  ;;  %v544_v13 = vld [vmem:[%s4951_s30 + $0x2e0] sm:$0xff] }
  0x97   : >> { %2604 = vmatpush1.bf16.msra.mxu1 %v1332_v14  ;;  %2564 = vmatprep.subr.bf16.mxu0 %v1273_v15  ;;  %v576_v14 = vld [vmem:[%s4951_s30 + $0x3e0] sm:$0xff]  ;;  %v1308_v15 = vunpack.c.l.s8.bf16 %v544_v13 }
  0x98   : >> { %2605 = vmatprep.subr.bf16.mxu1 %v1337_v16  ;;  %v1372_v16 = vunpack.c.l.s8.bf16 %v576_v14 }
  0x9a   : >> { %2565 = vmatpush1.bf16.msra.mxu0 %v1272_v19  ;;  %v581_v19 = vld [vmem:[%s4951_s30 + $0x408] sm:$0xff] }
  0x9b   : >> { %2606 = vmatpush1.bf16.msra.mxu1 %v1336_v20  ;;  %2566 = vmatprep.subr.bf16.mxu0 %v1277_v21  ;;  %v613_v20 = vld [vmem:[%s4951_s30 + $0x508] sm:$0xff]  ;;  %v1312_v21 = vunpack.c.h.s8.bf16 %v544_v13  ;;  %v1385_v35 = vunpack.c.h.s8.bf16 %v581_v19 }
  0x9c   : >> { %2607 = vmatprep.subr.bf16.mxu1 %v1341_v22  ;;  %v1376_v22 = vunpack.c.h.s8.bf16 %v576_v14  ;;  %v1449_v36 = vunpack.c.h.s8.bf16 %v613_v20 }
  0x9e   : >> { %2567 = vmatpush1.bf16.msra.mxu0 %v1276_v25  ;;  %v1381_v25 = vunpack.c.l.s8.bf16 %v581_v19 }
  0x9f   : >> { %2608 = vmatpush1.bf16.msra.mxu1 %v1340_v26  ;;  %2568 = vmatprep.subr.bf16.mxu0 %v1281_v27  ;;  %v1445_v26 = vunpack.c.l.s8.bf16 %v613_v20  ;;  %v580_v27 = vld [vmem:[%s4951_s30 + $0x400] sm:$0xff] }
  0xa0   : >> { %2609 = vmatprep.subr.bf16.mxu1 %v1345_v28  ;;  %v612_v28 = vld [vmem:[%s4951_s30 + $0x500] sm:$0xff]  ;;  %v1384_v43 = vunpack.c.h.s8.bf16 %v580_v27 }
  0xa1   : >> { %v1448_v44 = vunpack.c.h.s8.bf16 %v612_v28 }
  0xa2   : >> { %2569 = vmatpush1.bf16.msra.mxu0 %v1280_v31  ;;  %v372_v31 = vld [vmem:[%s4964_s8 + $0x48] sm:$0xff] }
  0xa3   : >> { %2610 = vmatpush1.bf16.msra.mxu1 %v1344_v32  ;;  %2570 = vmatprep.subr.bf16.mxu0 %v1285_v33  ;;  %v374_v32 = vld [vmem:[%s4964_s8 + $0x58] sm:$0xff]  ;;  %v1380_v33 = vunpack.c.l.s8.bf16 %v580_v27 }
  0xa4   : >> { %2611 = vmatprep.subr.bf16.mxu1 %v1349_v34  ;;  %v1444_v34 = vunpack.c.l.s8.bf16 %v612_v28 }
  0xa6   : >> { %2571 = vmatpush1.bf16.msra.mxu0 %v1284_v39  ;;  %v585_v39 = vld [vmem:[%s4951_s30 + $0x428] sm:$0xff] }
  0xa7   : >> { %2612 = vmatpush1.bf16.msra.mxu1 %v1348_v40  ;;  %2572 = vmatprep.subr.bf16.mxu0 %v1289_v41  ;;  %v617_v40 = vld [vmem:[%s4951_s30 + $0x528] sm:$0xff]  ;;  %v5058_v41 = vpack.c.bf16 %v372_v31, %v372_v31 }
  0xa8   : >> { %2613 = vmatprep.subr.bf16.mxu1 %v1353_v42  ;;  %v5060_v42 = vpack.c.bf16 %v374_v32, %v374_v32  ;;  %v601_v31 = vld [vmem:[%s4951_s30 + $0x4a8] sm:$0xff] }
  0xa9   : >> { %v633_v32 = vld [vmem:[%s4951_s30 + $0x5a8] sm:$0xff] }
  0xaa   : >> { %2573 = vmatpush1.bf16.msra.mxu0 %v1288_v45  ;;  %v1389_v45 = vunpack.c.l.s8.bf16 %v585_v39 }
  0xab   : >> { %2614 = vmatpush1.bf16.msra.mxu1 %v1352_v46  ;;  %2574 = vmatprep.subr.bf16.mxu0 %v1293_v49  ;;  %v1453_v46 = vunpack.c.l.s8.bf16 %v617_v40  ;;  %v584_v49 = vld [vmem:[%s4951_s30 + $0x420] sm:$0xff] }
  0xac   : >> { %2615 = vmatprep.subr.bf16.mxu1 %v1357_v50  ;;  %v616_v50 = vld [vmem:[%s4951_s30 + $0x520] sm:$0xff]  ;;  %v1388_v51 = vunpack.c.l.s8.bf16 %v584_v49  ;;  %v1392_v59 = vunpack.c.h.s8.bf16 %v584_v49  ;;  %v605_v49 = vld [vmem:[%s4951_s30 + $0x4c8] sm:$0xff] }
  0xad   : >> { %v1452_v52 = vunpack.c.l.s8.bf16 %v616_v50  ;;  %v1456_v60 = vunpack.c.h.s8.bf16 %v616_v50  ;;  %v637_v50 = vld [vmem:[%s4951_s30 + $0x5c8] sm:$0xff] }
  0xae   : >> { %2575 = vmatpush1.bf16.msra.mxu0 %v1292_v53  ;;  %v1393_v53 = vunpack.c.h.s8.bf16 %v585_v39  ;;  %v600_v39 = vld [vmem:[%s4951_s30 + $0x4a0] sm:$0xff] }
  0xaf   : >> { %2616 = vmatpush1.bf16.msra.mxu1 %v1356_v54  ;;  %2576 = vmatprep.subr.bf16.mxu0 %v1297_v55  ;;  %v1457_v54 = vunpack.c.h.s8.bf16 %v617_v40  ;;  %v589_v55 = vld [vmem:[%s4951_s30 + $0x448] sm:$0xff]  ;;  %v632_v40 = vld [vmem:[%s4951_s30 + $0x5a0] sm:$0xff] }
  0xb0   : >> { %2617 = vmatprep.subr.bf16.mxu1 %v1361_v56  ;;  %v621_v56 = vld [vmem:[%s4951_s30 + $0x548] sm:$0xff] }
  0xb2   : >> { %2577 = vmatpush1.bf16.msra.mxu0 %v1296_v61  ;;  %v1397_v61 = vunpack.c.l.s8.bf16 %v589_v55 }
  0xb3   : >> { %2618 = vmatpush1.bf16.msra.mxu1 %v1360_v62  ;;  %2578 = vmatprep.subr.bf16.mxu0 %v1301_v63  ;;  %v1461_v62 = vunpack.c.l.s8.bf16 %v621_v56  ;;  %v588_v63 = vld [vmem:[%s4951_s30 + $0x440] sm:$0xff] }
  0xb4   : >> { %2619 = vmatprep.subr.bf16.mxu1 %v1365_v0  ;;  %v620_v0 = vld [vmem:[%s4951_s30 + $0x540] sm:$0xff]  ;;  %v1396_v1 = vunpack.c.l.s8.bf16 %v588_v63  ;;  %v1400_v7 = vunpack.c.h.s8.bf16 %v588_v63  ;;  %v609_v63 = vld [vmem:[%s4951_s30 + $0x4e8] sm:$0xff] }
  0xb5   : >> { %v1460_v2 = vunpack.c.l.s8.bf16 %v620_v0  ;;  %v1464_v8 = vunpack.c.h.s8.bf16 %v620_v0  ;;  %v641_v0 = vld [vmem:[%s4951_s30 + $0x5e8] sm:$0xff] }
  0xb6   : >> { %2579 = vmatpush1.bf16.msra.mxu0 %v1300_v3  ;;  %v1401_v3 = vunpack.c.h.s8.bf16 %v589_v55  ;;  %v604_v55 = vld [vmem:[%s4951_s30 + $0x4c0] sm:$0xff] }
  0xb7   : >> { %2620 = vmatpush1.bf16.msra.mxu1 %v1364_v4  ;;  %2580 = vmatprep.subr.bf16.mxu0 %v1305_v5  ;;  %v1465_v4 = vunpack.c.h.s8.bf16 %v621_v56  ;;  %v593_v5 = vld [vmem:[%s4951_s30 + $0x468] sm:$0xff]  ;;  %v636_v56 = vld [vmem:[%s4951_s30 + $0x5c0] sm:$0xff] }
  0xb8   : >> { %2621 = vmatprep.subr.bf16.mxu1 %v1369_v6  ;;  %v625_v6 = vld [vmem:[%s4951_s30 + $0x568] sm:$0xff] }
  0xba   : >> { %2581 = vmatpush1.bf16.msra.mxu0 %v1304_v9  ;;  %v1405_v9 = vunpack.c.l.s8.bf16 %v593_v5 }
  0xbb   : >> { %2622 = vmatpush1.bf16.msra.mxu1 %v1368_v10  ;;  %2582 = vmatprep.subr.bf16.mxu0 %v1309_v11  ;;  %v1469_v10 = vunpack.c.l.s8.bf16 %v625_v6  ;;  %v592_v11 = vld [vmem:[%s4951_s30 + $0x460] sm:$0xff] }
  0xbc   : >> { %2623 = vmatprep.subr.bf16.mxu1 %v1373_v12  ;;  %v624_v12 = vld [vmem:[%s4951_s30 + $0x560] sm:$0xff]  ;;  %v1404_v13 = vunpack.c.l.s8.bf16 %v592_v11  ;;  %v1408_v19 = vunpack.c.h.s8.bf16 %v592_v11  ;;  %v645_v11 = vld [vmem:[%s4951_s30 + $0x608] sm:$0xff] }
  0xbd   : >> { %v1468_v14 = vunpack.c.l.s8.bf16 %v624_v12  ;;  %v1472_v20 = vunpack.c.h.s8.bf16 %v624_v12  ;;  %v677_v12 = vld [vmem:[%s4951_s30 + $0x708] sm:$0xff] }
  0xbe   : >> { %2583 = vmatpush1.bf16.msra.mxu0 %v1308_v15  ;;  %v1409_v15 = vunpack.c.h.s8.bf16 %v593_v5  ;;  %v608_v5 = vld [vmem:[%s4951_s30 + $0x4e0] sm:$0xff] }
  0xbf   : >> { %2624 = vmatpush1.bf16.msra.mxu1 %v1372_v16  ;;  %2584 = vmatprep.subr.bf16.mxu0 %v1313_v17  ;;  %v1473_v16 = vunpack.c.h.s8.bf16 %v625_v6  ;;  %v597_v17 = vld [vmem:[%s4951_s30 + $0x488] sm:$0xff]  ;;  %v640_v6 = vld [vmem:[%s4951_s30 + $0x5e0] sm:$0xff] }
  0xc0   : >> { %2625 = vmatprep.subr.bf16.mxu1 %v1377_v18  ;;  %v629_v18 = vld [vmem:[%s4951_s30 + $0x588] sm:$0xff]  ;;  %v1417_v27 = vunpack.c.h.s8.bf16 %v597_v17 }
  0xc1   : >> { %v1481_v28 = vunpack.c.h.s8.bf16 %v629_v18 }
  0xc2   : >> { %2585 = vmatpush1.bf16.msra.mxu0 %v1312_v21  ;;  %v1413_v21 = vunpack.c.l.s8.bf16 %v597_v17  ;;  %v1509_v17 = vunpack.c.l.s8.bf16 %v645_v11 }
  0xc3   : >> { %2626 = vmatpush1.bf16.msra.mxu1 %v1376_v22  ;;  %2636 = vmatprep.subr.bf16.mxu0 %v1381_v25  ;;  %v1477_v22 = vunpack.c.l.s8.bf16 %v629_v18  ;;  %v1412_v25 = vunpack.c.l.s8.bf16 %v596_v23  ;;  %v1573_v18 = vunpack.c.l.s8.bf16 %v677_v12 }
  0xc4   : >> { %2677 = vmatprep.subr.bf16.mxu1 %v1445_v26  ;;  %v1476_v26 = vunpack.c.l.s8.bf16 %v628_v24 }
  0xc5   : >> { %2587 = vmatmul.mubr.bf16.vlgmr.msra.gmra.mrb[4].mxu0 %v5050_v29 }
  0xc6   : >> { %2628 = vmatmul.mubr.bf16.vlgmr.msra.gmra.mrb[4].mxu1 %v5052_v30  ;;  %2637 = vmatpush1.bf16.msra.mxu0 %v1380_v33  ;;  %v1416_v33 = vunpack.c.h.s8.bf16 %v596_v23  ;;  %v376_v23 = vld [vmem:[%s4964_s8 + $0x68] sm:$0xff] }
  0xc7   : >> { %2678 = vmatpush1.bf16.msra.mxu1 %v1444_v34  ;;  %2638 = vmatprep.subr.bf16.mxu0 %v1385_v35  ;;  %v1480_v34 = vunpack.c.h.s8.bf16 %v628_v24  ;;  %v1421_v35 = vunpack.c.l.s8.bf16 %v601_v31  ;;  %v378_v24 = vld [vmem:[%s4964_s8 + $0x78] sm:$0xff] }
  0xc8   : >> { %2679 = vmatprep.subr.bf16.mxu1 %v1449_v36  ;;  %2668 = vmatprep.mubr.bf16.mxu0 %v5058_v41  ;;  %v1485_v36 = vunpack.c.l.s8.bf16 %v633_v32 }
  0xc9   : >> { %2709 = vmatprep.mubr.bf16.mxu1 %v5060_v42 }
  0xca   : >> { %2639 = vmatpush1.bf16.msra.mxu0 %v1384_v43  ;;  %v1420_v43 = vunpack.c.l.s8.bf16 %v600_v39 }
  0xcb   : >> { %2680 = vmatpush1.bf16.msra.mxu1 %v1448_v44  ;;  %2640 = vmatprep.subr.bf16.mxu0 %v1389_v45  ;;  %v1484_v44 = vunpack.c.l.s8.bf16 %v632_v40  ;;  %v1425_v45 = vunpack.c.h.s8.bf16 %v601_v31  ;;  %v649_v31 = vld [vmem:[%s4951_s30 + $0x628] sm:$0xff] }
  0xcc   : >> { %2681 = vmatprep.subr.bf16.mxu1 %v1453_v46  ;;  %v1489_v46 = vunpack.c.h.s8.bf16 %v633_v32  ;;  %v681_v32 = vld [vmem:[%s4951_s30 + $0x728] sm:$0xff] }
  0xce   : >> { %2641 = vmatpush1.bf16.msra.mxu0 %v1388_v51  ;;  %v1424_v51 = vunpack.c.h.s8.bf16 %v600_v39  ;;  %v1517_v39 = vunpack.c.l.s8.bf16 %v649_v31 }
  0xcf   : >> { %2682 = vmatpush1.bf16.msra.mxu1 %v1452_v52  ;;  %2642 = vmatprep.subr.bf16.mxu0 %v1393_v53  ;;  %v1488_v52 = vunpack.c.h.s8.bf16 %v632_v40  ;;  %v1429_v53 = vunpack.c.l.s8.bf16 %v605_v49  ;;  %v1581_v40 = vunpack.c.l.s8.bf16 %v681_v32 }
  0xd0   : >> { %2683 = vmatprep.subr.bf16.mxu1 %v1457_v54  ;;  %v1493_v54 = vunpack.c.l.s8.bf16 %v637_v50 }
  0xd2   : >> { %2643 = vmatpush1.bf16.msra.mxu0 %v1392_v59  ;;  %v1428_v59 = vunpack.c.l.s8.bf16 %v604_v55 }
  0xd3   : >> { %2684 = vmatpush1.bf16.msra.mxu1 %v1456_v60  ;;  %2644 = vmatprep.subr.bf16.mxu0 %v1397_v61  ;;  %v1492_v60 = vunpack.c.l.s8.bf16 %v636_v56  ;;  %v1433_v61 = vunpack.c.h.s8.bf16 %v605_v49  ;;  %v1521_v49 = vunpack.c.h.s8.bf16 %v649_v31 }
  0xd4   : >> { %2685 = vmatprep.subr.bf16.mxu1 %v1461_v62  ;;  %v1497_v62 = vunpack.c.h.s8.bf16 %v637_v50  ;;  %v1585_v50 = vunpack.c.h.s8.bf16 %v681_v32 }
  0xd6   : >> { %2645 = vmatpush1.bf16.msra.mxu0 %v1396_v1  ;;  %v1432_v1 = vunpack.c.h.s8.bf16 %v604_v55 }
  0xd7   : >> { %2686 = vmatpush1.bf16.msra.mxu1 %v1460_v2  ;;  %2646 = vmatprep.subr.bf16.mxu0 %v1401_v3  ;;  %v1496_v2 = vunpack.c.h.s8.bf16 %v636_v56  ;;  %v1437_v3 = vunpack.c.l.s8.bf16 %v609_v63 }
  0xd8   : >> { %2687 = vmatprep.subr.bf16.mxu1 %v1465_v4  ;;  %v1501_v4 = vunpack.c.l.s8.bf16 %v641_v0 }
  0xda   : >> { %2647 = vmatpush1.bf16.msra.mxu0 %v1400_v7  ;;  %v1436_v7 = vunpack.c.l.s8.bf16 %v608_v5 }
  0xdb   : >> { %2688 = vmatpush1.bf16.msra.mxu1 %v1464_v8  ;;  %2648 = vmatprep.subr.bf16.mxu0 %v1405_v9  ;;  %v1500_v8 = vunpack.c.l.s8.bf16 %v640_v6  ;;  %v1441_v9 = vunpack.c.h.s8.bf16 %v609_v63 }
  0xdc   : >> { %2689 = vmatprep.subr.bf16.mxu1 %v1469_v10  ;;  %v1505_v10 = vunpack.c.h.s8.bf16 %v641_v0 }
  0xde   : >> { %2649 = vmatpush1.bf16.msra.mxu0 %v1404_v13  ;;  %v1440_v13 = vunpack.c.h.s8.bf16 %v608_v5 }
  0xdf   : >> { %2690 = vmatpush1.bf16.msra.mxu1 %v1468_v14  ;;  %2650 = vmatprep.subr.bf16.mxu0 %v1409_v15  ;;  %v1504_v14 = vunpack.c.h.s8.bf16 %v640_v6  ;;  %v371_v15 = vld [vmem:[%s4964_s8 + $0x40] sm:$0xff] }
  0xe0   : >> { %2691 = vmatprep.subr.bf16.mxu1 %v1473_v16  ;;  %v373_v16 = vld [vmem:[%s4964_s8 + $0x50] sm:$0xff] }
  0xe2   : >> { %2651 = vmatpush1.bf16.msra.mxu0 %v1408_v19  ;;  %v644_v19 = vld [vmem:[%s4951_s30 + $0x600] sm:$0xff] }
  0xe3   : >> { %2692 = vmatpush1.bf16.msra.mxu1 %v1472_v20  ;;  %2652 = vmatprep.subr.bf16.mxu0 %v1413_v21  ;;  %v676_v20 = vld [vmem:[%s4951_s30 + $0x700] sm:$0xff]  ;;  %v5098_v21 = vpack.c.bf16 %v371_v15, %v371_v15 }
  0xe4   : >> { %2693 = vmatprep.subr.bf16.mxu1 %v1477_v22  ;;  %v5100_v22 = vpack.c.bf16 %v373_v16, %v373_v16 }
  0xe6   : >> { %2653 = vmatpush1.bf16.msra.mxu0 %v1412_v25  ;;  %v1508_v25 = vunpack.c.l.s8.bf16 %v644_v19 }
  0xe7   : >> { %2694 = vmatpush1.bf16.msra.mxu1 %v1476_v26  ;;  %2654 = vmatprep.subr.bf16.mxu0 %v1417_v27  ;;  %v1572_v26 = vunpack.c.l.s8.bf16 %v676_v20  ;;  %v1513_v27 = vunpack.c.h.s8.bf16 %v645_v11 }
  0xe8   : >> { %2695 = vmatprep.subr.bf16.mxu1 %v1481_v28  ;;  %v1577_v28 = vunpack.c.h.s8.bf16 %v677_v12 }
  0xea   : >> { %2655 = vmatpush1.bf16.msra.mxu0 %v1416_v33  ;;  %v5106_v33 = vpack.c.bf16 %v376_v23, %v376_v23 }
  0xeb   : >> { %2696 = vmatpush1.bf16.msra.mxu1 %v1480_v34  ;;  %2656 = vmatprep.subr.bf16.mxu0 %v1421_v35  ;;  %v5108_v34 = vpack.c.bf16 %v378_v24, %v378_v24  ;;  %v1512_v35 = vunpack.c.h.s8.bf16 %v644_v19  ;;  %v660_v19 = vld [vmem:[%s4951_s30 + $0x680] sm:$0xff] }
  0xec   : >> { %2697 = vmatprep.subr.bf16.mxu1 %v1485_v36  ;;  %v1576_v36 = vunpack.c.h.s8.bf16 %v676_v20  ;;  %v692_v20 = vld [vmem:[%s4951_s30 + $0x780] sm:$0xff]  ;;  %v1540_v23 = vunpack.c.l.s8.bf16 %v660_v19  ;;  %v1544_v31 = vunpack.c.h.s8.bf16 %v660_v19 }
  0xed   : >> { %v1604_v24 = vunpack.c.l.s8.bf16 %v692_v20  ;;  %v1608_v32 = vunpack.c.h.s8.bf16 %v692_v20  ;;  %v708_v19 = vld [vmem:[%s4951_s30 + $0x800] sm:$0xff] }
  0xee   : >> { %2657 = vmatpush1.bf16.msra.mxu0 %v1420_v43  ;;  %v648_v43 = vld [vmem:[%s4951_s30 + $0x620] sm:$0xff] }
  0xef   : >> { %2698 = vmatpush1.bf16.msra.mxu1 %v1484_v44  ;;  %2658 = vmatprep.subr.bf16.mxu0 %v1425_v45  ;;  %v680_v44 = vld [vmem:[%s4951_s30 + $0x720] sm:$0xff]  ;;  %v1516_v45 = vunpack.c.l.s8.bf16 %v648_v43 }
  0xf0   : >> { %2699 = vmatprep.subr.bf16.mxu1 %v1489_v46  ;;  %v1580_v46 = vunpack.c.l.s8.bf16 %v680_v44  ;;  %v740_v20 = vld [vmem:[%s4951_s30 + $0x900] sm:$0xff] }
  0xf2   : >> { %2659 = vmatpush1.bf16.msra.mxu0 %v1424_v51  ;;  %v653_v51 = vld [vmem:[%s4951_s30 + $0x648] sm:$0xff] }
  0xf3   : >> { %2700 = vmatpush1.bf16.msra.mxu1 %v1488_v52  ;;  %2660 = vmatprep.subr.bf16.mxu0 %v1429_v53  ;;  %v685_v52 = vld [vmem:[%s4951_s30 + $0x748] sm:$0xff]  ;;  %v1520_v53 = vunpack.c.h.s8.bf16 %v648_v43  ;;  %v1525_v55 = vunpack.c.l.s8.bf16 %v653_v51  ;;  %v1529_v63 = vunpack.c.h.s8.bf16 %v653_v51 }
  0xf4   : >> { %2701 = vmatprep.subr.bf16.mxu1 %v1493_v54  ;;  %v1584_v54 = vunpack.c.h.s8.bf16 %v680_v44  ;;  %v1589_v56 = vunpack.c.l.s8.bf16 %v685_v52  ;;  %v1593_v0 = vunpack.c.h.s8.bf16 %v685_v52 }
  0xf6   : >> { %2661 = vmatpush1.bf16.msra.mxu0 %v1428_v59  ;;  %v652_v59 = vld [vmem:[%s4951_s30 + $0x640] sm:$0xff] }
  0xf7   : >> { %2702 = vmatpush1.bf16.msra.mxu1 %v1492_v60  ;;  %2662 = vmatprep.subr.bf16.mxu0 %v1433_v61  ;;  %v684_v60 = vld [vmem:[%s4951_s30 + $0x740] sm:$0xff]  ;;  %v1524_v61 = vunpack.c.l.s8.bf16 %v652_v59 }
  0xf8   : >> { %2703 = vmatprep.subr.bf16.mxu1 %v1497_v62  ;;  %v1588_v62 = vunpack.c.l.s8.bf16 %v684_v60 }
  0xfa   : >> { %2663 = vmatpush1.bf16.msra.mxu0 %v1432_v1  ;;  %v657_v1 = vld [vmem:[%s4951_s30 + $0x668] sm:$0xff] }
  0xfb   : >> { %2704 = vmatpush1.bf16.msra.mxu1 %v1496_v2  ;;  %2664 = vmatprep.subr.bf16.mxu0 %v1437_v3  ;;  %v689_v2 = vld [vmem:[%s4951_s30 + $0x768] sm:$0xff]  ;;  %v1528_v3 = vunpack.c.h.s8.bf16 %v652_v59  ;;  %v1533_v5 = vunpack.c.l.s8.bf16 %v657_v1  ;;  %v1537_v11 = vunpack.c.h.s8.bf16 %v657_v1 }
  0xfc   : >> { %2705 = vmatprep.subr.bf16.mxu1 %v1501_v4  ;;  %v1592_v4 = vunpack.c.h.s8.bf16 %v684_v60  ;;  %v1597_v6 = vunpack.c.l.s8.bf16 %v689_v2  ;;  %v1601_v12 = vunpack.c.h.s8.bf16 %v689_v2 }
  0xfe   : >> { %2665 = vmatpush1.bf16.msra.mxu0 %v1436_v7  ;;  %v656_v7 = vld [vmem:[%s4951_s30 + $0x660] sm:$0xff] }
  0xff   : >> { %2706 = vmatpush1.bf16.msra.mxu1 %v1500_v8  ;;  %2666 = vmatprep.subr.bf16.mxu0 %v1441_v9  ;;  %v688_v8 = vld [vmem:[%s4951_s30 + $0x760] sm:$0xff]  ;;  %v1532_v9 = vunpack.c.l.s8.bf16 %v656_v7  ;;  %v1536_v15 = vunpack.c.h.s8.bf16 %v656_v7 }
 0x100   : >> { %2707 = vmatprep.subr.bf16.mxu1 %v1505_v10  ;;  %v1596_v10 = vunpack.c.l.s8.bf16 %v688_v8  ;;  %v1600_v16 = vunpack.c.h.s8.bf16 %v688_v8 }
 0x102   : >> { %2667 = vmatpush1.bf16.msra.mxu0 %v1440_v13  ;;  %v661_v13 = vld [vmem:[%s4951_s30 + $0x688] sm:$0xff] }
 0x103   : >> { %2708 = vmatpush1.bf16.msra.mxu1 %v1504_v14  ;;  %2718 = vmatprep.subr.bf16.mxu0 %v1509_v17  ;;  %v693_v14 = vld [vmem:[%s4951_s30 + $0x788] sm:$0xff]  ;;  %v1541_v17 = vunpack.c.l.s8.bf16 %v661_v13 }
 0x104   : >> { %2759 = vmatprep.subr.bf16.mxu1 %v1573_v18  ;;  %v1605_v18 = vunpack.c.l.s8.bf16 %v693_v14 }
 0x105   : >> { %2669 = vmatmul.mubr.bf16.vlgmr.msra.gmra.mrb[8].mxu0 %v5098_v21 }
 0x106   : >> { %2710 = vmatmul.mubr.bf16.vlgmr.msra.gmra.mrb[8].mxu1 %v5100_v22  ;;  %2719 = vmatpush1.bf16.msra.mxu0 %v1508_v25  ;;  %v1545_v25 = vunpack.c.h.s8.bf16 %v661_v13 }
 0x107   : >> { %2760 = vmatpush1.bf16.msra.mxu1 %v1572_v26  ;;  %2720 = vmatprep.subr.bf16.mxu0 %v1513_v27  ;;  %v1609_v26 = vunpack.c.h.s8.bf16 %v693_v14  ;;  %v665_v27 = vld [vmem:[%s4951_s30 + $0x6a8] sm:$0xff] }
 0x108   : >> { %2761 = vmatprep.subr.bf16.mxu1 %v1577_v28  ;;  %2750 = vmatprep.mubr.bf16.mxu0 %v5106_v33  ;;  %v697_v28 = vld [vmem:[%s4951_s30 + $0x7a8] sm:$0xff] }
 0x109   : >> { %2791 = vmatprep.mubr.bf16.mxu1 %v5108_v34 }
 0x10a   : >> { %2721 = vmatpush1.bf16.msra.mxu0 %v1512_v35  ;;  %v1549_v35 = vunpack.c.l.s8.bf16 %v665_v27 }
 0x10b   : >> { %2762 = vmatpush1.bf16.msra.mxu1 %v1576_v36  ;;  %2722 = vmatprep.subr.bf16.mxu0 %v1517_v39  ;;  %v1613_v36 = vunpack.c.l.s8.bf16 %v697_v28  ;;  %v664_v39 = vld [vmem:[%s4951_s30 + $0x6a0] sm:$0xff] }
 0x10c   : >> { %2763 = vmatprep.subr.bf16.mxu1 %v1581_v40  ;;  %v696_v40 = vld [vmem:[%s4951_s30 + $0x7a0] sm:$0xff]  ;;  %v1548_v43 = vunpack.c.l.s8.bf16 %v664_v39  ;;  %v1552_v51 = vunpack.c.h.s8.bf16 %v664_v39 }
 0x10d   : >> { %v1612_v44 = vunpack.c.l.s8.bf16 %v696_v40  ;;  %v1616_v52 = vunpack.c.h.s8.bf16 %v696_v40 }
 0x10e   : >> { %2723 = vmatpush1.bf16.msra.mxu0 %v1516_v45  ;;  %v1553_v45 = vunpack.c.h.s8.bf16 %v665_v27  ;;  %v1636_v27 = vunpack.c.l.s8.bf16 %v708_v19 }
 0x10f   : >> { %2764 = vmatpush1.bf16.msra.mxu1 %v1580_v46  ;;  %2724 = vmatprep.subr.bf16.mxu0 %v1521_v49  ;;  %v1617_v46 = vunpack.c.h.s8.bf16 %v697_v28  ;;  %v669_v49 = vld [vmem:[%s4951_s30 + $0x6c8] sm:$0xff]  ;;  %v1700_v28 = vunpack.c.l.s8.bf16 %v740_v20 }
 0x110   : >> { %2765 = vmatprep.subr.bf16.mxu1 %v1585_v50  ;;  %v701_v50 = vld [vmem:[%s4951_s30 + $0x7c8] sm:$0xff] }
 0x112   : >> { %2725 = vmatpush1.bf16.msra.mxu0 %v1520_v53  ;;  %v1557_v53 = vunpack.c.l.s8.bf16 %v669_v49 }
 0x113   : >> { %2766 = vmatpush1.bf16.msra.mxu1 %v1584_v54  ;;  %2726 = vmatprep.subr.bf16.mxu0 %v1525_v55  ;;  %v1621_v54 = vunpack.c.l.s8.bf16 %v701_v50  ;;  %v668_v55 = vld [vmem:[%s4951_s30 + $0x6c0] sm:$0xff] }
 0x114   : >> { %2767 = vmatprep.subr.bf16.mxu1 %v1589_v56  ;;  %v700_v56 = vld [vmem:[%s4951_s30 + $0x7c0] sm:$0xff]  ;;  %v1556_v59 = vunpack.c.l.s8.bf16 %v668_v55  ;;  %v1560_v1 = vunpack.c.h.s8.bf16 %v668_v55  ;;  %v717_v55 = vld [vmem:[%s4951_s30 + $0x848] sm:$0xff] }
 0x115   : >> { %v1620_v60 = vunpack.c.l.s8.bf16 %v700_v56  ;;  %v1624_v2 = vunpack.c.h.s8.bf16 %v700_v56  ;;  %v749_v56 = vld [vmem:[%s4951_s30 + $0x948] sm:$0xff] }
 0x116   : >> { %2727 = vmatpush1.bf16.msra.mxu0 %v1524_v61  ;;  %v1561_v61 = vunpack.c.h.s8.bf16 %v669_v49  ;;  %v712_v49 = vld [vmem:[%s4951_s30 + $0x820] sm:$0xff] }
 0x117   : >> { %2768 = vmatpush1.bf16.msra.mxu1 %v1588_v62  ;;  %2728 = vmatprep.subr.bf16.mxu0 %v1529_v63  ;;  %v1625_v62 = vunpack.c.h.s8.bf16 %v701_v50  ;;  %v673_v63 = vld [vmem:[%s4951_s30 + $0x6e8] sm:$0xff]  ;;  %v744_v50 = vld [vmem:[%s4951_s30 + $0x920] sm:$0xff] }
 0x118   : >> { %2769 = vmatprep.subr.bf16.mxu1 %v1593_v0  ;;  %v705_v0 = vld [vmem:[%s4951_s30 + $0x7e8] sm:$0xff] }
 0x11a   : >> { %2729 = vmatpush1.bf16.msra.mxu0 %v1528_v3  ;;  %v1565_v3 = vunpack.c.l.s8.bf16 %v673_v63 }
 0x11b   : >> { %2770 = vmatpush1.bf16.msra.mxu1 %v1592_v4  ;;  %2730 = vmatprep.subr.bf16.mxu0 %v1533_v5  ;;  %v1629_v4 = vunpack.c.l.s8.bf16 %v705_v0  ;;  %v672_v5 = vld [vmem:[%s4951_s30 + $0x6e0] sm:$0xff] }
 0x11c   : >> { %2771 = vmatprep.subr.bf16.mxu1 %v1597_v6  ;;  %v704_v6 = vld [vmem:[%s4951_s30 + $0x7e0] sm:$0xff]  ;;  %v1564_v7 = vunpack.c.l.s8.bf16 %v672_v5  ;;  %v1568_v13 = vunpack.c.h.s8.bf16 %v672_v5  ;;  %v721_v5 = vld [vmem:[%s4951_s30 + $0x868] sm:$0xff] }
 0x11d   : >> { %v1628_v8 = vunpack.c.l.s8.bf16 %v704_v6  ;;  %v1632_v14 = vunpack.c.h.s8.bf16 %v704_v6  ;;  %v753_v6 = vld [vmem:[%s4951_s30 + $0x968] sm:$0xff] }
 0x11e   : >> { %2731 = vmatpush1.bf16.msra.mxu0 %v1532_v9  ;;  %v1569_v9 = vunpack.c.h.s8.bf16 %v673_v63  ;;  %v716_v63 = vld [vmem:[%s4951_s30 + $0x840] sm:$0xff] }
 0x11f   : >> { %2772 = vmatpush1.bf16.msra.mxu1 %v1596_v10  ;;  %2732 = vmatprep.subr.bf16.mxu0 %v1537_v11  ;;  %v1633_v10 = vunpack.c.h.s8.bf16 %v705_v0  ;;  %v709_v11 = vld [vmem:[%s4951_s30 + $0x808] sm:$0xff]  ;;  %v748_v0 = vld [vmem:[%s4951_s30 + $0x940] sm:$0xff] }
 0x120   : >> { %2773 = vmatprep.subr.bf16.mxu1 %v1601_v12  ;;  %v741_v12 = vld [vmem:[%s4951_s30 + $0x908] sm:$0xff] }
 0x122   : >> { %2733 = vmatpush1.bf16.msra.mxu0 %v1536_v15  ;;  %v375_v15 = vld [vmem:[%s4964_s8 + $0x60] sm:$0xff] }
 0x123   : >> { %2774 = vmatpush1.bf16.msra.mxu1 %v1600_v16  ;;  %2734 = vmatprep.subr.bf16.mxu0 %v1541_v17  ;;  %v377_v16 = vld [vmem:[%s4964_s8 + $0x70] sm:$0xff]  ;;  %v1637_v17 = vunpack.c.l.s8.bf16 %v709_v11 }
 0x124   : >> { %2775 = vmatprep.subr.bf16.mxu1 %v1605_v18  ;;  %v1701_v18 = vunpack.c.l.s8.bf16 %v741_v12 }
 0x126   : >> { %2735 = vmatpush1.bf16.msra.mxu0 %v1540_v23  ;;  %v5146_v23 = vpack.c.bf16 %v375_v15, %v375_v15 }
 0x127   : >> { %2776 = vmatpush1.bf16.msra.mxu1 %v1604_v24  ;;  %2736 = vmatprep.subr.bf16.mxu0 %v1545_v25  ;;  %v5148_v24 = vpack.c.bf16 %v377_v16, %v377_v16  ;;  %v380_v25 = vld [vmem:[%s4964_s8 + $0x88] sm:$0xff] }
 0x128   : >> { %2777 = vmatprep.subr.bf16.mxu1 %v1609_v26  ;;  %v382_v26 = vld [vmem:[%s4964_s8 + $0x98] sm:$0xff]  ;;  %v5154_v39 = vpack.c.bf16 %v380_v25, %v380_v25 }
 0x129   : >> { %v5156_v40 = vpack.c.bf16 %v382_v26, %v382_v26 }
 0x12a   : >> { %2737 = vmatpush1.bf16.msra.mxu0 %v1544_v31  ;;  %v1641_v31 = vunpack.c.h.s8.bf16 %v709_v11  ;;  %v720_v11 = vld [vmem:[%s4951_s30 + $0x860] sm:$0xff] }
 0x12b   : >> { %2778 = vmatpush1.bf16.msra.mxu1 %v1608_v32  ;;  %2738 = vmatprep.subr.bf16.mxu0 %v1549_v35  ;;  %v1705_v32 = vunpack.c.h.s8.bf16 %v741_v12  ;;  %v713_v35 = vld [vmem:[%s4951_s30 + $0x828] sm:$0xff]  ;;  %v752_v12 = vld [vmem:[%s4951_s30 + $0x960] sm:$0xff]  ;;  %v1660_v25 = vunpack.c.l.s8.bf16 %v720_v11 }
 0x12c   : >> { %2779 = vmatprep.subr.bf16.mxu1 %v1613_v36  ;;  %v745_v36 = vld [vmem:[%s4951_s30 + $0x928] sm:$0xff]  ;;  %v1724_v26 = vunpack.c.l.s8.bf16 %v752_v12 }
 0x12e   : >> { %2739 = vmatpush1.bf16.msra.mxu0 %v1548_v43  ;;  %v1640_v43 = vunpack.c.h.s8.bf16 %v708_v19 }
 0x12f   : >> { %2780 = vmatpush1.bf16.msra.mxu1 %v1612_v44  ;;  %2740 = vmatprep.subr.bf16.mxu0 %v1553_v45  ;;  %v1704_v44 = vunpack.c.h.s8.bf16 %v740_v20  ;;  %v1645_v45 = vunpack.c.l.s8.bf16 %v713_v35 }
 0x130   : >> { %2781 = vmatprep.subr.bf16.mxu1 %v1617_v46  ;;  %v1709_v46 = vunpack.c.l.s8.bf16 %v745_v36 }
 0x132   : >> { %2741 = vmatpush1.bf16.msra.mxu0 %v1552_v51  ;;  %v1644_v51 = vunpack.c.l.s8.bf16 %v712_v49 }
 0x133   : >> { %2782 = vmatpush1.bf16.msra.mxu1 %v1616_v52  ;;  %2742 = vmatprep.subr.bf16.mxu0 %v1557_v53  ;;  %v1708_v52 = vunpack.c.l.s8.bf16 %v744_v50  ;;  %v1649_v53 = vunpack.c.h.s8.bf16 %v713_v35  ;;  %v725_v35 = vld [vmem:[%s4951_s30 + $0x888] sm:$0xff] }
 0x134   : >> { %2783 = vmatprep.subr.bf16.mxu1 %v1621_v54  ;;  %v1713_v54 = vunpack.c.h.s8.bf16 %v745_v36  ;;  %v757_v36 = vld [vmem:[%s4951_s30 + $0x988] sm:$0xff] }
 0x136   : >> { %2743 = vmatpush1.bf16.msra.mxu0 %v1556_v59  ;;  %v1648_v59 = vunpack.c.h.s8.bf16 %v712_v49  ;;  %v724_v49 = vld [vmem:[%s4951_s30 + $0x880] sm:$0xff] }
 0x137   : >> { %2784 = vmatpush1.bf16.msra.mxu1 %v1620_v60  ;;  %2744 = vmatprep.subr.bf16.mxu0 %v1561_v61  ;;  %v1712_v60 = vunpack.c.h.s8.bf16 %v744_v50  ;;  %v1653_v61 = vunpack.c.l.s8.bf16 %v717_v55  ;;  %v756_v50 = vld [vmem:[%s4951_s30 + $0x980] sm:$0xff] }
 0x138   : >> { %2785 = vmatprep.subr.bf16.mxu1 %v1625_v62  ;;  %v1717_v62 = vunpack.c.l.s8.bf16 %v749_v56 }
 0x13a   : >> { %2745 = vmatpush1.bf16.msra.mxu0 %v1560_v1  ;;  %v1652_v1 = vunpack.c.l.s8.bf16 %v716_v63 }
 0x13b   : >> { %2786 = vmatpush1.bf16.msra.mxu1 %v1624_v2  ;;  %2746 = vmatprep.subr.bf16.mxu0 %v1565_v3  ;;  %v1716_v2 = vunpack.c.l.s8.bf16 %v748_v0  ;;  %v1657_v3 = vunpack.c.h.s8.bf16 %v717_v55  ;;  %v729_v55 = vld [vmem:[%s4951_s30 + $0x8a8] sm:$0xff] }
 0x13c   : >> { %2787 = vmatprep.subr.bf16.mxu1 %v1629_v4  ;;  %v1721_v4 = vunpack.c.h.s8.bf16 %v749_v56  ;;  %v761_v56 = vld [vmem:[%s4951_s30 + $0x9a8] sm:$0xff] }
 0x13e   : >> { %2747 = vmatpush1.bf16.msra.mxu0 %v1564_v7  ;;  %v1656_v7 = vunpack.c.h.s8.bf16 %v716_v63  ;;  %v728_v63 = vld [vmem:[%s4951_s30 + $0x8a0] sm:$0xff] }
 0x13f   : >> { %2788 = vmatpush1.bf16.msra.mxu1 %v1628_v8  ;;  %2748 = vmatprep.subr.bf16.mxu0 %v1569_v9  ;;  %v1720_v8 = vunpack.c.h.s8.bf16 %v748_v0  ;;  %v1661_v9 = vunpack.c.l.s8.bf16 %v721_v5  ;;  %v760_v0 = vld [vmem:[%s4951_s30 + $0x9a0] sm:$0xff] }
 0x140   : >> { %2789 = vmatprep.subr.bf16.mxu1 %v1633_v10  ;;  %v1725_v10 = vunpack.c.l.s8.bf16 %v753_v6 }
 0x142   : >> { %2749 = vmatpush1.bf16.msra.mxu0 %v1568_v13 }
 0x143   : >> { %2790 = vmatpush1.bf16.msra.mxu1 %v1632_v14  ;;  %2800 = vmatprep.subr.bf16.mxu0 %v1637_v17 }
 0x144   : >> { %2841 = vmatprep.subr.bf16.mxu1 %v1701_v18 }
 0x145   : >> { %2751 = vmatmul.mubr.bf16.vlgmr.msra.gmra.mrb[12].mxu0 %v5146_v23 }
 0x146   : >> { %2792 = vmatmul.mubr.bf16.vlgmr.msra.gmra.mrb[12].mxu1 %v5148_v24  ;;  %2801 = vmatpush1.bf16.msra.mxu0 %v1636_v27 }
 0x147   : >> { %2842 = vmatpush1.bf16.msra.mxu1 %v1700_v28  ;;  %2802 = vmatprep.subr.bf16.mxu0 %v1641_v31  ;;  %v1665_v31 = vunpack.c.h.s8.bf16 %v721_v5  ;;  %v733_v5 = vld [vmem:[%s4951_s30 + $0x8c8] sm:$0xff] }
 0x148   : >> { %2843 = vmatprep.subr.bf16.mxu1 %v1705_v32  ;;  %2832 = vmatprep.mubr.bf16.mxu0 %v5154_v39  ;;  %v1729_v32 = vunpack.c.h.s8.bf16 %v753_v6  ;;  %v765_v6 = vld [vmem:[%s4951_s30 + $0x9c8] sm:$0xff] }
 0x149   : >> { %2873 = vmatprep.mubr.bf16.mxu1 %v5156_v40 }
 0x14a   : >> { %2803 = vmatpush1.bf16.msra.mxu0 %v1640_v43  ;;  %v1664_v43 = vunpack.c.h.s8.bf16 %v720_v11  ;;  %v732_v11 = vld [vmem:[%s4951_s30 + $0x8c0] sm:$0xff] }
 0x14b   : >> { %2844 = vmatpush1.bf16.msra.mxu1 %v1704_v44  ;;  %2804 = vmatprep.subr.bf16.mxu0 %v1645_v45  ;;  %v1728_v44 = vunpack.c.h.s8.bf16 %v752_v12  ;;  %v1669_v45 = vunpack.c.l.s8.bf16 %v725_v35  ;;  %v764_v12 = vld [vmem:[%s4951_s30 + $0x9c0] sm:$0xff] }
 0x14c   : >> { %2845 = vmatprep.subr.bf16.mxu1 %v1709_v46  ;;  %v1733_v46 = vunpack.c.l.s8.bf16 %v757_v36 }
 0x14e   : >> { %2805 = vmatpush1.bf16.msra.mxu0 %v1644_v51  ;;  %v1668_v51 = vunpack.c.l.s8.bf16 %v724_v49 }
 0x14f   : >> { %2846 = vmatpush1.bf16.msra.mxu1 %v1708_v52  ;;  %2806 = vmatprep.subr.bf16.mxu0 %v1649_v53  ;;  %v1732_v52 = vunpack.c.l.s8.bf16 %v756_v50  ;;  %v1673_v53 = vunpack.c.h.s8.bf16 %v725_v35 }
 0x150   : >> { %2847 = vmatprep.subr.bf16.mxu1 %v1713_v54  ;;  %v1737_v54 = vunpack.c.h.s8.bf16 %v757_v36 }
 0x152   : >> { %2807 = vmatpush1.bf16.msra.mxu0 %v1648_v59  ;;  %v1672_v59 = vunpack.c.h.s8.bf16 %v724_v49 }
 0x153   : >> { %2848 = vmatpush1.bf16.msra.mxu1 %v1712_v60  ;;  %2808 = vmatprep.subr.bf16.mxu0 %v1653_v61  ;;  %v1736_v60 = vunpack.c.h.s8.bf16 %v756_v50  ;;  %v1677_v61 = vunpack.c.l.s8.bf16 %v729_v55 }
 0x154   : >> { %2849 = vmatprep.subr.bf16.mxu1 %v1717_v62  ;;  %v1741_v62 = vunpack.c.l.s8.bf16 %v761_v56 }
 0x156   : >> { %2809 = vmatpush1.bf16.msra.mxu0 %v1652_v1  ;;  %v1676_v1 = vunpack.c.l.s8.bf16 %v728_v63 }
 0x157   : >> { %2850 = vmatpush1.bf16.msra.mxu1 %v1716_v2  ;;  %2810 = vmatprep.subr.bf16.mxu0 %v1657_v3  ;;  %v1740_v2 = vunpack.c.l.s8.bf16 %v760_v0  ;;  %v1681_v3 = vunpack.c.h.s8.bf16 %v729_v55  ;;  %v772_v55 = vld [vmem:[%s4951_s30 + $0xa00] sm:$0xff] }
 0x158   : >> { %2851 = vmatprep.subr.bf16.mxu1 %v1721_v4  ;;  %v2506_v13 = vpop.f32.mrb[0].mxu0  ;;  %v1745_v4 = vunpack.c.h.s8.bf16 %v761_v56  ;;  %v804_v56 = vld [vmem:[%s4951_s30 + $0xb00] sm:$0xff] }
 0x159   : >> { %v2547_v14 = vpop.f32.mrb[0].mxu1  ;;  %v2508_v16 = vpop.f32.mrb[1].mxu0 }
 0x15a   : >> { %v5172_v15 = vadd.f32 %v2547_v14, %v2506_v13  ;;  %v2549_v17 = vpop.f32.mrb[1].mxu1  ;;  %v2510_v19 = vpop.f32.mrb[2].mxu0  ;;  %2811 = vmatpush1.bf16.msra.mxu0 %v1656_v7  ;;  %v1680_v7 = vunpack.c.h.s8.bf16 %v728_v63  ;;  %v1684_v13 = vunpack.c.l.s8.bf16 %v732_v11  ;;  %v1748_v14 = vunpack.c.l.s8.bf16 %v764_v12 }
 0x15b   : >> { %v5174_v18 = vadd.f32 %v2549_v17, %v2508_v16  ;;  %v2551_v20 = vpop.f32.mrb[2].mxu1  ;;  %2852 = vmatpush1.bf16.msra.mxu1 %v1720_v8  ;;  %v2511_v27 = vpop.f32.mrb[3].mxu0  ;;  %2812 = vmatprep.subr.bf16.mxu0 %v1661_v9  ;;  %v1744_v8 = vunpack.c.h.s8.bf16 %v760_v0  ;;  %v1685_v9 = vunpack.c.l.s8.bf16 %v733_v5  ;;  %v1689_v16 = vunpack.c.h.s8.bf16 %v733_v5  ;;  %v737_v19 = vld [vmem:[%s4951_s30 + $0x8e8] sm:$0xff] }
 0x15c   : >> { %v2552_v28 = vpop.f32.mrb[3].mxu1  ;;  %2853 = vmatprep.subr.bf16.mxu1 %v1725_v10  ;;  %v1749_v10 = vunpack.c.l.s8.bf16 %v765_v6  ;;  %v1753_v17 = vunpack.c.h.s8.bf16 %v765_v6  ;;  %v769_v20 = vld [vmem:[%s4951_s30 + $0x9e8] sm:$0xff]  ;;  %v1693_v27 = vunpack.c.l.s8.bf16 %v737_v19  ;;  %v1764_v63 = vunpack.c.l.s8.bf16 %v772_v55 }
 0x15d   : >> { %v1757_v28 = vunpack.c.l.s8.bf16 %v769_v20  ;;  %v1828_v0 = vunpack.c.l.s8.bf16 %v804_v56 }
 0x15e   : >> { %2813 = vmatpush1.bf16.msra.mxu0 %v1660_v25  ;;  %v1688_v25 = vunpack.c.h.s8.bf16 %v732_v11  ;;  %v776_v11 = vld [vmem:[%s4951_s30 + $0xa20] sm:$0xff] }
 0x15f   : >> { %2854 = vmatpush1.bf16.msra.mxu1 %v1724_v26  ;;  %2814 = vmatprep.subr.bf16.mxu0 %v1665_v31  ;;  %v1752_v26 = vunpack.c.h.s8.bf16 %v764_v12  ;;  %v736_v31 = vld [vmem:[%s4951_s30 + $0x8e0] sm:$0xff] }
 0x160   : >> { %2855 = vmatprep.subr.bf16.mxu1 %v1729_v32  ;;  %v768_v32 = vld [vmem:[%s4951_s30 + $0x9e0] sm:$0xff]  ;;  %v1692_v35 = vunpack.c.l.s8.bf16 %v736_v31  ;;  %v1696_v49 = vunpack.c.h.s8.bf16 %v736_v31 }
 0x161   : >> { %v1756_v36 = vunpack.c.l.s8.bf16 %v768_v32  ;;  %v1760_v50 = vunpack.c.h.s8.bf16 %v768_v32  ;;  %v808_v12 = vld [vmem:[%s4951_s30 + $0xb20] sm:$0xff] }
 0x162   : >> { %2815 = vmatpush1.bf16.msra.mxu0 %v1664_v43  ;;  %v1697_v43 = vunpack.c.h.s8.bf16 %v737_v19  ;;  %v781_v19 = vld [vmem:[%s4951_s30 + $0xa48] sm:$0xff]  ;;  %v780_v31 = vld [vmem:[%s4951_s30 + $0xa40] sm:$0xff] }
 0x163   : >> { %2856 = vmatpush1.bf16.msra.mxu1 %v1728_v44  ;;  %2816 = vmatprep.subr.bf16.mxu0 %v1669_v45  ;;  %v1761_v44 = vunpack.c.h.s8.bf16 %v769_v20  ;;  %v773_v45 = vld [vmem:[%s4951_s30 + $0xa08] sm:$0xff]  ;;  %v812_v32 = vld [vmem:[%s4951_s30 + $0xb40] sm:$0xff] }
 0x164   : >> { %2857 = vmatprep.subr.bf16.mxu1 %v1733_v46  ;;  %v805_v46 = vld [vmem:[%s4951_s30 + $0xb08] sm:$0xff] }
 0x165   : >> { %v813_v20 = vld [vmem:[%s4951_s30 + $0xb48] sm:$0xff] }
 0x166   : >> { %2817 = vmatpush1.bf16.msra.mxu0 %v1668_v51  ;;  %v379_v51 = vld [vmem:[%s4964_s8 + $0x80] sm:$0xff] }
 0x167   : >> { %2858 = vmatpush1.bf16.msra.mxu1 %v1732_v52  ;;  %2818 = vmatprep.subr.bf16.mxu0 %v1673_v53  ;;  %v381_v52 = vld [vmem:[%s4964_s8 + $0x90] sm:$0xff]  ;;  %v1765_v53 = vunpack.c.l.s8.bf16 %v773_v45 }
 0x168   : >> { %2859 = vmatprep.subr.bf16.mxu1 %v1737_v54  ;;  %v1829_v54 = vunpack.c.l.s8.bf16 %v805_v46 }
 0x16a   : >> { %2819 = vmatpush1.bf16.msra.mxu0 %v1672_v59  ;;  %v5198_v59 = vpack.c.bf16 %v379_v51, %v379_v51 }
 0x16b   : >> { %2860 = vmatpush1.bf16.msra.mxu1 %v1736_v60  ;;  %2820 = vmatprep.subr.bf16.mxu0 %v1677_v61  ;;  %v5200_v60 = vpack.c.bf16 %v381_v52, %v381_v52  ;;  %v384_v61 = vld [vmem:[%s4964_s8 + $0xa8] sm:$0xff] }
 0x16c   : >> { %2861 = vmatprep.subr.bf16.mxu1 %v1741_v62  ;;  %v386_v62 = vld [vmem:[%s4964_s8 + $0xb8] sm:$0xff]  ;;  %v5206_v5 = vpack.c.bf16 %v384_v61, %v384_v61 }
 0x16d   : >> { %v5208_v6 = vpack.c.bf16 %v386_v62, %v386_v62 }
 0x16e   : >> { %2821 = vmatpush1.bf16.msra.mxu0 %v1676_v1  ;;  %v1769_v1 = vunpack.c.h.s8.bf16 %v773_v45  ;;  %v785_v45 = vld [vmem:[%s4951_s30 + $0xa68] sm:$0xff] }
 0x16f   : >> { %2862 = vmatpush1.bf16.msra.mxu1 %v1740_v2  ;;  %2822 = vmatprep.subr.bf16.mxu0 %v1681_v3  ;;  %v1833_v2 = vunpack.c.h.s8.bf16 %v805_v46  ;;  %v777_v3 = vld [vmem:[%s4951_s30 + $0xa28] sm:$0xff]  ;;  %v1789_v51 = vunpack.c.l.s8.bf16 %v785_v45 }
 0x170   : >> { %2863 = vmatprep.subr.bf16.mxu1 %v1745_v4  ;;  %v809_v4 = vld [vmem:[%s4951_s30 + $0xb28] sm:$0xff] }
 0x171   : >> { %v817_v46 = vld [vmem:[%s4951_s30 + $0xb68] sm:$0xff] }
 0x172   : >> { %2823 = vmatpush1.bf16.msra.mxu0 %v1680_v7  ;;  %v1768_v7 = vunpack.c.h.s8.bf16 %v772_v55  ;;  %v1853_v52 = vunpack.c.l.s8.bf16 %v817_v46 }
 0x173   : >> { %2864 = vmatpush1.bf16.msra.mxu1 %v1744_v8  ;;  %2824 = vmatprep.subr.bf16.mxu0 %v1685_v9  ;;  %v1832_v8 = vunpack.c.h.s8.bf16 %v804_v56  ;;  %v1773_v9 = vunpack.c.l.s8.bf16 %v777_v3 }
 0x174   : >> { %2865 = vmatprep.subr.bf16.mxu1 %v1749_v10  ;;  %v1837_v10 = vunpack.c.l.s8.bf16 %v809_v4 }
 0x176   : >> { %2825 = vmatpush1.bf16.msra.mxu0 %v1684_v13  ;;  %v1772_v13 = vunpack.c.l.s8.bf16 %v776_v11 }
 0x177   : >> { %2866 = vmatpush1.bf16.msra.mxu1 %v1748_v14  ;;  %2826 = vmatprep.subr.bf16.mxu0 %v1689_v16  ;;  %v1836_v14 = vunpack.c.l.s8.bf16 %v808_v12  ;;  %v1777_v16 = vunpack.c.h.s8.bf16 %v777_v3 }
 0x178   : >> { %2867 = vmatprep.subr.bf16.mxu1 %v1753_v17  ;;  %v1841_v17 = vunpack.c.h.s8.bf16 %v809_v4 }
 0x17a   : >> { %2827 = vmatpush1.bf16.msra.mxu0 %v1688_v25  ;;  %v1776_v25 = vunpack.c.h.s8.bf16 %v776_v11 }
 0x17b   : >> { %2868 = vmatpush1.bf16.msra.mxu1 %v1752_v26  ;;  %2828 = vmatprep.subr.bf16.mxu0 %v1693_v27  ;;  %v1840_v26 = vunpack.c.h.s8.bf16 %v808_v12  ;;  %v1781_v27 = vunpack.c.l.s8.bf16 %v781_v19  ;;  %v821_v12 = vld [vmem:[%s4951_s30 + $0xb88] sm:$0xff] }
 0x17c   : >> { %2869 = vmatprep.subr.bf16.mxu1 %v1757_v28  ;;  %v1845_v28 = vunpack.c.l.s8.bf16 %v813_v20 }
 0x17e   : >> { %2829 = vmatpush1.bf16.msra.mxu0 %v1692_v35  ;;  %v1780_v35 = vunpack.c.l.s8.bf16 %v780_v31 }
 0x17f   : >> { %2870 = vmatpush1.bf16.msra.mxu1 %v1756_v36  ;;  %2830 = vmatprep.subr.bf16.mxu0 %v1697_v43  ;;  %v1844_v36 = vunpack.c.l.s8.bf16 %v812_v32  ;;  %v1785_v43 = vunpack.c.h.s8.bf16 %v781_v19  ;;  %v788_v19 = vld [vmem:[%s4951_s30 + $0xa80] sm:$0xff] }
 0x180   : >> { %2871 = vmatprep.subr.bf16.mxu1 %v1761_v44  ;;  %v1849_v44 = vunpack.c.h.s8.bf16 %v813_v20  ;;  %v820_v20 = vld [vmem:[%s4951_s30 + $0xb80] sm:$0xff] }
 0x182   : >> { %2831 = vmatpush1.bf16.msra.mxu0 %v1696_v49  ;;  %v1784_v49 = vunpack.c.h.s8.bf16 %v780_v31  ;;  %v793_v31 = vld [vmem:[%s4951_s30 + $0xaa8] sm:$0xff] }
 0x183   : >> { %2872 = vmatpush1.bf16.msra.mxu1 %v1760_v50  ;;  %2882 = vmatprep.subr.bf16.mxu0 %v1765_v53  ;;  %v1848_v50 = vunpack.c.h.s8.bf16 %v812_v32  ;;  %v784_v53 = vld [vmem:[%s4951_s30 + $0xa60] sm:$0xff]  ;;  %v825_v32 = vld [vmem:[%s4951_s30 + $0xba8] sm:$0xff] }
 0x184   : >> { %2923 = vmatprep.subr.bf16.mxu1 %v1829_v54  ;;  %v816_v54 = vld [vmem:[%s4951_s30 + $0xb60] sm:$0xff]  ;;  %v1788_v3 = vunpack.c.l.s8.bf16 %v784_v53 }
 0x185   : >> { %2833 = vmatmul.mubr.bf16.vlgmr.msra.gmra.mrb[16].mxu0 %v5198_v59  ;;  %v1852_v4 = vunpack.c.l.s8.bf16 %v816_v54 }
 0x186   : >> { %2874 = vmatmul.mubr.bf16.vlgmr.msra.gmra.mrb[16].mxu1 %v5200_v60  ;;  %2883 = vmatpush1.bf16.msra.mxu0 %v1764_v63 }
 0x187   : >> { %2924 = vmatpush1.bf16.msra.mxu1 %v1828_v0  ;;  %2884 = vmatprep.subr.bf16.mxu0 %v1769_v1 }
 0x188   : >> { %2925 = vmatprep.subr.bf16.mxu1 %v1833_v2  ;;  %2914 = vmatprep.mubr.bf16.mxu0 %v5206_v5 }
 0x189   : >> { %2955 = vmatprep.mubr.bf16.mxu1 %v5208_v6 }
 0x18a   : >> { %2885 = vmatpush1.bf16.msra.mxu0 %v1768_v7 }
 0x18b   : >> { %2926 = vmatpush1.bf16.msra.mxu1 %v1832_v8  ;;  %2886 = vmatprep.subr.bf16.mxu0 %v1773_v9 }
 0x18c   : >> { %2927 = vmatprep.subr.bf16.mxu1 %v1837_v10  ;;  %v1857_v10 = vunpack.c.h.s8.bf16 %v817_v46  ;;  %v824_v46 = vld [vmem:[%s4951_s30 + $0xba0] sm:$0xff] }
 0x18e   : >> { %2887 = vmatpush1.bf16.msra.mxu0 %v1772_v13  ;;  %v1792_v13 = vunpack.c.h.s8.bf16 %v784_v53  ;;  %v797_v53 = vld [vmem:[%s4951_s30 + $0xac8] sm:$0xff] }
 0x18f   : >> { %2928 = vmatpush1.bf16.msra.mxu1 %v1836_v14  ;;  %2888 = vmatprep.subr.bf16.mxu0 %v1777_v16  ;;  %v1856_v14 = vunpack.c.h.s8.bf16 %v816_v54  ;;  %v829_v54 = vld [vmem:[%s4951_s30 + $0xbc8] sm:$0xff] }
 0x190   : >> { %2929 = vmatprep.subr.bf16.mxu1 %v1841_v17  ;;  %v1861_v17 = vunpack.c.l.s8.bf16 %v821_v12 }
 0x192   : >> { %2889 = vmatpush1.bf16.msra.mxu0 %v1776_v25  ;;  %v1796_v25 = vunpack.c.l.s8.bf16 %v788_v19 }
 0x193   : >> { %2930 = vmatpush1.bf16.msra.mxu1 %v1840_v26  ;;  %2890 = vmatprep.subr.bf16.mxu0 %v1781_v27  ;;  %v1860_v26 = vunpack.c.l.s8.bf16 %v820_v20 }
 0x194   : >> { %2931 = vmatprep.subr.bf16.mxu1 %v1845_v28  ;;  %v1865_v28 = vunpack.c.h.s8.bf16 %v821_v12 }
 0x196   : >> { %2891 = vmatpush1.bf16.msra.mxu0 %v1780_v35  ;;  %v1800_v35 = vunpack.c.h.s8.bf16 %v788_v19 }
 0x197   : >> { %2932 = vmatpush1.bf16.msra.mxu1 %v1844_v36  ;;  %2892 = vmatprep.subr.bf16.mxu0 %v1785_v43  ;;  %v1864_v36 = vunpack.c.h.s8.bf16 %v820_v20  ;;  %v1805_v43 = vunpack.c.l.s8.bf16 %v793_v31 }
 0x198   : >> { %2933 = vmatprep.subr.bf16.mxu1 %v1849_v44  ;;  %v2588_v55 = vpop.f32.mrb[4].mxu0  ;;  %v1869_v44 = vunpack.c.l.s8.bf16 %v825_v32 }
 0x199   : >> { %v2629_v56 = vpop.f32.mrb[4].mxu1  ;;  %v2589_v61 = vadd.f32 %v2588_v55, %v5172_v15  ;;  %v2590_v62 = vpop.f32.mrb[5].mxu0  ;;  %v1793_v15 = vunpack.c.h.s8.bf16 %v785_v45  ;;  %v792_v45 = vld [vmem:[%s4951_s30 + $0xaa0] sm:$0xff] }
 0x19a   : >> { %v2631_v63 = vpop.f32.mrb[5].mxu1  ;;  %v2591_v0 = vadd.f32 %v2590_v62, %v5174_v18  ;;  %v2592_v1 = vpop.f32.mrb[6].mxu0  ;;  %2893 = vmatpush1.bf16.msra.mxu0 %v1784_v49  ;;  %v789_v18 = vld [vmem:[%s4951_s30 + $0xa88] sm:$0xff]  ;;  %v1804_v49 = vunpack.c.l.s8.bf16 %v792_v45  ;;  %v1808_v55 = vunpack.c.h.s8.bf16 %v792_v45  ;;  %v1877_v62 = vunpack.c.l.s8.bf16 %v829_v54 }
 0x19b   : >> { %v2633_v2 = vpop.f32.mrb[6].mxu1  ;;  %2934 = vmatpush1.bf16.msra.mxu1 %v1848_v50  ;;  %v5226_v7 = vadd.f32 %v2629_v56, %v2589_v61  ;;  %v2593_v8 = vpop.f32.mrb[7].mxu0  ;;  %2894 = vmatprep.subr.bf16.mxu0 %v1789_v51  ;;  %v1797_v16 = vunpack.c.l.s8.bf16 %v789_v18  ;;  %v1801_v27 = vunpack.c.h.s8.bf16 %v789_v18  ;;  %v1868_v50 = vunpack.c.l.s8.bf16 %v824_v46 }
 0x19c   : >> { %v2634_v9 = vpop.f32.mrb[7].mxu1  ;;  %2935 = vmatprep.subr.bf16.mxu1 %v1853_v52  ;;  %v5228_v11 = vadd.f32 %v2631_v63, %v2591_v0  ;;  %v1809_v51 = vunpack.c.h.s8.bf16 %v793_v31  ;;  %v1873_v52 = vunpack.c.h.s8.bf16 %v825_v32  ;;  %v1872_v56 = vunpack.c.h.s8.bf16 %v824_v46  ;;  %v796_v63 = vld [vmem:[%s4951_s30 + $0xac0] sm:$0xff]  ;;  %v801_v8 = vld [vmem:[%s4951_s30 + $0xae8] sm:$0xff]  ;;  %v385_v32 = vld [vmem:[%s4964_s8 + $0xb0] sm:$0xff] }
 0x19d   : >> { %v1813_v61 = vunpack.c.l.s8.bf16 %v797_v53  ;;  %v828_v0 = vld [vmem:[%s4951_s30 + $0xbc0] sm:$0xff]  ;;  %v1812_v1 = vunpack.c.l.s8.bf16 %v796_v63  ;;  %v833_v9 = vld [vmem:[%s4951_s30 + $0xbe8] sm:$0xff]  ;;  %v1821_v18 = vunpack.c.l.s8.bf16 %v801_v8  ;;  %v1825_v19 = vunpack.c.h.s8.bf16 %v801_v8 }
 0x19e   : >> { %2895 = vmatpush1.bf16.msra.mxu0 %v1788_v3  ;;  %v1876_v2 = vunpack.c.l.s8.bf16 %v828_v0  ;;  %v1817_v3 = vunpack.c.h.s8.bf16 %v797_v53  ;;  %v1885_v12 = vunpack.c.l.s8.bf16 %v833_v9  ;;  %v1889_v20 = vunpack.c.h.s8.bf16 %v833_v9  ;;  %v383_v31 = vld [vmem:[%s4964_s8 + $0xa0] sm:$0xff] }
 0x19f   : >> { %2936 = vmatpush1.bf16.msra.mxu1 %v1852_v4  ;;  %2896 = vmatprep.subr.bf16.mxu0 %v1793_v15  ;;  %v1881_v4 = vunpack.c.h.s8.bf16 %v829_v54  ;;  %v1816_v15 = vunpack.c.h.s8.bf16 %v796_v63  ;;  %v5252_v45 = vpack.c.bf16 %v383_v31, %v383_v31  ;;  %v5254_v46 = vpack.c.bf16 %v385_v32, %v385_v32  ;;  %v849_v31 = vld [vmem:[%s4951_s30 + $0xc68] sm:$0xff] }
 0x1a0   : >> { %2937 = vmatprep.subr.bf16.mxu1 %v1857_v10  ;;  %v1880_v10 = vunpack.c.h.s8.bf16 %v828_v0  ;;  %v881_v32 = vld [vmem:[%s4951_s30 + $0xd68] sm:$0xff] }
 0x1a2   : >> { %2897 = vmatpush1.bf16.msra.mxu0 %v1792_v13  ;;  %v800_v13 = vld [vmem:[%s4951_s30 + $0xae0] sm:$0xff] }
 0x1a3   : >> { %2938 = vmatpush1.bf16.msra.mxu1 %v1856_v14  ;;  %2898 = vmatprep.subr.bf16.mxu0 %v1797_v16  ;;  %v832_v14 = vld [vmem:[%s4951_s30 + $0xbe0] sm:$0xff]  ;;  %v1820_v16 = vunpack.c.l.s8.bf16 %v800_v13 }
 0x1a4   : >> { %2939 = vmatprep.subr.bf16.mxu1 %v1861_v17  ;;  %v1884_v17 = vunpack.c.l.s8.bf16 %v832_v14 }
 0x1a6   : >> { %2899 = vmatpush1.bf16.msra.mxu0 %v1796_v25  ;;  %v837_v25 = vld [vmem:[%s4951_s30 + $0xc08] sm:$0xff] }
 0x1a7   : >> { %2940 = vmatpush1.bf16.msra.mxu1 %v1860_v26  ;;  %2900 = vmatprep.subr.bf16.mxu0 %v1801_v27  ;;  %v869_v26 = vld [vmem:[%s4951_s30 + $0xd08] sm:$0xff]  ;;  %v1824_v27 = vunpack.c.h.s8.bf16 %v800_v13  ;;  %v1897_v53 = vunpack.c.h.s8.bf16 %v837_v25 }
 0x1a8   : >> { %2941 = vmatprep.subr.bf16.mxu1 %v1865_v28  ;;  %v1888_v28 = vunpack.c.h.s8.bf16 %v832_v14  ;;  %v1961_v54 = vunpack.c.h.s8.bf16 %v869_v26 }
 0x1aa   : >> { %2901 = vmatpush1.bf16.msra.mxu0 %v1800_v35  ;;  %v1893_v35 = vunpack.c.l.s8.bf16 %v837_v25 }
 0x1ab   : >> { %2942 = vmatpush1.bf16.msra.mxu1 %v1864_v36  ;;  %2902 = vmatprep.subr.bf16.mxu0 %v1805_v43  ;;  %v1957_v36 = vunpack.c.l.s8.bf16 %v869_v26  ;;  %v836_v43 = vld [vmem:[%s4951_s30 + $0xc00] sm:$0xff] }
 0x1ac   : >> { %2943 = vmatprep.subr.bf16.mxu1 %v1869_v44  ;;  %v868_v44 = vld [vmem:[%s4951_s30 + $0xd00] sm:$0xff]  ;;  %v1896_v63 = vunpack.c.h.s8.bf16 %v836_v43 }
 0x1ad   : >> { %v1960_v0 = vunpack.c.h.s8.bf16 %v868_v44 }
 0x1ae   : >> { %2903 = vmatpush1.bf16.msra.mxu0 %v1804_v49  ;;  %v388_v49 = vld [vmem:[%s4964_s8 + $0xc8] sm:$0xff] }
 0x1af   : >> { %2944 = vmatpush1.bf16.msra.mxu1 %v1868_v50  ;;  %2904 = vmatprep.subr.bf16.mxu0 %v1809_v51  ;;  %v390_v50 = vld [vmem:[%s4964_s8 + $0xd8] sm:$0xff]  ;;  %v1892_v51 = vunpack.c.l.s8.bf16 %v836_v43  ;;  %v1917_v43 = vunpack.c.l.s8.bf16 %v849_v31 }
 0x1b0   : >> { %2945 = vmatprep.subr.bf16.mxu1 %v1873_v52  ;;  %v1956_v52 = vunpack.c.l.s8.bf16 %v868_v44  ;;  %v1981_v44 = vunpack.c.l.s8.bf16 %v881_v32 }
 0x1b2   : >> { %2905 = vmatpush1.bf16.msra.mxu0 %v1808_v55  ;;  %v841_v55 = vld [vmem:[%s4951_s30 + $0xc28] sm:$0xff] }
 0x1b3   : >> { %2946 = vmatpush1.bf16.msra.mxu1 %v1872_v56  ;;  %2906 = vmatprep.subr.bf16.mxu0 %v1813_v61  ;;  %v873_v56 = vld [vmem:[%s4951_s30 + $0xd28] sm:$0xff]  ;;  %v5260_v61 = vpack.c.bf16 %v388_v49, %v388_v49  ;;  %v848_v49 = vld [vmem:[%s4951_s30 + $0xc60] sm:$0xff] }
 0x1b4   : >> { %2947 = vmatprep.subr.bf16.mxu1 %v1877_v62  ;;  %v5262_v62 = vpack.c.bf16 %v390_v50, %v390_v50  ;;  %v880_v50 = vld [vmem:[%s4951_s30 + $0xd60] sm:$0xff] }
 0x1b6   : >> { %2907 = vmatpush1.bf16.msra.mxu0 %v1812_v1  ;;  %v1901_v1 = vunpack.c.l.s8.bf16 %v841_v55 }
 0x1b7   : >> { %2948 = vmatpush1.bf16.msra.mxu1 %v1876_v2  ;;  %2908 = vmatprep.subr.bf16.mxu0 %v1817_v3  ;;  %v1965_v2 = vunpack.c.l.s8.bf16 %v873_v56  ;;  %v840_v3 = vld [vmem:[%s4951_s30 + $0xc20] sm:$0xff] }
 0x1b8   : >> { %2949 = vmatprep.subr.bf16.mxu1 %v1881_v4  ;;  %v872_v4 = vld [vmem:[%s4951_s30 + $0xd20] sm:$0xff]  ;;  %v1900_v8 = vunpack.c.l.s8.bf16 %v840_v3  ;;  %v1904_v13 = vunpack.c.h.s8.bf16 %v840_v3 }
 0x1b9   : >> { %v1964_v9 = vunpack.c.l.s8.bf16 %v872_v4  ;;  %v1968_v14 = vunpack.c.h.s8.bf16 %v872_v4 }
 0x1ba   : >> { %2909 = vmatpush1.bf16.msra.mxu0 %v1816_v15  ;;  %v1905_v15 = vunpack.c.h.s8.bf16 %v841_v55 }
 0x1bb   : >> { %2950 = vmatpush1.bf16.msra.mxu1 %v1880_v10  ;;  %2910 = vmatprep.subr.bf16.mxu0 %v1821_v18  ;;  %v1969_v10 = vunpack.c.h.s8.bf16 %v873_v56  ;;  %v845_v18 = vld [vmem:[%s4951_s30 + $0xc48] sm:$0xff] }
 0x1bc   : >> { %2951 = vmatprep.subr.bf16.mxu1 %v1885_v12  ;;  %v877_v12 = vld [vmem:[%s4951_s30 + $0xd48] sm:$0xff] }
 0x1be   : >> { %2911 = vmatpush1.bf16.msra.mxu0 %v1820_v16  ;;  %v1909_v16 = vunpack.c.l.s8.bf16 %v845_v18 }
 0x1bf   : >> { %2952 = vmatpush1.bf16.msra.mxu1 %v1884_v17  ;;  %2912 = vmatprep.subr.bf16.mxu0 %v1825_v19  ;;  %v1973_v17 = vunpack.c.l.s8.bf16 %v877_v12  ;;  %v844_v19 = vld [vmem:[%s4951_s30 + $0xc40] sm:$0xff] }
 0x1c0   : >> { %2953 = vmatprep.subr.bf16.mxu1 %v1889_v20  ;;  %v876_v20 = vld [vmem:[%s4951_s30 + $0xd40] sm:$0xff]  ;;  %v1908_v25 = vunpack.c.l.s8.bf16 %v844_v19 }
 0x1c1   : >> { %v1972_v26 = vunpack.c.l.s8.bf16 %v876_v20 }
 0x1c2   : >> { %2913 = vmatpush1.bf16.msra.mxu0 %v1824_v27  ;;  %v1913_v27 = vunpack.c.h.s8.bf16 %v845_v18  ;;  %v1920_v18 = vunpack.c.h.s8.bf16 %v848_v49 }
 0x1c3   : >> { %2954 = vmatpush1.bf16.msra.mxu1 %v1888_v28  ;;  %2964 = vmatprep.subr.bf16.mxu0 %v1893_v35  ;;  %v1977_v28 = vunpack.c.h.s8.bf16 %v877_v12  ;;  %v1912_v35 = vunpack.c.h.s8.bf16 %v844_v19  ;;  %v1984_v12 = vunpack.c.h.s8.bf16 %v880_v50 }
 0x1c4   : >> { %3005 = vmatprep.subr.bf16.mxu1 %v1957_v36  ;;  %v1976_v36 = vunpack.c.h.s8.bf16 %v876_v20 }
 0x1c5   : >> { %2915 = vmatmul.mubr.bf16.vlgmr.msra.gmra.mrb[20].mxu0 %v5252_v45 }
 0x1c6   : >> { %2956 = vmatmul.mubr.bf16.vlgmr.msra.gmra.mrb[20].mxu1 %v5254_v46  ;;  %2965 = vmatpush1.bf16.msra.mxu0 %v1892_v51 }
 0x1c7   : >> { %3006 = vmatpush1.bf16.msra.mxu1 %v1956_v52  ;;  %2966 = vmatprep.subr.bf16.mxu0 %v1897_v53 }
 0x1c8   : >> { %3007 = vmatprep.subr.bf16.mxu1 %v1961_v54  ;;  %2996 = vmatprep.mubr.bf16.mxu0 %v5260_v61 }
 0x1c9   : >> { %3037 = vmatprep.mubr.bf16.mxu1 %v5262_v62 }
 0x1ca   : >> { %2967 = vmatpush1.bf16.msra.mxu0 %v1896_v63 }
 0x1cb   : >> { %3008 = vmatpush1.bf16.msra.mxu1 %v1960_v0  ;;  %2968 = vmatprep.subr.bf16.mxu0 %v1901_v1  ;;  %v1916_v1 = vunpack.c.l.s8.bf16 %v848_v49 }
 0x1cc   : >> { %3009 = vmatprep.subr.bf16.mxu1 %v1965_v2  ;;  %v1980_v2 = vunpack.c.l.s8.bf16 %v880_v50 }
 0x1ce   : >> { %2969 = vmatpush1.bf16.msra.mxu0 %v1900_v8 }
 0x1cf   : >> { %3010 = vmatpush1.bf16.msra.mxu1 %v1964_v9  ;;  %2970 = vmatprep.subr.bf16.mxu0 %v1905_v15  ;;  %v1985_v9 = vunpack.c.h.s8.bf16 %v881_v32 }
 0x1d0   : >> { %3011 = vmatprep.subr.bf16.mxu1 %v1969_v10  ;;  %v885_v10 = vld [vmem:[%s4951_s30 + $0xd88] sm:$0xff] }
 0x1d2   : >> { %2971 = vmatpush1.bf16.msra.mxu0 %v1904_v13 }
 0x1d3   : >> { %3012 = vmatpush1.bf16.msra.mxu1 %v1968_v14  ;;  %2972 = vmatprep.subr.bf16.mxu0 %v1909_v16  ;;  %v1989_v14 = vunpack.c.l.s8.bf16 %v885_v10  ;;  %v852_v16 = vld [vmem:[%s4951_s30 + $0xc80] sm:$0xff] }
 0x1d4   : >> { %3013 = vmatprep.subr.bf16.mxu1 %v1973_v17  ;;  %v884_v17 = vld [vmem:[%s4951_s30 + $0xd80] sm:$0xff]  ;;  %v1924_v19 = vunpack.c.l.s8.bf16 %v852_v16 }
 0x1d5   : >> { %v1988_v20 = vunpack.c.l.s8.bf16 %v884_v17  ;;  %v1992_v32 = vunpack.c.h.s8.bf16 %v884_v17  ;;  %v896_v17 = vld [vmem:[%s4951_s30 + $0xde0] sm:$0xff] }
 0x1d6   : >> { %2973 = vmatpush1.bf16.msra.mxu0 %v1908_v25 }
 0x1d7   : >> { %3014 = vmatpush1.bf16.msra.mxu1 %v1972_v26  ;;  %2974 = vmatprep.subr.bf16.mxu0 %v1913_v27  ;;  %v1993_v26 = vunpack.c.h.s8.bf16 %v885_v10  ;;  %v857_v27 = vld [vmem:[%s4951_s30 + $0xca8] sm:$0xff] }
 0x1d8   : >> { %3015 = vmatprep.subr.bf16.mxu1 %v1977_v28  ;;  %v2670_v51 = vpop.f32.mrb[8].mxu0  ;;  %v889_v28 = vld [vmem:[%s4951_s30 + $0xda8] sm:$0xff] }
 0x1d9   : >> { %v2711_v52 = vpop.f32.mrb[8].mxu1  ;;  %v2671_v53 = vadd.f32 %v2670_v51, %v5226_v7  ;;  %v2672_v54 = vpop.f32.mrb[9].mxu0  ;;  %v1921_v7 = vunpack.c.h.s8.bf16 %v849_v31  ;;  %v1928_v31 = vunpack.c.h.s8.bf16 %v852_v16  ;;  %v1937_v51 = vunpack.c.h.s8.bf16 %v857_v27  ;;  %v897_v10 = vld [vmem:[%s4951_s30 + $0xde8] sm:$0xff]  ;;  %v864_v16 = vld [vmem:[%s4951_s30 + $0xce0] sm:$0xff] }
 0x1da   : >> { %v2713_v55 = vpop.f32.mrb[9].mxu1  ;;  %v2673_v56 = vadd.f32 %v2672_v54, %v5228_v11  ;;  %v2674_v63 = vpop.f32.mrb[10].mxu0  ;;  %2975 = vmatpush1.bf16.msra.mxu0 %v1912_v35  ;;  %v853_v11 = vld [vmem:[%s4951_s30 + $0xc88] sm:$0xff]  ;;  %v1933_v35 = vunpack.c.l.s8.bf16 %v857_v27 }
 0x1db   : >> { %v2715_v0 = vpop.f32.mrb[10].mxu1  ;;  %3016 = vmatpush1.bf16.msra.mxu1 %v1976_v36  ;;  %v5280_v3 = vadd.f32 %v2711_v52, %v2671_v53  ;;  %v2675_v4 = vpop.f32.mrb[11].mxu0  ;;  %2976 = vmatprep.subr.bf16.mxu0 %v1917_v43  ;;  %v1925_v13 = vunpack.c.l.s8.bf16 %v853_v11  ;;  %v1929_v25 = vunpack.c.h.s8.bf16 %v853_v11  ;;  %v1997_v36 = vunpack.c.l.s8.bf16 %v889_v28  ;;  %v856_v43 = vld [vmem:[%s4951_s30 + $0xca0] sm:$0xff]  ;;  %v861_v53 = vld [vmem:[%s4951_s30 + $0xcc8] sm:$0xff] }
 0x1dc   : >> { %v2716_v8 = vpop.f32.mrb[11].mxu1  ;;  %3017 = vmatprep.subr.bf16.mxu1 %v1981_v44  ;;  %v5282_v15 = vadd.f32 %v2713_v55, %v2673_v56  ;;  %v888_v44 = vld [vmem:[%s4951_s30 + $0xda0] sm:$0xff]  ;;  %v1932_v49 = vunpack.c.l.s8.bf16 %v856_v43  ;;  %v2001_v52 = vunpack.c.h.s8.bf16 %v889_v28  ;;  %v893_v54 = vld [vmem:[%s4951_s30 + $0xdc8] sm:$0xff]  ;;  %v1936_v55 = vunpack.c.h.s8.bf16 %v856_v43 }
 0x1dd   : >> { %v1996_v50 = vunpack.c.l.s8.bf16 %v888_v44  ;;  %v2000_v56 = vunpack.c.h.s8.bf16 %v888_v44  ;;  %v1941_v63 = vunpack.c.l.s8.bf16 %v861_v53  ;;  %v2005_v0 = vunpack.c.l.s8.bf16 %v893_v54  ;;  %v865_v11 = vld [vmem:[%s4951_s30 + $0xce8] sm:$0xff] }
 0x1de   : >> { %2977 = vmatpush1.bf16.msra.mxu0 %v1916_v1  ;;  %v860_v1 = vld [vmem:[%s4951_s30 + $0xcc0] sm:$0xff]  ;;  %v901_v27 = vld [vmem:[%s4951_s30 + $0xe08] sm:$0xff] }
 0x1df   : >> { %3018 = vmatpush1.bf16.msra.mxu1 %v1980_v2  ;;  %2978 = vmatprep.subr.bf16.mxu0 %v1921_v7  ;;  %v892_v2 = vld [vmem:[%s4951_s30 + $0xdc0] sm:$0xff]  ;;  %v1940_v4 = vunpack.c.l.s8.bf16 %v860_v1  ;;  %v1945_v7 = vunpack.c.h.s8.bf16 %v861_v53  ;;  %v933_v28 = vld [vmem:[%s4951_s30 + $0xf08] sm:$0xff]  ;;  %v2021_v43 = vunpack.c.l.s8.bf16 %v901_v27 }
 0x1e0   : >> { %3019 = vmatprep.subr.bf16.mxu1 %v1985_v9  ;;  %v2004_v8 = vunpack.c.l.s8.bf16 %v892_v2  ;;  %v2009_v9 = vunpack.c.h.s8.bf16 %v893_v54  ;;  %v2085_v44 = vunpack.c.l.s8.bf16 %v933_v28  ;;  %v392_v53 = vld [vmem:[%s4964_s8 + $0xe8] sm:$0xff]  ;;  %v394_v54 = vld [vmem:[%s4964_s8 + $0xf8] sm:$0xff] }
 0x1e2   : >> { %2979 = vmatpush1.bf16.msra.mxu0 %v1920_v18  ;;  %v1944_v18 = vunpack.c.h.s8.bf16 %v860_v1  ;;  %v905_v1 = vld [vmem:[%s4951_s30 + $0xe28] sm:$0xff] }
 0x1e3   : >> { %3020 = vmatpush1.bf16.msra.mxu1 %v1984_v12  ;;  %2980 = vmatprep.subr.bf16.mxu0 %v1925_v13  ;;  %v2008_v12 = vunpack.c.h.s8.bf16 %v892_v2  ;;  %v1949_v13 = vunpack.c.l.s8.bf16 %v865_v11  ;;  %v937_v2 = vld [vmem:[%s4951_s30 + $0xf28] sm:$0xff] }
 0x1e4   : >> { %3021 = vmatprep.subr.bf16.mxu1 %v1989_v14  ;;  %v2013_v14 = vunpack.c.l.s8.bf16 %v897_v10 }
 0x1e6   : >> { %2981 = vmatpush1.bf16.msra.mxu0 %v1924_v19  ;;  %v1948_v19 = vunpack.c.l.s8.bf16 %v864_v16 }
 0x1e7   : >> { %3022 = vmatpush1.bf16.msra.mxu1 %v1988_v20  ;;  %2982 = vmatprep.subr.bf16.mxu0 %v1929_v25  ;;  %v2012_v20 = vunpack.c.l.s8.bf16 %v896_v17  ;;  %v1953_v25 = vunpack.c.h.s8.bf16 %v865_v11  ;;  %v2029_v11 = vunpack.c.l.s8.bf16 %v905_v1 }
 0x1e8   : >> { %3023 = vmatprep.subr.bf16.mxu1 %v1993_v26  ;;  %v2017_v26 = vunpack.c.h.s8.bf16 %v897_v10  ;;  %v2093_v10 = vunpack.c.l.s8.bf16 %v937_v2 }
 0x1ea   : >> { %2983 = vmatpush1.bf16.msra.mxu0 %v1928_v31  ;;  %v1952_v31 = vunpack.c.h.s8.bf16 %v864_v16  ;;  %v2033_v16 = vunpack.c.h.s8.bf16 %v905_v1 }
 0x1eb   : >> { %3024 = vmatpush1.bf16.msra.mxu1 %v1992_v32  ;;  %2984 = vmatprep.subr.bf16.mxu0 %v1933_v35  ;;  %v2016_v32 = vunpack.c.h.s8.bf16 %v896_v17  ;;  %v387_v35 = vld [vmem:[%s4964_s8 + $0xc0] sm:$0xff]  ;;  %v2097_v17 = vunpack.c.h.s8.bf16 %v937_v2 }
 0x1ec   : >> { %3025 = vmatprep.subr.bf16.mxu1 %v1997_v36  ;;  %v389_v36 = vld [vmem:[%s4964_s8 + $0xd0] sm:$0xff] }
 0x1ee   : >> { %2985 = vmatpush1.bf16.msra.mxu0 %v1932_v49  ;;  %v900_v49 = vld [vmem:[%s4951_s30 + $0xe00] sm:$0xff] }
 0x1ef   : >> { %3026 = vmatpush1.bf16.msra.mxu1 %v1996_v50  ;;  %2986 = vmatprep.subr.bf16.mxu0 %v1937_v51  ;;  %v932_v50 = vld [vmem:[%s4951_s30 + $0xf00] sm:$0xff]  ;;  %v5306_v51 = vpack.c.bf16 %v387_v35, %v387_v35 }
 0x1f0   : >> { %3027 = vmatprep.subr.bf16.mxu1 %v2001_v52  ;;  %v5308_v52 = vpack.c.bf16 %v389_v36, %v389_v36 }
 0x1f2   : >> { %2987 = vmatpush1.bf16.msra.mxu0 %v1936_v55  ;;  %v2020_v55 = vunpack.c.l.s8.bf16 %v900_v49 }
 0x1f3   : >> { %3028 = vmatpush1.bf16.msra.mxu1 %v2000_v56  ;;  %2988 = vmatprep.subr.bf16.mxu0 %v1941_v63  ;;  %v2084_v56 = vunpack.c.l.s8.bf16 %v932_v50  ;;  %v2025_v63 = vunpack.c.h.s8.bf16 %v901_v27 }
 0x1f4   : >> { %3029 = vmatprep.subr.bf16.mxu1 %v2005_v0  ;;  %v2089_v0 = vunpack.c.h.s8.bf16 %v933_v28 }
 0x1f6   : >> { %2989 = vmatpush1.bf16.msra.mxu0 %v1940_v4  ;;  %v5314_v4 = vpack.c.bf16 %v392_v53, %v392_v53 }
 0x1f7   : >> { %3030 = vmatpush1.bf16.msra.mxu1 %v2004_v8  ;;  %2990 = vmatprep.subr.bf16.mxu0 %v1945_v7  ;;  %v5316_v8 = vpack.c.bf16 %v394_v54, %v394_v54  ;;  %v2024_v7 = vunpack.c.h.s8.bf16 %v900_v49  ;;  %v913_v49 = vld [vmem:[%s4951_s30 + $0xe68] sm:$0xff] }
 0x1f8   : >> { %3031 = vmatprep.subr.bf16.mxu1 %v2009_v9  ;;  %v2088_v9 = vunpack.c.h.s8.bf16 %v932_v50  ;;  %v945_v50 = vld [vmem:[%s4951_s30 + $0xf68] sm:$0xff] }
 0x1fa   : >> { %2991 = vmatpush1.bf16.msra.mxu0 %v1944_v18  ;;  %v904_v18 = vld [vmem:[%s4951_s30 + $0xe20] sm:$0xff] }
 0x1fb   : >> { %3032 = vmatpush1.bf16.msra.mxu1 %v2008_v12  ;;  %2992 = vmatprep.subr.bf16.mxu0 %v1949_v13  ;;  %v936_v12 = vld [vmem:[%s4951_s30 + $0xf20] sm:$0xff]  ;;  %v2028_v13 = vunpack.c.l.s8.bf16 %v904_v18 }
 0x1fc   : >> { %3033 = vmatprep.subr.bf16.mxu1 %v2013_v14  ;;  %v2092_v14 = vunpack.c.l.s8.bf16 %v936_v12 }
 0x1fe   : >> { %2993 = vmatpush1.bf16.msra.mxu0 %v1948_v19  ;;  %v909_v19 = vld [vmem:[%s4951_s30 + $0xe48] sm:$0xff] }
 0x1ff   : >> { %3034 = vmatpush1.bf16.msra.mxu1 %v2012_v20  ;;  %2994 = vmatprep.subr.bf16.mxu0 %v1953_v25  ;;  %v941_v20 = vld [vmem:[%s4951_s30 + $0xf48] sm:$0xff]  ;;  %v2032_v25 = vunpack.c.h.s8.bf16 %v904_v18  ;;  %v2037_v27 = vunpack.c.l.s8.bf16 %v909_v19 }
 0x200   : >> { %3035 = vmatprep.subr.bf16.mxu1 %v2017_v26  ;;  %v2096_v26 = vunpack.c.h.s8.bf16 %v936_v12  ;;  %v2101_v28 = vunpack.c.l.s8.bf16 %v941_v20 }
 0x202   : >> { %2995 = vmatpush1.bf16.msra.mxu0 %v1952_v31  ;;  %v908_v31 = vld [vmem:[%s4951_s30 + $0xe40] sm:$0xff] }
 0x203   : >> { %3036 = vmatpush1.bf16.msra.mxu1 %v2016_v32  ;;  %3046 = vmatprep.subr.bf16.mxu0 %v2021_v43  ;;  %v940_v32 = vld [vmem:[%s4951_s30 + $0xf40] sm:$0xff]  ;;  %v2036_v35 = vunpack.c.l.s8.bf16 %v908_v31  ;;  %v2041_v43 = vunpack.c.h.s8.bf16 %v909_v19  ;;  %v2040_v53 = vunpack.c.h.s8.bf16 %v908_v31 }
 0x204   : >> { %3087 = vmatprep.subr.bf16.mxu1 %v2085_v44  ;;  %v2100_v36 = vunpack.c.l.s8.bf16 %v940_v32  ;;  %v2105_v44 = vunpack.c.h.s8.bf16 %v941_v20  ;;  %v2104_v54 = vunpack.c.h.s8.bf16 %v940_v32  ;;  %v2113_v20 = vunpack.c.h.s8.bf16 %v945_v50 }
 0x205   : >> { %2997 = vmatmul.mubr.bf16.vlgmr.msra.gmra.mrb[24].mxu0 %v5306_v51 }
 0x206   : >> { %3038 = vmatmul.mubr.bf16.vlgmr.msra.gmra.mrb[24].mxu1 %v5308_v52  ;;  %3047 = vmatpush1.bf16.msra.mxu0 %v2020_v55  ;;  %v2045_v55 = vunpack.c.l.s8.bf16 %v913_v49 }
 0x207   : >> { %3088 = vmatpush1.bf16.msra.mxu1 %v2084_v56  ;;  %3048 = vmatprep.subr.bf16.mxu0 %v2025_v63  ;;  %v2109_v56 = vunpack.c.l.s8.bf16 %v945_v50  ;;  %v912_v63 = vld [vmem:[%s4951_s30 + $0xe60] sm:$0xff] }
 0x208   : >> { %3089 = vmatprep.subr.bf16.mxu1 %v2089_v0  ;;  %3078 = vmatprep.mubr.bf16.mxu0 %v5314_v4  ;;  %v944_v0 = vld [vmem:[%s4951_s30 + $0xf60] sm:$0xff] }
 0x209   : >> { %3119 = vmatprep.mubr.bf16.mxu1 %v5316_v8 }
 0x20a   : >> { %3049 = vmatpush1.bf16.msra.mxu0 %v2024_v7 }
 0x20b   : >> { %3090 = vmatpush1.bf16.msra.mxu1 %v2088_v9  ;;  %3050 = vmatprep.subr.bf16.mxu0 %v2029_v11 }
 0x20c   : >> { %3091 = vmatprep.subr.bf16.mxu1 %v2093_v10 }
 0x20e   : >> { %3051 = vmatpush1.bf16.msra.mxu0 %v2028_v13  ;;  %v2044_v13 = vunpack.c.l.s8.bf16 %v912_v63 }
 0x20f   : >> { %3092 = vmatpush1.bf16.msra.mxu1 %v2092_v14  ;;  %3052 = vmatprep.subr.bf16.mxu0 %v2033_v16  ;;  %v2108_v14 = vunpack.c.l.s8.bf16 %v944_v0 }
 0x210   : >> { %3093 = vmatprep.subr.bf16.mxu1 %v2097_v17 }
 0x212   : >> { %3053 = vmatpush1.bf16.msra.mxu0 %v2032_v25 }
 0x213   : >> { %3094 = vmatpush1.bf16.msra.mxu1 %v2096_v26  ;;  %3054 = vmatprep.subr.bf16.mxu0 %v2037_v27  ;;  %v949_v26 = vld [vmem:[%s4951_s30 + $0xf88] sm:$0xff]  ;;  %v2048_v27 = vunpack.c.h.s8.bf16 %v912_v63 }
 0x214   : >> { %3095 = vmatprep.subr.bf16.mxu1 %v2101_v28  ;;  %v2112_v28 = vunpack.c.h.s8.bf16 %v944_v0  ;;  %v2117_v32 = vunpack.c.l.s8.bf16 %v949_v26  ;;  %v2121_v50 = vunpack.c.h.s8.bf16 %v949_v26 }
 0x216   : >> { %3055 = vmatpush1.bf16.msra.mxu0 %v2036_v35  ;;  %v916_v35 = vld [vmem:[%s4951_s30 + $0xe80] sm:$0xff] }
 0x217   : >> { %3096 = vmatpush1.bf16.msra.mxu1 %v2100_v36  ;;  %3056 = vmatprep.subr.bf16.mxu0 %v2041_v43  ;;  %v948_v36 = vld [vmem:[%s4951_s30 + $0xf80] sm:$0xff]  ;;  %v2052_v43 = vunpack.c.l.s8.bf16 %v916_v35 }
 0x218   : >> { %3097 = vmatprep.subr.bf16.mxu1 %v2105_v44  ;;  %v2752_v1 = vpop.f32.mrb[12].mxu0  ;;  %v2116_v44 = vunpack.c.l.s8.bf16 %v948_v36 }
 0x219   : >> { %v2793_v2 = vpop.f32.mrb[12].mxu1  ;;  %v2753_v7 = vadd.f32 %v2752_v1, %v5280_v3  ;;  %v2754_v9 = vpop.f32.mrb[13].mxu0  ;;  %v2049_v3 = vunpack.c.h.s8.bf16 %v913_v49  ;;  %v920_v1 = vld [vmem:[%s4951_s30 + $0xea0] sm:$0xff] }
 0x21a   : >> { %v2795_v11 = vpop.f32.mrb[13].mxu1  ;;  %v2755_v10 = vadd.f32 %v2754_v9, %v5282_v15  ;;  %v2756_v18 = vpop.f32.mrb[14].mxu0  ;;  %3057 = vmatpush1.bf16.msra.mxu0 %v2040_v53  ;;  %v917_v15 = vld [vmem:[%s4951_s30 + $0xe88] sm:$0xff] }
 0x21b   : >> { %v2797_v12 = vpop.f32.mrb[14].mxu1  ;;  %3098 = vmatpush1.bf16.msra.mxu1 %v2104_v54  ;;  %v5334_v16 = vadd.f32 %v2793_v2, %v2753_v7  ;;  %v2757_v17 = vpop.f32.mrb[15].mxu0  ;;  %3058 = vmatprep.subr.bf16.mxu0 %v2045_v55  ;;  %v2053_v31 = vunpack.c.l.s8.bf16 %v917_v15  ;;  %v2057_v49 = vunpack.c.h.s8.bf16 %v917_v15  ;;  %v921_v53 = vld [vmem:[%s4951_s30 + $0xea8] sm:$0xff]  ;;  %v2056_v55 = vunpack.c.h.s8.bf16 %v916_v35  ;;  %v952_v2 = vld [vmem:[%s4951_s30 + $0xfa0] sm:$0xff] }
 0x21c   : >> { %v2798_v19 = vpop.f32.mrb[15].mxu1  ;;  %3099 = vmatprep.subr.bf16.mxu1 %v2109_v56  ;;  %v5336_v25 = vadd.f32 %v2795_v11, %v2755_v10  ;;  %v953_v54 = vld [vmem:[%s4951_s30 + $0xfa8] sm:$0xff]  ;;  %v2120_v56 = vunpack.c.h.s8.bf16 %v948_v36  ;;  %v2061_v63 = vunpack.c.l.s8.bf16 %v921_v53  ;;  %v2060_v7 = vunpack.c.l.s8.bf16 %v920_v1 }
 0x21d   : >> { %v2125_v0 = vunpack.c.l.s8.bf16 %v953_v54  ;;  %v2124_v9 = vunpack.c.l.s8.bf16 %v952_v2  ;;  %v2065_v11 = vunpack.c.h.s8.bf16 %v921_v53  ;;  %v2129_v10 = vunpack.c.h.s8.bf16 %v953_v54  ;;  %v925_v18 = vld [vmem:[%s4951_s30 + $0xec8] sm:$0xff] }
 0x21e   : >> { %3059 = vmatpush1.bf16.msra.mxu0 %v2044_v13  ;;  %v957_v12 = vld [vmem:[%s4951_s30 + $0xfc8] sm:$0xff]  ;;  %v2064_v13 = vunpack.c.h.s8.bf16 %v920_v1  ;;  %v2069_v17 = vunpack.c.l.s8.bf16 %v925_v18 }
 0x21f   : >> { %3100 = vmatpush1.bf16.msra.mxu1 %v2108_v14  ;;  %3060 = vmatprep.subr.bf16.mxu0 %v2049_v3  ;;  %v2128_v14 = vunpack.c.h.s8.bf16 %v952_v2  ;;  %v2133_v19 = vunpack.c.l.s8.bf16 %v957_v12  ;;  %v924_v3 = vld [vmem:[%s4951_s30 + $0xec0] sm:$0xff] }
 0x220   : >> { %3101 = vmatprep.subr.bf16.mxu1 %v2113_v20  ;;  %v956_v20 = vld [vmem:[%s4951_s30 + $0xfc0] sm:$0xff]  ;;  %v2068_v15 = vunpack.c.l.s8.bf16 %v924_v3  ;;  %v2072_v35 = vunpack.c.h.s8.bf16 %v924_v3 }
 0x221   : >> { %v2132_v26 = vunpack.c.l.s8.bf16 %v956_v20  ;;  %v2136_v36 = vunpack.c.h.s8.bf16 %v956_v20 }
 0x222   : >> { %3061 = vmatpush1.bf16.msra.mxu0 %v2048_v27  ;;  %v2073_v27 = vunpack.c.h.s8.bf16 %v925_v18  ;;  %v964_v18 = vld [vmem:[%s4951_s30 + $0x1000] sm:$0xff] }
 0x223   : >> { %3102 = vmatpush1.bf16.msra.mxu1 %v2112_v28  ;;  %3062 = vmatprep.subr.bf16.mxu0 %v2053_v31  ;;  %v2137_v28 = vunpack.c.h.s8.bf16 %v957_v12  ;;  %v929_v31 = vld [vmem:[%s4951_s30 + $0xee8] sm:$0xff]  ;;  %v996_v12 = vld [vmem:[%s4951_s30 + $0x1100] sm:$0xff]  ;;  %v2148_v3 = vunpack.c.l.s8.bf16 %v964_v18 }
 0x224   : >> { %3103 = vmatprep.subr.bf16.mxu1 %v2117_v32  ;;  %v961_v32 = vld [vmem:[%s4951_s30 + $0xfe8] sm:$0xff]  ;;  %v2212_v20 = vunpack.c.l.s8.bf16 %v996_v12 }
 0x226   : >> { %3063 = vmatpush1.bf16.msra.mxu0 %v2052_v43  ;;  %v2077_v43 = vunpack.c.l.s8.bf16 %v929_v31 }
 0x227   : >> { %3104 = vmatpush1.bf16.msra.mxu1 %v2116_v44  ;;  %3064 = vmatprep.subr.bf16.mxu0 %v2057_v49  ;;  %v2141_v44 = vunpack.c.l.s8.bf16 %v961_v32  ;;  %v928_v49 = vld [vmem:[%s4951_s30 + $0xee0] sm:$0xff] }
 0x228   : >> { %3105 = vmatprep.subr.bf16.mxu1 %v2121_v50  ;;  %v960_v50 = vld [vmem:[%s4951_s30 + $0xfe0] sm:$0xff]  ;;  %v2076_v53 = vunpack.c.l.s8.bf16 %v928_v49  ;;  %v2080_v1 = vunpack.c.h.s8.bf16 %v928_v49 }
 0x229   : >> { %v2140_v54 = vunpack.c.l.s8.bf16 %v960_v50  ;;  %v2144_v2 = vunpack.c.h.s8.bf16 %v960_v50  ;;  %v968_v49 = vld [vmem:[%s4951_s30 + $0x1020] sm:$0xff] }
 0x22a   : >> { %3065 = vmatpush1.bf16.msra.mxu0 %v2056_v55  ;;  %v2081_v55 = vunpack.c.h.s8.bf16 %v929_v31  ;;  %v1000_v50 = vld [vmem:[%s4951_s30 + $0x1120] sm:$0xff] }
 0x22b   : >> { %3106 = vmatpush1.bf16.msra.mxu1 %v2120_v56  ;;  %3066 = vmatprep.subr.bf16.mxu0 %v2061_v63  ;;  %v2145_v56 = vunpack.c.h.s8.bf16 %v961_v32  ;;  %v965_v63 = vld [vmem:[%s4951_s30 + $0x1008] sm:$0xff] }
 0x22c   : >> { %3107 = vmatprep.subr.bf16.mxu1 %v2125_v0  ;;  %v997_v0 = vld [vmem:[%s4951_s30 + $0x1108] sm:$0xff] }
 0x22e   : >> { %3067 = vmatpush1.bf16.msra.mxu0 %v2060_v7  ;;  %v391_v7 = vld [vmem:[%s4964_s8 + $0xe0] sm:$0xff] }
 0x22f   : >> { %3108 = vmatpush1.bf16.msra.mxu1 %v2124_v9  ;;  %3068 = vmatprep.subr.bf16.mxu0 %v2065_v11  ;;  %v393_v9 = vld [vmem:[%s4964_s8 + $0xf0] sm:$0xff]  ;;  %v2149_v11 = vunpack.c.l.s8.bf16 %v965_v63 }
 0x230   : >> { %3109 = vmatprep.subr.bf16.mxu1 %v2129_v10  ;;  %v2213_v10 = vunpack.c.l.s8.bf16 %v997_v0 }
 0x232   : >> { %3069 = vmatpush1.bf16.msra.mxu0 %v2064_v13  ;;  %v5360_v13 = vpack.c.bf16 %v391_v7, %v391_v7 }
 0x233   : >> { %3110 = vmatpush1.bf16.msra.mxu1 %v2128_v14  ;;  %3070 = vmatprep.subr.bf16.mxu0 %v2069_v17  ;;  %v5362_v14 = vpack.c.bf16 %v393_v9, %v393_v9  ;;  %v396_v17 = vld [vmem:[%s4964_s8 + $0x108] sm:$0xff] }
 0x234   : >> { %3111 = vmatprep.subr.bf16.mxu1 %v2133_v19  ;;  %v398_v19 = vld [vmem:[%s4964_s8 + $0x118] sm:$0xff]  ;;  %v5368_v31 = vpack.c.bf16 %v396_v17, %v396_v17 }
 0x235   : >> { %v5370_v32 = vpack.c.bf16 %v398_v19, %v398_v19 }
 0x236   : >> { %3071 = vmatpush1.bf16.msra.mxu0 %v2068_v15  ;;  %v2153_v15 = vunpack.c.h.s8.bf16 %v965_v63  ;;  %v973_v63 = vld [vmem:[%s4951_s30 + $0x1048] sm:$0xff] }
 0x237   : >> { %3112 = vmatpush1.bf16.msra.mxu1 %v2132_v26  ;;  %3072 = vmatprep.subr.bf16.mxu0 %v2073_v27  ;;  %v2217_v26 = vunpack.c.h.s8.bf16 %v997_v0  ;;  %v969_v27 = vld [vmem:[%s4951_s30 + $0x1028] sm:$0xff]  ;;  %v2165_v7 = vunpack.c.l.s8.bf16 %v973_v63  ;;  %v2169_v17 = vunpack.c.h.s8.bf16 %v973_v63 }
 0x238   : >> { %3113 = vmatprep.subr.bf16.mxu1 %v2137_v28  ;;  %v1001_v28 = vld [vmem:[%s4951_s30 + $0x1128] sm:$0xff] }
 0x239   : >> { %v1005_v0 = vld [vmem:[%s4951_s30 + $0x1148] sm:$0xff] }
 0x23a   : >> { %3073 = vmatpush1.bf16.msra.mxu0 %v2072_v35  ;;  %v2152_v35 = vunpack.c.h.s8.bf16 %v964_v18  ;;  %v2229_v9 = vunpack.c.l.s8.bf16 %v1005_v0  ;;  %v2233_v19 = vunpack.c.h.s8.bf16 %v1005_v0 }
 0x23b   : >> { %3114 = vmatpush1.bf16.msra.mxu1 %v2136_v36  ;;  %3074 = vmatprep.subr.bf16.mxu0 %v2077_v43  ;;  %v2216_v36 = vunpack.c.h.s8.bf16 %v996_v12  ;;  %v2157_v43 = vunpack.c.l.s8.bf16 %v969_v27 }
 0x23c   : >> { %3115 = vmatprep.subr.bf16.mxu1 %v2141_v44  ;;  %v2221_v44 = vunpack.c.l.s8.bf16 %v1001_v28 }
 0x23e   : >> { %3075 = vmatpush1.bf16.msra.mxu0 %v2076_v53  ;;  %v2156_v53 = vunpack.c.l.s8.bf16 %v968_v49 }
 0x23f   : >> { %3116 = vmatpush1.bf16.msra.mxu1 %v2140_v54  ;;  %3076 = vmatprep.subr.bf16.mxu0 %v2081_v55  ;;  %v2220_v54 = vunpack.c.l.s8.bf16 %v1000_v50  ;;  %v2161_v55 = vunpack.c.h.s8.bf16 %v969_v27 }
 0x240   : >> { %3117 = vmatprep.subr.bf16.mxu1 %v2145_v56  ;;  %v2225_v56 = vunpack.c.h.s8.bf16 %v1001_v28 }
 0x242   : >> { %3077 = vmatpush1.bf16.msra.mxu0 %v2080_v1  ;;  %v2160_v1 = vunpack.c.h.s8.bf16 %v968_v49 }
 0x243   : >> { %3118 = vmatpush1.bf16.msra.mxu1 %v2144_v2  ;;  %3128 = vmatprep.subr.bf16.mxu0 %v2149_v11  ;;  %v2224_v2 = vunpack.c.h.s8.bf16 %v1000_v50  ;;  %v972_v11 = vld [vmem:[%s4951_s30 + $0x1040] sm:$0xff] }
 0x244   : >> { %3169 = vmatprep.subr.bf16.mxu1 %v2213_v10  ;;  %v1004_v10 = vld [vmem:[%s4951_s30 + $0x1140] sm:$0xff]  ;;  %v2164_v18 = vunpack.c.l.s8.bf16 %v972_v11 }
 0x245   : >> { %3079 = vmatmul.mubr.bf16.vlgmr.msra.gmra.mrb[28].mxu0 %v5360_v13  ;;  %v2228_v12 = vunpack.c.l.s8.bf16 %v1004_v10 }
 0x246   : >> { %3120 = vmatmul.mubr.bf16.vlgmr.msra.gmra.mrb[28].mxu1 %v5362_v14  ;;  %3129 = vmatpush1.bf16.msra.mxu0 %v2148_v3  ;;  %v977_v3 = vld [vmem:[%s4951_s30 + $0x1068] sm:$0xff] }
 0x247   : >> { %3170 = vmatpush1.bf16.msra.mxu1 %v2212_v20  ;;  %3130 = vmatprep.subr.bf16.mxu0 %v2153_v15  ;;  %v1009_v20 = vld [vmem:[%s4951_s30 + $0x1168] sm:$0xff]  ;;  %v2168_v15 = vunpack.c.h.s8.bf16 %v972_v11  ;;  %v2173_v27 = vunpack.c.l.s8.bf16 %v977_v3 }
 0x248   : >> { %3171 = vmatprep.subr.bf16.mxu1 %v2217_v26  ;;  %3160 = vmatprep.mubr.bf16.mxu0 %v5368_v31  ;;  %v2232_v26 = vunpack.c.h.s8.bf16 %v1004_v10  ;;  %v2237_v28 = vunpack.c.l.s8.bf16 %v1009_v20  ;;  %v1013_v10 = vld [vmem:[%s4951_s30 + $0x1188] sm:$0xff] }
 0x249   : >> { %3201 = vmatprep.mubr.bf16.mxu1 %v5370_v32 }
 0x24a   : >> { %3131 = vmatpush1.bf16.msra.mxu0 %v2152_v35  ;;  %v976_v35 = vld [vmem:[%s4951_s30 + $0x1060] sm:$0xff] }
 0x24b   : >> { %3172 = vmatpush1.bf16.msra.mxu1 %v2216_v36  ;;  %3132 = vmatprep.subr.bf16.mxu0 %v2157_v43  ;;  %v1008_v36 = vld [vmem:[%s4951_s30 + $0x1160] sm:$0xff]  ;;  %v2172_v63 = vunpack.c.l.s8.bf16 %v976_v35 }
 0x24c   : >> { %3173 = vmatprep.subr.bf16.mxu1 %v2221_v44  ;;  %v2236_v0 = vunpack.c.l.s8.bf16 %v1008_v36 }
 0x24e   : >> { %3133 = vmatpush1.bf16.msra.mxu0 %v2156_v53 }
 0x24f   : >> { %3174 = vmatpush1.bf16.msra.mxu1 %v2220_v54  ;;  %3134 = vmatprep.subr.bf16.mxu0 %v2161_v55 }
 0x250   : >> { %3175 = vmatprep.subr.bf16.mxu1 %v2225_v56 }
 0x252   : >> { %3135 = vmatpush1.bf16.msra.mxu0 %v2160_v1 }
 0x253   : >> { %3176 = vmatpush1.bf16.msra.mxu1 %v2224_v2  ;;  %3136 = vmatprep.subr.bf16.mxu0 %v2165_v7 }
 0x254   : >> { %3177 = vmatprep.subr.bf16.mxu1 %v2229_v9  ;;  %v2241_v9 = vunpack.c.h.s8.bf16 %v1009_v20 }
 0x256   : >> { %3137 = vmatpush1.bf16.msra.mxu0 %v2164_v18  ;;  %v2176_v18 = vunpack.c.h.s8.bf16 %v976_v35  ;;  %v985_v35 = vld [vmem:[%s4951_s30 + $0x10a8] sm:$0xff] }
 0x257   : >> { %3178 = vmatpush1.bf16.msra.mxu1 %v2228_v12  ;;  %3138 = vmatprep.subr.bf16.mxu0 %v2169_v17  ;;  %v2240_v12 = vunpack.c.h.s8.bf16 %v1008_v36 }
 0x258   : >> { %3179 = vmatprep.subr.bf16.mxu1 %v2233_v19  ;;  %v2834_v43 = vpop.f32.mrb[16].mxu0  ;;  %v2245_v19 = vunpack.c.l.s8.bf16 %v1013_v10 }
 0x259   : >> { %v2875_v44 = vpop.f32.mrb[16].mxu1  ;;  %v2835_v49 = vadd.f32 %v2834_v43, %v5334_v16  ;;  %v2836_v50 = vpop.f32.mrb[17].mxu0  ;;  %v2177_v16 = vunpack.c.h.s8.bf16 %v977_v3  ;;  %v1017_v43 = vld [vmem:[%s4951_s30 + $0x11a8] sm:$0xff] }
 0x25a   : >> { %v2877_v53 = vpop.f32.mrb[17].mxu1  ;;  %v2837_v54 = vadd.f32 %v2836_v50, %v5336_v25  ;;  %v2838_v55 = vpop.f32.mrb[18].mxu0  ;;  %3139 = vmatpush1.bf16.msra.mxu0 %v2168_v15  ;;  %v981_v25 = vld [vmem:[%s4951_s30 + $0x1088] sm:$0xff]  ;;  %v980_v15 = vld [vmem:[%s4951_s30 + $0x1080] sm:$0xff]  ;;  %v2253_v50 = vunpack.c.l.s8.bf16 %v1017_v43 }
 0x25b   : >> { %v2879_v56 = vpop.f32.mrb[18].mxu1  ;;  %3180 = vmatpush1.bf16.msra.mxu1 %v2232_v26  ;;  %v5388_v1 = vadd.f32 %v2875_v44, %v2835_v49  ;;  %v2839_v2 = vpop.f32.mrb[19].mxu0  ;;  %3140 = vmatprep.subr.bf16.mxu0 %v2173_v27  ;;  %v2181_v17 = vunpack.c.l.s8.bf16 %v981_v25  ;;  %v1012_v26 = vld [vmem:[%s4951_s30 + $0x1180] sm:$0xff]  ;;  %v2180_v3 = vunpack.c.l.s8.bf16 %v980_v15  ;;  %v2185_v27 = vunpack.c.h.s8.bf16 %v981_v25 }
 0x25c   : >> { %v2880_v7 = vpop.f32.mrb[19].mxu1  ;;  %3181 = vmatprep.subr.bf16.mxu1 %v2237_v28  ;;  %v5390_v11 = vadd.f32 %v2877_v53, %v2837_v54  ;;  %v2244_v20 = vunpack.c.l.s8.bf16 %v1012_v26  ;;  %v2249_v28 = vunpack.c.h.s8.bf16 %v1013_v10  ;;  %v2184_v36 = vunpack.c.h.s8.bf16 %v980_v15  ;;  %v984_v53 = vld [vmem:[%s4951_s30 + $0x10a0] sm:$0xff]  ;;  %v989_v2 = vld [vmem:[%s4951_s30 + $0x10c8] sm:$0xff] }
 0x25d   : >> { %v2248_v44 = vunpack.c.h.s8.bf16 %v1012_v26  ;;  %v2189_v49 = vunpack.c.l.s8.bf16 %v985_v35  ;;  %v1016_v54 = vld [vmem:[%s4951_s30 + $0x11a0] sm:$0xff]  ;;  %v2188_v55 = vunpack.c.l.s8.bf16 %v984_v53  ;;  %v1021_v7 = vld [vmem:[%s4951_s30 + $0x11c8] sm:$0xff]  ;;  %v2197_v25 = vunpack.c.l.s8.bf16 %v989_v2 }
 0x25e   : >> { %3141 = vmatpush1.bf16.msra.mxu0 %v2172_v63  ;;  %v2252_v56 = vunpack.c.l.s8.bf16 %v1016_v54  ;;  %v2193_v63 = vunpack.c.h.s8.bf16 %v985_v35  ;;  %v2261_v10 = vunpack.c.l.s8.bf16 %v1021_v7  ;;  %v2201_v15 = vunpack.c.h.s8.bf16 %v989_v2  ;;  %v395_v2 = vld [vmem:[%s4964_s8 + $0x100] sm:$0xff] }
 0x25f   : >> { %3182 = vmatpush1.bf16.msra.mxu1 %v2236_v0  ;;  %3142 = vmatprep.subr.bf16.mxu0 %v2177_v16  ;;  %v2257_v0 = vunpack.c.h.s8.bf16 %v1017_v43  ;;  %v2192_v16 = vunpack.c.h.s8.bf16 %v984_v53  ;;  %v2265_v26 = vunpack.c.h.s8.bf16 %v1021_v7  ;;  %v397_v7 = vld [vmem:[%s4964_s8 + $0x110] sm:$0xff] }
 0x260   : >> { %3183 = vmatprep.subr.bf16.mxu1 %v2241_v9  ;;  %v2256_v9 = vunpack.c.h.s8.bf16 %v1016_v54 }
 0x262   : >> { %3143 = vmatpush1.bf16.msra.mxu0 %v2176_v18  ;;  %v988_v18 = vld [vmem:[%s4951_s30 + $0x10c0] sm:$0xff] }
 0x263   : >> { %3184 = vmatpush1.bf16.msra.mxu1 %v2240_v12  ;;  %3144 = vmatprep.subr.bf16.mxu0 %v2181_v17  ;;  %v1020_v12 = vld [vmem:[%s4951_s30 + $0x11c0] sm:$0xff]  ;;  %v2196_v17 = vunpack.c.l.s8.bf16 %v988_v18 }
 0x264   : >> { %3185 = vmatprep.subr.bf16.mxu1 %v2245_v19  ;;  %v2260_v19 = vunpack.c.l.s8.bf16 %v1020_v12 }
 0x266   : >> { %3145 = vmatpush1.bf16.msra.mxu0 %v2180_v3  ;;  %v993_v3 = vld [vmem:[%s4951_s30 + $0x10e8] sm:$0xff] }
 0x267   : >> { %3186 = vmatpush1.bf16.msra.mxu1 %v2244_v20  ;;  %3146 = vmatprep.subr.bf16.mxu0 %v2185_v27  ;;  %v1025_v20 = vld [vmem:[%s4951_s30 + $0x11e8] sm:$0xff]  ;;  %v2200_v27 = vunpack.c.h.s8.bf16 %v988_v18  ;;  %v2205_v35 = vunpack.c.l.s8.bf16 %v993_v3  ;;  %v2209_v53 = vunpack.c.h.s8.bf16 %v993_v3  ;;  %v5414_v18 = vpack.c.bf16 %v395_v2, %v395_v2 }
 0x268   : >> { %3187 = vmatprep.subr.bf16.mxu1 %v2249_v28  ;;  %v2264_v28 = vunpack.c.h.s8.bf16 %v1020_v12  ;;  %v2269_v43 = vunpack.c.l.s8.bf16 %v1025_v20  ;;  %v2273_v54 = vunpack.c.h.s8.bf16 %v1025_v20  ;;  %v5416_v12 = vpack.c.bf16 %v397_v7, %v397_v7  ;;  %v1037_v2 = vld [vmem:[%s4951_s30 + $0x1248] sm:$0xff] }
 0x269   : >> { %v1069_v7 = vld [vmem:[%s4951_s30 + $0x1348] sm:$0xff] }
 0x26a   : >> { %3147 = vmatpush1.bf16.msra.mxu0 %v2184_v36  ;;  %v992_v36 = vld [vmem:[%s4951_s30 + $0x10e0] sm:$0xff] }
 0x26b   : >> { %3188 = vmatpush1.bf16.msra.mxu1 %v2248_v44  ;;  %3148 = vmatprep.subr.bf16.mxu0 %v2189_v49  ;;  %v1024_v44 = vld [vmem:[%s4951_s30 + $0x11e0] sm:$0xff]  ;;  %v2204_v49 = vunpack.c.l.s8.bf16 %v992_v36 }
 0x26c   : >> { %3189 = vmatprep.subr.bf16.mxu1 %v2253_v50  ;;  %v2268_v50 = vunpack.c.l.s8.bf16 %v1024_v44 }
 0x26e   : >> { %3149 = vmatpush1.bf16.msra.mxu0 %v2188_v55  ;;  %v1029_v55 = vld [vmem:[%s4951_s30 + $0x1208] sm:$0xff] }
 0x26f   : >> { %3190 = vmatpush1.bf16.msra.mxu1 %v2252_v56  ;;  %3150 = vmatprep.subr.bf16.mxu0 %v2193_v63  ;;  %v1061_v56 = vld [vmem:[%s4951_s30 + $0x1308] sm:$0xff]  ;;  %v2208_v63 = vunpack.c.h.s8.bf16 %v992_v36  ;;  %v2281_v3 = vunpack.c.h.s8.bf16 %v1029_v55 }
 0x270   : >> { %3191 = vmatprep.subr.bf16.mxu1 %v2257_v0  ;;  %v2272_v0 = vunpack.c.h.s8.bf16 %v1024_v44  ;;  %v2345_v20 = vunpack.c.h.s8.bf16 %v1061_v56 }
 0x272   : >> { %3151 = vmatpush1.bf16.msra.mxu0 %v2192_v16  ;;  %v2277_v16 = vunpack.c.l.s8.bf16 %v1029_v55 }
 0x273   : >> { %3192 = vmatpush1.bf16.msra.mxu1 %v2256_v9  ;;  %3152 = vmatprep.subr.bf16.mxu0 %v2197_v25  ;;  %v2341_v9 = vunpack.c.l.s8.bf16 %v1061_v56  ;;  %v1028_v25 = vld [vmem:[%s4951_s30 + $0x1200] sm:$0xff] }
 0x274   : >> { %3193 = vmatprep.subr.bf16.mxu1 %v2261_v10  ;;  %v1060_v10 = vld [vmem:[%s4951_s30 + $0x1300] sm:$0xff]  ;;  %v2280_v36 = vunpack.c.h.s8.bf16 %v1028_v25 }
 0x275   : >> { %v2344_v44 = vunpack.c.h.s8.bf16 %v1060_v10 }
 0x276   : >> { %3153 = vmatpush1.bf16.msra.mxu0 %v2196_v17  ;;  %v400_v17 = vld [vmem:[%s4964_s8 + $0x128] sm:$0xff] }
 0x277   : >> { %3194 = vmatpush1.bf16.msra.mxu1 %v2260_v19  ;;  %3154 = vmatprep.subr.bf16.mxu0 %v2201_v15  ;;  %v402_v19 = vld [vmem:[%s4964_s8 + $0x138] sm:$0xff]  ;;  %v2276_v15 = vunpack.c.l.s8.bf16 %v1028_v25  ;;  %v2293_v25 = vunpack.c.l.s8.bf16 %v1037_v2 }
 0x278   : >> { %3195 = vmatprep.subr.bf16.mxu1 %v2265_v26  ;;  %v2340_v26 = vunpack.c.l.s8.bf16 %v1060_v10  ;;  %v2357_v10 = vunpack.c.l.s8.bf16 %v1069_v7 }
 0x27a   : >> { %3155 = vmatpush1.bf16.msra.mxu0 %v2200_v27  ;;  %v1033_v27 = vld [vmem:[%s4951_s30 + $0x1228] sm:$0xff] }
 0x27b   : >> { %3196 = vmatpush1.bf16.msra.mxu1 %v2264_v28  ;;  %3156 = vmatprep.subr.bf16.mxu0 %v2205_v35  ;;  %v1065_v28 = vld [vmem:[%s4951_s30 + $0x1328] sm:$0xff]  ;;  %v5422_v35 = vpack.c.bf16 %v400_v17, %v400_v17  ;;  %v1036_v17 = vld [vmem:[%s4951_s30 + $0x1240] sm:$0xff] }
 0x27c   : >> { %3197 = vmatprep.subr.bf16.mxu1 %v2269_v43  ;;  %v5424_v43 = vpack.c.bf16 %v402_v19, %v402_v19  ;;  %v1068_v19 = vld [vmem:[%s4951_s30 + $0x1340] sm:$0xff] }
 0x27e   : >> { %3157 = vmatpush1.bf16.msra.mxu0 %v2204_v49  ;;  %v2285_v49 = vunpack.c.l.s8.bf16 %v1033_v27 }
 0x27f   : >> { %3198 = vmatpush1.bf16.msra.mxu1 %v2268_v50  ;;  %3158 = vmatprep.subr.bf16.mxu0 %v2209_v53  ;;  %v2349_v50 = vunpack.c.l.s8.bf16 %v1065_v28  ;;  %v1032_v53 = vld [vmem:[%s4951_s30 + $0x1220] sm:$0xff] }
 0x280   : >> { %3199 = vmatprep.subr.bf16.mxu1 %v2273_v54  ;;  %v1064_v54 = vld [vmem:[%s4951_s30 + $0x1320] sm:$0xff]  ;;  %v2284_v55 = vunpack.c.l.s8.bf16 %v1032_v53 }
 0x281   : >> { %v2348_v56 = vunpack.c.l.s8.bf16 %v1064_v54 }
 0x282   : >> { %3159 = vmatpush1.bf16.msra.mxu0 %v2208_v63  ;;  %v2289_v63 = vunpack.c.h.s8.bf16 %v1033_v27  ;;  %v1041_v27 = vld [vmem:[%s4951_s30 + $0x1268] sm:$0xff] }
 0x283   : >> { %3200 = vmatpush1.bf16.msra.mxu1 %v2272_v0  ;;  %3210 = vmatprep.subr.bf16.mxu0 %v2277_v16  ;;  %v2353_v0 = vunpack.c.h.s8.bf16 %v1065_v28  ;;  %v2288_v16 = vunpack.c.h.s8.bf16 %v1032_v53  ;;  %v1073_v28 = vld [vmem:[%s4951_s30 + $0x1368] sm:$0xff]  ;;  %v1040_v53 = vld [vmem:[%s4951_s30 + $0x1260] sm:$0xff] }
 0x284   : >> { %3251 = vmatprep.subr.bf16.mxu1 %v2341_v9  ;;  %v2352_v9 = vunpack.c.h.s8.bf16 %v1064_v54  ;;  %v1072_v54 = vld [vmem:[%s4951_s30 + $0x1360] sm:$0xff] }
 0x285   : >> { %3161 = vmatmul.mubr.bf16.vlgmr.msra.gmra.mrb[32].mxu0 %v5414_v18 }
 0x286   : >> { %3202 = vmatmul.mubr.bf16.vlgmr.msra.gmra.mrb[32].mxu1 %v5416_v12  ;;  %3211 = vmatpush1.bf16.msra.mxu0 %v2276_v15  ;;  %v2292_v15 = vunpack.c.l.s8.bf16 %v1036_v17 }
 0x287   : >> { %3252 = vmatpush1.bf16.msra.mxu1 %v2340_v26  ;;  %3212 = vmatprep.subr.bf16.mxu0 %v2281_v3  ;;  %v2356_v26 = vunpack.c.l.s8.bf16 %v1068_v19  ;;  %v2297_v3 = vunpack.c.h.s8.bf16 %v1037_v2 }
 0x288   : >> { %3253 = vmatprep.subr.bf16.mxu1 %v2345_v20  ;;  %3242 = vmatprep.mubr.bf16.mxu0 %v5422_v35  ;;  %v2361_v20 = vunpack.c.h.s8.bf16 %v1069_v7 }
 0x289   : >> { %3283 = vmatprep.mubr.bf16.mxu1 %v5424_v43 }
 0x28a   : >> { %3213 = vmatpush1.bf16.msra.mxu0 %v2280_v36  ;;  %v2296_v36 = vunpack.c.h.s8.bf16 %v1036_v17 }
 0x28b   : >> { %3254 = vmatpush1.bf16.msra.mxu1 %v2344_v44  ;;  %3214 = vmatprep.subr.bf16.mxu0 %v2285_v49  ;;  %v2360_v44 = vunpack.c.h.s8.bf16 %v1068_v19  ;;  %v2301_v49 = vunpack.c.l.s8.bf16 %v1041_v27 }
 0x28c   : >> { %3255 = vmatprep.subr.bf16.mxu1 %v2349_v50  ;;  %v2365_v50 = vunpack.c.l.s8.bf16 %v1073_v28 }
 0x28e   : >> { %3215 = vmatpush1.bf16.msra.mxu0 %v2284_v55 }
 0x28f   : >> { %3256 = vmatpush1.bf16.msra.mxu1 %v2348_v56  ;;  %3216 = vmatprep.subr.bf16.mxu0 %v2289_v63 }
 0x290   : >> { %3257 = vmatprep.subr.bf16.mxu1 %v2353_v0 }
 0x292   : >> { %3217 = vmatpush1.bf16.msra.mxu0 %v2288_v16 }
 0x293   : >> { %3258 = vmatpush1.bf16.msra.mxu1 %v2352_v9  ;;  %3218 = vmatprep.subr.bf16.mxu0 %v2293_v25  ;;  %v2300_v25 = vunpack.c.l.s8.bf16 %v1040_v53 }
 0x294   : >> { %3259 = vmatprep.subr.bf16.mxu1 %v2357_v10  ;;  %v2364_v10 = vunpack.c.l.s8.bf16 %v1072_v54 }
 0x296   : >> { %3219 = vmatpush1.bf16.msra.mxu0 %v2292_v15 }
 0x297   : >> { %3260 = vmatpush1.bf16.msra.mxu1 %v2356_v26  ;;  %3220 = vmatprep.subr.bf16.mxu0 %v2297_v3  ;;  %v2369_v26 = vunpack.c.h.s8.bf16 %v1073_v28 }
 0x298   : >> { %3261 = vmatprep.subr.bf16.mxu1 %v2361_v20  ;;  %v2916_v55 = vpop.f32.mrb[20].mxu0  ;;  %v1077_v20 = vld [vmem:[%s4951_s30 + $0x1388] sm:$0xff] }
 0x299   : >> { %v2957_v56 = vpop.f32.mrb[20].mxu1  ;;  %v2917_v63 = vadd.f32 %v2916_v55, %v5388_v1  ;;  %v2918_v0 = vpop.f32.mrb[21].mxu0  ;;  %v2305_v1 = vunpack.c.h.s8.bf16 %v1041_v27 }
 0x29a   : >> { %v2959_v16 = vpop.f32.mrb[21].mxu1  ;;  %v2919_v2 = vadd.f32 %v2918_v0, %v5390_v11  ;;  %v2920_v7 = vpop.f32.mrb[22].mxu0  ;;  %3221 = vmatpush1.bf16.msra.mxu0 %v2296_v36  ;;  %v1045_v11 = vld [vmem:[%s4951_s30 + $0x1288] sm:$0xff]  ;;  %v2304_v36 = vunpack.c.h.s8.bf16 %v1040_v53  ;;  %v2377_v0 = vunpack.c.h.s8.bf16 %v1077_v20 }
 0x29b   : >> { %v2961_v9 = vpop.f32.mrb[22].mxu1  ;;  %3262 = vmatpush1.bf16.msra.mxu1 %v2360_v44  ;;  %v5442_v17 = vadd.f32 %v2957_v56, %v2917_v63  ;;  %v2921_v19 = vpop.f32.mrb[23].mxu0  ;;  %3222 = vmatprep.subr.bf16.mxu0 %v2301_v49  ;;  %v2368_v44 = vunpack.c.h.s8.bf16 %v1072_v54  ;;  %v2309_v55 = vunpack.c.l.s8.bf16 %v1045_v11  ;;  %v2373_v56 = vunpack.c.l.s8.bf16 %v1077_v20  ;;  %v1044_v63 = vld [vmem:[%s4951_s30 + $0x1280] sm:$0xff]  ;;  %v1049_v53 = vld [vmem:[%s4951_s30 + $0x12a8] sm:$0xff] }
 0x29c   : >> { %v2962_v15 = vpop.f32.mrb[23].mxu1  ;;  %3263 = vmatprep.subr.bf16.mxu1 %v2365_v50  ;;  %v5444_v3 = vadd.f32 %v2959_v16, %v2919_v2  ;;  %v1076_v49 = vld [vmem:[%s4951_s30 + $0x1380] sm:$0xff]  ;;  %v2308_v27 = vunpack.c.l.s8.bf16 %v1044_v63  ;;  %v2313_v50 = vunpack.c.h.s8.bf16 %v1045_v11  ;;  %v1081_v16 = vld [vmem:[%s4951_s30 + $0x13a8] sm:$0xff]  ;;  %v2312_v54 = vunpack.c.h.s8.bf16 %v1044_v63 }
 0x29d   : >> { %v2372_v28 = vunpack.c.l.s8.bf16 %v1076_v49  ;;  %v2376_v2 = vunpack.c.h.s8.bf16 %v1076_v49  ;;  %v2317_v7 = vunpack.c.l.s8.bf16 %v1049_v53  ;;  %v2381_v9 = vunpack.c.l.s8.bf16 %v1081_v16  ;;  %v1053_v11 = vld [vmem:[%s4951_s30 + $0x12c8] sm:$0xff]  ;;  %v1052_v63 = vld [vmem:[%s4951_s30 + $0x12c0] sm:$0xff] }
 0x29e   : >> { %3223 = vmatpush1.bf16.msra.mxu0 %v2300_v25  ;;  %v1048_v25 = vld [vmem:[%s4951_s30 + $0x12a0] sm:$0xff]  ;;  %v1085_v20 = vld [vmem:[%s4951_s30 + $0x13c8] sm:$0xff] }
 0x29f   : >> { %3264 = vmatpush1.bf16.msra.mxu1 %v2364_v10  ;;  %3224 = vmatprep.subr.bf16.mxu0 %v2305_v1  ;;  %v1080_v10 = vld [vmem:[%s4951_s30 + $0x13a0] sm:$0xff]  ;;  %v2316_v19 = vunpack.c.l.s8.bf16 %v1048_v25  ;;  %v2321_v1 = vunpack.c.h.s8.bf16 %v1049_v53  ;;  %v1057_v53 = vld [vmem:[%s4951_s30 + $0x12e8] sm:$0xff] }
 0x2a0   : >> { %3265 = vmatprep.subr.bf16.mxu1 %v2369_v26  ;;  %v2380_v15 = vunpack.c.l.s8.bf16 %v1080_v10  ;;  %v2385_v26 = vunpack.c.h.s8.bf16 %v1081_v16  ;;  %v1084_v49 = vld [vmem:[%s4951_s30 + $0x13c0] sm:$0xff]  ;;  %v1089_v16 = vld [vmem:[%s4951_s30 + $0x13e8] sm:$0xff] }
 0x2a2   : >> { %3225 = vmatpush1.bf16.msra.mxu0 %v2304_v36  ;;  %v2320_v36 = vunpack.c.h.s8.bf16 %v1048_v25  ;;  %v1056_v25 = vld [vmem:[%s4951_s30 + $0x12e0] sm:$0xff] }
 0x2a3   : >> { %3266 = vmatpush1.bf16.msra.mxu1 %v2368_v44  ;;  %3226 = vmatprep.subr.bf16.mxu0 %v2309_v55  ;;  %v2384_v44 = vunpack.c.h.s8.bf16 %v1080_v10  ;;  %v2325_v55 = vunpack.c.l.s8.bf16 %v1053_v11  ;;  %v1088_v10 = vld [vmem:[%s4951_s30 + $0x13e0] sm:$0xff] }
 0x2a4   : >> { %3267 = vmatprep.subr.bf16.mxu1 %v2373_v56  ;;  %v2389_v56 = vunpack.c.l.s8.bf16 %v1085_v20 }
 0x2a6   : >> { %3227 = vmatpush1.bf16.msra.mxu0 %v2308_v27  ;;  %v2324_v27 = vunpack.c.l.s8.bf16 %v1052_v63 }
 0x2a7   : >> { %3268 = vmatpush1.bf16.msra.mxu1 %v2372_v28  ;;  %3228 = vmatprep.subr.bf16.mxu0 %v2313_v50  ;;  %v2388_v28 = vunpack.c.l.s8.bf16 %v1084_v49  ;;  %v2329_v50 = vunpack.c.h.s8.bf16 %v1053_v11  ;;  %v1093_v11 = vld [vmem:[%s4951_s30 + $0x1408] sm:$0xff] }
 0x2a8   : >> { %3269 = vmatprep.subr.bf16.mxu1 %v2377_v0  ;;  %v2393_v0 = vunpack.c.h.s8.bf16 %v1085_v20  ;;  %v455_v20 = vld [vmem:[%s4951_s30 + $0x18] sm:$0xff] }
 0x2aa   : >> { %3229 = vmatpush1.bf16.msra.mxu0 %v2312_v54  ;;  %v2328_v54 = vunpack.c.h.s8.bf16 %v1052_v63  ;;  %v2405_v63 = vunpack.c.l.s8.bf16 %v1093_v11 }
 0x2ab   : >> { %3270 = vmatpush1.bf16.msra.mxu1 %v2376_v2  ;;  %3230 = vmatprep.subr.bf16.mxu0 %v2317_v7  ;;  %v2392_v2 = vunpack.c.h.s8.bf16 %v1084_v49  ;;  %v2333_v7 = vunpack.c.l.s8.bf16 %v1057_v53  ;;  %v1127_v49 = vunpack.c.l.s8.bf16 %v455_v20 }
 0x2ac   : >> { %3271 = vmatprep.subr.bf16.mxu1 %v2381_v9  ;;  %v2397_v9 = vunpack.c.l.s8.bf16 %v1089_v16 }
 0x2ae   : >> { %3231 = vmatpush1.bf16.msra.mxu0 %v2316_v19  ;;  %v2332_v19 = vunpack.c.l.s8.bf16 %v1056_v25 }
 0x2af   : >> { %3272 = vmatpush1.bf16.msra.mxu1 %v2380_v15  ;;  %3232 = vmatprep.subr.bf16.mxu0 %v2321_v1  ;;  %v2396_v15 = vunpack.c.l.s8.bf16 %v1088_v10  ;;  %v2337_v1 = vunpack.c.h.s8.bf16 %v1057_v53  ;;  %v404_v53 = vld [vmem:[%s4964_s8 + $0x148] sm:$0xff] }
 0x2b0   : >> { %3273 = vmatprep.subr.bf16.mxu1 %v2385_v26  ;;  %v2401_v26 = vunpack.c.h.s8.bf16 %v1089_v16 }
 0x2b2   : >> { %3233 = vmatpush1.bf16.msra.mxu0 %v2320_v36  ;;  %v2336_v36 = vunpack.c.h.s8.bf16 %v1056_v25  ;;  %v459_v25 = vld [vmem:[%s4951_s30 + $0x38] sm:$0xff] }
 0x2b3   : >> { %3274 = vmatpush1.bf16.msra.mxu1 %v2384_v44  ;;  %3234 = vmatprep.subr.bf16.mxu0 %v2325_v55  ;;  %v2400_v44 = vunpack.c.h.s8.bf16 %v1088_v10  ;;  %v399_v55 = vld [vmem:[%s4964_s8 + $0x120] sm:$0xff]  ;;  %v5475_v10 = vpack.c.bf16 %v404_v53, %v404_v53 }
 0x2b4   : >> { %3275 = vmatprep.subr.bf16.mxu1 %v2389_v56  ;;  %v401_v56 = vld [vmem:[%s4964_s8 + $0x130] sm:$0xff] }
 0x2b6   : >> { %3235 = vmatpush1.bf16.msra.mxu0 %v2324_v27  ;;  %v1092_v27 = vld [vmem:[%s4951_s30 + $0x1400] sm:$0xff] }
 0x2b7   : >> { %3276 = vmatpush1.bf16.msra.mxu1 %v2388_v28  ;;  %3236 = vmatprep.subr.bf16.mxu0 %v2329_v50  ;;  %v454_v28 = vld [vmem:[%s4951_s30 + $0x10] sm:$0xff]  ;;  %v5468_v50 = vpack.c.bf16 %v399_v55, %v399_v55  ;;  %v2404_v16 = vunpack.c.l.s8.bf16 %v1092_v27 }
 0x2b8   : >> { %3277 = vmatprep.subr.bf16.mxu1 %v2393_v0  ;;  %v5470_v0 = vpack.c.bf16 %v401_v56, %v401_v56  ;;  %v1139_v56 = vunpack.c.h.s8.bf16 %v459_v25 }
 0x2ba   : >> { %3237 = vmatpush1.bf16.msra.mxu0 %v2328_v54  ;;  %v1126_v54 = vunpack.c.l.s8.bf16 %v454_v28 }
 0x2bb   : >> { %3278 = vmatpush1.bf16.msra.mxu1 %v2392_v2  ;;  %3238 = vmatprep.subr.bf16.mxu0 %v2333_v7  ;;  %v2409_v2 = vunpack.c.h.s8.bf16 %v1093_v11  ;;  %v1131_v7 = vunpack.c.h.s8.bf16 %v455_v20  ;;  %v1096_v11 = vld [vmem:[%s4951_s30 + $0x1420] sm:$0xff]  ;;  %v458_v20 = vld [vmem:[%s4951_s30 + $0x30] sm:$0xff] }
 0x2bc   : >> { %3279 = vmatprep.subr.bf16.mxu1 %v2397_v9  ;;  %v1097_v9 = vld [vmem:[%s4951_s30 + $0x1428] sm:$0xff] }
 0x2bd   : >> { %v2417_v55 = vunpack.c.h.s8.bf16 %v1097_v9 }
 0x2be   : >> { %3239 = vmatpush1.bf16.msra.mxu0 %v2332_v19  ;;  %v2408_v19 = vunpack.c.h.s8.bf16 %v1092_v27  ;;  %v2416_v27 = vunpack.c.h.s8.bf16 %v1096_v11 }
 0x2bf   : >> { %3280 = vmatpush1.bf16.msra.mxu1 %v2396_v15  ;;  %3240 = vmatprep.subr.bf16.mxu0 %v2337_v1  ;;  %v1130_v15 = vunpack.c.h.s8.bf16 %v454_v28  ;;  %v2413_v1 = vunpack.c.l.s8.bf16 %v1097_v9  ;;  %v1138_v28 = vunpack.c.h.s8.bf16 %v458_v20 }
 0x2c0   : >> { %3281 = vmatprep.subr.bf16.mxu1 %v2401_v26  ;;  %v1135_v26 = vunpack.c.l.s8.bf16 %v459_v25 }
 0x2c2   : >> { %3241 = vmatpush1.bf16.msra.mxu0 %v2336_v36  ;;  %v2412_v36 = vunpack.c.l.s8.bf16 %v1096_v11 }
 0x2c3   : >> { %3282 = vmatpush1.bf16.msra.mxu1 %v2400_v44  ;;  %3292 = vmatprep.subr.bf16.mxu0 %v2405_v63  ;;  %v1134_v44 = vunpack.c.l.s8.bf16 %v458_v20  ;;  %v1101_v63 = vld [vmem:[%s4951_s30 + $0x1448] sm:$0xff] }
 0x2c4   : >> { %3333 = vmatprep.subr.bf16.mxu1 %v1127_v49  ;;  %v463_v49 = vld [vmem:[%s4951_s30 + $0x58] sm:$0xff]  ;;  %v2425_v9 = vunpack.c.h.s8.bf16 %v1101_v63 }
 0x2c5   : >> { %3243 = vmatmul.mubr.bf16.vlgmr.msra.gmra.mrb[36].mxu0 %v5468_v50  ;;  %v1143_v53 = vunpack.c.l.s8.bf16 %v463_v49  ;;  %v1147_v25 = vunpack.c.h.s8.bf16 %v463_v49 }
 0x2c6   : >> { %3284 = vmatmul.mubr.bf16.vlgmr.msra.gmra.mrb[36].mxu1 %v5470_v0  ;;  %3293 = vmatpush1.bf16.msra.mxu0 %v2404_v16  ;;  %v1100_v16 = vld [vmem:[%s4951_s30 + $0x1440] sm:$0xff] }
 0x2c7   : >> { %3334 = vmatpush1.bf16.msra.mxu1 %v1126_v54  ;;  %3294 = vmatprep.subr.bf16.mxu0 %v2409_v2  ;;  %v462_v54 = vld [vmem:[%s4951_s30 + $0x50] sm:$0xff]  ;;  %v2420_v2 = vunpack.c.l.s8.bf16 %v1100_v16 }
 0x2c8   : >> { %3335 = vmatprep.subr.bf16.mxu1 %v1131_v7  ;;  %3324 = vmatprep.mubr.bf16.mxu0 %v5475_v10  ;;  %v1142_v7 = vunpack.c.l.s8.bf16 %v462_v54 }
 0x2c9   : >> { %3365 = vmatprep.mubr.bf16.mxu1 %v4970_v37  ;;  %v2421_v37 = vunpack.c.l.s8.bf16 %v1101_v63 }
 0x2ca   : >> { %3295 = vmatpush1.bf16.msra.mxu0 %v2408_v19  ;;  %v1105_v19 = vld [vmem:[%s4951_s30 + $0x1468] sm:$0xff] }
 0x2cb   : >> { %3336 = vmatpush1.bf16.msra.mxu1 %v1130_v15  ;;  %3296 = vmatprep.subr.bf16.mxu0 %v2413_v1  ;;  %v467_v15 = vld [vmem:[%s4951_s30 + $0x78] sm:$0xff]  ;;  %v2424_v1 = vunpack.c.h.s8.bf16 %v1100_v16  ;;  %v2429_v11 = vunpack.c.l.s8.bf16 %v1105_v19 }
 0x2cc   : >> { %3337 = vmatprep.subr.bf16.mxu1 %v1135_v26  ;;  %v1146_v26 = vunpack.c.h.s8.bf16 %v462_v54  ;;  %v1151_v20 = vunpack.c.l.s8.bf16 %v467_v15 }
 0x2ce   : >> { %3297 = vmatpush1.bf16.msra.mxu0 %v2412_v36  ;;  %v1104_v36 = vld [vmem:[%s4951_s30 + $0x1460] sm:$0xff] }
 0x2cf   : >> { %3338 = vmatpush1.bf16.msra.mxu1 %v1134_v44  ;;  %3298 = vmatprep.subr.bf16.mxu0 %v2417_v55  ;;  %v466_v44 = vld [vmem:[%s4951_s30 + $0x70] sm:$0xff]  ;;  %v2428_v16 = vunpack.c.l.s8.bf16 %v1104_v36 }
 0x2d0   : >> { %3339 = vmatprep.subr.bf16.mxu1 %v1139_v56  ;;  %v1150_v54 = vunpack.c.l.s8.bf16 %v466_v44 }
 0x2d2   : >> { %3299 = vmatpush1.bf16.msra.mxu0 %v2416_v27 }
 0x2d3   : >> { %3340 = vmatpush1.bf16.msra.mxu1 %v1138_v28  ;;  %3300 = vmatprep.subr.bf16.mxu0 %v2421_v37 }
 0x2d4   : >> { %3341 = vmatprep.subr.bf16.mxu1 %v1143_v53 }
 0x2d6   : >> { %3301 = vmatpush1.bf16.msra.mxu0 %v2420_v2 }
 0x2d7   : >> { %3342 = vmatpush1.bf16.msra.mxu1 %v1142_v7  ;;  %3302 = vmatprep.subr.bf16.mxu0 %v2425_v9 }
 0x2d8   : >> { %3343 = vmatprep.subr.bf16.mxu1 %v1147_v25  ;;  %v2998_v55 = vpop.f32.mrb[24].mxu0  ;;  %v1155_v25 = vunpack.c.h.s8.bf16 %v467_v15 }
 0x2d9   : >> { %v3039_v56 = vpop.f32.mrb[24].mxu1  ;;  %v2999_v27 = vadd.f32 %v2998_v55, %v5442_v17  ;;  %v3000_v28 = vpop.f32.mrb[25].mxu0  ;;  %v2433_v17 = vunpack.c.h.s8.bf16 %v1105_v19 }
 0x2da   : >> { %v3041_v37 = vpop.f32.mrb[25].mxu1  ;;  %v3001_v63 = vadd.f32 %v3000_v28, %v5444_v3  ;;  %v3002_v49 = vpop.f32.mrb[26].mxu0  ;;  %3303 = vmatpush1.bf16.msra.mxu0 %v2424_v1  ;;  %v1109_v3 = vld [vmem:[%s4951_s30 + $0x1488] sm:$0xff]  ;;  %v471_v28 = vld [vmem:[%s4951_s30 + $0x98] sm:$0xff]  ;;  %v2432_v1 = vunpack.c.h.s8.bf16 %v1104_v36 }
 0x2db   : >> { %v3043_v53 = vpop.f32.mrb[26].mxu1  ;;  %3344 = vmatpush1.bf16.msra.mxu1 %v1146_v26  ;;  %v5493_v2 = vadd.f32 %v3039_v56, %v2999_v27  ;;  %v3003_v7 = vpop.f32.mrb[27].mxu0  ;;  %3304 = vmatprep.subr.bf16.mxu0 %v2429_v11  ;;  %v1154_v26 = vunpack.c.h.s8.bf16 %v466_v44  ;;  %v2437_v56 = vunpack.c.l.s8.bf16 %v1109_v3  ;;  %v1159_v27 = vunpack.c.l.s8.bf16 %v471_v28  ;;  %v1108_v49 = vld [vmem:[%s4951_s30 + $0x1480] sm:$0xff]  ;;  %v470_v11 = vld [vmem:[%s4951_s30 + $0x90] sm:$0xff]  ;;  %v1113_v36 = vld [vmem:[%s4951_s30 + $0x14a8] sm:$0xff] }
 0x2dc   : >> { %v3044_v9 = vpop.f32.mrb[27].mxu1  ;;  %3345 = vmatprep.subr.bf16.mxu1 %v1151_v20  ;;  %v5495_v55 = vadd.f32 %v3041_v37, %v3001_v63  ;;  %v2436_v19 = vunpack.c.l.s8.bf16 %v1108_v49  ;;  %v1158_v15 = vunpack.c.l.s8.bf16 %v470_v11  ;;  %v2441_v20 = vunpack.c.h.s8.bf16 %v1109_v3  ;;  %v475_v63 = vld [vmem:[%s4951_s30 + $0xb8] sm:$0xff]  ;;  %v1112_v7 = vld [vmem:[%s4951_s30 + $0x14a0] sm:$0xff] }
 0x2dd   : >> { %v1163_v37 = vunpack.c.h.s8.bf16 %v471_v28  ;;  %v2440_v44 = vunpack.c.h.s8.bf16 %v1108_v49  ;;  %v1162_v53 = vunpack.c.h.s8.bf16 %v470_v11  ;;  %v474_v9 = vld [vmem:[%s4951_s30 + $0xb0] sm:$0xff]  ;;  %v2449_v3 = vunpack.c.h.s8.bf16 %v1113_v36 }
 0x2de   : >> { %3305 = vmatpush1.bf16.msra.mxu0 %v2428_v16  ;;  %v2445_v16 = vunpack.c.l.s8.bf16 %v1113_v36  ;;  %v1171_v28 = vunpack.c.h.s8.bf16 %v475_v63 }
 0x2df   : >> { %3346 = vmatpush1.bf16.msra.mxu1 %v1150_v54  ;;  %3306 = vmatprep.subr.bf16.mxu0 %v2433_v17  ;;  %v1167_v54 = vunpack.c.l.s8.bf16 %v475_v63  ;;  %v2444_v17 = vunpack.c.l.s8.bf16 %v1112_v7 }
 0x2e0   : >> { %3347 = vmatprep.subr.bf16.mxu1 %v1155_v25  ;;  %v1166_v25 = vunpack.c.l.s8.bf16 %v474_v9 }
 0x2e2   : >> { %3307 = vmatpush1.bf16.msra.mxu0 %v2432_v1  ;;  %v1117_v1 = vld [vmem:[%s4951_s30 + $0x14c8] sm:$0xff] }
 0x2e3   : >> { %3348 = vmatpush1.bf16.msra.mxu1 %v1154_v26  ;;  %3308 = vmatprep.subr.bf16.mxu0 %v2437_v56  ;;  %v479_v26 = vld [vmem:[%s4951_s30 + $0xd8] sm:$0xff]  ;;  %v2448_v56 = vunpack.c.h.s8.bf16 %v1112_v7  ;;  %v2453_v49 = vunpack.c.l.s8.bf16 %v1117_v1  ;;  %v2457_v36 = vunpack.c.h.s8.bf16 %v1117_v1 }
 0x2e4   : >> { %3349 = vmatprep.subr.bf16.mxu1 %v1159_v27  ;;  %v1170_v27 = vunpack.c.h.s8.bf16 %v474_v9  ;;  %v1175_v11 = vunpack.c.l.s8.bf16 %v479_v26  ;;  %v1179_v63 = vunpack.c.h.s8.bf16 %v479_v26 }
 0x2e6   : >> { %3309 = vmatpush1.bf16.msra.mxu0 %v2436_v19  ;;  %v1116_v19 = vld [vmem:[%s4951_s30 + $0x14c0] sm:$0xff] }
 0x2e7   : >> { %3350 = vmatpush1.bf16.msra.mxu1 %v1158_v15  ;;  %3310 = vmatprep.subr.bf16.mxu0 %v2441_v20  ;;  %v478_v15 = vld [vmem:[%s4951_s30 + $0xd0] sm:$0xff]  ;;  %v2452_v20 = vunpack.c.l.s8.bf16 %v1116_v19 }
 0x2e8   : >> { %3351 = vmatprep.subr.bf16.mxu1 %v1163_v37  ;;  %v1174_v37 = vunpack.c.l.s8.bf16 %v478_v15 }
 0x2ea   : >> { %3311 = vmatpush1.bf16.msra.mxu0 %v2440_v44  ;;  %v1121_v44 = vld [vmem:[%s4951_s30 + $0x14e8] sm:$0xff] }
 0x2eb   : >> { %3352 = vmatpush1.bf16.msra.mxu1 %v1162_v53  ;;  %3312 = vmatprep.subr.bf16.mxu0 %v2445_v16  ;;  %v483_v53 = vld [vmem:[%s4951_s30 + $0xf8] sm:$0xff]  ;;  %v2456_v16 = vunpack.c.h.s8.bf16 %v1116_v19  ;;  %v2461_v7 = vunpack.c.l.s8.bf16 %v1121_v44  ;;  %v2465_v1 = vunpack.c.h.s8.bf16 %v1121_v44  ;;  %v403_v19 = vld [vmem:[%s4964_s8 + $0x140] sm:$0xff] }
 0x2ec   : >> { %3353 = vmatprep.subr.bf16.mxu1 %v1167_v54  ;;  %v1178_v54 = vunpack.c.h.s8.bf16 %v478_v15  ;;  %v1183_v9 = vunpack.c.l.s8.bf16 %v483_v53  ;;  %v1187_v26 = vunpack.c.h.s8.bf16 %v483_v53 }
 0x2ee   : >> { %3313 = vmatpush1.bf16.msra.mxu0 %v2444_v17  ;;  %v1120_v17 = vld [vmem:[%s4951_s30 + $0x14e0] sm:$0xff] }
 0x2ef   : >> { %3354 = vmatpush1.bf16.msra.mxu1 %v1166_v25  ;;  %3314 = vmatprep.subr.bf16.mxu0 %v2449_v3  ;;  %v482_v25 = vld [vmem:[%s4951_s30 + $0xf0] sm:$0xff]  ;;  %v2460_v3 = vunpack.c.l.s8.bf16 %v1120_v17 }
 0x2f0   : >> { %3355 = vmatprep.subr.bf16.mxu1 %v1171_v28  ;;  %v1182_v28 = vunpack.c.l.s8.bf16 %v482_v25 }
 0x2f2   : >> { %3315 = vmatpush1.bf16.msra.mxu0 %v2448_v56  ;;  %v487_v56 = vld [vmem:[%s4951_s30 + $0x118] sm:$0xff] }
 0x2f3   : >> { %3356 = vmatpush1.bf16.msra.mxu1 %v1170_v27  ;;  %3316 = vmatprep.subr.bf16.mxu0 %v2453_v49  ;;  %v519_v27 = vld [vmem:[%s4951_s30 + $0x218] sm:$0xff]  ;;  %v2464_v49 = vunpack.c.h.s8.bf16 %v1120_v17  ;;  %v1191_v15 = vunpack.c.l.s8.bf16 %v487_v56 }
 0x2f4   : >> { %3357 = vmatprep.subr.bf16.mxu1 %v1175_v11  ;;  %v1186_v11 = vunpack.c.h.s8.bf16 %v482_v25 }
 0x2f6   : >> { %3317 = vmatpush1.bf16.msra.mxu0 %v2452_v20  ;;  %v1255_v20 = vunpack.c.l.s8.bf16 %v519_v27 }
 0x2f7   : >> { %3358 = vmatpush1.bf16.msra.mxu1 %v1174_v37  ;;  %3318 = vmatprep.subr.bf16.mxu0 %v2457_v36  ;;  %v486_v37 = vld [vmem:[%s4951_s30 + $0x110] sm:$0xff] }
 0x2f8   : >> { %3359 = vmatprep.subr.bf16.mxu1 %v1179_v63  ;;  %v518_v36 = vld [vmem:[%s4951_s30 + $0x210] sm:$0xff]  ;;  %v5518_v63 = vpack.c.bf16 %v403_v19, %v403_v19  ;;  %v1190_v44 = vunpack.c.l.s8.bf16 %v486_v37  ;;  %v1194_v17 = vunpack.c.h.s8.bf16 %v486_v37  ;;  %v527_v19 = vld [vmem:[%s4951_s30 + $0x258] sm:$0xff] }
 0x2f9   : >> { %v1254_v53 = vunpack.c.l.s8.bf16 %v518_v36  ;;  %v1258_v25 = vunpack.c.h.s8.bf16 %v518_v36  ;;  %v494_v37 = vld [vmem:[%s4951_s30 + $0x150] sm:$0xff] }
 0x2fa   : >> { %3319 = vmatpush1.bf16.msra.mxu0 %v2456_v16  ;;  %v1195_v16 = vunpack.c.h.s8.bf16 %v487_v56  ;;  %v526_v36 = vld [vmem:[%s4951_s30 + $0x250] sm:$0xff] }
 0x2fb   : >> { %3360 = vmatpush1.bf16.msra.mxu1 %v1178_v54  ;;  %3320 = vmatprep.subr.bf16.mxu0 %v2461_v7  ;;  %v1259_v54 = vunpack.c.h.s8.bf16 %v519_v27  ;;  %v491_v7 = vld [vmem:[%s4951_s30 + $0x138] sm:$0xff] }
 0x2fc   : >> { %3361 = vmatprep.subr.bf16.mxu1 %v1183_v9  ;;  %v523_v9 = vld [vmem:[%s4951_s30 + $0x238] sm:$0xff]  ;;  %v1203_v27 = vunpack.c.h.s8.bf16 %v491_v7 }
 0x2fe   : >> { %3321 = vmatpush1.bf16.msra.mxu0 %v2460_v3  ;;  %v1199_v3 = vunpack.c.l.s8.bf16 %v491_v7  ;;  %v499_v7 = vld [vmem:[%s4951_s30 + $0x178] sm:$0xff] }
 0x2ff   : >> { %3362 = vmatpush1.bf16.msra.mxu1 %v1182_v28  ;;  %3322 = vmatprep.subr.bf16.mxu0 %v2465_v1  ;;  %v1263_v28 = vunpack.c.l.s8.bf16 %v523_v9  ;;  %v490_v1 = vld [vmem:[%s4951_s30 + $0x130] sm:$0xff] }
 0x300   : >> { %3363 = vmatprep.subr.bf16.mxu1 %v1187_v26  ;;  %v522_v26 = vld [vmem:[%s4951_s30 + $0x230] sm:$0xff]  ;;  %v1198_v56 = vunpack.c.l.s8.bf16 %v490_v1 }
 0x302   : >> { %3323 = vmatpush1.bf16.msra.mxu0 %v2464_v49  ;;  %v1267_v49 = vunpack.c.h.s8.bf16 %v523_v9  ;;  %v531_v9 = vld [vmem:[%s4951_s30 + $0x278] sm:$0xff] }
 0x303   : >> { %3364 = vmatpush1.bf16.msra.mxu1 %v1186_v11  ;;  %3374 = vmatprep.subr.bf16.mxu0 %v1191_v15  ;;  %v495_v11 = vld [vmem:[%s4951_s30 + $0x158] sm:$0xff]  ;;  %v1202_v15 = vunpack.c.h.s8.bf16 %v490_v1  ;;  %v498_v1 = vld [vmem:[%s4951_s30 + $0x170] sm:$0xff] }
 0x304   : >> { %3415 = vmatprep.subr.bf16.mxu1 %v1255_v20  ;;  %v1266_v20 = vunpack.c.h.s8.bf16 %v522_v26 }
 0x305   : >> { %3325 = vmatmul.mubr.bf16.vlgmr.msra.gmra.mrb[40].mxu0 %v5518_v63 }
 0x306   : >> { %3366 = vmatmul.mubr.bf16.vlgmr.msra.gmra.mrb[40].mxu1 %v5002_v47  ;;  %3375 = vmatpush1.bf16.msra.mxu0 %v1190_v44  ;;  %v1262_v47 = vunpack.c.l.s8.bf16 %v522_v26  ;;  %v1206_v44 = vunpack.c.l.s8.bf16 %v494_v37  ;;  %v530_v26 = vld [vmem:[%s4951_s30 + $0x270] sm:$0xff] }
 0x307   : >> { %3416 = vmatpush1.bf16.msra.mxu1 %v1254_v53  ;;  %3376 = vmatprep.subr.bf16.mxu0 %v1195_v16  ;;  %v1270_v53 = vunpack.c.l.s8.bf16 %v526_v36  ;;  %v1211_v16 = vunpack.c.h.s8.bf16 %v495_v11 }
 0x308   : >> { %3417 = vmatprep.subr.bf16.mxu1 %v1259_v54  ;;  %3406 = vmatprep.mubr.bf16.mxu0 %v4972_v38  ;;  %v1207_v38 = vunpack.c.l.s8.bf16 %v495_v11  ;;  %v1275_v54 = vunpack.c.h.s8.bf16 %v527_v19 }
 0x309   : >> { %3447 = vmatprep.mubr.bf16.mxu1 %v5010_v57  ;;  %v1271_v57 = vunpack.c.l.s8.bf16 %v527_v19 }
 0x30a   : >> { %3377 = vmatpush1.bf16.msra.mxu0 %v1194_v17  ;;  %v1210_v17 = vunpack.c.h.s8.bf16 %v494_v37 }
 0x30b   : >> { %3418 = vmatpush1.bf16.msra.mxu1 %v1258_v25  ;;  %3378 = vmatprep.subr.bf16.mxu0 %v1199_v3  ;;  %v1274_v25 = vunpack.c.h.s8.bf16 %v526_v36  ;;  %v1215_v3 = vunpack.c.l.s8.bf16 %v499_v7 }
 0x30c   : >> { %3419 = vmatprep.subr.bf16.mxu1 %v1263_v28  ;;  %v1279_v28 = vunpack.c.l.s8.bf16 %v531_v9 }
 0x30e   : >> { %3379 = vmatpush1.bf16.msra.mxu0 %v1198_v56 }
 0x30f   : >> { %3420 = vmatpush1.bf16.msra.mxu1 %v1262_v47  ;;  %3380 = vmatprep.subr.bf16.mxu0 %v1203_v27 }
 0x310   : >> { %3421 = vmatprep.subr.bf16.mxu1 %v1267_v49 }
 0x312   : >> { %3381 = vmatpush1.bf16.msra.mxu0 %v1202_v15 }
 0x313   : >> { %3422 = vmatpush1.bf16.msra.mxu1 %v1266_v20  ;;  %3382 = vmatprep.subr.bf16.mxu0 %v1207_v38  ;;  %v1214_v38 = vunpack.c.l.s8.bf16 %v498_v1 }
 0x314   : >> { %3423 = vmatprep.subr.bf16.mxu1 %v1271_v57  ;;  %v1278_v57 = vunpack.c.l.s8.bf16 %v530_v26 }
 0x316   : >> { %3383 = vmatpush1.bf16.msra.mxu0 %v1206_v44 }
 0x317   : >> { %3424 = vmatpush1.bf16.msra.mxu1 %v1270_v53  ;;  %3384 = vmatprep.subr.bf16.mxu0 %v1211_v16  ;;  %v1283_v53 = vunpack.c.h.s8.bf16 %v531_v9 }
 0x318   : >> { %3425 = vmatprep.subr.bf16.mxu1 %v1275_v54  ;;  %v3080_v56 = vpop.f32.mrb[28].mxu0  ;;  %v535_v54 = vld [vmem:[%s4951_s30 + $0x298] sm:$0xff] }
 0x319   : >> { %v3121_v47 = vpop.f32.mrb[28].mxu1  ;;  %v3081_v27 = vadd.f32 %v3080_v56, %v5493_v2  ;;  %v3082_v49 = vpop.f32.mrb[29].mxu0  ;;  %v1219_v2 = vunpack.c.h.s8.bf16 %v499_v7 }
 0x31a   : >> { %v3123_v15 = vpop.f32.mrb[29].mxu1  ;;  %v3083_v11 = vadd.f32 %v3082_v49, %v5495_v55  ;;  %v3084_v19 = vpop.f32.mrb[30].mxu0  ;;  %3385 = vmatpush1.bf16.msra.mxu0 %v1210_v17  ;;  %v503_v55 = vld [vmem:[%s4951_s30 + $0x198] sm:$0xff]  ;;  %v1218_v17 = vunpack.c.h.s8.bf16 %v498_v1  ;;  %v1291_v49 = vunpack.c.h.s8.bf16 %v535_v54 }
 0x31b   : >> { %v3125_v20 = vpop.f32.mrb[30].mxu1  ;;  %3426 = vmatpush1.bf16.msra.mxu1 %v1274_v25  ;;  %v5538_v37 = vadd.f32 %v3121_v47, %v3081_v27  ;;  %v3085_v36 = vpop.f32.mrb[31].mxu0  ;;  %3386 = vmatprep.subr.bf16.mxu0 %v1215_v3  ;;  %v1282_v25 = vunpack.c.h.s8.bf16 %v530_v26  ;;  %v1223_v56 = vunpack.c.l.s8.bf16 %v503_v55  ;;  %v1287_v47 = vunpack.c.l.s8.bf16 %v535_v54  ;;  %v502_v27 = vld [vmem:[%s4951_s30 + $0x190] sm:$0xff]  ;;  %v507_v1 = vld [vmem:[%s4951_s30 + $0x1b8] sm:$0xff] }
 0x31c   : >> { %v3126_v44 = vpop.f32.mrb[31].mxu1  ;;  %3427 = vmatprep.subr.bf16.mxu1 %v1279_v28  ;;  %v5540_v16 = vadd.f32 %v3123_v15, %v3083_v11  ;;  %v534_v3 = vld [vmem:[%s4951_s30 + $0x290] sm:$0xff]  ;;  %v1222_v7 = vunpack.c.l.s8.bf16 %v502_v27  ;;  %v1227_v28 = vunpack.c.h.s8.bf16 %v503_v55  ;;  %v539_v15 = vld [vmem:[%s4951_s30 + $0x2b8] sm:$0xff]  ;;  %v1226_v26 = vunpack.c.h.s8.bf16 %v502_v27 }
 0x31d   : >> { %v1286_v9 = vunpack.c.l.s8.bf16 %v534_v3  ;;  %v1290_v11 = vunpack.c.h.s8.bf16 %v534_v3  ;;  %v1231_v19 = vunpack.c.l.s8.bf16 %v507_v1  ;;  %v1295_v20 = vunpack.c.l.s8.bf16 %v539_v15  ;;  %v511_v55 = vld [vmem:[%s4951_s30 + $0x1d8] sm:$0xff]  ;;  %v510_v27 = vld [vmem:[%s4951_s30 + $0x1d0] sm:$0xff] }
 0x31e   : >> { %3387 = vmatpush1.bf16.msra.mxu0 %v1214_v38  ;;  %v506_v38 = vld [vmem:[%s4951_s30 + $0x1b0] sm:$0xff]  ;;  %v543_v54 = vld [vmem:[%s4951_s30 + $0x2d8] sm:$0xff] }
 0x31f   : >> { %3428 = vmatpush1.bf16.msra.mxu1 %v1278_v57  ;;  %3388 = vmatprep.subr.bf16.mxu0 %v1219_v2  ;;  %v538_v57 = vld [vmem:[%s4951_s30 + $0x2b0] sm:$0xff]  ;;  %v1230_v36 = vunpack.c.l.s8.bf16 %v506_v38  ;;  %v1235_v2 = vunpack.c.h.s8.bf16 %v507_v1  ;;  %v515_v1 = vld [vmem:[%s4951_s30 + $0x1f8] sm:$0xff] }
 0x320   : >> { %3429 = vmatprep.subr.bf16.mxu1 %v1283_v53  ;;  %v1294_v44 = vunpack.c.l.s8.bf16 %v538_v57  ;;  %v1299_v53 = vunpack.c.h.s8.bf16 %v539_v15  ;;  %v542_v3 = vld [vmem:[%s4951_s30 + $0x2d0] sm:$0xff]  ;;  %v547_v15 = vld [vmem:[%s4951_s30 + $0x2f8] sm:$0xff] }
 0x322   : >> { %3389 = vmatpush1.bf16.msra.mxu0 %v1218_v17  ;;  %v1234_v17 = vunpack.c.h.s8.bf16 %v506_v38  ;;  %v514_v38 = vld [vmem:[%s4951_s30 + $0x1f0] sm:$0xff] }
 0x323   : >> { %3430 = vmatpush1.bf16.msra.mxu1 %v1282_v25  ;;  %3390 = vmatprep.subr.bf16.mxu0 %v1223_v56  ;;  %v1298_v25 = vunpack.c.h.s8.bf16 %v538_v57  ;;  %v1239_v56 = vunpack.c.l.s8.bf16 %v511_v55  ;;  %v546_v57 = vld [vmem:[%s4951_s30 + $0x2f0] sm:$0xff] }
 0x324   : >> { %3431 = vmatprep.subr.bf16.mxu1 %v1287_v47  ;;  %v1303_v47 = vunpack.c.l.s8.bf16 %v543_v54 }
 0x326   : >> { %3391 = vmatpush1.bf16.msra.mxu0 %v1222_v7  ;;  %v1238_v7 = vunpack.c.l.s8.bf16 %v510_v27 }
 0x327   : >> { %3432 = vmatpush1.bf16.msra.mxu1 %v1286_v9  ;;  %3392 = vmatprep.subr.bf16.mxu0 %v1227_v28  ;;  %v1302_v9 = vunpack.c.l.s8.bf16 %v542_v3  ;;  %v1243_v28 = vunpack.c.h.s8.bf16 %v511_v55  ;;  %v551_v55 = vld [vmem:[%s4951_s30 + $0x318] sm:$0xff] }
 0x328   : >> { %3433 = vmatprep.subr.bf16.mxu1 %v1291_v49  ;;  %v1307_v49 = vunpack.c.h.s8.bf16 %v543_v54  ;;  %v583_v54 = vld [vmem:[%s4951_s30 + $0x418] sm:$0xff] }
 0x32a   : >> { %3393 = vmatpush1.bf16.msra.mxu0 %v1226_v26  ;;  %v1242_v26 = vunpack.c.h.s8.bf16 %v510_v27  ;;  %v550_v27 = vld [vmem:[%s4951_s30 + $0x310] sm:$0xff] }
 0x32b   : >> { %3434 = vmatpush1.bf16.msra.mxu1 %v1290_v11  ;;  %3394 = vmatprep.subr.bf16.mxu0 %v1231_v19  ;;  %v1306_v11 = vunpack.c.h.s8.bf16 %v542_v3  ;;  %v1247_v19 = vunpack.c.l.s8.bf16 %v515_v1  ;;  %v582_v3 = vld [vmem:[%s4951_s30 + $0x410] sm:$0xff] }
 0x32c   : >> { %3435 = vmatprep.subr.bf16.mxu1 %v1295_v20  ;;  %v1311_v20 = vunpack.c.l.s8.bf16 %v547_v15 }
 0x32e   : >> { %3395 = vmatpush1.bf16.msra.mxu0 %v1230_v36  ;;  %v1246_v36 = vunpack.c.l.s8.bf16 %v514_v38 }
 0x32f   : >> { %3436 = vmatpush1.bf16.msra.mxu1 %v1294_v44  ;;  %3396 = vmatprep.subr.bf16.mxu0 %v1235_v2  ;;  %v1310_v44 = vunpack.c.l.s8.bf16 %v546_v57  ;;  %v1251_v2 = vunpack.c.h.s8.bf16 %v515_v1  ;;  %v555_v1 = vld [vmem:[%s4951_s30 + $0x338] sm:$0xff] }
 0x330   : >> { %3437 = vmatprep.subr.bf16.mxu1 %v1299_v53  ;;  %v1315_v53 = vunpack.c.h.s8.bf16 %v547_v15  ;;  %v587_v15 = vld [vmem:[%s4951_s30 + $0x438] sm:$0xff] }
 0x332   : >> { %3397 = vmatpush1.bf16.msra.mxu0 %v1234_v17  ;;  %v1250_v17 = vunpack.c.h.s8.bf16 %v514_v38  ;;  %v554_v38 = vld [vmem:[%s4951_s30 + $0x330] sm:$0xff] }
 0x333   : >> { %3438 = vmatpush1.bf16.msra.mxu1 %v1298_v25  ;;  %3398 = vmatprep.subr.bf16.mxu0 %v1239_v56  ;;  %v1314_v25 = vunpack.c.h.s8.bf16 %v546_v57  ;;  %v1319_v56 = vunpack.c.l.s8.bf16 %v551_v55  ;;  %v586_v57 = vld [vmem:[%s4951_s30 + $0x430] sm:$0xff] }
 0x334   : >> { %3439 = vmatprep.subr.bf16.mxu1 %v1303_v47  ;;  %v1383_v47 = vunpack.c.l.s8.bf16 %v583_v54 }
 0x336   : >> { %3399 = vmatpush1.bf16.msra.mxu0 %v1238_v7  ;;  %v1318_v7 = vunpack.c.l.s8.bf16 %v550_v27 }
 0x337   : >> { %3440 = vmatpush1.bf16.msra.mxu1 %v1302_v9  ;;  %3400 = vmatprep.subr.bf16.mxu0 %v1243_v28  ;;  %v1382_v9 = vunpack.c.l.s8.bf16 %v582_v3  ;;  %v1323_v28 = vunpack.c.h.s8.bf16 %v551_v55  ;;  %v1330_v55 = vunpack.c.h.s8.bf16 %v554_v38 }
 0x338   : >> { %3441 = vmatprep.subr.bf16.mxu1 %v1307_v49  ;;  %v1387_v49 = vunpack.c.h.s8.bf16 %v583_v54  ;;  %v1394_v54 = vunpack.c.h.s8.bf16 %v586_v57 }
 0x33a   : >> { %3401 = vmatpush1.bf16.msra.mxu0 %v1242_v26  ;;  %v1322_v26 = vunpack.c.h.s8.bf16 %v550_v27 }
 0x33b   : >> { %3442 = vmatpush1.bf16.msra.mxu1 %v1306_v11  ;;  %3402 = vmatprep.subr.bf16.mxu0 %v1247_v19  ;;  %v1386_v11 = vunpack.c.h.s8.bf16 %v582_v3  ;;  %v1327_v19 = vunpack.c.l.s8.bf16 %v555_v1 }
 0x33c   : >> { %3443 = vmatprep.subr.bf16.mxu1 %v1311_v20  ;;  %v1391_v20 = vunpack.c.l.s8.bf16 %v587_v15 }
 0x33e   : >> { %3403 = vmatpush1.bf16.msra.mxu0 %v1246_v36  ;;  %v1331_v36 = vunpack.c.h.s8.bf16 %v555_v1 }
 0x33f   : >> { %3444 = vmatpush1.bf16.msra.mxu1 %v1310_v44  ;;  %3404 = vmatprep.subr.bf16.mxu0 %v1251_v2  ;;  %v1395_v44 = vunpack.c.h.s8.bf16 %v587_v15  ;;  %v559_v2 = vld [vmem:[%s4951_s30 + $0x358] sm:$0xff] }
 0x340   : >> { %3445 = vmatprep.subr.bf16.mxu1 %v1315_v53  ;;  %v591_v53 = vld [vmem:[%s4951_s30 + $0x458] sm:$0xff]  ;;  %v1339_v27 = vunpack.c.h.s8.bf16 %v559_v2 }
 0x341   : >> { %v1403_v3 = vunpack.c.h.s8.bf16 %v591_v53 }
 0x342   : >> { %3405 = vmatpush1.bf16.msra.mxu0 %v1250_v17  ;;  %v558_v17 = vld [vmem:[%s4951_s30 + $0x350] sm:$0xff] }
 0x343   : >> { %3446 = vmatpush1.bf16.msra.mxu1 %v1314_v25  ;;  %3456 = vmatprep.subr.bf16.mxu0 %v1319_v56  ;;  %v590_v25 = vld [vmem:[%s4951_s30 + $0x450] sm:$0xff]  ;;  %v1334_v56 = vunpack.c.l.s8.bf16 %v558_v17 }
 0x344   : >> { %3497 = vmatprep.subr.bf16.mxu1 %v1383_v47  ;;  %v1398_v47 = vunpack.c.l.s8.bf16 %v590_v25 }
 0x345   : >> { %3407 = vmatmul.mubr.bf16.vlgmr.msra.gmra.mrb[44].mxu0 %v5004_v48  ;;  %v1326_v48 = vunpack.c.l.s8.bf16 %v554_v38 }
 0x346   : >> { %3448 = vmatmul.mubr.bf16.vlgmr.msra.gmra.mrb[44].mxu1 %v5050_v29  ;;  %3457 = vmatpush1.bf16.msra.mxu0 %v1318_v7  ;;  %v1390_v29 = vunpack.c.l.s8.bf16 %v586_v57  ;;  %v563_v7 = vld [vmem:[%s4951_s30 + $0x378] sm:$0xff] }
 0x347   : >> { %3498 = vmatpush1.bf16.msra.mxu1 %v1382_v9  ;;  %3458 = vmatprep.subr.bf16.mxu0 %v1323_v28  ;;  %v595_v9 = vld [vmem:[%s4951_s30 + $0x478] sm:$0xff]  ;;  %v1338_v28 = vunpack.c.h.s8.bf16 %v558_v17  ;;  %v1343_v1 = vunpack.c.l.s8.bf16 %v563_v7 }
 0x348   : >> { %3499 = vmatprep.subr.bf16.mxu1 %v1387_v49  ;;  %3488 = vmatprep.mubr.bf16.mxu0 %v5012_v58  ;;  %v1335_v58 = vunpack.c.l.s8.bf16 %v559_v2  ;;  %v1402_v49 = vunpack.c.h.s8.bf16 %v590_v25  ;;  %v1407_v15 = vunpack.c.l.s8.bf16 %v595_v9  ;;  %v599_v25 = vld [vmem:[%s4951_s30 + $0x498] sm:$0xff] }
 0x349   : >> { %3529 = vmatprep.mubr.bf16.mxu1 %v5058_v41  ;;  %v1399_v41 = vunpack.c.l.s8.bf16 %v591_v53 }
 0x34a   : >> { %3459 = vmatpush1.bf16.msra.mxu0 %v1322_v26  ;;  %v562_v26 = vld [vmem:[%s4951_s30 + $0x370] sm:$0xff] }
 0x34b   : >> { %3500 = vmatpush1.bf16.msra.mxu1 %v1386_v11  ;;  %3460 = vmatprep.subr.bf16.mxu0 %v1327_v19  ;;  %v594_v11 = vld [vmem:[%s4951_s30 + $0x470] sm:$0xff]  ;;  %v1342_v2 = vunpack.c.l.s8.bf16 %v562_v26 }
 0x34c   : >> { %3501 = vmatprep.subr.bf16.mxu1 %v1391_v20  ;;  %v1406_v53 = vunpack.c.l.s8.bf16 %v594_v11 }
 0x34e   : >> { %3461 = vmatpush1.bf16.msra.mxu0 %v1326_v48 }
 0x34f   : >> { %3502 = vmatpush1.bf16.msra.mxu1 %v1390_v29  ;;  %3462 = vmatprep.subr.bf16.mxu0 %v1331_v36 }
 0x350   : >> { %3503 = vmatprep.subr.bf16.mxu1 %v1395_v44 }
 0x352   : >> { %3463 = vmatpush1.bf16.msra.mxu0 %v1330_v55 }
 0x353   : >> { %3504 = vmatpush1.bf16.msra.mxu1 %v1394_v54  ;;  %3464 = vmatprep.subr.bf16.mxu0 %v1335_v58 }
 0x354   : >> { %3505 = vmatprep.subr.bf16.mxu1 %v1399_v41  ;;  %v1411_v41 = vunpack.c.h.s8.bf16 %v595_v9 }
 0x356   : >> { %3465 = vmatpush1.bf16.msra.mxu0 %v1334_v56  ;;  %v1346_v56 = vunpack.c.h.s8.bf16 %v562_v26  ;;  %v571_v26 = vld [vmem:[%s4951_s30 + $0x3b8] sm:$0xff] }
 0x357   : >> { %3506 = vmatpush1.bf16.msra.mxu1 %v1398_v47  ;;  %3466 = vmatprep.subr.bf16.mxu0 %v1339_v27  ;;  %v1410_v47 = vunpack.c.h.s8.bf16 %v594_v11 }
 0x358   : >> { %3507 = vmatprep.subr.bf16.mxu1 %v1403_v3  ;;  %v3162_v19 = vpop.f32.mrb[32].mxu0  ;;  %v1415_v3 = vunpack.c.l.s8.bf16 %v599_v25 }
 0x359   : >> { %v3203_v20 = vpop.f32.mrb[32].mxu1  ;;  %v3163_v38 = vadd.f32 %v3162_v19, %v5538_v37  ;;  %v3164_v57 = vpop.f32.mrb[33].mxu0  ;;  %v1347_v37 = vunpack.c.h.s8.bf16 %v563_v7  ;;  %v603_v19 = vld [vmem:[%s4951_s30 + $0x4b8] sm:$0xff] }
 0x35a   : >> { %v3205_v48 = vpop.f32.mrb[33].mxu1  ;;  %v3165_v29 = vadd.f32 %v3164_v57, %v5540_v16  ;;  %v3166_v36 = vpop.f32.mrb[34].mxu0  ;;  %3467 = vmatpush1.bf16.msra.mxu0 %v1338_v28  ;;  %v567_v16 = vld [vmem:[%s4951_s30 + $0x398] sm:$0xff]  ;;  %v566_v28 = vld [vmem:[%s4951_s30 + $0x390] sm:$0xff]  ;;  %v1423_v57 = vunpack.c.l.s8.bf16 %v603_v19 }
 0x35b   : >> { %v3207_v44 = vpop.f32.mrb[34].mxu1  ;;  %3508 = vmatpush1.bf16.msra.mxu1 %v1402_v49  ;;  %v5580_v55 = vadd.f32 %v3203_v20, %v3163_v38  ;;  %v3167_v54 = vpop.f32.mrb[35].mxu0  ;;  %3468 = vmatprep.subr.bf16.mxu0 %v1343_v1  ;;  %v1351_v27 = vunpack.c.l.s8.bf16 %v567_v16  ;;  %v598_v49 = vld [vmem:[%s4951_s30 + $0x490] sm:$0xff]  ;;  %v1350_v7 = vunpack.c.l.s8.bf16 %v566_v28  ;;  %v1355_v1 = vunpack.c.h.s8.bf16 %v567_v16 }
 0x35c   : >> { %v3208_v58 = vpop.f32.mrb[35].mxu1  ;;  %3509 = vmatprep.subr.bf16.mxu1 %v1407_v15  ;;  %v5582_v17 = vadd.f32 %v3205_v48, %v3165_v29  ;;  %v1414_v9 = vunpack.c.l.s8.bf16 %v598_v49  ;;  %v1419_v15 = vunpack.c.h.s8.bf16 %v599_v25  ;;  %v1354_v11 = vunpack.c.h.s8.bf16 %v566_v28  ;;  %v570_v48 = vld [vmem:[%s4951_s30 + $0x3b0] sm:$0xff]  ;;  %v575_v54 = vld [vmem:[%s4951_s30 + $0x3d8] sm:$0xff] }
 0x35d   : >> { %v1418_v20 = vunpack.c.h.s8.bf16 %v598_v49  ;;  %v1359_v38 = vunpack.c.l.s8.bf16 %v571_v26  ;;  %v602_v29 = vld [vmem:[%s4951_s30 + $0x4b0] sm:$0xff]  ;;  %v1358_v36 = vunpack.c.l.s8.bf16 %v570_v48  ;;  %v607_v58 = vld [vmem:[%s4951_s30 + $0x4d8] sm:$0xff]  ;;  %v1367_v16 = vunpack.c.l.s8.bf16 %v575_v54 }
 0x35e   : >> { %3469 = vmatpush1.bf16.msra.mxu0 %v1342_v2  ;;  %v1422_v44 = vunpack.c.l.s8.bf16 %v602_v29  ;;  %v1363_v2 = vunpack.c.h.s8.bf16 %v571_v26  ;;  %v1431_v25 = vunpack.c.l.s8.bf16 %v607_v58  ;;  %v1371_v28 = vunpack.c.h.s8.bf16 %v575_v54 }
 0x35f   : >> { %3510 = vmatpush1.bf16.msra.mxu1 %v1406_v53  ;;  %3470 = vmatprep.subr.bf16.mxu0 %v1347_v37  ;;  %v1427_v53 = vunpack.c.h.s8.bf16 %v603_v19  ;;  %v1362_v37 = vunpack.c.h.s8.bf16 %v570_v48  ;;  %v1435_v49 = vunpack.c.h.s8.bf16 %v607_v58 }
 0x360   : >> { %3511 = vmatprep.subr.bf16.mxu1 %v1411_v41  ;;  %v1426_v41 = vunpack.c.h.s8.bf16 %v602_v29 }
 0x362   : >> { %3471 = vmatpush1.bf16.msra.mxu0 %v1346_v56  ;;  %v574_v56 = vld [vmem:[%s4951_s30 + $0x3d0] sm:$0xff] }
 0x363   : >> { %3512 = vmatpush1.bf16.msra.mxu1 %v1410_v47  ;;  %3472 = vmatprep.subr.bf16.mxu0 %v1351_v27  ;;  %v606_v47 = vld [vmem:[%s4951_s30 + $0x4d0] sm:$0xff]  ;;  %v1366_v27 = vunpack.c.l.s8.bf16 %v574_v56 }
 0x364   : >> { %3513 = vmatprep.subr.bf16.mxu1 %v1415_v3  ;;  %v1430_v3 = vunpack.c.l.s8.bf16 %v606_v47 }
 0x366   : >> { %3473 = vmatpush1.bf16.msra.mxu0 %v1350_v7  ;;  %v579_v7 = vld [vmem:[%s4951_s30 + $0x3f8] sm:$0xff] }
 0x367   : >> { %3514 = vmatpush1.bf16.msra.mxu1 %v1414_v9  ;;  %3474 = vmatprep.subr.bf16.mxu0 %v1355_v1  ;;  %v611_v9 = vld [vmem:[%s4951_s30 + $0x4f8] sm:$0xff]  ;;  %v1370_v1 = vunpack.c.h.s8.bf16 %v574_v56  ;;  %v1375_v26 = vunpack.c.l.s8.bf16 %v579_v7  ;;  %v1379_v48 = vunpack.c.h.s8.bf16 %v579_v7 }
 0x368   : >> { %3515 = vmatprep.subr.bf16.mxu1 %v1419_v15  ;;  %v1434_v15 = vunpack.c.h.s8.bf16 %v606_v47  ;;  %v1439_v19 = vunpack.c.l.s8.bf16 %v611_v9  ;;  %v1443_v29 = vunpack.c.h.s8.bf16 %v611_v9 }
 0x36a   : >> { %3475 = vmatpush1.bf16.msra.mxu0 %v1354_v11  ;;  %v578_v11 = vld [vmem:[%s4951_s30 + $0x3f0] sm:$0xff] }
 0x36b   : >> { %3516 = vmatpush1.bf16.msra.mxu1 %v1418_v20  ;;  %3476 = vmatprep.subr.bf16.mxu0 %v1359_v38  ;;  %v610_v20 = vld [vmem:[%s4951_s30 + $0x4f0] sm:$0xff]  ;;  %v1374_v38 = vunpack.c.l.s8.bf16 %v578_v11 }
 0x36c   : >> { %3517 = vmatprep.subr.bf16.mxu1 %v1423_v57  ;;  %v1438_v57 = vunpack.c.l.s8.bf16 %v610_v20 }
 0x36e   : >> { %3477 = vmatpush1.bf16.msra.mxu0 %v1358_v36  ;;  %v615_v36 = vld [vmem:[%s4951_s30 + $0x518] sm:$0xff] }
 0x36f   : >> { %3518 = vmatpush1.bf16.msra.mxu1 %v1422_v44  ;;  %3478 = vmatprep.subr.bf16.mxu0 %v1363_v2  ;;  %v647_v44 = vld [vmem:[%s4951_s30 + $0x618] sm:$0xff]  ;;  %v1378_v2 = vunpack.c.h.s8.bf16 %v578_v11  ;;  %v1447_v54 = vunpack.c.l.s8.bf16 %v615_v36  ;;  %v1451_v56 = vunpack.c.h.s8.bf16 %v615_v36 }
 0x370   : >> { %3519 = vmatprep.subr.bf16.mxu1 %v1427_v53  ;;  %v1442_v53 = vunpack.c.h.s8.bf16 %v610_v20  ;;  %v1511_v58 = vunpack.c.l.s8.bf16 %v647_v44  ;;  %v1515_v47 = vunpack.c.h.s8.bf16 %v647_v44  ;;  %v623_v11 = vld [vmem:[%s4951_s30 + $0x558] sm:$0xff] }
 0x371   : >> { %v655_v20 = vld [vmem:[%s4951_s30 + $0x658] sm:$0xff] }
 0x372   : >> { %3479 = vmatpush1.bf16.msra.mxu0 %v1362_v37  ;;  %v614_v37 = vld [vmem:[%s4951_s30 + $0x510] sm:$0xff] }
 0x373   : >> { %3520 = vmatpush1.bf16.msra.mxu1 %v1426_v41  ;;  %3480 = vmatprep.subr.bf16.mxu0 %v1367_v16  ;;  %v646_v41 = vld [vmem:[%s4951_s30 + $0x610] sm:$0xff]  ;;  %v1446_v16 = vunpack.c.l.s8.bf16 %v614_v37 }
 0x374   : >> { %3521 = vmatprep.subr.bf16.mxu1 %v1431_v25  ;;  %v1510_v25 = vunpack.c.l.s8.bf16 %v646_v41 }
 0x376   : >> { %3481 = vmatpush1.bf16.msra.mxu0 %v1366_v27  ;;  %v619_v27 = vld [vmem:[%s4951_s30 + $0x538] sm:$0xff] }
 0x377   : >> { %3522 = vmatpush1.bf16.msra.mxu1 %v1430_v3  ;;  %3482 = vmatprep.subr.bf16.mxu0 %v1371_v28  ;;  %v651_v3 = vld [vmem:[%s4951_s30 + $0x638] sm:$0xff]  ;;  %v1450_v28 = vunpack.c.h.s8.bf16 %v614_v37  ;;  %v1455_v7 = vunpack.c.l.s8.bf16 %v619_v27 }
 0x378   : >> { %3523 = vmatprep.subr.bf16.mxu1 %v1435_v49  ;;  %v1514_v49 = vunpack.c.h.s8.bf16 %v646_v41  ;;  %v1519_v9 = vunpack.c.l.s8.bf16 %v651_v3 }
 0x37a   : >> { %3483 = vmatpush1.bf16.msra.mxu0 %v1370_v1  ;;  %v618_v1 = vld [vmem:[%s4951_s30 + $0x530] sm:$0xff] }
 0x37b   : >> { %3524 = vmatpush1.bf16.msra.mxu1 %v1434_v15  ;;  %3484 = vmatprep.subr.bf16.mxu0 %v1375_v26  ;;  %v650_v15 = vld [vmem:[%s4951_s30 + $0x630] sm:$0xff]  ;;  %v1459_v26 = vunpack.c.h.s8.bf16 %v619_v27 }
 0x37c   : >> { %3525 = vmatprep.subr.bf16.mxu1 %v1439_v19  ;;  %v1523_v19 = vunpack.c.h.s8.bf16 %v651_v3 }
 0x37e   : >> { %3485 = vmatpush1.bf16.msra.mxu0 %v1374_v38  ;;  %v1458_v38 = vunpack.c.h.s8.bf16 %v618_v1 }
 0x37f   : >> { %3526 = vmatpush1.bf16.msra.mxu1 %v1438_v57  ;;  %3486 = vmatprep.subr.bf16.mxu0 %v1379_v48  ;;  %v1522_v57 = vunpack.c.h.s8.bf16 %v650_v15  ;;  %v622_v48 = vld [vmem:[%s4951_s30 + $0x550] sm:$0xff] }
 0x380   : >> { %3527 = vmatprep.subr.bf16.mxu1 %v1443_v29  ;;  %v654_v29 = vld [vmem:[%s4951_s30 + $0x650] sm:$0xff]  ;;  %v1462_v36 = vunpack.c.l.s8.bf16 %v622_v48  ;;  %v1466_v37 = vunpack.c.h.s8.bf16 %v622_v48 }
 0x381   : >> { %v1526_v44 = vunpack.c.l.s8.bf16 %v654_v29  ;;  %v1530_v41 = vunpack.c.h.s8.bf16 %v654_v29 }
 0x382   : >> { %3487 = vmatpush1.bf16.msra.mxu0 %v1378_v2  ;;  %v1467_v2 = vunpack.c.h.s8.bf16 %v623_v11 }
 0x383   : >> { %3528 = vmatpush1.bf16.msra.mxu1 %v1442_v53  ;;  %3538 = vmatprep.subr.bf16.mxu0 %v1447_v54  ;;  %v1531_v53 = vunpack.c.h.s8.bf16 %v655_v20  ;;  %v627_v54 = vld [vmem:[%s4951_s30 + $0x578] sm:$0xff] }
 0x384   : >> { %3579 = vmatprep.subr.bf16.mxu1 %v1511_v58  ;;  %v659_v58 = vld [vmem:[%s4951_s30 + $0x678] sm:$0xff] }
 0x385   : >> { %3489 = vmatmul.mubr.bf16.vlgmr.msra.gmra.mrb[48].mxu0 %v5052_v30  ;;  %v1454_v30 = vunpack.c.l.s8.bf16 %v618_v1 }
 0x386   : >> { %3530 = vmatmul.mubr.bf16.vlgmr.msra.gmra.mrb[48].mxu1 %v5098_v21  ;;  %3539 = vmatpush1.bf16.msra.mxu0 %v1446_v16  ;;  %v1518_v21 = vunpack.c.l.s8.bf16 %v650_v15  ;;  %v1471_v16 = vunpack.c.l.s8.bf16 %v627_v54 }
 0x387   : >> { %3580 = vmatpush1.bf16.msra.mxu1 %v1510_v25  ;;  %3540 = vmatprep.subr.bf16.mxu0 %v1451_v56  ;;  %v1535_v25 = vunpack.c.l.s8.bf16 %v659_v58  ;;  %v626_v56 = vld [vmem:[%s4951_s30 + $0x570] sm:$0xff] }
 0x388   : >> { %3581 = vmatprep.subr.bf16.mxu1 %v1515_v47  ;;  %3570 = vmatprep.mubr.bf16.mxu0 %v5060_v42  ;;  %v1463_v42 = vunpack.c.l.s8.bf16 %v623_v11  ;;  %v658_v47 = vld [vmem:[%s4951_s30 + $0x670] sm:$0xff] }
 0x389   : >> { %3611 = vmatprep.mubr.bf16.mxu1 %v5106_v33  ;;  %v1527_v33 = vunpack.c.l.s8.bf16 %v655_v20  ;;  %v1539_v20 = vunpack.c.h.s8.bf16 %v659_v58 }
 0x38a   : >> { %3541 = vmatpush1.bf16.msra.mxu0 %v1450_v28 }
 0x38b   : >> { %3582 = vmatpush1.bf16.msra.mxu1 %v1514_v49  ;;  %3542 = vmatprep.subr.bf16.mxu0 %v1455_v7 }
 0x38c   : >> { %3583 = vmatprep.subr.bf16.mxu1 %v1519_v9 }
 0x38e   : >> { %3543 = vmatpush1.bf16.msra.mxu0 %v1454_v30  ;;  %v1470_v30 = vunpack.c.l.s8.bf16 %v626_v56 }
 0x38f   : >> { %3584 = vmatpush1.bf16.msra.mxu1 %v1518_v21  ;;  %3544 = vmatprep.subr.bf16.mxu0 %v1459_v26  ;;  %v1534_v21 = vunpack.c.l.s8.bf16 %v658_v47 }
 0x390   : >> { %3585 = vmatprep.subr.bf16.mxu1 %v1523_v19 }
 0x392   : >> { %3545 = vmatpush1.bf16.msra.mxu0 %v1458_v38 }
 0x393   : >> { %3586 = vmatpush1.bf16.msra.mxu1 %v1522_v57  ;;  %3546 = vmatprep.subr.bf16.mxu0 %v1463_v42  ;;  %v663_v57 = vld [vmem:[%s4951_s30 + $0x698] sm:$0xff]  ;;  %v1474_v42 = vunpack.c.h.s8.bf16 %v626_v56 }
 0x394   : >> { %3587 = vmatprep.subr.bf16.mxu1 %v1527_v33  ;;  %v1538_v33 = vunpack.c.h.s8.bf16 %v658_v47  ;;  %v1543_v29 = vunpack.c.l.s8.bf16 %v663_v57  ;;  %v1547_v58 = vunpack.c.h.s8.bf16 %v663_v57 }
 0x396   : >> { %3547 = vmatpush1.bf16.msra.mxu0 %v1462_v36  ;;  %v630_v36 = vld [vmem:[%s4951_s30 + $0x590] sm:$0xff] }
 0x397   : >> { %3588 = vmatpush1.bf16.msra.mxu1 %v1526_v44  ;;  %3548 = vmatprep.subr.bf16.mxu0 %v1467_v2  ;;  %v662_v44 = vld [vmem:[%s4951_s30 + $0x690] sm:$0xff]  ;;  %v1478_v2 = vunpack.c.l.s8.bf16 %v630_v36 }
 0x398   : >> { %3589 = vmatprep.subr.bf16.mxu1 %v1531_v53  ;;  %v3244_v27 = vpop.f32.mrb[36].mxu0  ;;  %v1542_v53 = vunpack.c.l.s8.bf16 %v662_v44 }
 0x399   : >> { %v3285_v3 = vpop.f32.mrb[36].mxu1  ;;  %v3245_v28 = vadd.f32 %v3244_v27, %v5580_v55  ;;  %v3246_v49 = vpop.f32.mrb[37].mxu0  ;;  %v1475_v55 = vunpack.c.h.s8.bf16 %v627_v54  ;;  %v634_v27 = vld [vmem:[%s4951_s30 + $0x5b0] sm:$0xff] }
 0x39a   : >> { %v3287_v7 = vpop.f32.mrb[37].mxu1  ;;  %v3247_v9 = vadd.f32 %v3246_v49, %v5582_v17  ;;  %v3248_v1 = vpop.f32.mrb[38].mxu0  ;;  %3549 = vmatpush1.bf16.msra.mxu0 %v1466_v37  ;;  %v631_v17 = vld [vmem:[%s4951_s30 + $0x598] sm:$0xff] }
 0x39b   : >> { %v3289_v15 = vpop.f32.mrb[38].mxu1  ;;  %3590 = vmatpush1.bf16.msra.mxu1 %v1530_v41  ;;  %v5622_v26 = vadd.f32 %v3285_v3, %v3245_v28  ;;  %v3249_v19 = vpop.f32.mrb[39].mxu0  ;;  %3550 = vmatprep.subr.bf16.mxu0 %v1471_v16  ;;  %v1479_v48 = vunpack.c.l.s8.bf16 %v631_v17  ;;  %v1483_v54 = vunpack.c.h.s8.bf16 %v631_v17  ;;  %v635_v37 = vld [vmem:[%s4951_s30 + $0x5b8] sm:$0xff]  ;;  %v1482_v16 = vunpack.c.h.s8.bf16 %v630_v36  ;;  %v666_v3 = vld [vmem:[%s4951_s30 + $0x6b0] sm:$0xff] }
 0x39c   : >> { %v3290_v11 = vpop.f32.mrb[39].mxu1  ;;  %3591 = vmatprep.subr.bf16.mxu1 %v1535_v25  ;;  %v5624_v38 = vadd.f32 %v3287_v7, %v3247_v9  ;;  %v667_v41 = vld [vmem:[%s4951_s30 + $0x6b8] sm:$0xff]  ;;  %v1546_v25 = vunpack.c.h.s8.bf16 %v662_v44  ;;  %v1487_v56 = vunpack.c.l.s8.bf16 %v635_v37  ;;  %v1486_v28 = vunpack.c.l.s8.bf16 %v634_v27 }
 0x39d   : >> { %v1551_v47 = vunpack.c.l.s8.bf16 %v667_v41  ;;  %v1550_v49 = vunpack.c.l.s8.bf16 %v666_v3  ;;  %v1491_v7 = vunpack.c.h.s8.bf16 %v635_v37  ;;  %v1555_v9 = vunpack.c.h.s8.bf16 %v667_v41  ;;  %v639_v1 = vld [vmem:[%s4951_s30 + $0x5d8] sm:$0xff] }
 0x39e   : >> { %3551 = vmatpush1.bf16.msra.mxu0 %v1470_v30  ;;  %v671_v15 = vld [vmem:[%s4951_s30 + $0x6d8] sm:$0xff]  ;;  %v1490_v30 = vunpack.c.h.s8.bf16 %v634_v27  ;;  %v1495_v19 = vunpack.c.l.s8.bf16 %v639_v1 }
 0x39f   : >> { %3592 = vmatpush1.bf16.msra.mxu1 %v1534_v21  ;;  %3552 = vmatprep.subr.bf16.mxu0 %v1475_v55  ;;  %v1554_v21 = vunpack.c.h.s8.bf16 %v666_v3  ;;  %v1559_v11 = vunpack.c.l.s8.bf16 %v671_v15  ;;  %v638_v55 = vld [vmem:[%s4951_s30 + $0x5d0] sm:$0xff] }
 0x3a0   : >> { %3593 = vmatprep.subr.bf16.mxu1 %v1539_v20  ;;  %v670_v20 = vld [vmem:[%s4951_s30 + $0x6d0] sm:$0xff]  ;;  %v1494_v17 = vunpack.c.l.s8.bf16 %v638_v55  ;;  %v1498_v36 = vunpack.c.h.s8.bf16 %v638_v55 }
 0x3a1   : >> { %v1558_v57 = vunpack.c.l.s8.bf16 %v670_v20  ;;  %v1562_v44 = vunpack.c.h.s8.bf16 %v670_v20 }
 0x3a2   : >> { %3553 = vmatpush1.bf16.msra.mxu0 %v1474_v42  ;;  %v1499_v42 = vunpack.c.h.s8.bf16 %v639_v1 }
 0x3a3   : >> { %3594 = vmatpush1.bf16.msra.mxu1 %v1538_v33  ;;  %3554 = vmatprep.subr.bf16.mxu0 %v1479_v48  ;;  %v1563_v33 = vunpack.c.h.s8.bf16 %v671_v15  ;;  %v643_v48 = vld [vmem:[%s4951_s30 + $0x5f8] sm:$0xff] }
 0x3a4   : >> { %3595 = vmatprep.subr.bf16.mxu1 %v1543_v29  ;;  %v675_v29 = vld [vmem:[%s4951_s30 + $0x6f8] sm:$0xff] }
 0x3a6   : >> { %3555 = vmatpush1.bf16.msra.mxu0 %v1478_v2  ;;  %v1503_v2 = vunpack.c.l.s8.bf16 %v643_v48 }
 0x3a7   : >> { %3596 = vmatpush1.bf16.msra.mxu1 %v1542_v53  ;;  %3556 = vmatprep.subr.bf16.mxu0 %v1483_v54  ;;  %v1567_v53 = vunpack.c.l.s8.bf16 %v675_v29  ;;  %v642_v54 = vld [vmem:[%s4951_s30 + $0x5f0] sm:$0xff] }
 0x3a8   : >> { %3597 = vmatprep.subr.bf16.mxu1 %v1547_v58  ;;  %v674_v58 = vld [vmem:[%s4951_s30 + $0x6f0] sm:$0xff]  ;;  %v1502_v37 = vunpack.c.l.s8.bf16 %v642_v54  ;;  %v1506_v27 = vunpack.c.h.s8.bf16 %v642_v54 }
 0x3a9   : >> { %v1566_v41 = vunpack.c.l.s8.bf16 %v674_v58  ;;  %v1570_v3 = vunpack.c.h.s8.bf16 %v674_v58  ;;  %v686_v54 = vld [vmem:[%s4951_s30 + $0x750] sm:$0xff] }
 0x3aa   : >> { %3557 = vmatpush1.bf16.msra.mxu0 %v1482_v16  ;;  %v1507_v16 = vunpack.c.h.s8.bf16 %v643_v48  ;;  %v718_v58 = vld [vmem:[%s4951_s30 + $0x850] sm:$0xff] }
 0x3ab   : >> { %3598 = vmatpush1.bf16.msra.mxu1 %v1546_v25  ;;  %3558 = vmatprep.subr.bf16.mxu0 %v1487_v56  ;;  %v1571_v25 = vunpack.c.h.s8.bf16 %v675_v29  ;;  %v679_v56 = vld [vmem:[%s4951_s30 + $0x718] sm:$0xff] }
 0x3ac   : >> { %3599 = vmatprep.subr.bf16.mxu1 %v1551_v47  ;;  %v711_v47 = vld [vmem:[%s4951_s30 + $0x818] sm:$0xff] }
 0x3ae   : >> { %3559 = vmatpush1.bf16.msra.mxu0 %v1486_v28  ;;  %v1575_v28 = vunpack.c.l.s8.bf16 %v679_v56 }
 0x3af   : >> { %3600 = vmatpush1.bf16.msra.mxu1 %v1550_v49  ;;  %3560 = vmatprep.subr.bf16.mxu0 %v1491_v7  ;;  %v1639_v49 = vunpack.c.l.s8.bf16 %v711_v47  ;;  %v678_v7 = vld [vmem:[%s4951_s30 + $0x710] sm:$0xff] }
 0x3b0   : >> { %3601 = vmatprep.subr.bf16.mxu1 %v1555_v9  ;;  %v710_v9 = vld [vmem:[%s4951_s30 + $0x810] sm:$0xff]  ;;  %v1574_v1 = vunpack.c.l.s8.bf16 %v678_v7  ;;  %v1578_v55 = vunpack.c.h.s8.bf16 %v678_v7 }
 0x3b1   : >> { %v1638_v15 = vunpack.c.l.s8.bf16 %v710_v9  ;;  %v1642_v20 = vunpack.c.h.s8.bf16 %v710_v9  ;;  %v690_v7 = vld [vmem:[%s4951_s30 + $0x770] sm:$0xff] }
 0x3b2   : >> { %3561 = vmatpush1.bf16.msra.mxu0 %v1490_v30  ;;  %v1579_v30 = vunpack.c.h.s8.bf16 %v679_v56  ;;  %v691_v56 = vld [vmem:[%s4951_s30 + $0x778] sm:$0xff]  ;;  %v722_v9 = vld [vmem:[%s4951_s30 + $0x870] sm:$0xff] }
 0x3b3   : >> { %3602 = vmatpush1.bf16.msra.mxu1 %v1554_v21  ;;  %3562 = vmatprep.subr.bf16.mxu0 %v1495_v19  ;;  %v1643_v21 = vunpack.c.h.s8.bf16 %v711_v47  ;;  %v683_v19 = vld [vmem:[%s4951_s30 + $0x738] sm:$0xff] }
 0x3b4   : >> { %3603 = vmatprep.subr.bf16.mxu1 %v1559_v11  ;;  %v715_v11 = vld [vmem:[%s4951_s30 + $0x838] sm:$0xff]  ;;  %v1587_v48 = vunpack.c.h.s8.bf16 %v683_v19 }
 0x3b5   : >> { %v1651_v29 = vunpack.c.h.s8.bf16 %v715_v11  ;;  %v723_v47 = vld [vmem:[%s4951_s30 + $0x878] sm:$0xff] }
 0x3b6   : >> { %3563 = vmatpush1.bf16.msra.mxu0 %v1494_v17  ;;  %v1583_v17 = vunpack.c.l.s8.bf16 %v683_v19  ;;  %v2469_v19 = vld [vmem:[#allocation2 + $0x8] sm:$0xff] }
 0x3b7   : >> { %3604 = vmatpush1.bf16.msra.mxu1 %v1558_v57  ;;  %3564 = vmatprep.subr.bf16.mxu0 %v1499_v42  ;;  %v1647_v57 = vunpack.c.l.s8.bf16 %v715_v11  ;;  %v682_v42 = vld [vmem:[%s4951_s30 + $0x730] sm:$0xff] }
 0x3b8   : >> { %3605 = vmatprep.subr.bf16.mxu1 %v1563_v33  ;;  %v714_v33 = vld [vmem:[%s4951_s30 + $0x830] sm:$0xff] }
 0x3ba   : >> { %3565 = vmatpush1.bf16.msra.mxu0 %v1498_v36  ;;  %v687_v36 = vld [vmem:[%s4951_s30 + $0x758] sm:$0xff] }
 0x3bb   : >> { %3606 = vmatpush1.bf16.msra.mxu1 %v1562_v44  ;;  %3566 = vmatprep.subr.bf16.mxu0 %v1503_v2  ;;  %v719_v44 = vld [vmem:[%s4951_s30 + $0x858] sm:$0xff]  ;;  %v1586_v2 = vunpack.c.h.s8.bf16 %v682_v42 }
 0x3bc   : >> { %3607 = vmatprep.subr.bf16.mxu1 %v1567_v53  ;;  %v1650_v53 = vunpack.c.h.s8.bf16 %v714_v33 }
 0x3be   : >> { %3567 = vmatpush1.bf16.msra.mxu0 %v1502_v37  ;;  %v1590_v37 = vunpack.c.l.s8.bf16 %v686_v54 }
 0x3bf   : >> { %3608 = vmatpush1.bf16.msra.mxu1 %v1566_v41  ;;  %3568 = vmatprep.subr.bf16.mxu0 %v1507_v16  ;;  %v1654_v41 = vunpack.c.l.s8.bf16 %v718_v58  ;;  %v1595_v16 = vunpack.c.h.s8.bf16 %v687_v36 }
 0x3c0   : >> { %3609 = vmatprep.subr.bf16.mxu1 %v1571_v25  ;;  %v1659_v25 = vunpack.c.h.s8.bf16 %v719_v44 }
 0x3c2   : >> { %3569 = vmatpush1.bf16.msra.mxu0 %v1506_v27  ;;  %v1594_v27 = vunpack.c.h.s8.bf16 %v686_v54  ;;  %v694_v54 = vld [vmem:[%s4951_s30 + $0x790] sm:$0xff] }
 0x3c3   : >> { %3610 = vmatpush1.bf16.msra.mxu1 %v1570_v3  ;;  %3620 = vmatprep.subr.bf16.mxu0 %v1575_v28  ;;  %v1658_v3 = vunpack.c.h.s8.bf16 %v718_v58  ;;  %v1599_v28 = vunpack.c.l.s8.bf16 %v691_v56  ;;  %v726_v58 = vld [vmem:[%s4951_s30 + $0x890] sm:$0xff] }
 0x3c4   : >> { %3661 = vmatprep.subr.bf16.mxu1 %v1639_v49  ;;  %v1663_v49 = vunpack.c.l.s8.bf16 %v723_v47 }
 0x3c5   : >> { %3571 = vmatmul.mubr.bf16.vlgmr.msra.gmra.mrb[52].mxu0 %v5100_v22  ;;  %v1582_v22 = vunpack.c.l.s8.bf16 %v682_v42  ;;  %v1598_v42 = vunpack.c.l.s8.bf16 %v690_v7 }
 0x3c6   : >> { %3612 = vmatmul.mubr.bf16.vlgmr.msra.gmra.mrb[52].mxu1 %v5146_v23  ;;  %3621 = vmatpush1.bf16.msra.mxu0 %v1574_v1  ;;  %v1646_v23 = vunpack.c.l.s8.bf16 %v714_v33  ;;  %v2468_v1 = vld [vmem:[#allocation2] sm:$0xff]  ;;  %v1662_v33 = vunpack.c.l.s8.bf16 %v722_v9 }
 0x3c7   : >> { %3662 = vmatpush1.bf16.msra.mxu1 %v1638_v15  ;;  %3622 = vmatprep.subr.bf16.mxu0 %v1579_v30 }
 0x3c8   : >> { %3663 = vmatprep.subr.bf16.mxu1 %v1643_v21  ;;  %3652 = vmatprep.mubr.bf16.mxu0 %v5108_v34  ;;  %v1591_v34 = vunpack.c.l.s8.bf16 %v687_v36 }
 0x3c9   : >> { %3693 = vmatprep.mubr.bf16.mxu1 %v5154_v39  ;;  %v1655_v39 = vunpack.c.l.s8.bf16 %v719_v44  ;;  %v695_v44 = vld [vmem:[%s4951_s30 + $0x798] sm:$0xff] }
 0x3ca   : >> { %3623 = vmatpush1.bf16.msra.mxu0 %v1578_v55 }
 0x3cb   : >> { %3664 = vmatpush1.bf16.msra.mxu1 %v1642_v20  ;;  %3624 = vmatprep.subr.bf16.mxu0 %v1583_v17 }
 0x3cc   : >> { %3665 = vmatprep.subr.bf16.mxu1 %v1647_v57 }
 0x3ce   : >> { %3625 = vmatpush1.bf16.msra.mxu0 %v1582_v22 }
 0x3cf   : >> { %3666 = vmatpush1.bf16.msra.mxu1 %v1646_v23  ;;  %3626 = vmatprep.subr.bf16.mxu0 %v1587_v48 }
 0x3d0   : >> { %3667 = vmatprep.subr.bf16.mxu1 %v1651_v29  ;;  %v1667_v29 = vunpack.c.h.s8.bf16 %v723_v47  ;;  %v731_v47 = vld [vmem:[%s4951_s30 + $0x8b8] sm:$0xff] }
 0x3d2   : >> { %3627 = vmatpush1.bf16.msra.mxu0 %v1586_v2  ;;  %v727_v2 = vld [vmem:[%s4951_s30 + $0x898] sm:$0xff] }
 0x3d3   : >> { %3668 = vmatpush1.bf16.msra.mxu1 %v1650_v53  ;;  %3628 = vmatprep.subr.bf16.mxu0 %v1591_v34  ;;  %v1666_v53 = vunpack.c.h.s8.bf16 %v722_v9  ;;  %v1607_v34 = vunpack.c.l.s8.bf16 %v695_v44  ;;  %v730_v9 = vld [vmem:[%s4951_s30 + $0x8b0] sm:$0xff] }
 0x3d4   : >> { %3669 = vmatprep.subr.bf16.mxu1 %v1655_v39  ;;  %v1671_v39 = vunpack.c.l.s8.bf16 %v727_v2 }
 0x3d6   : >> { %3629 = vmatpush1.bf16.msra.mxu0 %v1590_v37  ;;  %v1606_v37 = vunpack.c.l.s8.bf16 %v694_v54 }
 0x3d7   : >> { %3670 = vmatpush1.bf16.msra.mxu1 %v1654_v41  ;;  %3630 = vmatprep.subr.bf16.mxu0 %v1595_v16  ;;  %v1670_v41 = vunpack.c.l.s8.bf16 %v726_v58  ;;  %v1611_v16 = vunpack.c.h.s8.bf16 %v695_v44  ;;  %v707_v44 = vld [vmem:[%s4951_s30 + $0x7f8] sm:$0xff] }
 0x3d8   : >> { %3671 = vmatprep.subr.bf16.mxu1 %v1659_v25  ;;  %v3326_v15 = vpop.f32.mrb[40].mxu0  ;;  %v1675_v25 = vunpack.c.h.s8.bf16 %v727_v2  ;;  %v739_v2 = vld [vmem:[%s4951_s30 + $0x8f8] sm:$0xff] }
 0x3d9   : >> { %v5662_v30 = vpop.f32.mrb[40].mxu1  ;;  %v3327_v21 = vadd.f32 %v3326_v15, %v5622_v26  ;;  %v3328_v11 = vpop.f32.mrb[41].mxu0  ;;  %v1603_v26 = vunpack.c.h.s8.bf16 %v691_v56  ;;  %v699_v56 = vld [vmem:[%s4951_s30 + $0x7b8] sm:$0xff]  ;;  %v1678_v15 = vunpack.c.l.s8.bf16 %v730_v9 }
 0x3da   : >> { %v5665_v55 = vpop.f32.mrb[41].mxu1  ;;  %v3329_v20 = vadd.f32 %v3328_v11, %v5624_v38  ;;  %v3330_v17 = vpop.f32.mrb[42].mxu0  ;;  %3631 = vmatpush1.bf16.msra.mxu0 %v1594_v27  ;;  %v1602_v38 = vunpack.c.h.s8.bf16 %v690_v7  ;;  %v1610_v27 = vunpack.c.h.s8.bf16 %v694_v54  ;;  %v698_v7 = vld [vmem:[%s4951_s30 + $0x7b0] sm:$0xff]  ;;  %v703_v11 = vld [vmem:[%s4951_s30 + $0x7d8] sm:$0xff] }
 0x3db   : >> { %v3371_v57 = vpop.f32.mrb[42].mxu1  ;;  %3672 = vmatpush1.bf16.msra.mxu1 %v1658_v3  ;;  %v4194_v22 = vadd.f32 %v3327_v21, %v2468_v1  ;;  %v3331_v23 = vpop.f32.mrb[43].mxu0  ;;  %3632 = vmatprep.subr.bf16.mxu0 %v1599_v28  ;;  %v1674_v3 = vunpack.c.h.s8.bf16 %v726_v58  ;;  %v1615_v28 = vunpack.c.l.s8.bf16 %v699_v56  ;;  %v1614_v1 = vunpack.c.l.s8.bf16 %v698_v7  ;;  %v706_v54 = vld [vmem:[%s4951_s30 + $0x7f0] sm:$0xff] }
 0x3dc   : >> { %v3372_v48 = vpop.f32.mrb[43].mxu1  ;;  %3673 = vmatprep.subr.bf16.mxu1 %v1663_v49  ;;  %v4195_v36 = vadd.f32 %v3329_v20, %v2469_v19  ;;  %v1679_v49 = vunpack.c.l.s8.bf16 %v731_v47  ;;  %v1619_v21 = vunpack.c.h.s8.bf16 %v699_v56  ;;  %v1683_v19 = vunpack.c.h.s8.bf16 %v731_v47  ;;  %v735_v20 = vld [vmem:[%s4951_s30 + $0x8d8] sm:$0xff]  ;;  %v734_v23 = vld [vmem:[%s4951_s30 + $0x8d0] sm:$0xff] }
 0x3dd   : >> { %4198 = vst [vmem:[#allocation2] sm:$0xff] %v4194_v22  ;;  %v1618_v17 = vunpack.c.h.s8.bf16 %v698_v7  ;;  %v1682_v57 = vunpack.c.h.s8.bf16 %v730_v9  ;;  %v702_v22 = vld [vmem:[%s4951_s30 + $0x7d0] sm:$0xff]  ;;  %v743_v56 = vld [vmem:[%s4951_s30 + $0x918] sm:$0xff] }
 0x3de   : >> { %4199 = vst [vmem:[#allocation2 + $0x8] sm:$0xff] %v4195_v36  ;;  %3633 = vmatpush1.bf16.msra.mxu0 %v1598_v42  ;;  %v1623_v42 = vunpack.c.l.s8.bf16 %v703_v11  ;;  %v1622_v48 = vunpack.c.l.s8.bf16 %v702_v22  ;;  %v1691_v36 = vunpack.c.h.s8.bf16 %v735_v20  ;;  %v738_v58 = vld [vmem:[%s4951_s30 + $0x8f0] sm:$0xff]  ;;  %v775_v47 = vld [vmem:[%s4951_s30 + $0xa18] sm:$0xff] }
 0x3df   : >> { %3674 = vmatpush1.bf16.msra.mxu1 %v1662_v33  ;;  %3634 = vmatprep.subr.bf16.mxu0 %v1603_v26  ;;  %v1687_v33 = vunpack.c.l.s8.bf16 %v735_v20  ;;  %v1686_v26 = vunpack.c.l.s8.bf16 %v734_v23  ;;  %v742_v7 = vld [vmem:[%s4951_s30 + $0x910] sm:$0xff]  ;;  %v779_v20 = vld [vmem:[%s4951_s30 + $0xa38] sm:$0xff] }
 0x3e0   : >> { %3675 = vmatprep.subr.bf16.mxu1 %v1667_v29  ;;  %v1627_v29 = vunpack.c.h.s8.bf16 %v703_v11  ;;  %v774_v9 = vld [vmem:[%s4951_s30 + $0xa10] sm:$0xff]  ;;  %v747_v11 = vld [vmem:[%s4951_s30 + $0x938] sm:$0xff] }
 0x3e2   : >> { %3635 = vmatpush1.bf16.msra.mxu0 %v1602_v38  ;;  %v1626_v38 = vunpack.c.h.s8.bf16 %v702_v22  ;;  %v746_v22 = vld [vmem:[%s4951_s30 + $0x930] sm:$0xff] }
 0x3e3   : >> { %3676 = vmatpush1.bf16.msra.mxu1 %v1666_v53  ;;  %3636 = vmatprep.subr.bf16.mxu0 %v1607_v34  ;;  %v1690_v53 = vunpack.c.h.s8.bf16 %v734_v23  ;;  %v1631_v34 = vunpack.c.l.s8.bf16 %v707_v44  ;;  %v778_v23 = vld [vmem:[%s4951_s30 + $0xa30] sm:$0xff] }
 0x3e4   : >> { %3677 = vmatprep.subr.bf16.mxu1 %v1671_v39  ;;  %v1695_v39 = vunpack.c.l.s8.bf16 %v739_v2 }
 0x3e6   : >> { %3637 = vmatpush1.bf16.msra.mxu0 %v1606_v37  ;;  %v1630_v37 = vunpack.c.l.s8.bf16 %v706_v54 }
 0x3e7   : >> { %3678 = vmatpush1.bf16.msra.mxu1 %v1670_v41  ;;  %3638 = vmatprep.subr.bf16.mxu0 %v1611_v16  ;;  %v1694_v41 = vunpack.c.l.s8.bf16 %v738_v58  ;;  %v1635_v16 = vunpack.c.h.s8.bf16 %v707_v44  ;;  %v1714_v44 = vunpack.c.h.s8.bf16 %v746_v22 }
 0x3e8   : >> { %3679 = vmatprep.subr.bf16.mxu1 %v1675_v25  ;;  %v1699_v25 = vunpack.c.h.s8.bf16 %v739_v2  ;;  %v1778_v2 = vunpack.c.h.s8.bf16 %v778_v23 }
 0x3ea   : >> { %3639 = vmatpush1.bf16.msra.mxu0 %v1610_v27  ;;  %v1634_v27 = vunpack.c.h.s8.bf16 %v706_v54 }
 0x3eb   : >> { %3680 = vmatpush1.bf16.msra.mxu1 %v1674_v3  ;;  %3640 = vmatprep.subr.bf16.mxu0 %v1615_v28  ;;  %v1698_v3 = vunpack.c.h.s8.bf16 %v738_v58  ;;  %v1703_v28 = vunpack.c.l.s8.bf16 %v743_v56 }
 0x3ec   : >> { %3681 = vmatprep.subr.bf16.mxu1 %v1679_v49  ;;  %v1767_v49 = vunpack.c.l.s8.bf16 %v775_v47 }
 0x3ee   : >> { %3641 = vmatpush1.bf16.msra.mxu0 %v1614_v1  ;;  %v1702_v1 = vunpack.c.l.s8.bf16 %v742_v7 }
 0x3ef   : >> { %3682 = vmatpush1.bf16.msra.mxu1 %v1678_v15  ;;  %3642 = vmatprep.subr.bf16.mxu0 %v1619_v21  ;;  %v1766_v15 = vunpack.c.l.s8.bf16 %v774_v9  ;;  %v1707_v21 = vunpack.c.h.s8.bf16 %v743_v56 }
 0x3f0   : >> { %3683 = vmatprep.subr.bf16.mxu1 %v1683_v19  ;;  %v1771_v19 = vunpack.c.h.s8.bf16 %v775_v47 }
 0x3f2   : >> { %3643 = vmatpush1.bf16.msra.mxu0 %v1618_v17  ;;  %v1706_v17 = vunpack.c.h.s8.bf16 %v742_v7 }
 0x3f3   : >> { %3684 = vmatpush1.bf16.msra.mxu1 %v1682_v57  ;;  %3644 = vmatprep.subr.bf16.mxu0 %v1623_v42  ;;  %v1770_v57 = vunpack.c.h.s8.bf16 %v774_v9  ;;  %v1711_v42 = vunpack.c.l.s8.bf16 %v747_v11 }
 0x3f4   : >> { %3685 = vmatprep.subr.bf16.mxu1 %v1687_v33  ;;  %v1775_v33 = vunpack.c.l.s8.bf16 %v779_v20 }
 0x3f6   : >> { %3645 = vmatpush1.bf16.msra.mxu0 %v1622_v48  ;;  %v1715_v48 = vunpack.c.h.s8.bf16 %v747_v11 }
 0x3f7   : >> { %3686 = vmatpush1.bf16.msra.mxu1 %v1686_v26  ;;  %3646 = vmatprep.subr.bf16.mxu0 %v1627_v29  ;;  %v1779_v26 = vunpack.c.h.s8.bf16 %v779_v20  ;;  %v751_v29 = vld [vmem:[%s4951_s30 + $0x958] sm:$0xff] }
 0x3f8   : >> { %3687 = vmatprep.subr.bf16.mxu1 %v1691_v36  ;;  %v783_v36 = vld [vmem:[%s4951_s30 + $0xa58] sm:$0xff]  ;;  %v1723_v54 = vunpack.c.h.s8.bf16 %v751_v29 }
 0x3f9   : >> { %v1787_v58 = vunpack.c.h.s8.bf16 %v783_v36 }
 0x3fa   : >> { %3647 = vmatpush1.bf16.msra.mxu0 %v1626_v38  ;;  %v750_v38 = vld [vmem:[%s4951_s30 + $0x950] sm:$0xff] }
 0x3fb   : >> { %3688 = vmatpush1.bf16.msra.mxu1 %v1690_v53  ;;  %3648 = vmatprep.subr.bf16.mxu0 %v1631_v34  ;;  %v782_v53 = vld [vmem:[%s4951_s30 + $0xa50] sm:$0xff]  ;;  %v1718_v34 = vunpack.c.l.s8.bf16 %v750_v38 }
 0x3fc   : >> { %3689 = vmatprep.subr.bf16.mxu1 %v1695_v39  ;;  %v1782_v39 = vunpack.c.l.s8.bf16 %v782_v53 }
 0x3fe   : >> { %3649 = vmatpush1.bf16.msra.mxu0 %v1630_v37  ;;  %v755_v37 = vld [vmem:[%s4951_s30 + $0x978] sm:$0xff] }
 0x3ff   : >> { %3690 = vmatpush1.bf16.msra.mxu1 %v1694_v41  ;;  %3650 = vmatprep.subr.bf16.mxu0 %v1635_v16  ;;  %v787_v41 = vld [vmem:[%s4951_s30 + $0xa78] sm:$0xff]  ;;  %v1722_v16 = vunpack.c.h.s8.bf16 %v750_v38  ;;  %v1727_v56 = vunpack.c.l.s8.bf16 %v755_v37 }
 0x400   : >> { %3691 = vmatprep.subr.bf16.mxu1 %v1699_v25  ;;  %v1786_v25 = vunpack.c.h.s8.bf16 %v782_v53  ;;  %v1791_v47 = vunpack.c.l.s8.bf16 %v787_v41  ;;  %v763_v38 = vld [vmem:[%s4951_s30 + $0x9b8] sm:$0xff] }
 0x401   : >> { %v795_v53 = vld [vmem:[%s4951_s30 + $0xab8] sm:$0xff] }
 0x402   : >> { %3651 = vmatpush1.bf16.msra.mxu0 %v1634_v27  ;;  %v754_v27 = vld [vmem:[%s4951_s30 + $0x970] sm:$0xff] }
 0x403   : >> { %3692 = vmatpush1.bf16.msra.mxu1 %v1698_v3  ;;  %3702 = vmatprep.subr.bf16.mxu0 %v1703_v28  ;;  %v786_v3 = vld [vmem:[%s4951_s30 + $0xa70] sm:$0xff]  ;;  %v1726_v11 = vunpack.c.l.s8.bf16 %v754_v27 }
 0x404   : >> { %3743 = vmatprep.subr.bf16.mxu1 %v1767_v49  ;;  %v1790_v20 = vunpack.c.l.s8.bf16 %v786_v3 }
 0x405   : >> { %3653 = vmatmul.mubr.bf16.vlgmr.msra.gmra.mrb[56].mxu0 %v5148_v24  ;;  %v1710_v24 = vunpack.c.l.s8.bf16 %v746_v22 }
 0x406   : >> { %3694 = vmatmul.mubr.bf16.vlgmr.msra.gmra.mrb[56].mxu1 %v5198_v59  ;;  %3703 = vmatpush1.bf16.msra.mxu0 %v1702_v1  ;;  %v1774_v59 = vunpack.c.l.s8.bf16 %v778_v23  ;;  %v791_v23 = vld [vmem:[%s4951_s30 + $0xa98] sm:$0xff] }
 0x407   : >> { %3744 = vmatpush1.bf16.msra.mxu1 %v1766_v15  ;;  %3704 = vmatprep.subr.bf16.mxu0 %v1707_v21 }
 0x408   : >> { %3745 = vmatprep.subr.bf16.mxu1 %v1771_v19  ;;  %3734 = vmatprep.mubr.bf16.mxu0 %v5156_v40  ;;  %v1719_v40 = vunpack.c.l.s8.bf16 %v751_v29  ;;  %v758_v29 = vld [vmem:[%s4951_s30 + $0x990] sm:$0xff] }
 0x409   : >> { %3775 = vmatprep.mubr.bf16.mxu1 %v5206_v5  ;;  %v1783_v5 = vunpack.c.l.s8.bf16 %v783_v36  ;;  %v790_v36 = vld [vmem:[%s4951_s30 + $0xa90] sm:$0xff] }
 0x40a   : >> { %3705 = vmatpush1.bf16.msra.mxu0 %v1706_v17 }
 0x40b   : >> { %3746 = vmatpush1.bf16.msra.mxu1 %v1770_v57  ;;  %3706 = vmatprep.subr.bf16.mxu0 %v1711_v42 }
 0x40c   : >> { %3747 = vmatprep.subr.bf16.mxu1 %v1775_v33  ;;  %v1795_v33 = vunpack.c.h.s8.bf16 %v787_v41  ;;  %v794_v41 = vld [vmem:[%s4951_s30 + $0xab0] sm:$0xff] }
 0x40e   : >> { %3707 = vmatpush1.bf16.msra.mxu0 %v1710_v24  ;;  %v1730_v24 = vunpack.c.h.s8.bf16 %v754_v27  ;;  %v767_v27 = vld [vmem:[%s4951_s30 + $0x9d8] sm:$0xff] }
 0x40f   : >> { %3748 = vmatpush1.bf16.msra.mxu1 %v1774_v59  ;;  %3708 = vmatprep.subr.bf16.mxu0 %v1715_v48  ;;  %v1794_v59 = vunpack.c.h.s8.bf16 %v786_v3  ;;  %v799_v3 = vld [vmem:[%s4951_s30 + $0xad8] sm:$0xff] }
 0x410   : >> { %3749 = vmatprep.subr.bf16.mxu1 %v1779_v26  ;;  %v1799_v26 = vunpack.c.l.s8.bf16 %v791_v23 }
 0x412   : >> { %3709 = vmatpush1.bf16.msra.mxu0 %v1714_v44  ;;  %v1734_v44 = vunpack.c.l.s8.bf16 %v758_v29 }
 0x413   : >> { %3750 = vmatpush1.bf16.msra.mxu1 %v1778_v2  ;;  %3710 = vmatprep.subr.bf16.mxu0 %v1719_v40  ;;  %v1798_v2 = vunpack.c.l.s8.bf16 %v790_v36 }
 0x414   : >> { %3751 = vmatprep.subr.bf16.mxu1 %v1783_v5  ;;  %v1803_v5 = vunpack.c.h.s8.bf16 %v791_v23 }
 0x416   : >> { %3711 = vmatpush1.bf16.msra.mxu0 %v1718_v34  ;;  %v1738_v34 = vunpack.c.h.s8.bf16 %v758_v29 }
 0x417   : >> { %3752 = vmatpush1.bf16.msra.mxu1 %v1782_v39  ;;  %3712 = vmatprep.subr.bf16.mxu0 %v1723_v54  ;;  %v1802_v39 = vunpack.c.h.s8.bf16 %v790_v36  ;;  %v1743_v54 = vunpack.c.l.s8.bf16 %v763_v38 }
 0x418   : >> { %3753 = vmatprep.subr.bf16.mxu1 %v1787_v58  ;;  %v3408_v28 = vpop.f32.mrb[44].mxu0  ;;  %v1807_v58 = vunpack.c.l.s8.bf16 %v795_v53 }
 0x419   : >> { %v3449_v49 = vpop.f32.mrb[44].mxu1  ;;  %v3409_v7 = vadd.f32 %v3408_v28, %v5662_v30  ;;  %v3410_v9 = vpop.f32.mrb[45].mxu0  ;;  %v1731_v30 = vunpack.c.h.s8.bf16 %v755_v37  ;;  %v762_v37 = vld [vmem:[%s4951_s30 + $0x9b0] sm:$0xff] }
 0x41a   : >> { %v3451_v1 = vpop.f32.mrb[45].mxu1  ;;  %v3411_v15 = vadd.f32 %v3410_v9, %v5665_v55  ;;  %v3412_v21 = vpop.f32.mrb[46].mxu0  ;;  %3713 = vmatpush1.bf16.msra.mxu0 %v1722_v16  ;;  %v759_v55 = vld [vmem:[%s4951_s30 + $0x998] sm:$0xff]  ;;  %v1742_v16 = vunpack.c.l.s8.bf16 %v762_v37  ;;  %v1746_v28 = vunpack.c.h.s8.bf16 %v762_v37  ;;  %v1815_v9 = vunpack.c.l.s8.bf16 %v799_v3 }
 0x41b   : >> { %v3453_v19 = vpop.f32.mrb[46].mxu1  ;;  %3754 = vmatpush1.bf16.msra.mxu1 %v1786_v25  ;;  %v5706_v17 = vadd.f32 %v3449_v49, %v3409_v7  ;;  %v3413_v57 = vpop.f32.mrb[47].mxu0  ;;  %3714 = vmatprep.subr.bf16.mxu0 %v1727_v56  ;;  %v1735_v48 = vunpack.c.l.s8.bf16 %v759_v55  ;;  %v1739_v40 = vunpack.c.h.s8.bf16 %v759_v55  ;;  %v1806_v25 = vunpack.c.l.s8.bf16 %v794_v41 }
 0x41c   : >> { %v3454_v42 = vpop.f32.mrb[47].mxu1  ;;  %3755 = vmatprep.subr.bf16.mxu1 %v1791_v47  ;;  %v5708_v22 = vadd.f32 %v3451_v1, %v3411_v15  ;;  %v1747_v56 = vunpack.c.h.s8.bf16 %v763_v38  ;;  %v1811_v47 = vunpack.c.h.s8.bf16 %v795_v53  ;;  %v1810_v49 = vunpack.c.h.s8.bf16 %v794_v41  ;;  %v766_v1 = vld [vmem:[%s4951_s30 + $0x9d0] sm:$0xff]  ;;  %v771_v57 = vld [vmem:[%s4951_s30 + $0x9f8] sm:$0xff] }
 0x41d   : >> { %v1751_v7 = vunpack.c.l.s8.bf16 %v767_v27  ;;  %v798_v15 = vld [vmem:[%s4951_s30 + $0xad0] sm:$0xff]  ;;  %v1750_v21 = vunpack.c.l.s8.bf16 %v766_v1  ;;  %v803_v42 = vld [vmem:[%s4951_s30 + $0xaf8] sm:$0xff]  ;;  %v1759_v55 = vunpack.c.l.s8.bf16 %v771_v57  ;;  %v1763_v29 = vunpack.c.h.s8.bf16 %v771_v57 }
 0x41e   : >> { %3715 = vmatpush1.bf16.msra.mxu0 %v1726_v11  ;;  %v1814_v19 = vunpack.c.l.s8.bf16 %v798_v15  ;;  %v1755_v11 = vunpack.c.h.s8.bf16 %v767_v27  ;;  %v1823_v23 = vunpack.c.l.s8.bf16 %v803_v42  ;;  %v1827_v36 = vunpack.c.h.s8.bf16 %v803_v42 }
 0x41f   : >> { %3756 = vmatpush1.bf16.msra.mxu1 %v1790_v20  ;;  %3716 = vmatprep.subr.bf16.mxu0 %v1731_v30  ;;  %v1819_v20 = vunpack.c.h.s8.bf16 %v799_v3  ;;  %v1754_v30 = vunpack.c.h.s8.bf16 %v766_v1  ;;  %v815_v1 = vld [vmem:[%s4951_s30 + $0xb58] sm:$0xff] }
 0x420   : >> { %3757 = vmatprep.subr.bf16.mxu1 %v1795_v33  ;;  %v1818_v33 = vunpack.c.h.s8.bf16 %v798_v15  ;;  %v847_v15 = vld [vmem:[%s4951_s30 + $0xc58] sm:$0xff] }
 0x422   : >> { %3717 = vmatpush1.bf16.msra.mxu0 %v1730_v24  ;;  %v770_v24 = vld [vmem:[%s4951_s30 + $0x9f0] sm:$0xff] }
 0x423   : >> { %3758 = vmatpush1.bf16.msra.mxu1 %v1794_v59  ;;  %3718 = vmatprep.subr.bf16.mxu0 %v1735_v48  ;;  %v802_v59 = vld [vmem:[%s4951_s30 + $0xaf0] sm:$0xff]  ;;  %v1758_v48 = vunpack.c.l.s8.bf16 %v770_v24 }
 0x424   : >> { %3759 = vmatprep.subr.bf16.mxu1 %v1799_v26  ;;  %v1822_v26 = vunpack.c.l.s8.bf16 %v802_v59 }
 0x426   : >> { %3719 = vmatpush1.bf16.msra.mxu0 %v1734_v44  ;;  %v807_v44 = vld [vmem:[%s4951_s30 + $0xb18] sm:$0xff] }
 0x427   : >> { %3760 = vmatpush1.bf16.msra.mxu1 %v1798_v2  ;;  %3720 = vmatprep.subr.bf16.mxu0 %v1739_v40  ;;  %v839_v2 = vld [vmem:[%s4951_s30 + $0xc18] sm:$0xff]  ;;  %v1762_v40 = vunpack.c.h.s8.bf16 %v770_v24  ;;  %v1831_v38 = vunpack.c.l.s8.bf16 %v807_v44  ;;  %v1835_v37 = vunpack.c.h.s8.bf16 %v807_v44 }
 0x428   : >> { %3761 = vmatprep.subr.bf16.mxu1 %v1803_v5  ;;  %v1826_v5 = vunpack.c.h.s8.bf16 %v802_v59  ;;  %v1895_v53 = vunpack.c.l.s8.bf16 %v839_v2  ;;  %v1899_v41 = vunpack.c.h.s8.bf16 %v839_v2 }
 0x42a   : >> { %3721 = vmatpush1.bf16.msra.mxu0 %v1738_v34  ;;  %v806_v34 = vld [vmem:[%s4951_s30 + $0xb10] sm:$0xff] }
 0x42b   : >> { %3762 = vmatpush1.bf16.msra.mxu1 %v1802_v39  ;;  %3722 = vmatprep.subr.bf16.mxu0 %v1743_v54  ;;  %v838_v39 = vld [vmem:[%s4951_s30 + $0xc10] sm:$0xff]  ;;  %v1830_v54 = vunpack.c.l.s8.bf16 %v806_v34 }
 0x42c   : >> { %3763 = vmatprep.subr.bf16.mxu1 %v1807_v58  ;;  %v1894_v58 = vunpack.c.l.s8.bf16 %v838_v39 }
 0x42e   : >> { %3723 = vmatpush1.bf16.msra.mxu0 %v1742_v16  ;;  %v811_v16 = vld [vmem:[%s4951_s30 + $0xb38] sm:$0xff] }
 0x42f   : >> { %3764 = vmatpush1.bf16.msra.mxu1 %v1806_v25  ;;  %3724 = vmatprep.subr.bf16.mxu0 %v1747_v56  ;;  %v843_v25 = vld [vmem:[%s4951_s30 + $0xc38] sm:$0xff]  ;;  %v1834_v56 = vunpack.c.h.s8.bf16 %v806_v34  ;;  %v1839_v27 = vunpack.c.l.s8.bf16 %v811_v16 }
 0x430   : >> { %3765 = vmatprep.subr.bf16.mxu1 %v1811_v47  ;;  %v1898_v47 = vunpack.c.h.s8.bf16 %v838_v39  ;;  %v1903_v3 = vunpack.c.l.s8.bf16 %v843_v25 }
 0x432   : >> { %3725 = vmatpush1.bf16.msra.mxu0 %v1746_v28  ;;  %v810_v28 = vld [vmem:[%s4951_s30 + $0xb30] sm:$0xff] }
 0x433   : >> { %3766 = vmatpush1.bf16.msra.mxu1 %v1810_v49  ;;  %3726 = vmatprep.subr.bf16.mxu0 %v1751_v7  ;;  %v842_v49 = vld [vmem:[%s4951_s30 + $0xc30] sm:$0xff]  ;;  %v1843_v7 = vunpack.c.h.s8.bf16 %v811_v16 }
 0x434   : >> { %3767 = vmatprep.subr.bf16.mxu1 %v1815_v9  ;;  %v1907_v9 = vunpack.c.h.s8.bf16 %v843_v25 }
 0x436   : >> { %3727 = vmatpush1.bf16.msra.mxu0 %v1750_v21  ;;  %v1842_v21 = vunpack.c.h.s8.bf16 %v810_v28 }
 0x437   : >> { %3768 = vmatpush1.bf16.msra.mxu1 %v1814_v19  ;;  %3728 = vmatprep.subr.bf16.mxu0 %v1755_v11  ;;  %v1906_v19 = vunpack.c.h.s8.bf16 %v842_v49  ;;  %v814_v11 = vld [vmem:[%s4951_s30 + $0xb50] sm:$0xff] }
 0x438   : >> { %3769 = vmatprep.subr.bf16.mxu1 %v1819_v20  ;;  %v846_v20 = vld [vmem:[%s4951_s30 + $0xc50] sm:$0xff]  ;;  %v1846_v57 = vunpack.c.l.s8.bf16 %v814_v11  ;;  %v1850_v24 = vunpack.c.h.s8.bf16 %v814_v11 }
 0x439   : >> { %v1910_v42 = vunpack.c.l.s8.bf16 %v846_v20  ;;  %v1914_v59 = vunpack.c.h.s8.bf16 %v846_v20 }
 0x43a   : >> { %3729 = vmatpush1.bf16.msra.mxu0 %v1754_v30  ;;  %v1851_v30 = vunpack.c.h.s8.bf16 %v815_v1 }
 0x43b   : >> { %3770 = vmatpush1.bf16.msra.mxu1 %v1818_v33  ;;  %3730 = vmatprep.subr.bf16.mxu0 %v1759_v55  ;;  %v1915_v33 = vunpack.c.h.s8.bf16 %v847_v15  ;;  %v819_v55 = vld [vmem:[%s4951_s30 + $0xb78] sm:$0xff] }
 0x43c   : >> { %3771 = vmatprep.subr.bf16.mxu1 %v1823_v23  ;;  %v851_v23 = vld [vmem:[%s4951_s30 + $0xc78] sm:$0xff] }
 0x43d   : >> { %v1923_v25 = vunpack.c.h.s8.bf16 %v851_v23 }
 0x43e   : >> { %3731 = vmatpush1.bf16.msra.mxu0 %v1758_v48  ;;  %v1855_v48 = vunpack.c.l.s8.bf16 %v819_v55 }
 0x43f   : >> { %3772 = vmatpush1.bf16.msra.mxu1 %v1822_v26  ;;  %3732 = vmatprep.subr.bf16.mxu0 %v1763_v29  ;;  %v1919_v26 = vunpack.c.l.s8.bf16 %v851_v23  ;;  %v818_v29 = vld [vmem:[%s4951_s30 + $0xb70] sm:$0xff] }
 0x440   : >> { %3773 = vmatprep.subr.bf16.mxu1 %v1827_v36  ;;  %v850_v36 = vld [vmem:[%s4951_s30 + $0xc70] sm:$0xff] }
 0x442   : >> { %3733 = vmatpush1.bf16.msra.mxu0 %v1762_v40 }
 0x443   : >> { %3774 = vmatpush1.bf16.msra.mxu1 %v1826_v5  ;;  %3784 = vmatprep.subr.bf16.mxu0 %v1831_v38 }
 0x444   : >> { %3825 = vmatprep.subr.bf16.mxu1 %v1895_v53 }
 0x445   : >> { %3735 = vmatmul.mubr.bf16.vlgmr.msra.gmra.mrb[60].mxu0 %v5200_v60  ;;  %v1838_v60 = vunpack.c.l.s8.bf16 %v810_v28 }
 0x446   : >> { %3776 = vmatmul.mubr.bf16.vlgmr.msra.gmra.mrb[60].mxu1 %v5252_v45  ;;  %3785 = vmatpush1.bf16.msra.mxu0 %v1830_v54  ;;  %v1902_v45 = vunpack.c.l.s8.bf16 %v842_v49  ;;  %v1854_v54 = vunpack.c.l.s8.bf16 %v818_v29 }
 0x447   : >> { %3826 = vmatpush1.bf16.msra.mxu1 %v1894_v58  ;;  %3786 = vmatprep.subr.bf16.mxu0 %v1835_v37  ;;  %v1918_v58 = vunpack.c.l.s8.bf16 %v850_v36 }
 0x448   : >> { %3827 = vmatprep.subr.bf16.mxu1 %v1899_v41  ;;  %3816 = vmatprep.mubr.bf16.mxu0 %v5208_v6  ;;  %v1847_v6 = vunpack.c.l.s8.bf16 %v815_v1 }
 0x449   : >> { %3857 = vmatprep.mubr.bf16.mxu1 %v5260_v61  ;;  %v1911_v61 = vunpack.c.l.s8.bf16 %v847_v15 }
 0x44a   : >> { %3787 = vmatpush1.bf16.msra.mxu0 %v1834_v56 }
 0x44b   : >> { %3828 = vmatpush1.bf16.msra.mxu1 %v1898_v47  ;;  %3788 = vmatprep.subr.bf16.mxu0 %v1839_v27  ;;  %v855_v47 = vld [vmem:[%s4951_s30 + $0xc98] sm:$0xff]  ;;  %v1858_v27 = vunpack.c.h.s8.bf16 %v818_v29 }
 0x44c   : >> { %3829 = vmatprep.subr.bf16.mxu1 %v1903_v3  ;;  %v1922_v3 = vunpack.c.h.s8.bf16 %v850_v36  ;;  %v1927_v49 = vunpack.c.l.s8.bf16 %v855_v47  ;;  %v1931_v15 = vunpack.c.h.s8.bf16 %v855_v47 }
 0x44e   : >> { %3789 = vmatpush1.bf16.msra.mxu0 %v1838_v60  ;;  %v822_v60 = vld [vmem:[%s4951_s30 + $0xb90] sm:$0xff] }
 0x44f   : >> { %3830 = vmatpush1.bf16.msra.mxu1 %v1902_v45  ;;  %3790 = vmatprep.subr.bf16.mxu0 %v1843_v7  ;;  %v854_v45 = vld [vmem:[%s4951_s30 + $0xc90] sm:$0xff]  ;;  %v1862_v7 = vunpack.c.l.s8.bf16 %v822_v60 }
 0x450   : >> { %3831 = vmatprep.subr.bf16.mxu1 %v1907_v9  ;;  %v1926_v9 = vunpack.c.l.s8.bf16 %v854_v45 }
 0x452   : >> { %3791 = vmatpush1.bf16.msra.mxu0 %v1842_v21  ;;  %v827_v21 = vld [vmem:[%s4951_s30 + $0xbb8] sm:$0xff] }
 0x453   : >> { %3832 = vmatpush1.bf16.msra.mxu1 %v1906_v19  ;;  %3792 = vmatprep.subr.bf16.mxu0 %v1847_v6  ;;  %v859_v19 = vld [vmem:[%s4951_s30 + $0xcb8] sm:$0xff]  ;;  %v1866_v6 = vunpack.c.h.s8.bf16 %v822_v60  ;;  %v1871_v11 = vunpack.c.l.s8.bf16 %v827_v21 }
 0x454   : >> { %3833 = vmatprep.subr.bf16.mxu1 %v1911_v61  ;;  %v1930_v61 = vunpack.c.h.s8.bf16 %v854_v45  ;;  %v1935_v20 = vunpack.c.l.s8.bf16 %v859_v19  ;;  %v1939_v23 = vunpack.c.h.s8.bf16 %v859_v19 }
 0x456   : >> { %3793 = vmatpush1.bf16.msra.mxu0 %v1846_v57  ;;  %v826_v57 = vld [vmem:[%s4951_s30 + $0xbb0] sm:$0xff] }
 0x457   : >> { %3834 = vmatpush1.bf16.msra.mxu1 %v1910_v42  ;;  %3794 = vmatprep.subr.bf16.mxu0 %v1851_v30  ;;  %v858_v42 = vld [vmem:[%s4951_s30 + $0xcb0] sm:$0xff]  ;;  %v1870_v30 = vunpack.c.l.s8.bf16 %v826_v57 }
 0x458   : >> { %3835 = vmatprep.subr.bf16.mxu1 %v1915_v33  ;;  %v3490_v44 = vpop.f32.mrb[48].mxu0  ;;  %v1934_v33 = vunpack.c.l.s8.bf16 %v858_v42 }
 0x459   : >> { %v3531_v2 = vpop.f32.mrb[48].mxu1  ;;  %v3491_v40 = vadd.f32 %v3490_v44, %v5706_v17  ;;  %v3492_v5 = vpop.f32.mrb[49].mxu0  ;;  %v1859_v17 = vunpack.c.h.s8.bf16 %v819_v55  ;;  %v1875_v55 = vunpack.c.h.s8.bf16 %v827_v21  ;;  %v830_v44 = vld [vmem:[%s4951_s30 + $0xbd0] sm:$0xff] }
 0x45a   : >> { %v3533_v38 = vpop.f32.mrb[49].mxu1  ;;  %v3493_v53 = vadd.f32 %v3492_v5, %v5708_v22  ;;  %v3494_v34 = vpop.f32.mrb[50].mxu0  ;;  %3795 = vmatpush1.bf16.msra.mxu0 %v1850_v24  ;;  %v823_v22 = vld [vmem:[%s4951_s30 + $0xb98] sm:$0xff] }
 0x45b   : >> { %v3535_v39 = vpop.f32.mrb[50].mxu1  ;;  %3836 = vmatpush1.bf16.msra.mxu1 %v1914_v59  ;;  %v5748_v37 = vadd.f32 %v3531_v2, %v3491_v40  ;;  %v3495_v41 = vpop.f32.mrb[51].mxu0  ;;  %3796 = vmatprep.subr.bf16.mxu0 %v1855_v48  ;;  %v1863_v28 = vunpack.c.l.s8.bf16 %v823_v22  ;;  %v1867_v1 = vunpack.c.h.s8.bf16 %v823_v22  ;;  %v831_v24 = vld [vmem:[%s4951_s30 + $0xbd8] sm:$0xff]  ;;  %v1874_v48 = vunpack.c.h.s8.bf16 %v826_v57  ;;  %v862_v2 = vld [vmem:[%s4951_s30 + $0xcd0] sm:$0xff] }
 0x45c   : >> { %v3536_v16 = vpop.f32.mrb[51].mxu1  ;;  %3837 = vmatprep.subr.bf16.mxu1 %v1919_v26  ;;  %v5750_v56 = vadd.f32 %v3533_v38, %v3493_v53  ;;  %v863_v59 = vld [vmem:[%s4951_s30 + $0xcd8] sm:$0xff]  ;;  %v1938_v26 = vunpack.c.h.s8.bf16 %v858_v42  ;;  %v1879_v29 = vunpack.c.l.s8.bf16 %v831_v24  ;;  %v1878_v40 = vunpack.c.l.s8.bf16 %v830_v44 }
 0x45d   : >> { %v1943_v36 = vunpack.c.l.s8.bf16 %v863_v59  ;;  %v1942_v5 = vunpack.c.l.s8.bf16 %v862_v2  ;;  %v1883_v38 = vunpack.c.h.s8.bf16 %v831_v24  ;;  %v1947_v53 = vunpack.c.h.s8.bf16 %v863_v59  ;;  %v835_v34 = vld [vmem:[%s4951_s30 + $0xbf8] sm:$0xff] }
 0x45e   : >> { %3797 = vmatpush1.bf16.msra.mxu0 %v1854_v54  ;;  %v867_v39 = vld [vmem:[%s4951_s30 + $0xcf8] sm:$0xff]  ;;  %v1882_v54 = vunpack.c.h.s8.bf16 %v830_v44  ;;  %v1887_v41 = vunpack.c.l.s8.bf16 %v835_v34  ;;  %v878_v44 = vld [vmem:[%s4951_s30 + $0xd50] sm:$0xff] }
 0x45f   : >> { %3838 = vmatpush1.bf16.msra.mxu1 %v1918_v58  ;;  %3798 = vmatprep.subr.bf16.mxu0 %v1859_v17  ;;  %v1946_v58 = vunpack.c.h.s8.bf16 %v862_v2  ;;  %v1951_v16 = vunpack.c.l.s8.bf16 %v867_v39  ;;  %v834_v17 = vld [vmem:[%s4951_s30 + $0xbf0] sm:$0xff] }
 0x460   : >> { %3839 = vmatprep.subr.bf16.mxu1 %v1923_v25  ;;  %v866_v25 = vld [vmem:[%s4951_s30 + $0xcf0] sm:$0xff]  ;;  %v1886_v22 = vunpack.c.l.s8.bf16 %v834_v17  ;;  %v1890_v60 = vunpack.c.h.s8.bf16 %v834_v17 }
 0x461   : >> { %v1950_v47 = vunpack.c.l.s8.bf16 %v866_v25  ;;  %v1954_v45 = vunpack.c.h.s8.bf16 %v866_v25  ;;  %v910_v2 = vld [vmem:[%s4951_s30 + $0xe50] sm:$0xff] }
 0x462   : >> { %3799 = vmatpush1.bf16.msra.mxu0 %v1858_v27  ;;  %v1891_v27 = vunpack.c.h.s8.bf16 %v835_v34  ;;  %v883_v34 = vld [vmem:[%s4951_s30 + $0xd78] sm:$0xff]  ;;  %v882_v17 = vld [vmem:[%s4951_s30 + $0xd70] sm:$0xff] }
 0x463   : >> { %3840 = vmatpush1.bf16.msra.mxu1 %v1922_v3  ;;  %3800 = vmatprep.subr.bf16.mxu0 %v1863_v28  ;;  %v1955_v3 = vunpack.c.h.s8.bf16 %v867_v39  ;;  %v871_v28 = vld [vmem:[%s4951_s30 + $0xd18] sm:$0xff]  ;;  %v914_v25 = vld [vmem:[%s4951_s30 + $0xe70] sm:$0xff] }
 0x464   : >> { %3841 = vmatprep.subr.bf16.mxu1 %v1927_v49  ;;  %v903_v49 = vld [vmem:[%s4951_s30 + $0xe18] sm:$0xff] }
 0x465   : >> { %v915_v39 = vld [vmem:[%s4951_s30 + $0xe78] sm:$0xff] }
 0x466   : >> { %3801 = vmatpush1.bf16.msra.mxu0 %v1862_v7  ;;  %v1959_v7 = vunpack.c.l.s8.bf16 %v871_v28 }
 0x467   : >> { %3842 = vmatpush1.bf16.msra.mxu1 %v1926_v9  ;;  %3802 = vmatprep.subr.bf16.mxu0 %v1867_v1  ;;  %v2023_v9 = vunpack.c.l.s8.bf16 %v903_v49  ;;  %v870_v1 = vld [vmem:[%s4951_s30 + $0xd10] sm:$0xff] }
 0x468   : >> { %3843 = vmatprep.subr.bf16.mxu1 %v1931_v15  ;;  %v902_v15 = vld [vmem:[%s4951_s30 + $0xe10] sm:$0xff]  ;;  %v1958_v21 = vunpack.c.l.s8.bf16 %v870_v1  ;;  %v1962_v57 = vunpack.c.h.s8.bf16 %v870_v1 }
 0x469   : >> { %v2022_v19 = vunpack.c.l.s8.bf16 %v902_v15  ;;  %v2026_v42 = vunpack.c.h.s8.bf16 %v902_v15 }
 0x46a   : >> { %3803 = vmatpush1.bf16.msra.mxu0 %v1866_v6  ;;  %v1963_v6 = vunpack.c.h.s8.bf16 %v871_v28 }
 0x46b   : >> { %3844 = vmatpush1.bf16.msra.mxu1 %v1930_v61  ;;  %3804 = vmatprep.subr.bf16.mxu0 %v1871_v11  ;;  %v2027_v61 = vunpack.c.h.s8.bf16 %v903_v49  ;;  %v875_v11 = vld [vmem:[%s4951_s30 + $0xd38] sm:$0xff] }
 0x46c   : >> { %3845 = vmatprep.subr.bf16.mxu1 %v1935_v20  ;;  %v907_v20 = vld [vmem:[%s4951_s30 + $0xe38] sm:$0xff]  ;;  %v1971_v24 = vunpack.c.h.s8.bf16 %v875_v11 }
 0x46d   : >> { %v2035_v59 = vunpack.c.h.s8.bf16 %v907_v20 }
 0x46e   : >> { %3805 = vmatpush1.bf16.msra.mxu0 %v1870_v30  ;;  %v1967_v30 = vunpack.c.l.s8.bf16 %v875_v11  ;;  %v1986_v11 = vunpack.c.h.s8.bf16 %v882_v17 }
 0x46f   : >> { %3846 = vmatpush1.bf16.msra.mxu1 %v1934_v33  ;;  %3806 = vmatprep.subr.bf16.mxu0 %v1875_v55  ;;  %v2031_v33 = vunpack.c.l.s8.bf16 %v907_v20  ;;  %v874_v55 = vld [vmem:[%s4951_s30 + $0xd30] sm:$0xff]  ;;  %v2050_v20 = vunpack.c.h.s8.bf16 %v914_v25 }
 0x470   : >> { %3847 = vmatprep.subr.bf16.mxu1 %v1939_v23  ;;  %v906_v23 = vld [vmem:[%s4951_s30 + $0xe30] sm:$0xff] }
 0x472   : >> { %3807 = vmatpush1.bf16.msra.mxu0 %v1874_v48  ;;  %v879_v48 = vld [vmem:[%s4951_s30 + $0xd58] sm:$0xff] }
 0x473   : >> { %3848 = vmatpush1.bf16.msra.mxu1 %v1938_v26  ;;  %3808 = vmatprep.subr.bf16.mxu0 %v1879_v29  ;;  %v911_v26 = vld [vmem:[%s4951_s30 + $0xe58] sm:$0xff]  ;;  %v1970_v29 = vunpack.c.h.s8.bf16 %v874_v55 }
 0x474   : >> { %3849 = vmatprep.subr.bf16.mxu1 %v1943_v36  ;;  %v2034_v36 = vunpack.c.h.s8.bf16 %v906_v23 }
 0x476   : >> { %3809 = vmatpush1.bf16.msra.mxu0 %v1878_v40  ;;  %v1974_v40 = vunpack.c.l.s8.bf16 %v878_v44 }
 0x477   : >> { %3850 = vmatpush1.bf16.msra.mxu1 %v1942_v5  ;;  %3810 = vmatprep.subr.bf16.mxu0 %v1883_v38  ;;  %v2038_v5 = vunpack.c.l.s8.bf16 %v910_v2  ;;  %v1979_v38 = vunpack.c.h.s8.bf16 %v879_v48 }
 0x478   : >> { %3851 = vmatprep.subr.bf16.mxu1 %v1947_v53  ;;  %v2043_v53 = vunpack.c.h.s8.bf16 %v911_v26 }
 0x47a   : >> { %3811 = vmatpush1.bf16.msra.mxu0 %v1882_v54  ;;  %v1978_v54 = vunpack.c.h.s8.bf16 %v878_v44 }
 0x47b   : >> { %3852 = vmatpush1.bf16.msra.mxu1 %v1946_v58  ;;  %3812 = vmatprep.subr.bf16.mxu0 %v1887_v41  ;;  %v2042_v58 = vunpack.c.h.s8.bf16 %v910_v2  ;;  %v1983_v41 = vunpack.c.l.s8.bf16 %v883_v34 }
 0x47c   : >> { %3853 = vmatprep.subr.bf16.mxu1 %v1951_v16  ;;  %v2047_v16 = vunpack.c.l.s8.bf16 %v915_v39 }
 0x47e   : >> { %3813 = vmatpush1.bf16.msra.mxu0 %v1886_v22 }
 0x47f   : >> { %3854 = vmatpush1.bf16.msra.mxu1 %v1950_v47  ;;  %3814 = vmatprep.subr.bf16.mxu0 %v1891_v27 }
 0x480   : >> { %3855 = vmatprep.subr.bf16.mxu1 %v1955_v3 }
 0x482   : >> { %3815 = vmatpush1.bf16.msra.mxu0 %v1890_v60 }
 0x483   : >> { %3856 = vmatpush1.bf16.msra.mxu1 %v1954_v45  ;;  %3866 = vmatprep.subr.bf16.mxu0 %v1959_v7  ;;  %v1982_v7 = vunpack.c.l.s8.bf16 %v882_v17 }
 0x484   : >> { %3907 = vmatprep.subr.bf16.mxu1 %v2023_v9  ;;  %v2046_v9 = vunpack.c.l.s8.bf16 %v914_v25 }
 0x485   : >> { %3817 = vmatmul.mubr.bf16.vlgmr.msra.gmra.mrb[64].mxu0 %v5254_v46  ;;  %v1966_v46 = vunpack.c.l.s8.bf16 %v874_v55 }
 0x486   : >> { %3858 = vmatmul.mubr.bf16.vlgmr.msra.gmra.mrb[64].mxu1 %v5306_v51  ;;  %3867 = vmatpush1.bf16.msra.mxu0 %v1958_v21  ;;  %v2030_v51 = vunpack.c.l.s8.bf16 %v906_v23 }
 0x487   : >> { %3908 = vmatpush1.bf16.msra.mxu1 %v2022_v19  ;;  %3868 = vmatprep.subr.bf16.mxu0 %v1963_v6  ;;  %v2051_v19 = vunpack.c.h.s8.bf16 %v915_v39 }
 0x488   : >> { %3909 = vmatprep.subr.bf16.mxu1 %v2027_v61  ;;  %3898 = vmatprep.mubr.bf16.mxu0 %v5262_v62  ;;  %v1975_v62 = vunpack.c.l.s8.bf16 %v879_v48  ;;  %v919_v61 = vld [vmem:[%s4951_s30 + $0xe98] sm:$0xff] }
 0x489   : >> { %3939 = vmatprep.mubr.bf16.mxu1 %v5314_v4  ;;  %v2039_v4 = vunpack.c.l.s8.bf16 %v911_v26 }
 0x48a   : >> { %3869 = vmatpush1.bf16.msra.mxu0 %v1962_v57 }
 0x48b   : >> { %3910 = vmatpush1.bf16.msra.mxu1 %v2026_v42  ;;  %3870 = vmatprep.subr.bf16.mxu0 %v1967_v30  ;;  %v2055_v42 = vunpack.c.l.s8.bf16 %v919_v61  ;;  %v886_v30 = vld [vmem:[%s4951_s30 + $0xd90] sm:$0xff] }
 0x48c   : >> { %3911 = vmatprep.subr.bf16.mxu1 %v2031_v33  ;;  %v918_v33 = vld [vmem:[%s4951_s30 + $0xe90] sm:$0xff]  ;;  %v1990_v55 = vunpack.c.l.s8.bf16 %v886_v30  ;;  %v1994_v48 = vunpack.c.h.s8.bf16 %v886_v30 }
 0x48d   : >> { %v2054_v23 = vunpack.c.l.s8.bf16 %v918_v33  ;;  %v2058_v26 = vunpack.c.h.s8.bf16 %v918_v33  ;;  %v934_v30 = vld [vmem:[%s4951_s30 + $0xf10] sm:$0xff] }
 0x48e   : >> { %3871 = vmatpush1.bf16.msra.mxu0 %v1966_v46  ;;  %v966_v33 = vld [vmem:[%s4951_s30 + $0x1010] sm:$0xff] }
 0x48f   : >> { %3912 = vmatpush1.bf16.msra.mxu1 %v2030_v51  ;;  %3872 = vmatprep.subr.bf16.mxu0 %v1971_v24  ;;  %v2059_v51 = vunpack.c.h.s8.bf16 %v919_v61  ;;  %v891_v24 = vld [vmem:[%s4951_s30 + $0xdb8] sm:$0xff] }
 0x490   : >> { %3913 = vmatprep.subr.bf16.mxu1 %v2035_v59  ;;  %v923_v59 = vld [vmem:[%s4951_s30 + $0xeb8] sm:$0xff] }
 0x491   : >> { %v967_v61 = vld [vmem:[%s4951_s30 + $0x1018] sm:$0xff] }
 0x492   : >> { %3873 = vmatpush1.bf16.msra.mxu0 %v1970_v29  ;;  %v1999_v29 = vunpack.c.l.s8.bf16 %v891_v24 }
 0x493   : >> { %3914 = vmatpush1.bf16.msra.mxu1 %v2034_v36  ;;  %3874 = vmatprep.subr.bf16.mxu0 %v1975_v62  ;;  %v2063_v36 = vunpack.c.l.s8.bf16 %v923_v59  ;;  %v890_v62 = vld [vmem:[%s4951_s30 + $0xdb0] sm:$0xff] }
 0x494   : >> { %3915 = vmatprep.subr.bf16.mxu1 %v2039_v4  ;;  %v922_v4 = vld [vmem:[%s4951_s30 + $0xeb0] sm:$0xff]  ;;  %v1998_v44 = vunpack.c.l.s8.bf16 %v890_v62 }
 0x495   : >> { %v2062_v2 = vunpack.c.l.s8.bf16 %v922_v4  ;;  %v2066_v39 = vunpack.c.h.s8.bf16 %v922_v4  ;;  %v970_v4 = vld [vmem:[%s4951_s30 + $0x1030] sm:$0xff] }
 0x496   : >> { %3875 = vmatpush1.bf16.msra.mxu0 %v1974_v40  ;;  %v2003_v40 = vunpack.c.h.s8.bf16 %v891_v24  ;;  %v939_v24 = vld [vmem:[%s4951_s30 + $0xf38] sm:$0xff] }
 0x497   : >> { %3916 = vmatpush1.bf16.msra.mxu1 %v2038_v5  ;;  %3876 = vmatprep.subr.bf16.mxu0 %v1979_v38  ;;  %v2067_v5 = vunpack.c.h.s8.bf16 %v923_v59  ;;  %v895_v38 = vld [vmem:[%s4951_s30 + $0xdd8] sm:$0xff] }
 0x498   : >> { %3917 = vmatprep.subr.bf16.mxu1 %v2043_v53  ;;  %v3572_v22 = vpop.f32.mrb[52].mxu0  ;;  %v927_v53 = vld [vmem:[%s4951_s30 + $0xed8] sm:$0xff] }
 0x499   : >> { %v3613_v47 = vpop.f32.mrb[52].mxu1  ;;  %v3573_v27 = vadd.f32 %v3572_v22, %v5748_v37  ;;  %v3574_v3 = vpop.f32.mrb[53].mxu0  ;;  %v1987_v37 = vunpack.c.h.s8.bf16 %v883_v34  ;;  %v2002_v34 = vunpack.c.h.s8.bf16 %v890_v62  ;;  %v2011_v22 = vunpack.c.h.s8.bf16 %v895_v38  ;;  %v971_v59 = vld [vmem:[%s4951_s30 + $0x1038] sm:$0xff]  ;;  %v938_v62 = vld [vmem:[%s4951_s30 + $0xf30] sm:$0xff] }
 0x49a   : >> { %v3615_v28 = vpop.f32.mrb[53].mxu1  ;;  %v3575_v49 = vadd.f32 %v3574_v3, %v5750_v56  ;;  %v3576_v60 = vpop.f32.mrb[54].mxu0  ;;  %3877 = vmatpush1.bf16.msra.mxu0 %v1978_v54  ;;  %v887_v56 = vld [vmem:[%s4951_s30 + $0xd98] sm:$0xff]  ;;  %v2007_v54 = vunpack.c.l.s8.bf16 %v895_v38  ;;  %v2098_v38 = vunpack.c.h.s8.bf16 %v938_v62 }
 0x49b   : >> { %v3617_v45 = vpop.f32.mrb[54].mxu1  ;;  %3918 = vmatpush1.bf16.msra.mxu1 %v2042_v58  ;;  %v5790_v1 = vadd.f32 %v3613_v47, %v3573_v27  ;;  %v3577_v15 = vpop.f32.mrb[55].mxu0  ;;  %3878 = vmatprep.subr.bf16.mxu0 %v1983_v41  ;;  %v1991_v57 = vunpack.c.l.s8.bf16 %v887_v56  ;;  %v1995_v46 = vunpack.c.h.s8.bf16 %v887_v56  ;;  %v2071_v58 = vunpack.c.l.s8.bf16 %v927_v53  ;;  %v894_v41 = vld [vmem:[%s4951_s30 + $0xdd0] sm:$0xff]  ;;  %v899_v27 = vld [vmem:[%s4951_s30 + $0xdf8] sm:$0xff] }
 0x49c   : >> { %v3618_v21 = vpop.f32.mrb[55].mxu1  ;;  %3919 = vmatprep.subr.bf16.mxu1 %v2047_v16  ;;  %v5792_v6 = vadd.f32 %v3615_v28, %v3575_v49  ;;  %v926_v16 = vld [vmem:[%s4951_s30 + $0xed0] sm:$0xff]  ;;  %v2006_v17 = vunpack.c.l.s8.bf16 %v894_v41  ;;  %v2075_v47 = vunpack.c.h.s8.bf16 %v927_v53  ;;  %v931_v3 = vld [vmem:[%s4951_s30 + $0xef8] sm:$0xff]  ;;  %v2010_v28 = vunpack.c.h.s8.bf16 %v894_v41 }
 0x49d   : >> { %v2070_v25 = vunpack.c.l.s8.bf16 %v926_v16  ;;  %v2074_v49 = vunpack.c.h.s8.bf16 %v926_v16  ;;  %v2015_v60 = vunpack.c.l.s8.bf16 %v899_v27  ;;  %v2079_v45 = vunpack.c.l.s8.bf16 %v931_v3  ;;  %v935_v56 = vld [vmem:[%s4951_s30 + $0xf18] sm:$0xff] }
 0x49e   : >> { %3879 = vmatpush1.bf16.msra.mxu0 %v1982_v7  ;;  %v898_v7 = vld [vmem:[%s4951_s30 + $0xdf0] sm:$0xff]  ;;  %v2162_v53 = vunpack.c.h.s8.bf16 %v970_v4 }
 0x49f   : >> { %3920 = vmatpush1.bf16.msra.mxu1 %v2046_v9  ;;  %3880 = vmatprep.subr.bf16.mxu0 %v1987_v37  ;;  %v930_v9 = vld [vmem:[%s4951_s30 + $0xef0] sm:$0xff]  ;;  %v2014_v15 = vunpack.c.l.s8.bf16 %v898_v7  ;;  %v2019_v37 = vunpack.c.h.s8.bf16 %v899_v27 }
 0x4a0   : >> { %3921 = vmatprep.subr.bf16.mxu1 %v2051_v19  ;;  %v2078_v21 = vunpack.c.l.s8.bf16 %v930_v9  ;;  %v2083_v19 = vunpack.c.h.s8.bf16 %v931_v3 }
 0x4a2   : >> { %3881 = vmatpush1.bf16.msra.mxu0 %v1986_v11  ;;  %v2018_v11 = vunpack.c.h.s8.bf16 %v898_v7 }
 0x4a3   : >> { %3922 = vmatpush1.bf16.msra.mxu1 %v2050_v20  ;;  %3882 = vmatprep.subr.bf16.mxu0 %v1991_v57  ;;  %v2082_v20 = vunpack.c.h.s8.bf16 %v930_v9  ;;  %v2087_v57 = vunpack.c.l.s8.bf16 %v935_v56 }
 0x4a4   : >> { %3923 = vmatprep.subr.bf16.mxu1 %v2055_v42  ;;  %v2151_v42 = vunpack.c.l.s8.bf16 %v967_v61 }
 0x4a6   : >> { %3883 = vmatpush1.bf16.msra.mxu0 %v1990_v55  ;;  %v2086_v55 = vunpack.c.l.s8.bf16 %v934_v30 }
 0x4a7   : >> { %3924 = vmatpush1.bf16.msra.mxu1 %v2054_v23  ;;  %3884 = vmatprep.subr.bf16.mxu0 %v1995_v46  ;;  %v2150_v23 = vunpack.c.l.s8.bf16 %v966_v33  ;;  %v2091_v46 = vunpack.c.h.s8.bf16 %v935_v56 }
 0x4a8   : >> { %3925 = vmatprep.subr.bf16.mxu1 %v2059_v51  ;;  %v2155_v51 = vunpack.c.h.s8.bf16 %v967_v61 }
 0x4aa   : >> { %3885 = vmatpush1.bf16.msra.mxu0 %v1994_v48  ;;  %v2090_v48 = vunpack.c.h.s8.bf16 %v934_v30 }
 0x4ab   : >> { %3926 = vmatpush1.bf16.msra.mxu1 %v2058_v26  ;;  %3886 = vmatprep.subr.bf16.mxu0 %v1999_v29  ;;  %v2154_v26 = vunpack.c.h.s8.bf16 %v966_v33  ;;  %v2095_v29 = vunpack.c.l.s8.bf16 %v939_v24  ;;  %v983_v33 = vld [vmem:[%s4951_s30 + $0x1098] sm:$0xff] }
 0x4ac   : >> { %3927 = vmatprep.subr.bf16.mxu1 %v2063_v36  ;;  %v2159_v36 = vunpack.c.l.s8.bf16 %v971_v59 }
 0x4ae   : >> { %3887 = vmatpush1.bf16.msra.mxu0 %v1998_v44  ;;  %v2099_v44 = vunpack.c.h.s8.bf16 %v939_v24  ;;  %v950_v24 = vld [vmem:[%s4951_s30 + $0xf90] sm:$0xff] }
 0x4af   : >> { %3928 = vmatpush1.bf16.msra.mxu1 %v2062_v2  ;;  %3888 = vmatprep.subr.bf16.mxu0 %v2003_v40  ;;  %v2163_v2 = vunpack.c.h.s8.bf16 %v971_v59  ;;  %v943_v40 = vld [vmem:[%s4951_s30 + $0xf58] sm:$0xff]  ;;  %v982_v59 = vld [vmem:[%s4951_s30 + $0x1090] sm:$0xff] }
 0x4b0   : >> { %3929 = vmatprep.subr.bf16.mxu1 %v2067_v5  ;;  %v975_v5 = vld [vmem:[%s4951_s30 + $0x1058] sm:$0xff]  ;;  %v2107_v41 = vunpack.c.h.s8.bf16 %v943_v40 }
 0x4b1   : >> { %v2171_v16 = vunpack.c.h.s8.bf16 %v975_v5 }
 0x4b2   : >> { %3889 = vmatpush1.bf16.msra.mxu0 %v2002_v34  ;;  %v942_v34 = vld [vmem:[%s4951_s30 + $0xf50] sm:$0xff] }
 0x4b3   : >> { %3930 = vmatpush1.bf16.msra.mxu1 %v2066_v39  ;;  %3890 = vmatprep.subr.bf16.mxu0 %v2007_v54  ;;  %v974_v39 = vld [vmem:[%s4951_s30 + $0x1050] sm:$0xff]  ;;  %v2102_v54 = vunpack.c.l.s8.bf16 %v942_v34 }
 0x4b4   : >> { %3931 = vmatprep.subr.bf16.mxu1 %v2071_v58  ;;  %v2166_v58 = vunpack.c.l.s8.bf16 %v974_v39 }
 0x4b6   : >> { %3891 = vmatpush1.bf16.msra.mxu0 %v2006_v17  ;;  %v947_v17 = vld [vmem:[%s4951_s30 + $0xf78] sm:$0xff] }
 0x4b7   : >> { %3932 = vmatpush1.bf16.msra.mxu1 %v2070_v25  ;;  %3892 = vmatprep.subr.bf16.mxu0 %v2011_v22  ;;  %v979_v25 = vld [vmem:[%s4951_s30 + $0x1078] sm:$0xff]  ;;  %v2106_v22 = vunpack.c.h.s8.bf16 %v942_v34  ;;  %v2111_v27 = vunpack.c.l.s8.bf16 %v947_v17 }
 0x4b8   : >> { %3933 = vmatprep.subr.bf16.mxu1 %v2075_v47  ;;  %v2170_v47 = vunpack.c.h.s8.bf16 %v974_v39  ;;  %v2175_v3 = vunpack.c.l.s8.bf16 %v979_v25  ;;  %v959_v34 = vld [vmem:[%s4951_s30 + $0xfd8] sm:$0xff] }
 0x4b9   : >> { %v991_v39 = vld [vmem:[%s4951_s30 + $0x10d8] sm:$0xff] }
 0x4ba   : >> { %3893 = vmatpush1.bf16.msra.mxu0 %v2010_v28  ;;  %v946_v28 = vld [vmem:[%s4951_s30 + $0xf70] sm:$0xff] }
 0x4bb   : >> { %3934 = vmatpush1.bf16.msra.mxu1 %v2074_v49  ;;  %3894 = vmatprep.subr.bf16.mxu0 %v2015_v60  ;;  %v978_v49 = vld [vmem:[%s4951_s30 + $0x1070] sm:$0xff]  ;;  %v2110_v56 = vunpack.c.l.s8.bf16 %v946_v28 }
 0x4bc   : >> { %3935 = vmatprep.subr.bf16.mxu1 %v2079_v45  ;;  %v2174_v61 = vunpack.c.l.s8.bf16 %v978_v49 }
 0x4be   : >> { %3895 = vmatpush1.bf16.msra.mxu0 %v2014_v15 }
 0x4bf   : >> { %3936 = vmatpush1.bf16.msra.mxu1 %v2078_v21  ;;  %3896 = vmatprep.subr.bf16.mxu0 %v2019_v37 }
 0x4c0   : >> { %3937 = vmatprep.subr.bf16.mxu1 %v2083_v19 }
 0x4c2   : >> { %3897 = vmatpush1.bf16.msra.mxu0 %v2018_v11 }
 0x4c3   : >> { %3938 = vmatpush1.bf16.msra.mxu1 %v2082_v20  ;;  %3948 = vmatprep.subr.bf16.mxu0 %v2087_v57 }
 0x4c4   : >> { %3989 = vmatprep.subr.bf16.mxu1 %v2151_v42  ;;  %v2179_v42 = vunpack.c.h.s8.bf16 %v979_v25  ;;  %v990_v25 = vld [vmem:[%s4951_s30 + $0x10d0] sm:$0xff] }
 0x4c5   : >> { %3899 = vmatmul.mubr.bf16.vlgmr.msra.gmra.mrb[68].mxu0 %v5308_v52  ;;  %v2094_v52 = vunpack.c.l.s8.bf16 %v938_v62  ;;  %v955_v62 = vld [vmem:[%s4951_s30 + $0xfb8] sm:$0xff] }
 0x4c6   : >> { %3940 = vmatmul.mubr.bf16.vlgmr.msra.gmra.mrb[68].mxu1 %v5360_v13  ;;  %3949 = vmatpush1.bf16.msra.mxu0 %v2086_v55  ;;  %v2158_v13 = vunpack.c.l.s8.bf16 %v970_v4  ;;  %v2114_v55 = vunpack.c.h.s8.bf16 %v946_v28  ;;  %v987_v4 = vld [vmem:[%s4951_s30 + $0x10b8] sm:$0xff] }
 0x4c7   : >> { %3990 = vmatpush1.bf16.msra.mxu1 %v2150_v23  ;;  %3950 = vmatprep.subr.bf16.mxu0 %v2091_v46  ;;  %v2178_v23 = vunpack.c.h.s8.bf16 %v978_v49  ;;  %v963_v28 = vld [vmem:[%s4951_s30 + $0xff8] sm:$0xff] }
 0x4c8   : >> { %3991 = vmatprep.subr.bf16.mxu1 %v2155_v51  ;;  %3980 = vmatprep.mubr.bf16.mxu0 %v5316_v8  ;;  %v2103_v8 = vunpack.c.l.s8.bf16 %v943_v40  ;;  %v2183_v51 = vunpack.c.l.s8.bf16 %v983_v33  ;;  %v954_v40 = vld [vmem:[%s4951_s30 + $0xfb0] sm:$0xff]  ;;  %v995_v49 = vld [vmem:[%s4951_s30 + $0x10f8] sm:$0xff] }
 0x4c9   : >> { %4021 = vmatprep.mubr.bf16.mxu1 %v5368_v31  ;;  %v2167_v31 = vunpack.c.l.s8.bf16 %v975_v5  ;;  %v986_v5 = vld [vmem:[%s4951_s30 + $0x10b0] sm:$0xff] }
 0x4ca   : >> { %3951 = vmatpush1.bf16.msra.mxu0 %v2090_v48  ;;  %v2118_v48 = vunpack.c.l.s8.bf16 %v950_v24 }
 0x4cb   : >> { %3992 = vmatpush1.bf16.msra.mxu1 %v2154_v26  ;;  %3952 = vmatprep.subr.bf16.mxu0 %v2095_v29  ;;  %v2182_v26 = vunpack.c.l.s8.bf16 %v982_v59 }
 0x4cc   : >> { %3993 = vmatprep.subr.bf16.mxu1 %v2159_v36  ;;  %v2187_v36 = vunpack.c.h.s8.bf16 %v983_v33 }
 0x4ce   : >> { %3953 = vmatpush1.bf16.msra.mxu0 %v2094_v52  ;;  %v2122_v52 = vunpack.c.h.s8.bf16 %v950_v24 }
 0x4cf   : >> { %3994 = vmatpush1.bf16.msra.mxu1 %v2158_v13  ;;  %3954 = vmatprep.subr.bf16.mxu0 %v2099_v44  ;;  %v2186_v13 = vunpack.c.h.s8.bf16 %v982_v59  ;;  %v2127_v44 = vunpack.c.l.s8.bf16 %v955_v62 }
 0x4d0   : >> { %3995 = vmatprep.subr.bf16.mxu1 %v2163_v2  ;;  %v2191_v2 = vunpack.c.l.s8.bf16 %v987_v4 }
 0x4d2   : >> { %3955 = vmatpush1.bf16.msra.mxu0 %v2098_v38  ;;  %v2126_v38 = vunpack.c.l.s8.bf16 %v954_v40 }
 0x4d3   : >> { %3996 = vmatpush1.bf16.msra.mxu1 %v2162_v53  ;;  %3956 = vmatprep.subr.bf16.mxu0 %v2103_v8  ;;  %v2190_v53 = vunpack.c.l.s8.bf16 %v986_v5  ;;  %v2131_v8 = vunpack.c.h.s8.bf16 %v955_v62 }
 0x4d4   : >> { %3997 = vmatprep.subr.bf16.mxu1 %v2167_v31  ;;  %v2195_v31 = vunpack.c.h.s8.bf16 %v987_v4 }
 0x4d6   : >> { %3957 = vmatpush1.bf16.msra.mxu0 %v2102_v54  ;;  %v2130_v54 = vunpack.c.h.s8.bf16 %v954_v40  ;;  %v1007_v40 = vld [vmem:[%s4951_s30 + $0x1158] sm:$0xff] }
 0x4d7   : >> { %3998 = vmatpush1.bf16.msra.mxu1 %v2166_v58  ;;  %3958 = vmatprep.subr.bf16.mxu0 %v2107_v41  ;;  %v2194_v58 = vunpack.c.h.s8.bf16 %v986_v5  ;;  %v2135_v41 = vunpack.c.l.s8.bf16 %v959_v34  ;;  %v1039_v5 = vld [vmem:[%s4951_s30 + $0x1258] sm:$0xff] }
 0x4d8   : >> { %3999 = vmatprep.subr.bf16.mxu1 %v2171_v16  ;;  %v3654_v60 = vpop.f32.mrb[56].mxu0  ;;  %v2199_v16 = vunpack.c.l.s8.bf16 %v991_v39 }
 0x4d9   : >> { %v3695_v45 = vpop.f32.mrb[56].mxu1  ;;  %v3655_v7 = vadd.f32 %v3654_v60, %v5790_v1  ;;  %v3656_v9 = vpop.f32.mrb[57].mxu0  ;;  %v2115_v1 = vunpack.c.h.s8.bf16 %v947_v17  ;;  %v958_v17 = vld [vmem:[%s4951_s30 + $0xfd0] sm:$0xff] }
 0x4da   : >> { %v3697_v15 = vpop.f32.mrb[57].mxu1  ;;  %v3657_v21 = vadd.f32 %v3656_v9, %v5792_v6  ;;  %v3658_v37 = vpop.f32.mrb[58].mxu0  ;;  %3959 = vmatpush1.bf16.msra.mxu0 %v2106_v22  ;;  %v951_v6 = vld [vmem:[%s4951_s30 + $0xf98] sm:$0xff]  ;;  %v2134_v22 = vunpack.c.l.s8.bf16 %v958_v17  ;;  %v2138_v60 = vunpack.c.h.s8.bf16 %v958_v17  ;;  %v2207_v9 = vunpack.c.l.s8.bf16 %v995_v49 }
 0x4db   : >> { %v3699_v19 = vpop.f32.mrb[58].mxu1  ;;  %4000 = vmatpush1.bf16.msra.mxu1 %v2170_v47  ;;  %v5832_v11 = vadd.f32 %v3695_v45, %v3655_v7  ;;  %v3659_v20 = vpop.f32.mrb[59].mxu0  ;;  %3960 = vmatprep.subr.bf16.mxu0 %v2111_v27  ;;  %v2119_v46 = vunpack.c.l.s8.bf16 %v951_v6  ;;  %v2123_v29 = vunpack.c.h.s8.bf16 %v951_v6  ;;  %v2198_v47 = vunpack.c.l.s8.bf16 %v990_v25 }
 0x4dc   : >> { %v3700_v57 = vpop.f32.mrb[59].mxu1  ;;  %4001 = vmatprep.subr.bf16.mxu1 %v2175_v3  ;;  %v5834_v30 = vadd.f32 %v3697_v15, %v3657_v21  ;;  %v2139_v27 = vunpack.c.h.s8.bf16 %v959_v34  ;;  %v2203_v3 = vunpack.c.h.s8.bf16 %v991_v39  ;;  %v2202_v45 = vunpack.c.h.s8.bf16 %v990_v25  ;;  %v962_v15 = vld [vmem:[%s4951_s30 + $0xff0] sm:$0xff]  ;;  %v999_v20 = vld [vmem:[%s4951_s30 + $0x1118] sm:$0xff] }
 0x4dd   : >> { %v2143_v7 = vunpack.c.l.s8.bf16 %v963_v28  ;;  %v994_v21 = vld [vmem:[%s4951_s30 + $0x10f0] sm:$0xff]  ;;  %v2142_v37 = vunpack.c.l.s8.bf16 %v962_v15  ;;  %v1031_v57 = vld [vmem:[%s4951_s30 + $0x1218] sm:$0xff]  ;;  %v2215_v6 = vunpack.c.l.s8.bf16 %v999_v20  ;;  %v2219_v24 = vunpack.c.h.s8.bf16 %v999_v20 }
 0x4de   : >> { %3961 = vmatpush1.bf16.msra.mxu0 %v2110_v56  ;;  %v2206_v19 = vunpack.c.l.s8.bf16 %v994_v21  ;;  %v2147_v56 = vunpack.c.h.s8.bf16 %v963_v28  ;;  %v2279_v33 = vunpack.c.l.s8.bf16 %v1031_v57  ;;  %v2283_v59 = vunpack.c.h.s8.bf16 %v1031_v57 }
 0x4df   : >> { %4002 = vmatpush1.bf16.msra.mxu1 %v2174_v61  ;;  %3962 = vmatprep.subr.bf16.mxu0 %v2115_v1  ;;  %v2211_v61 = vunpack.c.h.s8.bf16 %v995_v49  ;;  %v2146_v1 = vunpack.c.h.s8.bf16 %v962_v15 }
 0x4e0   : >> { %4003 = vmatprep.subr.bf16.mxu1 %v2179_v42  ;;  %v2210_v42 = vunpack.c.h.s8.bf16 %v994_v21 }
 0x4e2   : >> { %3963 = vmatpush1.bf16.msra.mxu0 %v2114_v55  ;;  %v998_v55 = vld [vmem:[%s4951_s30 + $0x1110] sm:$0xff] }
 0x4e3   : >> { %4004 = vmatpush1.bf16.msra.mxu1 %v2178_v23  ;;  %3964 = vmatprep.subr.bf16.mxu0 %v2119_v46  ;;  %v1030_v23 = vld [vmem:[%s4951_s30 + $0x1210] sm:$0xff]  ;;  %v2214_v46 = vunpack.c.l.s8.bf16 %v998_v55 }
 0x4e4   : >> { %4005 = vmatprep.subr.bf16.mxu1 %v2183_v51  ;;  %v2278_v51 = vunpack.c.l.s8.bf16 %v1030_v23 }
 0x4e6   : >> { %3965 = vmatpush1.bf16.msra.mxu0 %v2118_v48  ;;  %v1003_v48 = vld [vmem:[%s4951_s30 + $0x1138] sm:$0xff] }
 0x4e7   : >> { %4006 = vmatpush1.bf16.msra.mxu1 %v2182_v26  ;;  %3966 = vmatprep.subr.bf16.mxu0 %v2123_v29  ;;  %v1035_v26 = vld [vmem:[%s4951_s30 + $0x1238] sm:$0xff]  ;;  %v2218_v29 = vunpack.c.h.s8.bf16 %v998_v55  ;;  %v2223_v62 = vunpack.c.l.s8.bf16 %v1003_v48 }
 0x4e8   : >> { %4007 = vmatprep.subr.bf16.mxu1 %v2187_v36  ;;  %v2282_v36 = vunpack.c.h.s8.bf16 %v1030_v23  ;;  %v2287_v4 = vunpack.c.l.s8.bf16 %v1035_v26 }
 0x4ea   : >> { %3967 = vmatpush1.bf16.msra.mxu0 %v2122_v52  ;;  %v1002_v52 = vld [vmem:[%s4951_s30 + $0x1130] sm:$0xff] }
 0x4eb   : >> { %4008 = vmatpush1.bf16.msra.mxu1 %v2186_v13  ;;  %3968 = vmatprep.subr.bf16.mxu0 %v2127_v44  ;;  %v1034_v13 = vld [vmem:[%s4951_s30 + $0x1230] sm:$0xff]  ;;  %v2227_v44 = vunpack.c.h.s8.bf16 %v1003_v48 }
 0x4ec   : >> { %4009 = vmatprep.subr.bf16.mxu1 %v2191_v2  ;;  %v2291_v2 = vunpack.c.h.s8.bf16 %v1035_v26 }
 0x4ee   : >> { %3969 = vmatpush1.bf16.msra.mxu0 %v2126_v38  ;;  %v2226_v38 = vunpack.c.h.s8.bf16 %v1002_v52 }
 0x4ef   : >> { %4010 = vmatpush1.bf16.msra.mxu1 %v2190_v53  ;;  %3970 = vmatprep.subr.bf16.mxu0 %v2131_v8  ;;  %v2290_v53 = vunpack.c.h.s8.bf16 %v1034_v13  ;;  %v1006_v8 = vld [vmem:[%s4951_s30 + $0x1150] sm:$0xff] }
 0x4f0   : >> { %4011 = vmatprep.subr.bf16.mxu1 %v2195_v31  ;;  %v1038_v31 = vld [vmem:[%s4951_s30 + $0x1250] sm:$0xff]  ;;  %v2230_v34 = vunpack.c.l.s8.bf16 %v1006_v8  ;;  %v2234_v17 = vunpack.c.h.s8.bf16 %v1006_v8 }
 0x4f1   : >> { %v2294_v39 = vunpack.c.l.s8.bf16 %v1038_v31  ;;  %v2298_v25 = vunpack.c.h.s8.bf16 %v1038_v31 }
 0x4f2   : >> { %3971 = vmatpush1.bf16.msra.mxu0 %v2130_v54  ;;  %v2235_v54 = vunpack.c.h.s8.bf16 %v1007_v40 }
 0x4f3   : >> { %4012 = vmatpush1.bf16.msra.mxu1 %v2194_v58  ;;  %3972 = vmatprep.subr.bf16.mxu0 %v2135_v41  ;;  %v2299_v58 = vunpack.c.h.s8.bf16 %v1039_v5  ;;  %v1011_v41 = vld [vmem:[%s4951_s30 + $0x1178] sm:$0xff] }
 0x4f4   : >> { %4013 = vmatprep.subr.bf16.mxu1 %v2199_v16  ;;  %v1043_v16 = vld [vmem:[%s4951_s30 + $0x1278] sm:$0xff] }
 0x4f5   : >> { %v2307_v57 = vunpack.c.h.s8.bf16 %v1043_v16 }
 0x4f6   : >> { %3973 = vmatpush1.bf16.msra.mxu0 %v2134_v22  ;;  %v2239_v22 = vunpack.c.l.s8.bf16 %v1011_v41 }
 0x4f7   : >> { %4014 = vmatpush1.bf16.msra.mxu1 %v2198_v47  ;;  %3974 = vmatprep.subr.bf16.mxu0 %v2139_v27  ;;  %v2303_v47 = vunpack.c.l.s8.bf16 %v1043_v16  ;;  %v1010_v27 = vld [vmem:[%s4951_s30 + $0x1170] sm:$0xff] }
 0x4f8   : >> { %4015 = vmatprep.subr.bf16.mxu1 %v2203_v3  ;;  %v1042_v3 = vld [vmem:[%s4951_s30 + $0x1270] sm:$0xff] }
 0x4fa   : >> { %3975 = vmatpush1.bf16.msra.mxu0 %v2138_v60 }
 0x4fb   : >> { %4016 = vmatpush1.bf16.msra.mxu1 %v2202_v45  ;;  %3976 = vmatprep.subr.bf16.mxu0 %v2143_v7 }
 0x4fc   : >> { %4017 = vmatprep.subr.bf16.mxu1 %v2207_v9 }
 0x4fe   : >> { %3977 = vmatpush1.bf16.msra.mxu0 %v2142_v37  ;;  %v2238_v37 = vunpack.c.l.s8.bf16 %v1010_v27 }
 0x4ff   : >> { %4018 = vmatpush1.bf16.msra.mxu1 %v2206_v19  ;;  %3978 = vmatprep.subr.bf16.mxu0 %v2147_v56  ;;  %v2302_v19 = vunpack.c.l.s8.bf16 %v1042_v3 }
 0x500   : >> { %4019 = vmatprep.subr.bf16.mxu1 %v2211_v61 }
 0x502   : >> { %3979 = vmatpush1.bf16.msra.mxu0 %v2146_v1 }
 0x503   : >> { %4020 = vmatpush1.bf16.msra.mxu1 %v2210_v42  ;;  %4030 = vmatprep.subr.bf16.mxu0 %v2215_v6  ;;  %v1047_v42 = vld [vmem:[%s4951_s30 + $0x1298] sm:$0xff]  ;;  %v2242_v6 = vunpack.c.h.s8.bf16 %v1010_v27 }
 0x504   : >> { %4071 = vmatprep.subr.bf16.mxu1 %v2279_v33  ;;  %v2306_v33 = vunpack.c.h.s8.bf16 %v1042_v3  ;;  %v2311_v23 = vunpack.c.l.s8.bf16 %v1047_v42  ;;  %v2315_v26 = vunpack.c.h.s8.bf16 %v1047_v42 }
 0x505   : >> { %3981 = vmatmul.mubr.bf16.vlgmr.msra.gmra.mrb[72].mxu0 %v5362_v14  ;;  %v2222_v14 = vunpack.c.l.s8.bf16 %v1002_v52 }
 0x506   : >> { %4022 = vmatmul.mubr.bf16.vlgmr.msra.gmra.mrb[72].mxu1 %v5414_v18  ;;  %4031 = vmatpush1.bf16.msra.mxu0 %v2214_v46  ;;  %v2286_v18 = vunpack.c.l.s8.bf16 %v1034_v13  ;;  %v1014_v46 = vld [vmem:[%s4951_s30 + $0x1190] sm:$0xff] }
 0x507   : >> { %4072 = vmatpush1.bf16.msra.mxu1 %v2278_v51  ;;  %4032 = vmatprep.subr.bf16.mxu0 %v2219_v24  ;;  %v1046_v51 = vld [vmem:[%s4951_s30 + $0x1290] sm:$0xff]  ;;  %v2246_v24 = vunpack.c.l.s8.bf16 %v1014_v46 }
 0x508   : >> { %4073 = vmatprep.subr.bf16.mxu1 %v2283_v59  ;;  %4062 = vmatprep.mubr.bf16.mxu0 %v5370_v32  ;;  %v2231_v32 = vunpack.c.l.s8.bf16 %v1007_v40  ;;  %v2310_v59 = vunpack.c.l.s8.bf16 %v1046_v51 }
 0x509   : >> { %4103 = vmatprep.mubr.bf16.mxu1 %v5422_v35  ;;  %v2295_v35 = vunpack.c.l.s8.bf16 %v1039_v5 }
 0x50a   : >> { %4033 = vmatpush1.bf16.msra.mxu0 %v2218_v29  ;;  %v1019_v29 = vld [vmem:[%s4951_s30 + $0x11b8] sm:$0xff] }
 0x50b   : >> { %4074 = vmatpush1.bf16.msra.mxu1 %v2282_v36  ;;  %4034 = vmatprep.subr.bf16.mxu0 %v2223_v62  ;;  %v1051_v36 = vld [vmem:[%s4951_s30 + $0x12b8] sm:$0xff]  ;;  %v2250_v62 = vunpack.c.h.s8.bf16 %v1014_v46  ;;  %v2255_v52 = vunpack.c.l.s8.bf16 %v1019_v29  ;;  %v2259_v40 = vunpack.c.h.s8.bf16 %v1019_v29 }
 0x50c   : >> { %4075 = vmatprep.subr.bf16.mxu1 %v2287_v4  ;;  %v2314_v4 = vunpack.c.h.s8.bf16 %v1046_v51  ;;  %v2319_v13 = vunpack.c.l.s8.bf16 %v1051_v36  ;;  %v2323_v5 = vunpack.c.h.s8.bf16 %v1051_v36 }
 0x50e   : >> { %4035 = vmatpush1.bf16.msra.mxu0 %v2222_v14  ;;  %v1018_v14 = vld [vmem:[%s4951_s30 + $0x11b0] sm:$0xff] }
 0x50f   : >> { %4076 = vmatpush1.bf16.msra.mxu1 %v2286_v18  ;;  %4036 = vmatprep.subr.bf16.mxu0 %v2227_v44  ;;  %v1050_v18 = vld [vmem:[%s4951_s30 + $0x12b0] sm:$0xff]  ;;  %v2254_v44 = vunpack.c.l.s8.bf16 %v1018_v14 }
 0x510   : >> { %4077 = vmatprep.subr.bf16.mxu1 %v2291_v2  ;;  %v2318_v2 = vunpack.c.l.s8.bf16 %v1050_v18 }
 0x512   : >> { %4037 = vmatpush1.bf16.msra.mxu0 %v2226_v38  ;;  %v1023_v38 = vld [vmem:[%s4951_s30 + $0x11d8] sm:$0xff] }
 0x513   : >> { %4078 = vmatpush1.bf16.msra.mxu1 %v2290_v53  ;;  %4038 = vmatprep.subr.bf16.mxu0 %v2231_v32  ;;  %v1055_v53 = vld [vmem:[%s4951_s30 + $0x12d8] sm:$0xff]  ;;  %v2258_v32 = vunpack.c.h.s8.bf16 %v1018_v14  ;;  %v2263_v8 = vunpack.c.l.s8.bf16 %v1023_v38  ;;  %v1070_v14 = vld [vmem:[%s4951_s30 + $0x1350] sm:$0xff] }
 0x514   : >> { %4079 = vmatprep.subr.bf16.mxu1 %v2295_v35  ;;  %v2322_v35 = vunpack.c.h.s8.bf16 %v1050_v18  ;;  %v2327_v31 = vunpack.c.l.s8.bf16 %v1055_v53  ;;  %v2331_v16 = vunpack.c.h.s8.bf16 %v1055_v53  ;;  %v1102_v18 = vld [vmem:[%s4951_s30 + $0x1450] sm:$0xff]  ;;  %v1107_v53 = vld [vmem:[%s4951_s30 + $0x1478] sm:$0xff] }
 0x516   : >> { %4039 = vmatpush1.bf16.msra.mxu0 %v2230_v34  ;;  %v1022_v34 = vld [vmem:[%s4951_s30 + $0x11d0] sm:$0xff] }
 0x517   : >> { %4080 = vmatpush1.bf16.msra.mxu1 %v2294_v39  ;;  %4040 = vmatprep.subr.bf16.mxu0 %v2235_v54  ;;  %v1054_v39 = vld [vmem:[%s4951_s30 + $0x12d0] sm:$0xff]  ;;  %v2262_v54 = vunpack.c.l.s8.bf16 %v1022_v34 }
 0x518   : >> { %4081 = vmatprep.subr.bf16.mxu1 %v2299_v58  ;;  %v3736_v28 = vpop.f32.mrb[60].mxu0  ;;  %v2326_v58 = vunpack.c.l.s8.bf16 %v1054_v39 }
 0x519   : >> { %v3777_v49 = vpop.f32.mrb[60].mxu1  ;;  %v3737_v60 = vadd.f32 %v3736_v28, %v5832_v11  ;;  %v3738_v45 = vpop.f32.mrb[61].mxu0  ;;  %v2243_v11 = vunpack.c.h.s8.bf16 %v1011_v41  ;;  %v2267_v41 = vunpack.c.h.s8.bf16 %v1023_v38  ;;  %v1026_v28 = vld [vmem:[%s4951_s30 + $0x11f0] sm:$0xff]  ;;  %v1075_v38 = vld [vmem:[%s4951_s30 + $0x1378] sm:$0xff] }
 0x51a   : >> { %v3779_v7 = vpop.f32.mrb[61].mxu1  ;;  %v3739_v9 = vadd.f32 %v3738_v45, %v5834_v30  ;;  %v3740_v15 = vpop.f32.mrb[62].mxu0  ;;  %4041 = vmatpush1.bf16.msra.mxu0 %v2234_v17  ;;  %v1015_v30 = vld [vmem:[%s4951_s30 + $0x1198] sm:$0xff] }
 0x51b   : >> { %v3781_v21 = vpop.f32.mrb[62].mxu1  ;;  %4082 = vmatpush1.bf16.msra.mxu1 %v2298_v25  ;;  %v5874_v56 = vadd.f32 %v3777_v49, %v3737_v60  ;;  %v3741_v61 = vpop.f32.mrb[63].mxu0  ;;  %4042 = vmatprep.subr.bf16.mxu0 %v2239_v22  ;;  %v2247_v55 = vunpack.c.l.s8.bf16 %v1015_v30  ;;  %v2251_v48 = vunpack.c.h.s8.bf16 %v1015_v30  ;;  %v1027_v17 = vld [vmem:[%s4951_s30 + $0x11f8] sm:$0xff]  ;;  %v2266_v22 = vunpack.c.h.s8.bf16 %v1022_v34  ;;  %v1058_v49 = vld [vmem:[%s4951_s30 + $0x12f0] sm:$0xff] }
 0x51c   : >> { %v3782_v20 = vpop.f32.mrb[63].mxu1  ;;  %4083 = vmatprep.subr.bf16.mxu1 %v2303_v47  ;;  %v5876_v1 = vadd.f32 %v3779_v7, %v3739_v9  ;;  %v1059_v25 = vld [vmem:[%s4951_s30 + $0x12f8] sm:$0xff]  ;;  %v2330_v47 = vunpack.c.h.s8.bf16 %v1054_v39  ;;  %v2271_v27 = vunpack.c.l.s8.bf16 %v1027_v17  ;;  %v2270_v60 = vunpack.c.l.s8.bf16 %v1026_v28  ;;  %v1074_v34 = vld [vmem:[%s4951_s30 + $0x1370] sm:$0xff] }
 0x51d   : >> { %v2335_v3 = vunpack.c.l.s8.bf16 %v1059_v25  ;;  %v2334_v45 = vunpack.c.l.s8.bf16 %v1058_v49  ;;  %v2275_v7 = vunpack.c.h.s8.bf16 %v1027_v17  ;;  %v2339_v9 = vunpack.c.h.s8.bf16 %v1059_v25  ;;  %v1063_v15 = vld [vmem:[%s4951_s30 + $0x1318] sm:$0xff]  ;;  %v1106_v39 = vld [vmem:[%s4951_s30 + $0x1470] sm:$0xff] }
 0x51e   : >> { %4043 = vmatpush1.bf16.msra.mxu0 %v2238_v37  ;;  %v1095_v21 = vld [vmem:[%s4951_s30 + $0x1418] sm:$0xff]  ;;  %v2274_v37 = vunpack.c.h.s8.bf16 %v1026_v28  ;;  %v2343_v61 = vunpack.c.l.s8.bf16 %v1063_v15 }
 0x51f   : >> { %4084 = vmatpush1.bf16.msra.mxu1 %v2302_v19  ;;  %4044 = vmatprep.subr.bf16.mxu0 %v2243_v11  ;;  %v2338_v19 = vunpack.c.h.s8.bf16 %v1058_v49  ;;  %v2407_v20 = vunpack.c.l.s8.bf16 %v1095_v21  ;;  %v1062_v11 = vld [vmem:[%s4951_s30 + $0x1310] sm:$0xff] }
 0x520   : >> { %4085 = vmatprep.subr.bf16.mxu1 %v2307_v57  ;;  %v1094_v57 = vld [vmem:[%s4951_s30 + $0x1410] sm:$0xff]  ;;  %v2342_v30 = vunpack.c.l.s8.bf16 %v1062_v11  ;;  %v2346_v46 = vunpack.c.h.s8.bf16 %v1062_v11 }
 0x521   : >> { %v2406_v42 = vunpack.c.l.s8.bf16 %v1094_v57  ;;  %v2410_v51 = vunpack.c.h.s8.bf16 %v1094_v57 }
 0x522   : >> { %4045 = vmatpush1.bf16.msra.mxu0 %v2242_v6  ;;  %v2347_v6 = vunpack.c.h.s8.bf16 %v1063_v15  ;;  %v2370_v15 = vunpack.c.h.s8.bf16 %v1074_v34 }
 0x523   : >> { %4086 = vmatpush1.bf16.msra.mxu1 %v2306_v33  ;;  %4046 = vmatprep.subr.bf16.mxu0 %v2247_v55  ;;  %v2411_v33 = vunpack.c.h.s8.bf16 %v1095_v21  ;;  %v1067_v55 = vld [vmem:[%s4951_s30 + $0x1338] sm:$0xff]  ;;  %v2434_v21 = vunpack.c.h.s8.bf16 %v1106_v39 }
 0x524   : >> { %4087 = vmatprep.subr.bf16.mxu1 %v2311_v23  ;;  %v1099_v23 = vld [vmem:[%s4951_s30 + $0x1438] sm:$0xff]  ;;  %v2355_v29 = vunpack.c.h.s8.bf16 %v1067_v55 }
 0x525   : >> { %v2419_v36 = vunpack.c.h.s8.bf16 %v1099_v23 }
 0x526   : >> { %4047 = vmatpush1.bf16.msra.mxu0 %v2246_v24  ;;  %v2351_v24 = vunpack.c.l.s8.bf16 %v1067_v55 }
 0x527   : >> { %4088 = vmatpush1.bf16.msra.mxu1 %v2310_v59  ;;  %4048 = vmatprep.subr.bf16.mxu0 %v2251_v48  ;;  %v2415_v59 = vunpack.c.l.s8.bf16 %v1099_v23  ;;  %v1066_v48 = vld [vmem:[%s4951_s30 + $0x1330] sm:$0xff] }
 0x528   : >> { %4089 = vmatprep.subr.bf16.mxu1 %v2315_v26  ;;  %v1098_v26 = vld [vmem:[%s4951_s30 + $0x1430] sm:$0xff] }
 0x52a   : >> { %4049 = vmatpush1.bf16.msra.mxu0 %v2250_v62  ;;  %v1071_v62 = vld [vmem:[%s4951_s30 + $0x1358] sm:$0xff] }
 0x52b   : >> { %4090 = vmatpush1.bf16.msra.mxu1 %v2314_v4  ;;  %4050 = vmatprep.subr.bf16.mxu0 %v2255_v52  ;;  %v1103_v4 = vld [vmem:[%s4951_s30 + $0x1458] sm:$0xff]  ;;  %v2354_v52 = vunpack.c.h.s8.bf16 %v1066_v48 }
 0x52c   : >> { %4091 = vmatprep.subr.bf16.mxu1 %v2319_v13  ;;  %v2418_v13 = vunpack.c.h.s8.bf16 %v1098_v26 }
 0x52e   : >> { %4051 = vmatpush1.bf16.msra.mxu0 %v2254_v44  ;;  %v2358_v44 = vunpack.c.l.s8.bf16 %v1070_v14 }
 0x52f   : >> { %4092 = vmatpush1.bf16.msra.mxu1 %v2318_v2  ;;  %4052 = vmatprep.subr.bf16.mxu0 %v2259_v40  ;;  %v2422_v2 = vunpack.c.l.s8.bf16 %v1102_v18  ;;  %v2363_v40 = vunpack.c.h.s8.bf16 %v1071_v62 }
 0x530   : >> { %4093 = vmatprep.subr.bf16.mxu1 %v2323_v5  ;;  %v2427_v5 = vunpack.c.h.s8.bf16 %v1103_v4 }
 0x532   : >> { %4053 = vmatpush1.bf16.msra.mxu0 %v2258_v32  ;;  %v2362_v32 = vunpack.c.h.s8.bf16 %v1070_v14 }
 0x533   : >> { %4094 = vmatpush1.bf16.msra.mxu1 %v2322_v35  ;;  %4054 = vmatprep.subr.bf16.mxu0 %v2263_v8  ;;  %v2426_v35 = vunpack.c.h.s8.bf16 %v1102_v18  ;;  %v2367_v8 = vunpack.c.l.s8.bf16 %v1075_v38 }
 0x534   : >> { %4095 = vmatprep.subr.bf16.mxu1 %v2327_v31  ;;  %v2431_v31 = vunpack.c.l.s8.bf16 %v1107_v53 }
 0x536   : >> { %4055 = vmatpush1.bf16.msra.mxu0 %v2262_v54 }
 0x537   : >> { %4096 = vmatpush1.bf16.msra.mxu1 %v2326_v58  ;;  %4056 = vmatprep.subr.bf16.mxu0 %v2267_v41 }
 0x538   : >> { %4097 = vmatprep.subr.bf16.mxu1 %v2331_v16 }
 0x53a   : >> { %4057 = vmatpush1.bf16.msra.mxu0 %v2266_v22 }
 0x53b   : >> { %4098 = vmatpush1.bf16.msra.mxu1 %v2330_v47  ;;  %4058 = vmatprep.subr.bf16.mxu0 %v2271_v27  ;;  %v2366_v27 = vunpack.c.l.s8.bf16 %v1074_v34 }
 0x53c   : >> { %4099 = vmatprep.subr.bf16.mxu1 %v2335_v3  ;;  %v2430_v3 = vunpack.c.l.s8.bf16 %v1106_v39 }
 0x53e   : >> { %4059 = vmatpush1.bf16.msra.mxu0 %v2270_v60 }
 0x53f   : >> { %4100 = vmatpush1.bf16.msra.mxu1 %v2334_v45  ;;  %4060 = vmatprep.subr.bf16.mxu0 %v2275_v7  ;;  %v2435_v45 = vunpack.c.h.s8.bf16 %v1107_v53 }
 0x540   : >> { %4101 = vmatprep.subr.bf16.mxu1 %v2339_v9  ;;  %v1111_v9 = vld [vmem:[%s4951_s30 + $0x1498] sm:$0xff] }
 0x542   : >> { %4061 = vmatpush1.bf16.msra.mxu0 %v2274_v37 }
 0x543   : >> { %4102 = vmatpush1.bf16.msra.mxu1 %v2338_v19  ;;  %4112 = vmatprep.subr.bf16.mxu0 %v2343_v61  ;;  %v2439_v19 = vunpack.c.l.s8.bf16 %v1111_v9  ;;  %v1078_v61 = vld [vmem:[%s4951_s30 + $0x1390] sm:$0xff] }
 0x544   : >> { %4153 = vmatprep.subr.bf16.mxu1 %v2407_v20  ;;  %v1110_v20 = vld [vmem:[%s4951_s30 + $0x1490] sm:$0xff]  ;;  %v2374_v11 = vunpack.c.l.s8.bf16 %v1078_v61  ;;  %v2378_v55 = vunpack.c.h.s8.bf16 %v1078_v61 }
 0x545   : >> { %4063 = vmatmul.mubr.bf16.vlgmr.msra.gmra.mrb[76].mxu0 %v5416_v12  ;;  %v2350_v12 = vunpack.c.l.s8.bf16 %v1066_v48  ;;  %v2438_v57 = vunpack.c.l.s8.bf16 %v1110_v20  ;;  %v2442_v23 = vunpack.c.h.s8.bf16 %v1110_v20 }
 0x546   : >> { %4104 = vmatmul.mubr.bf16.vlgmr.msra.gmra.mrb[76].mxu1 %v5468_v50  ;;  %4113 = vmatpush1.bf16.msra.mxu0 %v2342_v30  ;;  %v2414_v50 = vunpack.c.l.s8.bf16 %v1098_v26 }
 0x547   : >> { %4154 = vmatpush1.bf16.msra.mxu1 %v2406_v42  ;;  %4114 = vmatprep.subr.bf16.mxu0 %v2347_v6  ;;  %v2443_v42 = vunpack.c.h.s8.bf16 %v1111_v9  ;;  %v1083_v6 = vld [vmem:[%s4951_s30 + $0x13b8] sm:$0xff] }
 0x548   : >> { %4155 = vmatprep.subr.bf16.mxu1 %v2411_v33  ;;  %4144 = vmatprep.mubr.bf16.mxu0 %v5424_v43  ;;  %v2359_v43 = vunpack.c.l.s8.bf16 %v1071_v62  ;;  %v1115_v33 = vld [vmem:[%s4951_s30 + $0x14b8] sm:$0xff] }
 0x549   : >> { %4185 = vmatprep.mubr.bf16.mxu1 %v5475_v10  ;;  %v2423_v10 = vunpack.c.l.s8.bf16 %v1103_v4 }
 0x54a   : >> { %4115 = vmatpush1.bf16.msra.mxu0 %v2346_v46  ;;  %v2383_v46 = vunpack.c.l.s8.bf16 %v1083_v6 }
 0x54b   : >> { %4156 = vmatpush1.bf16.msra.mxu1 %v2410_v51  ;;  %4116 = vmatprep.subr.bf16.mxu0 %v2351_v24  ;;  %v2447_v51 = vunpack.c.l.s8.bf16 %v1115_v33  ;;  %v1082_v24 = vld [vmem:[%s4951_s30 + $0x13b0] sm:$0xff] }
 0x54c   : >> { %4157 = vmatprep.subr.bf16.mxu1 %v2415_v59  ;;  %v1114_v59 = vld [vmem:[%s4951_s30 + $0x14b0] sm:$0xff]  ;;  %v2382_v48 = vunpack.c.l.s8.bf16 %v1082_v24  ;;  %v2386_v62 = vunpack.c.h.s8.bf16 %v1082_v24 }
 0x54d   : >> { %v2446_v26 = vunpack.c.l.s8.bf16 %v1114_v59  ;;  %v2450_v4 = vunpack.c.h.s8.bf16 %v1114_v59 }
 0x54e   : >> { %4117 = vmatpush1.bf16.msra.mxu0 %v2350_v12  ;;  %v2387_v12 = vunpack.c.h.s8.bf16 %v1083_v6 }
 0x54f   : >> { %4158 = vmatpush1.bf16.msra.mxu1 %v2414_v50  ;;  %4118 = vmatprep.subr.bf16.mxu0 %v2355_v29  ;;  %v2451_v50 = vunpack.c.h.s8.bf16 %v1115_v33  ;;  %v1087_v29 = vld [vmem:[%s4951_s30 + $0x13d8] sm:$0xff] }
 0x550   : >> { %4159 = vmatprep.subr.bf16.mxu1 %v2419_v36  ;;  %v1119_v36 = vld [vmem:[%s4951_s30 + $0x14d8] sm:$0xff] }
 0x552   : >> { %4119 = vmatpush1.bf16.msra.mxu0 %v2354_v52  ;;  %v2391_v52 = vunpack.c.l.s8.bf16 %v1087_v29 }
 0x553   : >> { %4160 = vmatpush1.bf16.msra.mxu1 %v2418_v13  ;;  %4120 = vmatprep.subr.bf16.mxu0 %v2359_v43  ;;  %v2455_v13 = vunpack.c.l.s8.bf16 %v1119_v36  ;;  %v1086_v43 = vld [vmem:[%s4951_s30 + $0x13d0] sm:$0xff] }
 0x554   : >> { %4161 = vmatprep.subr.bf16.mxu1 %v2423_v10  ;;  %v1118_v10 = vld [vmem:[%s4951_s30 + $0x14d0] sm:$0xff]  ;;  %v2390_v14 = vunpack.c.l.s8.bf16 %v1086_v43 }
 0x555   : >> { %v2454_v18 = vunpack.c.l.s8.bf16 %v1118_v10  ;;  %v2458_v53 = vunpack.c.h.s8.bf16 %v1118_v10 }
 0x556   : >> { %4121 = vmatpush1.bf16.msra.mxu0 %v2358_v44  ;;  %v2395_v44 = vunpack.c.h.s8.bf16 %v1087_v29 }
 0x557   : >> { %4162 = vmatpush1.bf16.msra.mxu1 %v2422_v2  ;;  %4122 = vmatprep.subr.bf16.mxu0 %v2363_v40  ;;  %v2459_v2 = vunpack.c.h.s8.bf16 %v1119_v36  ;;  %v1091_v40 = vld [vmem:[%s4951_s30 + $0x13f8] sm:$0xff] }
 0x558   : >> { %4163 = vmatprep.subr.bf16.mxu1 %v2427_v5  ;;  %v3818_v54 = vpop.f32.mrb[64].mxu0  ;;  %v1123_v5 = vld [vmem:[%s4951_s30 + $0x14f8] sm:$0xff] }
 0x559   : >> { %v3859_v58 = vpop.f32.mrb[64].mxu1  ;;  %v3819_v41 = vadd.f32 %v3818_v54, %v5874_v56  ;;  %v3820_v16 = vpop.f32.mrb[65].mxu0  ;;  %v2371_v56 = vunpack.c.h.s8.bf16 %v1075_v38  ;;  %v2394_v38 = vunpack.c.h.s8.bf16 %v1086_v43  ;;  %v2403_v54 = vunpack.c.h.s8.bf16 %v1091_v40 }
 0x55a   : >> { %v3861_v17 = vpop.f32.mrb[65].mxu1  ;;  %v3821_v25 = vadd.f32 %v3820_v16, %v5876_v1  ;;  %v3822_v22 = vpop.f32.mrb[66].mxu0  ;;  %4123 = vmatpush1.bf16.msra.mxu0 %v2362_v32  ;;  %v1079_v1 = vld [vmem:[%s4951_s30 + $0x1398] sm:$0xff]  ;;  %v2399_v32 = vunpack.c.l.s8.bf16 %v1091_v40 }
 0x55b   : >> { %v3863_v47 = vpop.f32.mrb[66].mxu1  ;;  %4164 = vmatpush1.bf16.msra.mxu1 %v2426_v35  ;;  %v5916_v28 = vadd.f32 %v3859_v58, %v3819_v41  ;;  %v3823_v49 = vpop.f32.mrb[67].mxu0  ;;  %4124 = vmatprep.subr.bf16.mxu0 %v2367_v8  ;;  %v2375_v37 = vunpack.c.l.s8.bf16 %v1079_v1  ;;  %v2379_v30 = vunpack.c.h.s8.bf16 %v1079_v1  ;;  %v2463_v35 = vunpack.c.l.s8.bf16 %v1123_v5  ;;  %v1090_v8 = vld [vmem:[%s4951_s30 + $0x13f0] sm:$0xff] }
 0x55c   : >> { %v3864_v60 = vpop.f32.mrb[67].mxu1  ;;  %4165 = vmatprep.subr.bf16.mxu1 %v2431_v31  ;;  %v5918_v7 = vadd.f32 %v3861_v17, %v3821_v25  ;;  %v1122_v31 = vld [vmem:[%s4951_s30 + $0x14f0] sm:$0xff]  ;;  %v2398_v34 = vunpack.c.l.s8.bf16 %v1090_v8  ;;  %v2467_v58 = vunpack.c.h.s8.bf16 %v1123_v5  ;;  %v2402_v41 = vunpack.c.h.s8.bf16 %v1090_v8 }
 0x55d   : >> { %v2462_v39 = vunpack.c.l.s8.bf16 %v1122_v31  ;;  %v2466_v16 = vunpack.c.h.s8.bf16 %v1122_v31 }
 0x55e   : >> { %4125 = vmatpush1.bf16.msra.mxu0 %v2366_v27 }
 0x55f   : >> { %4166 = vmatpush1.bf16.msra.mxu1 %v2430_v3  ;;  %4126 = vmatprep.subr.bf16.mxu0 %v2371_v56 }
 0x560   : >> { %4167 = vmatprep.subr.bf16.mxu1 %v2435_v45 }
 0x562   : >> { %4127 = vmatpush1.bf16.msra.mxu0 %v2370_v15 }
 0x563   : >> { %4168 = vmatpush1.bf16.msra.mxu1 %v2434_v21  ;;  %4128 = vmatprep.subr.bf16.mxu0 %v2375_v37 }
 0x564   : >> { %4169 = vmatprep.subr.bf16.mxu1 %v2439_v19 }
 0x566   : >> { %4129 = vmatpush1.bf16.msra.mxu0 %v2374_v11 }
 0x567   : >> { %4170 = vmatpush1.bf16.msra.mxu1 %v2438_v57  ;;  %4130 = vmatprep.subr.bf16.mxu0 %v2379_v30 }
 0x568   : >> { %4171 = vmatprep.subr.bf16.mxu1 %v2443_v42 }
 0x56a   : >> { %4131 = vmatpush1.bf16.msra.mxu0 %v2378_v55 }
 0x56b   : >> { %4172 = vmatpush1.bf16.msra.mxu1 %v2442_v23  ;;  %4132 = vmatprep.subr.bf16.mxu0 %v2383_v46 }
 0x56c   : >> { %4173 = vmatprep.subr.bf16.mxu1 %v2447_v51 }
 0x56e   : >> { %4133 = vmatpush1.bf16.msra.mxu0 %v2382_v48 }
 0x56f   : >> { %4174 = vmatpush1.bf16.msra.mxu1 %v2446_v26  ;;  %4134 = vmatprep.subr.bf16.mxu0 %v2387_v12 }
 0x570   : >> { %4175 = vmatprep.subr.bf16.mxu1 %v2451_v50 }
 0x572   : >> { %4135 = vmatpush1.bf16.msra.mxu0 %v2386_v62 }
 0x573   : >> { %4176 = vmatpush1.bf16.msra.mxu1 %v2450_v4  ;;  %4136 = vmatprep.subr.bf16.mxu0 %v2391_v52  ;;  %v2470_v4 = vld [vmem:[#allocation2 + $0x10] sm:$0xff] }
 0x574   : >> { %4177 = vmatprep.subr.bf16.mxu1 %v2455_v13 }
 0x576   : >> { %4137 = vmatpush1.bf16.msra.mxu0 %v2390_v14  ;;  %v2471_v14 = vld [vmem:[#allocation2 + $0x18] sm:$0xff] }
 0x577   : >> { %4178 = vmatpush1.bf16.msra.mxu1 %v2454_v18  ;;  %4138 = vmatprep.subr.bf16.mxu0 %v2395_v44 }
 0x578   : >> { %4179 = vmatprep.subr.bf16.mxu1 %v2459_v2 }
 0x57a   : >> { %4139 = vmatpush1.bf16.msra.mxu0 %v2394_v38 }
 0x57b   : >> { %4180 = vmatpush1.bf16.msra.mxu1 %v2458_v53  ;;  %4140 = vmatprep.subr.bf16.mxu0 %v2399_v32 }
 0x57c   : >> { %4181 = vmatprep.subr.bf16.mxu1 %v2463_v35 }
 0x57e   : >> { %4141 = vmatpush1.bf16.msra.mxu0 %v2398_v34 }
 0x57f   : >> { %4182 = vmatpush1.bf16.msra.mxu1 %v2462_v39  ;;  %4142 = vmatprep.subr.bf16.mxu0 %v2403_v54 }
 0x580   : >> { %4183 = vmatprep.subr.bf16.mxu1 %v2467_v58 }
 0x582   : >> { %4143 = vmatpush1.bf16.msra.mxu0 %v2402_v41 }
 0x583   : >> { %4184 = vmatpush1.bf16.msra.mxu1 %v2466_v16 }
 0x585   : >> { %4145 = vmatmul.mubr.bf16.vlgmr.msra.gmra.mrb[80].mxu0 %v5470_v0 }
 0x586   : >> { %4186 = vmatmul.mubr.bf16.vlgmr.msra.gmra.mrb[80].mxu1 %v5518_v63 }
 0x598   : >> { %v3900_v17 = vpop.f32.mrb[68].mxu0 }
 0x599   : >> { %v3941_v25 = vpop.f32.mrb[68].mxu1  ;;  %v3901_v22 = vadd.f32 %v3900_v17, %v5916_v28  ;;  %v3902_v47 = vpop.f32.mrb[69].mxu0 }
 0x59a   : >> { %v3943_v27 = vpop.f32.mrb[69].mxu1  ;;  %v3903_v3 = vadd.f32 %v3902_v47, %v5918_v7  ;;  %v3904_v49 = vpop.f32.mrb[70].mxu0 }
 0x59b   : >> { %v3945_v60 = vpop.f32.mrb[70].mxu1  ;;  %v3942_v56 = vadd.f32 %v3941_v25, %v3901_v22  ;;  %v3905_v45 = vpop.f32.mrb[71].mxu0 }
 0x59c   : >> { %v3946_v1 = vpop.f32.mrb[71].mxu1  ;;  %v3944_v9 = vadd.f32 %v3943_v27, %v3903_v3 }
 0x5d8   : >> { %v3982_v15 = vpop.f32.mrb[72].mxu0 }
 0x5d9   : >> { %v4023_v21 = vpop.f32.mrb[72].mxu1  ;;  %v3983_v37 = vadd.f32 %v3982_v15, %v3942_v56  ;;  %v3984_v0 = vpop.f32.mrb[73].mxu0 }
 0x5da   : >> { %v4025_v19 = vpop.f32.mrb[73].mxu1  ;;  %v3985_v63 = vadd.f32 %v3984_v0, %v3944_v9  ;;  %v3986_v61 = vpop.f32.mrb[74].mxu0 }
 0x5db   : >> { %v4027_v20 = vpop.f32.mrb[74].mxu1  ;;  %v4024_v11 = vadd.f32 %v4023_v21, %v3983_v37  ;;  %v3987_v28 = vpop.f32.mrb[75].mxu0 }
 0x5dc   : >> { %v4028_v57 = vpop.f32.mrb[75].mxu1  ;;  %v4026_v30 = vadd.f32 %v4025_v19, %v3985_v63 }
 0x618   : >> { %v4064_v42 = vpop.f32.mrb[76].mxu0 }
 0x619   : >> { %v4105_v7 = vpop.f32.mrb[76].mxu1  ;;  %v4065_v6 = vadd.f32 %v4064_v42, %v4024_v11  ;;  %v4066_v33 = vpop.f32.mrb[77].mxu0 }
 0x61a   : >> { %v4107_v55 = vpop.f32.mrb[77].mxu1  ;;  %v4067_v23 = vadd.f32 %v4066_v33, %v4026_v30  ;;  %v4068_v46 = vpop.f32.mrb[78].mxu0 }
 0x61b   : >> { %v4109_v51 = vpop.f32.mrb[78].mxu1  ;;  %v4106_v24 = vadd.f32 %v4105_v7, %v4065_v6  ;;  %v4069_v59 = vpop.f32.mrb[79].mxu0 }
 0x61c   : >> { %v4110_v48 = vpop.f32.mrb[79].mxu1  ;;  %v4108_v26 = vadd.f32 %v4107_v55, %v4067_v23 }
 0x658   : >> { %v4146_v12 = vpop.f32.mrb[80].mxu0 }
 0x659   : >> { %v4187_v50 = vpop.f32.mrb[80].mxu1  ;;  %v4147_v29 = vadd.f32 %v4146_v12, %v4106_v24  ;;  %v4148_v36 = vpop.f32.mrb[81].mxu0 }
 0x65a   : >> { %v4189_v62 = vpop.f32.mrb[81].mxu1  ;;  %v4149_v52 = vadd.f32 %v4148_v36, %v4108_v26  ;;  %v4150_v13 = vpop.f32.mrb[82].mxu0  ;;  %356 = sbr.rel (!%p354_p7) target bundleno = 61 (0x3d), region = 109 }
 0x65b   : >> { %v4191_v43 = vpop.f32.mrb[82].mxu1  ;;  %v4188_v10 = vadd.f32 %v4187_v50, %v4147_v29  ;;  %v4151_v18 = vpop.f32.mrb[83].mxu0 }
 0x65c   : >> { %v4192_v44 = vpop.f32.mrb[83].mxu1  ;;  %v4190_v2 = vadd.f32 %v4189_v62, %v4149_v52 }
 0x65d   : >> { %v4196_v40 = vadd.f32 %v4188_v10, %v2470_v4 }
 0x65e   : >> { %v4197_v5 = vadd.f32 %v4190_v2, %v2471_v14 }
 0x65f   : >> { %4200 = vst [vmem:[#allocation2 + $0x10] sm:$0xff] %v4196_v40 }
 0x660   : >> { %4201 = vst [vmem:[#allocation2 + $0x18] sm:$0xff] %v4197_v5 }
 0x661   : > { %4205 = sbr.rel (%p4594_p5) target bundleno = 1888 (0x760), region = 59  ;;  %v4286_v38 = vld [vmem:[%s6167_s4 + $0x80] sm:$0xff] (!%p4594_p5)  ;;  %v4287_v53 = vld [vmem:[%s6167_s4 + $0x88] sm:$0xff] (!%p4594_p5)  ;;  %v4288_v16 = vld [vmem:[%s6167_s4 + $0x90] sm:$0xff] (!%p4594_p5)  ;;  %v4212_v26 = vlaneseq (!%p4594_p5) }
 0x662   : > { %v4318_v32 = vld [vmem:[%s6167_s4 + $0x180] sm:$0xff] (!%p4594_p5)  ;;  %v4342_v35 = vpack.c.bf16 (!%p4594_p5), %v4287_v53, %v4286_v38  ;;  %v4319_v8 = vld [vmem:[%s6167_s4 + $0x188] sm:$0xff] (!%p4594_p5)  ;;  %v4289_v25 = vld [vmem:[%s6167_s4 + $0x98] sm:$0xff] (!%p4594_p5) }
 0x663   : > { %v4270_v31 = vld [vmem:[%s6167_s4] sm:$0xff] (!%p4594_p5)  ;;  %v4271_v34 = vld [vmem:[%s6167_s4 + $0x8] sm:$0xff] (!%p4594_p5)  ;;  %v4358_v39 = vpack.c.bf16 (!%p4594_p5), %v4319_v8, %v4318_v32  ;;  %v4320_v22 = vld [vmem:[%s6167_s4 + $0x190] sm:$0xff] (!%p4594_p5)  ;;  %v4343_v27 = vpack.c.bf16 (!%p4594_p5), %v4289_v25, %v4288_v16  ;;  %v4213_v2 = vshrl.u32 (!%p4594_p5), %v4212_v26, 7 }
 0x664   : > { %v4334_v54 = vpack.c.bf16 (!%p4594_p5), %v4271_v34, %v4270_v31  ;;  %v4302_v58 = vld [vmem:[%s6167_s4 + $0x100] sm:$0xff] (!%p4594_p5)  ;;  %v4303_v41 = vld [vmem:[%s6167_s4 + $0x108] sm:$0xff] (!%p4594_p5)  ;;  %4602 = vmatprep.subr.bf16.mxu0 (!%p4594_p5), %v4342_v35  ;;  %v4321_v47 = vld [vmem:[%s6167_s4 + $0x198] sm:$0xff] (!%p4594_p5) }
 0x665   : > { %v4350_v17 = vpack.c.bf16 (!%p4594_p5), %v4303_v41, %v4302_v58  ;;  %4624 = vmatprep.subr.bf16.mxu1 (!%p4594_p5), %v4358_v39  ;;  %v4359_v3 = vpack.c.bf16 (!%p4594_p5), %v4321_v47, %v4320_v22  ;;  %v4272_v49 = vld [vmem:[%s6167_s4 + $0x10] sm:$0xff] (!%p4594_p5)  ;;  %v4273_v60 = vld [vmem:[%s6167_s4 + $0x18] sm:$0xff] (!%p4594_p5)  ;;  %v4290_v9 = vld [vmem:[%s6167_s4 + $0xa0] sm:$0xff] (!%p4594_p5)  ;;  %v4226_v25 = vsub.s32 (!%p4594_p5), 3, %v4213_v2  ;;  %v4214_v22 = vsub.s32 (!%p4594_p5), 0, %v4213_v2 }
 0x666   : > { %4603 = vmatpush3.bf16.msra.mxu0 (!%p4594_p5), %v4334_v54  ;;  %v4304_v56 = vld [vmem:[%s6167_s4 + $0x110] sm:$0xff] (!%p4594_p5)  ;;  %v4335_v45 = vpack.c.bf16 (!%p4594_p5), %v4273_v60, %v4272_v49  ;;  %v4305_v1 = vld [vmem:[%s6167_s4 + $0x118] sm:$0xff] (!%p4594_p5)  ;;  %v4291_v15 = vld [vmem:[%s6167_s4 + $0xa8] sm:$0xff] (!%p4594_p5) }
 0x667   : > { %4625 = vmatpush3.bf16.msra.mxu1 (!%p4594_p5), %v4350_v17  ;;  %4604 = vmatprep.subr.bf16.mxu0 (!%p4594_p5), %v4343_v27  ;;  %v4351_v21 = vpack.c.bf16 (!%p4594_p5), %v4305_v1, %v4304_v56  ;;  %v4344_v37 = vpack.c.bf16 (!%p4594_p5), %v4291_v15, %v4290_v9  ;;  %v4322_v0 = vld [vmem:[%s6167_s4 + $0x1a0] sm:$0xff] (!%p4594_p5)  ;;  %v4323_v19 = vld [vmem:[%s6167_s4 + $0x1a8] sm:$0xff] (!%p4594_p5)  ;;  %v4292_v30 = vld [vmem:[%s6167_s4 + $0xb0] sm:$0xff] (!%p4594_p5)  ;;  %v4218_v17 = vsub.s32 (!%p4594_p5), 1, %v4213_v2 }
 0x668   : > { %4626 = vmatprep.subr.bf16.mxu1 %v4359_v3  ;;  %v4274_v63 = vld [vmem:[%s6167_s4 + $0x20] sm:$0xff]  ;;  %v4360_v61 = vpack.c.bf16 %v4323_v19, %v4322_v0  ;;  %v4275_v20 = vld [vmem:[%s6167_s4 + $0x28] sm:$0xff]  ;;  %v4293_v42 = vld [vmem:[%s6167_s4 + $0xb8] sm:$0xff]  ;;  %v4222_v3 = vsub.s32 2, %v4213_v2 }
 0x669   : > { %v4306_v11 = vld [vmem:[%s6167_s4 + $0x120] sm:$0xff]  ;;  %v4307_v28 = vld [vmem:[%s6167_s4 + $0x128] sm:$0xff]  ;;  %v4336_v57 = vpack.c.bf16 %v4275_v20, %v4274_v63  ;;  %v4324_v7 = vld [vmem:[%s6167_s4 + $0x1b0] sm:$0xff]  ;;  %v4345_v33 = vpack.c.bf16 %v4293_v42, %v4292_v30 }
 0x66a   : > { %4605 = vmatpush3.bf16.msra.mxu0 %v4335_v45  ;;  %v4352_v6 = vpack.c.bf16 %v4307_v28, %v4306_v11  ;;  %v4325_v55 = vld [vmem:[%s6167_s4 + $0x1b8] sm:$0xff]  ;;  %v4276_v23 = vld [vmem:[%s6167_s4 + $0x30] sm:$0xff]  ;;  %v4294_v48 = vld [vmem:[%s6167_s4 + $0xc0] sm:$0xff] }
 0x66b   : > { %4627 = vmatpush3.bf16.msra.mxu1 %v4351_v21  ;;  %4606 = vmatprep.subr.bf16.mxu0 %v4344_v37  ;;  %v4277_v46 = vld [vmem:[%s6167_s4 + $0x38] sm:$0xff]  ;;  %v4361_v51 = vpack.c.bf16 %v4325_v55, %v4324_v7  ;;  %v4308_v24 = vld [vmem:[%s6167_s4 + $0x130] sm:$0xff]  ;;  %v4295_v12 = vld [vmem:[%s6167_s4 + $0xc8] sm:$0xff] }
 0x66c   : > { %4628 = vmatprep.subr.bf16.mxu1 %v4360_v61  ;;  %v4309_v59 = vld [vmem:[%s6167_s4 + $0x138] sm:$0xff]  ;;  %v4326_v50 = vld [vmem:[%s6167_s4 + $0x1c0] sm:$0xff]  ;;  %v4327_v29 = vld [vmem:[%s6167_s4 + $0x1c8] sm:$0xff]  ;;  %v4337_v36 = vpack.c.bf16 %v4277_v46, %v4276_v23  ;;  %v4346_v4 = vpack.c.bf16 %v4295_v12, %v4294_v48 }
 0x66d   : > { %v4353_v62 = vpack.c.bf16 %v4309_v59, %v4308_v24  ;;  %v4278_v52 = vld [vmem:[%s6167_s4 + $0x40] sm:$0xff]  ;;  %v4279_v13 = vld [vmem:[%s6167_s4 + $0x48] sm:$0xff]  ;;  %v4362_v10 = vpack.c.bf16 %v4327_v29, %v4326_v50  ;;  %v4296_v18 = vld [vmem:[%s6167_s4 + $0xd0] sm:$0xff] }
 0x66e   : > { %4607 = vmatpush3.bf16.msra.mxu0 %v4336_v57  ;;  %v4310_v43 = vld [vmem:[%s6167_s4 + $0x140] sm:$0xff]  ;;  %v4311_v14 = vld [vmem:[%s6167_s4 + $0x148] sm:$0xff]  ;;  %v4297_v44 = vld [vmem:[%s6167_s4 + $0xd8] sm:$0xff]  ;;  %v4338_v38 = vpack.c.bf16 %v4279_v13, %v4278_v52 }
 0x66f   : > { %4629 = vmatpush3.bf16.msra.mxu1 %v4352_v6  ;;  %4608 = vmatprep.subr.bf16.mxu0 %v4345_v33  ;;  %v4328_v40 = vld [vmem:[%s6167_s4 + $0x1d0] sm:$0xff]  ;;  %v4329_v5 = vld [vmem:[%s6167_s4 + $0x1d8] sm:$0xff]  ;;  %v4354_v35 = vpack.c.bf16 %v4311_v14, %v4310_v43  ;;  %v4347_v8 = vpack.c.bf16 %v4297_v44, %v4296_v18  ;;  %v4298_v39 = vld [vmem:[%s6167_s4 + $0xe0] sm:$0xff] }
 0x670   : > { %4630 = vmatprep.subr.bf16.mxu1 %v4361_v51  ;;  %v4280_v53 = vld [vmem:[%s6167_s4 + $0x50] sm:$0xff]  ;;  %v4281_v32 = vld [vmem:[%s6167_s4 + $0x58] sm:$0xff]  ;;  %v4363_v54 = vpack.c.bf16 %v4329_v5, %v4328_v40  ;;  %v4299_v58 = vld [vmem:[%s6167_s4 + $0xe8] sm:$0xff] }
 0x671   : > { %v4312_v31 = vld [vmem:[%s6167_s4 + $0x150] sm:$0xff]  ;;  %v4313_v34 = vld [vmem:[%s6167_s4 + $0x158] sm:$0xff]  ;;  %v4330_v41 = vld [vmem:[%s6167_s4 + $0x1e0] sm:$0xff]  ;;  %v4339_v49 = vpack.c.bf16 %v4281_v32, %v4280_v53  ;;  %v4348_v9 = vpack.c.bf16 %v4299_v58, %v4298_v39 }
 0x672   : > { %4609 = vmatpush3.bf16.msra.mxu0 %v4337_v36  ;;  %v4331_v16 = vld [vmem:[%s6167_s4 + $0x1e8] sm:$0xff]  ;;  %v4282_v47 = vld [vmem:[%s6167_s4 + $0x60] sm:$0xff]  ;;  %v4300_v45 = vld [vmem:[%s6167_s4 + $0xf0] sm:$0xff]  ;;  %v4355_v1 = vpack.c.bf16 %v4313_v34, %v4312_v31 }
 0x673   : > { %4631 = vmatpush3.bf16.msra.mxu1 %v4353_v62  ;;  %4610 = vmatprep.subr.bf16.mxu0 %v4346_v4  ;;  %v4283_v27 = vld [vmem:[%s6167_s4 + $0x68] sm:$0xff]  ;;  %v4314_v60 = vld [vmem:[%s6167_s4 + $0x160] sm:$0xff]  ;;  %v4364_v15 = vpack.c.bf16 %v4331_v16, %v4330_v41  ;;  %v4301_v21 = vld [vmem:[%s6167_s4 + $0xf8] sm:$0xff] }
 0x674   : > { %4632 = vmatprep.subr.bf16.mxu1 %v4362_v10  ;;  %v4315_v56 = vld [vmem:[%s6167_s4 + $0x168] sm:$0xff]  ;;  %v4210_v0 = vld [vmem:[%s6165_s2] sm:$0xf]  ;;  %v4340_v19 = vpack.c.bf16 %v4283_v27, %v4282_v47  ;;  %v4209_v20 = vld [vmem:[#allocation2 + $0x18] sm:$0xff]  ;;  %v4349_v26 = vpack.c.bf16 %v4301_v21, %v4300_v45 }
 0x675   : > { %v4207_v37 = vld [vmem:[#allocation2 + $0x8] sm:$0xff]  ;;  %v4219_v63 = vrot.slane %v4210_v0, %v4218_v17  ;;  %v4236_v61 = vld [vmem:[%s6166_s3] sm:$0xf]  ;;  %v4227_v11 = vrot.slane %v4210_v0, %v4226_v25  ;;  %v4215_v57 = vrot.slane %v4210_v0, %v4214_v22  ;;  %v4332_v30 = vld [vmem:[%s6167_s4 + $0x1f0] sm:$0xff]  ;;  %v4223_v23 = vrot.slane %v4210_v0, %v4222_v3 }
 0x676   : > { %4611 = vmatpush3.bf16.msra.mxu0 %v4338_v38  ;;  %v4206_v28 = vld [vmem:[#allocation2] sm:$0xff]  ;;  %v4333_v42 = vld [vmem:[%s6167_s4 + $0x1f8] sm:$0xff]  ;;  %v4245_v7 = vrot.slane %v4236_v61, %v4218_v17  ;;  %v4253_v6 = vrot.slane %v4236_v61, %v4226_v25  ;;  %v4241_v33 = vrot.slane %v4236_v61, %v4214_v22  ;;  %v4208_v55 = vld [vmem:[#allocation2 + $0x10] sm:$0xff]  ;;  %v4249_v59 = vrot.slane %v4236_v61, %v4222_v3 }
 0x677   : > { %4633 = vmatpush3.bf16.msra.mxu1 %v4354_v35  ;;  %4612 = vmatprep.subr.bf16.mxu0 %v4347_v8  ;;  %v4233_v46 = vmul.f32 %v4219_v63, %v4207_v37  ;;  %v4235_v51 = vmul.f32 %v4227_v11, %v4209_v20  ;;  %v4232_v24 = vmul.f32 %v4215_v57, %v4206_v28  ;;  %v4284_v12 = vld [vmem:[%s6167_s4 + $0x70] sm:$0xff]  ;;  %v4285_v50 = vld [vmem:[%s6167_s4 + $0x78] sm:$0xff] }
 0x678   : > { %4634 = vmatprep.subr.bf16.mxu1 %v4363_v54  ;;  %v4356_v48 = vpack.c.bf16 %v4315_v56, %v4314_v60  ;;  %v4234_v29 = vmul.f32 %v4223_v23, %v4208_v55  ;;  %v4365_v36 = vpack.c.bf16 %v4333_v42, %v4332_v30  ;;  %v4316_v62 = vld [vmem:[%s6167_s4 + $0x170] sm:$0xff]  ;;  %v4317_v4 = vld [vmem:[%s6167_s4 + $0x178] sm:$0xff]  ;;  %v4341_v14 = vpack.c.bf16 %v4285_v50, %v4284_v12 }
 0x679   : > { %v4259_v52 = vadd.f32 %v4245_v7, %v4233_v46  ;;  %v4261_v13 = vadd.f32 %v4253_v6, %v4235_v51  ;;  %v4258_v43 = vadd.f32 %v4241_v33, %v4232_v24  ;;  %v4357_v40 = vpack.c.bf16 %v4317_v4, %v4316_v62 }
 0x67a   : > { %4613 = vmatpush3.bf16.msra.mxu0 %v4339_v49  ;;  %v4260_v10 = vadd.f32 %v4249_v59, %v4234_v29 }
 0x67b   : > { %4635 = vmatpush3.bf16.msra.mxu1 %v4355_v1  ;;  %4614 = vmatprep.subr.bf16.mxu0 %v4348_v9  ;;  %v4263_v18 = vmax.f32 %v4259_v52, 0.0  ;;  %v4265_v44 = vmax.f32 %v4261_v13, 0.0  ;;  %v4262_v2 = vmax.f32 %v4258_v43, 0.0 }
 0x67c   : > { %4636 = vmatprep.subr.bf16.mxu1 %v4364_v15  ;;  %v4264_v5 = vmax.f32 %v4260_v10, 0.0 }
 0x67d   : > { %v4267_v38 = vpack.c.bf16 %v4263_v18, %v4263_v18  ;;  %v4269_v53 = vpack.c.bf16 %v4265_v44, %v4265_v44  ;;  %v4266_v32 = vpack.c.bf16 %v4262_v2, %v4262_v2 }
 0x67e   : > { %4615 = vmatpush3.bf16.msra.mxu0 %v4340_v19  ;;  %v4268_v35 = vpack.c.bf16 %v4264_v5, %v4264_v5 }
 0x67f   : > { %4637 = vmatpush3.bf16.msra.mxu1 %v4356_v48  ;;  %4616 = vmatprep.subr.bf16.mxu0 %v4349_v26 }
 0x680   : > { %4638 = vmatprep.subr.bf16.mxu1 %v4365_v36  ;;  %4398 = vmatprep.mubr.bf16.mxu0 %v4267_v38 }
 0x681   : > { %4438 = vmatprep.mubr.bf16.mxu1 %v4269_v53 }
 0x682   : > { %4617 = vmatpush3.bf16.msra.mxu0 %v4341_v14 }
 0x683   : > { %4639 = vmatpush3.bf16.msra.mxu1 %v4357_v40 }
 0x685   : > { %4399 = vmatmul.mubr.bf16.vlgmr.msra.gmra.mrb[0].mxu0 %v4266_v32 }
 0x686   : > { %4439 = vmatmul.mubr.bf16.vlgmr.msra.gmra.mrb[0].mxu1 %v4268_v35 }
 0x758   : > { %v4618_v8 = vpop.f32.mrb[0].mxu0 }
 0x759   : > { %v4640_v31 = vpop.f32.mrb[0].mxu1  ;;  %v4619_v34 = vpop.f32.mrb[1].mxu0 }
 0x75a   : > { %v4620_v39 = vadd.f32 %v4619_v34, %v4618_v8  ;;  %v4641_v54 = vpop.f32.mrb[1].mxu1  ;;  %v4621_v58 = vpop.f32.mrb[2].mxu0 }
 0x75b   : > { %v4642_v41 = vadd.f32 %v4641_v54, %v4640_v31  ;;  %v4643_v16 = vpop.f32.mrb[2].mxu1  ;;  %v4622_v17 = vpop.f32.mrb[3].mxu0 }
 0x75c   : > { %v4644_v25 = vpop.f32.mrb[3].mxu1 }
 0x75d   : > { %v4441_v22 = vadd.f32 %v4642_v41, %v4620_v39 }
 0x75f   : > { %4446 = vst [vmem:[%s6168_s5] sm:$0xff] %v4441_v22 }
 0x760 PF: > { %s18_s23 = sadd.s32 1, %s4798_s23   ;;  %s6171_s18 = smov %s4782_s19 }
 0x761   : > { %p15_p6 = scmp.ge.s32.totalorder %s18_s23, 9   ;;  %s6172_s19 = smov %s4786_s20 }
 0x762   : > { %s6173_s20 = smov %s4883_s29  ;;  %s6174_s21 = smov %s4794_s22 }
 0x763   : > { %s6175_s22 = smov %s6177_s25  ;;  %17 = sbr.rel (!%p15_p6) target bundleno = 4 (0x4), region = 120 }
 0x76a   :  { %4466 = vsyncpa [#allocation4], 1 }
 0x76b   :  { %4468 = vsyncpa [#allocation4 + $0x1], 1 }

</bundles_post_ra>
